<compile_context>
chip_gen: v7x
topology: tpu7x:2x2x1
jax: 0.10.0
libtpu: 0.0.40
codegen_flags: <defaults>
</compile_context>

<pallas_src>
import jax
import jax.numpy as jnp
from jax.experimental import pallas as pl
from jax.experimental.pallas import tpu as pltpu


def _elu(y):
    # ELU(alpha=1). Clamp before exp so large positives never produce inf.
    return jnp.where(y > 0.0, y, jnp.exp(jnp.minimum(y, 0.0)) - 1.0)


def _make_fused_kernel(N, T, CH, taps, c_hid1):
    """Fused CNN_BLK forward.

    N, T   : batch / time (tile has NT = N*T rows)
    CH     : hidden width of the multi-scale block (32)
    taps   : temporal kernel sizes of conv1D_block_2/3/4 = (32, 16, 11)
    c_hid1 : cov2d1 output channels (= conv1D_block_1 input channels) = 8
    """
    NT = N * T
    K2, K3, K4 = taps
    # Row offsets inside the concatenated (scale-folded) weight matrix `wcat`.
    O1 = c_hid1            # conv1D_block_1 rows  [0,  O1)
    O2 = O1 + K2 * CH      # conv1D_block_2 rows  [O1, O2)
    O3 = O2 + K3 * CH      # conv1D_block_3 rows  [O2, O3)
    O4 = O3 + K4 * CH      # conv1D_block_4 rows  [O3, O4)

    def tconv(xin, w, b, k):
        # 'same' 1D conv over T with k taps (PyTorch puts the extra pad on the
        # right), realized as ONE im2col contraction (NT, k*CH) @ (k*CH, CH).
        pad_l = (k - 1) // 2
        pad_r = (k - 1) - pad_l
        x3 = xin.reshape(N, T, CH)
        parts = []
        if pad_l:
            parts.append(jnp.zeros((N, pad_l, CH), jnp.float32))
        parts.append(x3)
        if pad_r:
            parts.append(jnp.zeros((N, pad_r, CH), jnp.float32))
        xp = jnp.concatenate(parts, axis=1)                       # (N, T+k-1, CH)
        cols = jnp.concatenate([xp[:, dk:dk + T, :] for dk in range(k)],
                               axis=-1)                           # (N, T, k*CH)
        y = jnp.dot(cols.reshape(NT, k * CH), w,
                    preferred_element_type=jnp.float32)
        return _elu(y + b)

    def kernel(x_ref, w1_ref, b1_ref, wcat_ref, bp_ref, wo_ref, bo_ref, o_ref):
        x = x_ref[...]                                            # (NT, fb*C)
        bp = bp_ref[...]                                          # (4, CH)

        # cov2d1 + bn1_1 + ELU (a 1x1 conv over the flattened num_fb*C channels)
        h = _elu(jnp.dot(x, w1_ref[...], preferred_element_type=jnp.float32)
                 + b1_ref[...])                                   # (NT, 8)

        # conv1D_block_1 (1x1); x1 == x2 == x3 == x4 at inference (dropout = id)
        x1 = _elu(jnp.dot(h, wcat_ref[0:O1, :],
                          preferred_element_type=jnp.float32)
                  + bp[0:1, :])                                   # (NT, 32)

        x2_2 = tconv(x1, wcat_ref[O1:O2, :], bp[1:2, :], K2)      # (1,32) conv
        s12 = x1 + x2_2
        x3_3 = tconv(s12, wcat_ref[O2:O3, :], bp[2:3, :], K3)     # (1,16) conv
        x4_4 = tconv(x1 + x3_3, wcat_ref[O3:O4, :], bp[3:4, :], K4)  # (1,11) conv
        z = s12 + x3_3 + x4_4                                     # (NT, 32)

        # cov2d2 + bn1_2 + ELU, computed transposed so the (only) store is
        # lane-dense: (2C, NT) with NT = 128 lanes fully used.
        yt = jax.lax.dot_general(wo_ref[...], z, (((1,), (1,)), ((), ())),
                                 preferred_element_type=jnp.float32)
        o_ref[...] = _elu(yt + bo_ref[...])

    return kernel


def init_params(key, num_fb, C):
    """Deterministic synthetic parameters in "module" form: each conv+BN stage is
    a tuple (w_flat, scale, shift) with
        w_flat : (k*cin, cout)  im2col-flat conv weight (row index = dk*cin + c)
        scale  : (cout,)        gamma / sqrt(var + eps)        (eval-mode BN)
        shift  : (cout,)        (conv_bias - mean) * scale + beta
    so that  BN(conv(x) + bias) == conv_nobias(x) * scale + shift."""
    eps = 1e-5

    def conv_bn(k_, ksz, cin, cout):
        kw, kb, kg, kbe, km, kv = jax.random.split(k_, 6)
        w = jax.random.normal(kw, (ksz, cin, cout), jnp.float32)
        w = w / jnp.sqrt(jnp.float32(ksz * cin))
        b = 0.1 * jax.random.normal(kb, (cout,), jnp.float32)
        gamma = 1.0 + 0.1 * jax.random.normal(kg, (cout,), jnp.float32)
        beta = 0.1 * jax.random.normal(kbe, (cout,), jnp.float32)
        mean = 0.1 * jax.random.normal(km, (cout,), jnp.float32)
        var = 1.0 + 0.1 * jax.random.uniform(kv, (cout,), jnp.float32)
        scale = gamma / jnp.sqrt(var + eps)
        shift = (b - mean) * scale + beta
        return w.reshape(ksz * cin, cout), scale, shift

    keys = jax.random.split(key, 6)
    return {
        # cov2d1 kernel (C,1), no padding: equivalent to 1x1 over num_fb*C chans
        "conv1": conv_bn(keys[0], 1, num_fb * C, 8),
        "blk1": conv_bn(keys[1], 1, 8, 32),       # conv1D_block_1 (1x1)
        "blk2": conv_bn(keys[2], 32, 32, 32),     # conv1D_block_2 (1,32)
        "blk3": conv_bn(keys[3], 16, 32, 32),     # conv1D_block_3 (1,16)
        "blk4": conv_bn(keys[4], 11, 32, 32),     # conv1D_block_4 (1,11)
        "conv2": conv_bn(keys[5], 1, 32, 2 * C),  # cov2d2 (1x1 -> 2C)
    }


def _pack_params(params):
    """Fold BN scale into the conv weights and pack weights/shifts so the kernel
    takes 7 refs instead of 19 (pure layout plumbing, done outside the kernel)."""
    def fold(name):
        w, s, b = params[name]                       # (k*cin, cout), (cout,), (cout,)
        return w * s.reshape(1, -1), b.reshape(1, -1)

    w1, b1 = fold("conv1")                           # (fb*C, 8), (1, 8)
    wa, ba = fold("blk1")                            # (8,   32), (1, 32)
    w2, b2 = fold("blk2")                            # (1024,32)
    w3, b3 = fold("blk3")                            # (512, 32)
    w4, b4 = fold("blk4")                            # (352, 32)
    wcat = jnp.concatenate([wa, w2, w3, w4], axis=0)     # (1896, 32), 8-row aligned
    bpack = jnp.concatenate([ba, b2, b3, b4], axis=0)    # (4, 32)

    wo, so, bo = params["conv2"]                     # (32, 2C), (2C,), (2C,)
    wo_t = (wo * so.reshape(1, -1)).T                # (2C, 32) scale-folded, transposed
    bo_col = bo.reshape(-1, 1)                       # (2C, 1)
    return w1, b1, wcat, bpack, wo_t, bo_col


def cnn_blk_forward(x_nchw, params):
    N, num_fb, C, T = x_nchw.shape
    CH = 32
    taps = (32, 16, 11)
    NT = N * T
    Cout = 2 * C
    c_hid1 = params["conv1"][0].shape[1]             # 8

    w1, b1, wcat, bpack, wo_t, bo = _pack_params(params)

    # NCHW -> (N*T, num_fb*C): cov2d1's (C,1) kernel with no padding collapses H,
    # i.e. a 1x1 conv over the flattened (num_fb*C) channels at each (n, t).
    x2d = jnp.transpose(x_nchw, (0, 3, 1, 2)).reshape(NT, num_fb * C)

    args = (x2d, w1, b1, wcat, bpack, wo_t, bo)
    in_specs = [pl.BlockSpec(a.shape, lambda i: (0, 0)) for a in args]

    y_t = pl.pallas_call(
        _make_fused_kernel(N, T, CH, taps, c_hid1),
        out_shape=jax.ShapeDtypeStruct((Cout, NT), jnp.float32),
        grid_spec=pltpu.PrefetchScalarGridSpec(
            num_scalar_prefetch=0,
            grid=(1,),                       # whole problem fits in one VMEM tile
            in_specs=in_specs,
            out_specs=pl.BlockSpec((Cout, NT), lambda i: (0, 0)),
        ),
        compiler_params=pltpu.CompilerParams(
            dimension_semantics=("parallel",)),
    )(*args)

    # (2C, N*T) -> (N, 2C, 1, T)   (pure layout plumbing outside the kernel)
    return jnp.transpose(y_t.reshape(Cout, N, T), (1, 0, 2))[:, :, None, :]


def cnn_blk_reference(x_nchw, params):
    """Pure-JAX reference with identical inference semantics (validation only)."""
    N, num_fb, C, T = x_nchw.shape

    def conv_bn_elu(x_ntc, name, k):
        w, s, b = params[name]
        cout = w.shape[1]
        cin = w.shape[0] // k
        w3 = w.reshape(k, cin, cout)
        pad_l = (k - 1) // 2
        pad_r = (k - 1) - pad_l
        xp = jnp.pad(x_ntc, ((0, 0), (pad_l, pad_r), (0, 0)))
        y = jnp.zeros(x_ntc.shape[:2] + (cout,), jnp.float32)
        for dk in range(k):
            y = y + jnp.einsum("ntc,co->nto", xp[:, dk:dk + T, :], w3[dk],
                               precision=jax.lax.Precision.HIGHEST)
        return _elu(y * s.reshape(1, 1, -1) + b.reshape(1, 1, -1))

    x = jnp.transpose(x_nchw, (0, 3, 1, 2)).reshape(N, T, num_fb * C)
    h = conv_bn_elu(x, "conv1", 1)
    x1 = conv_bn_elu(h, "blk1", 1)          # x1 == x2 == x3 == x4 (dropout = id)
    x2_2 = conv_bn_elu(x1, "blk2", 32)
    x3_3 = conv_bn_elu(x1 + x2_2, "blk3", 16)
    x4_4 = conv_bn_elu(x1 + x3_3, "blk4", 11)
    z = x1 + x2_2 + x3_3 + x4_4
    y = conv_bn_elu(z, "conv2", 1)          # (N, T, 2C)
    return jnp.transpose(y, (0, 2, 1))[:, :, None, :]


if __name__ == "__main__":
    key = jax.random.PRNGKey(0)
    k_x, k_p = jax.random.split(key)
    # C must be 9 so cov2d2's 2*C = 18 output channels match BatchNorm2d(18);
    # N*T = 128 rows gives a single lane/sublane-friendly VMEM tile.
    N, num_fb, C, T = 2, 3, 9, 64
    x = jax.random.normal(k_x, (N, num_fb, C, T), jnp.float32)
    params = init_params(k_p, num_fb, C)

    fwd = jax.jit(cnn_blk_forward)
    y = fwd(x, params)
    jax.block_until_ready(y)

    assert y.shape == (N, 2 * C, 1, T) and y.dtype == jnp.float32
    assert bool(jnp.all(jnp.isfinite(y)))

    # Validate against a pure-JAX reference with the same inference semantics.
    y_ref = jax.jit(cnn_blk_reference)(x, params)
    max_err = float(jnp.max(jnp.abs(y - y_ref)))
    assert max_err < 2e-3, f"kernel/reference mismatch: max abs err = {max_err}"

    print("KERNEL_OK")
</pallas_src>

<mosaic_0001>
module attributes {stable_mosaic.version = 11 : i64} {
  func.func @kernel(%arg0: i32, %arg1: memref<128x27xf32, #tpu.memory_space<vmem>>, %arg2: memref<27x8xf32, #tpu.memory_space<vmem>>, %arg3: memref<1x8xf32, #tpu.memory_space<vmem>>, %arg4: memref<1896x32xf32, #tpu.memory_space<vmem>>, %arg5: memref<4x32xf32, #tpu.memory_space<vmem>>, %arg6: memref<18x32xf32, #tpu.memory_space<vmem>>, %arg7: memref<18x1xf32, #tpu.memory_space<vmem>>, %arg8: memref<18x128xf32, #tpu.memory_space<vmem>>) attributes {dimension_semantics = [#tpu.dimension_semantics<parallel>], iteration_bounds = array<i64: 1>, scalar_prefetch = 0 : i64, scratch_operands = 0 : i64, tpu.core_type = #tpu.core_type<tc>, window_params = [{pipeline_mode = #tpu.pipeline_mode<synchronous>, transform_indices = @transform_0, window_bounds = array<i64: 128, 27>}, {pipeline_mode = #tpu.pipeline_mode<synchronous>, transform_indices = @transform_1, window_bounds = array<i64: 27, 8>}, {pipeline_mode = #tpu.pipeline_mode<synchronous>, transform_indices = @transform_2, window_bounds = array<i64: 1, 8>}, {pipeline_mode = #tpu.pipeline_mode<synchronous>, transform_indices = @transform_3, window_bounds = array<i64: 1896, 32>}, {pipeline_mode = #tpu.pipeline_mode<synchronous>, transform_indices = @transform_4, window_bounds = array<i64: 4, 32>}, {pipeline_mode = #tpu.pipeline_mode<synchronous>, transform_indices = @transform_5, window_bounds = array<i64: 18, 32>}, {pipeline_mode = #tpu.pipeline_mode<synchronous>, transform_indices = @transform_6, window_bounds = array<i64: 18, 1>}, {pipeline_mode = #tpu.pipeline_mode<synchronous>, transform_indices = @transform_7, window_bounds = array<i64: 18, 128>}]} {
    %c0 = arith.constant 0 : index
    %c0_0 = arith.constant 0 : index
    %0 = vector.load %arg1[%c0, %c0_0] : memref<128x27xf32, #tpu.memory_space<vmem>>, vector<128x27xf32>
    %c0_1 = arith.constant 0 : index
    %c0_2 = arith.constant 0 : index
    %1 = vector.load %arg5[%c0_1, %c0_2] : memref<4x32xf32, #tpu.memory_space<vmem>>, vector<4x32xf32>
    %c0_3 = arith.constant 0 : index
    %c0_4 = arith.constant 0 : index
    %2 = vector.load %arg2[%c0_3, %c0_4] : memref<27x8xf32, #tpu.memory_space<vmem>>, vector<27x8xf32>
    %cst = arith.constant dense<0.000000e+00> : vector<128x8xf32>
    %3 = tpu.matmul %0, %2, %cst {dimension_numbers = #tpu.dot_dimension_numbers<[1], [0], [0], [1], [0, 0, 1, 1], [], []>} : vector<128x27xf32>, vector<27x8xf32>, vector<128x8xf32> -> vector<128x8xf32>
    %c0_5 = arith.constant 0 : index
    %c0_6 = arith.constant 0 : index
    %4 = vector.load %arg3[%c0_5, %c0_6] : memref<1x8xf32, #tpu.memory_space<vmem>>, vector<1x8xf32>
    %5 = vector.broadcast %4 : vector<1x8xf32> to vector<128x8xf32>
    %6 = arith.addf %3, %5 : vector<128x8xf32>
    %cst_7 = arith.constant 0.000000e+00 : f32
    %7 = vector.broadcast %cst_7 : f32 to vector<128x8xf32>
    %8 = arith.cmpf ogt, %6, %7 : vector<128x8xf32>
    %cst_8 = arith.constant 0.000000e+00 : f32
    %9 = vector.broadcast %cst_8 : f32 to vector<128x8xf32>
    %10 = arith.minimumf %6, %9 : vector<128x8xf32>
    %11 = math.exp %10 : vector<128x8xf32>
    %cst_9 = arith.constant 1.000000e+00 : f32
    %12 = vector.broadcast %cst_9 : f32 to vector<128x8xf32>
    %13 = arith.subf %11, %12 : vector<128x8xf32>
    %14 = arith.select %8, %6, %13 : vector<128x8xi1>, vector<128x8xf32>
    %c0_10 = arith.constant 0 : index
    %c0_11 = arith.constant 0 : index
    %15 = vector.load %arg4[%c0_10, %c0_11] : memref<1896x32xf32, #tpu.memory_space<vmem>>, vector<8x32xf32>
    %cst_12 = arith.constant dense<0.000000e+00> : vector<128x32xf32>
    %16 = tpu.matmul %14, %15, %cst_12 {dimension_numbers = #tpu.dot_dimension_numbers<[1], [0], [0], [1], [0, 0, 1, 1], [], []>} : vector<128x8xf32>, vector<8x32xf32>, vector<128x32xf32> -> vector<128x32xf32>
    %17 = vector.extract_strided_slice %1 {offsets = [0, 0], sizes = [1, 32], strides = [1, 1]} : vector<4x32xf32> to vector<1x32xf32>
    %18 = vector.broadcast %17 : vector<1x32xf32> to vector<128x32xf32>
    %19 = arith.addf %16, %18 : vector<128x32xf32>
    %cst_13 = arith.constant 0.000000e+00 : f32
    %20 = vector.broadcast %cst_13 : f32 to vector<128x32xf32>
    %21 = arith.cmpf ogt, %19, %20 : vector<128x32xf32>
    %cst_14 = arith.constant 0.000000e+00 : f32
    %22 = vector.broadcast %cst_14 : f32 to vector<128x32xf32>
    %23 = arith.minimumf %19, %22 : vector<128x32xf32>
    %24 = math.exp %23 : vector<128x32xf32>
    %cst_15 = arith.constant 1.000000e+00 : f32
    %25 = vector.broadcast %cst_15 : f32 to vector<128x32xf32>
    %26 = arith.subf %24, %25 : vector<128x32xf32>
    %27 = arith.select %21, %19, %26 : vector<128x32xi1>, vector<128x32xf32>
    %c8 = arith.constant 8 : index
    %c0_16 = arith.constant 0 : index
    %28 = vector.load %arg4[%c8, %c0_16] : memref<1896x32xf32, #tpu.memory_space<vmem>>, vector<1024x32xf32>
    %29 = vector.extract_strided_slice %1 {offsets = [1, 0], sizes = [1, 32], strides = [1, 1]} : vector<4x32xf32> to vector<1x32xf32>
    %30 = vector.shape_cast %27 : vector<128x32xf32> to vector<2x64x32xf32>
    %cst_17 = arith.constant 0.000000e+00 : f32
    %31 = vector.broadcast %cst_17 : f32 to vector<2x15x32xf32>
    %cst_18 = arith.constant 0.000000e+00 : f32
    %32 = vector.broadcast %cst_18 : f32 to vector<2x16x32xf32>
    %33 = tpu.concatenate %31, %30, %32 in 1 : vector<2x15x32xf32>, vector<2x64x32xf32>, vector<2x16x32xf32> -> vector<2x95x32xf32>
    %34 = vector.extract_strided_slice %33 {offsets = [0, 0, 0], sizes = [2, 64, 32], strides = [1, 1, 1]} : vector<2x95x32xf32> to vector<2x64x32xf32>
    %35 = vector.extract_strided_slice %33 {offsets = [0, 1, 0], sizes = [2, 64, 32], strides = [1, 1, 1]} : vector<2x95x32xf32> to vector<2x64x32xf32>
    %36 = vector.extract_strided_slice %33 {offsets = [0, 2, 0], sizes = [2, 64, 32], strides = [1, 1, 1]} : vector<2x95x32xf32> to vector<2x64x32xf32>
    %37 = vector.extract_strided_slice %33 {offsets = [0, 3, 0], sizes = [2, 64, 32], strides = [1, 1, 1]} : vector<2x95x32xf32> to vector<2x64x32xf32>
    %38 = vector.extract_strided_slice %33 {offsets = [0, 4, 0], sizes = [2, 64, 32], strides = [1, 1, 1]} : vector<2x95x32xf32> to vector<2x64x32xf32>
    %39 = vector.extract_strided_slice %33 {offsets = [0, 5, 0], sizes = [2, 64, 32], strides = [1, 1, 1]} : vector<2x95x32xf32> to vector<2x64x32xf32>
    %40 = vector.extract_strided_slice %33 {offsets = [0, 6, 0], sizes = [2, 64, 32], strides = [1, 1, 1]} : vector<2x95x32xf32> to vector<2x64x32xf32>
    %41 = vector.extract_strided_slice %33 {offsets = [0, 7, 0], sizes = [2, 64, 32], strides = [1, 1, 1]} : vector<2x95x32xf32> to vector<2x64x32xf32>
    %42 = vector.extract_strided_slice %33 {offsets = [0, 8, 0], sizes = [2, 64, 32], strides = [1, 1, 1]} : vector<2x95x32xf32> to vector<2x64x32xf32>
    %43 = vector.extract_strided_slice %33 {offsets = [0, 9, 0], sizes = [2, 64, 32], strides = [1, 1, 1]} : vector<2x95x32xf32> to vector<2x64x32xf32>
    %44 = vector.extract_strided_slice %33 {offsets = [0, 10, 0], sizes = [2, 64, 32], strides = [1, 1, 1]} : vector<2x95x32xf32> to vector<2x64x32xf32>
    %45 = vector.extract_strided_slice %33 {offsets = [0, 11, 0], sizes = [2, 64, 32], strides = [1, 1, 1]} : vector<2x95x32xf32> to vector<2x64x32xf32>
    %46 = vector.extract_strided_slice %33 {offsets = [0, 12, 0], sizes = [2, 64, 32], strides = [1, 1, 1]} : vector<2x95x32xf32> to vector<2x64x32xf32>
    %47 = vector.extract_strided_slice %33 {offsets = [0, 13, 0], sizes = [2, 64, 32], strides = [1, 1, 1]} : vector<2x95x32xf32> to vector<2x64x32xf32>
    %48 = vector.extract_strided_slice %33 {offsets = [0, 14, 0], sizes = [2, 64, 32], strides = [1, 1, 1]} : vector<2x95x32xf32> to vector<2x64x32xf32>
    %49 = vector.extract_strided_slice %33 {offsets = [0, 15, 0], sizes = [2, 64, 32], strides = [1, 1, 1]} : vector<2x95x32xf32> to vector<2x64x32xf32>
    %50 = vector.extract_strided_slice %33 {offsets = [0, 16, 0], sizes = [2, 64, 32], strides = [1, 1, 1]} : vector<2x95x32xf32> to vector<2x64x32xf32>
    %51 = vector.extract_strided_slice %33 {offsets = [0, 17, 0], sizes = [2, 64, 32], strides = [1, 1, 1]} : vector<2x95x32xf32> to vector<2x64x32xf32>
    %52 = vector.extract_strided_slice %33 {offsets = [0, 18, 0], sizes = [2, 64, 32], strides = [1, 1, 1]} : vector<2x95x32xf32> to vector<2x64x32xf32>
    %53 = vector.extract_strided_slice %33 {offsets = [0, 19, 0], sizes = [2, 64, 32], strides = [1, 1, 1]} : vector<2x95x32xf32> to vector<2x64x32xf32>
    %54 = vector.extract_strided_slice %33 {offsets = [0, 20, 0], sizes = [2, 64, 32], strides = [1, 1, 1]} : vector<2x95x32xf32> to vector<2x64x32xf32>
    %55 = vector.extract_strided_slice %33 {offsets = [0, 21, 0], sizes = [2, 64, 32], strides = [1, 1, 1]} : vector<2x95x32xf32> to vector<2x64x32xf32>
    %56 = vector.extract_strided_slice %33 {offsets = [0, 22, 0], sizes = [2, 64, 32], strides = [1, 1, 1]} : vector<2x95x32xf32> to vector<2x64x32xf32>
    %57 = vector.extract_strided_slice %33 {offsets = [0, 23, 0], sizes = [2, 64, 32], strides = [1, 1, 1]} : vector<2x95x32xf32> to vector<2x64x32xf32>
    %58 = vector.extract_strided_slice %33 {offsets = [0, 24, 0], sizes = [2, 64, 32], strides = [1, 1, 1]} : vector<2x95x32xf32> to vector<2x64x32xf32>
    %59 = vector.extract_strided_slice %33 {offsets = [0, 25, 0], sizes = [2, 64, 32], strides = [1, 1, 1]} : vector<2x95x32xf32> to vector<2x64x32xf32>
    %60 = vector.extract_strided_slice %33 {offsets = [0, 26, 0], sizes = [2, 64, 32], strides = [1, 1, 1]} : vector<2x95x32xf32> to vector<2x64x32xf32>
    %61 = vector.extract_strided_slice %33 {offsets = [0, 27, 0], sizes = [2, 64, 32], strides = [1, 1, 1]} : vector<2x95x32xf32> to vector<2x64x32xf32>
    %62 = vector.extract_strided_slice %33 {offsets = [0, 28, 0], sizes = [2, 64, 32], strides = [1, 1, 1]} : vector<2x95x32xf32> to vector<2x64x32xf32>
    %63 = vector.extract_strided_slice %33 {offsets = [0, 29, 0], sizes = [2, 64, 32], strides = [1, 1, 1]} : vector<2x95x32xf32> to vector<2x64x32xf32>
    %64 = vector.extract_strided_slice %33 {offsets = [0, 30, 0], sizes = [2, 64, 32], strides = [1, 1, 1]} : vector<2x95x32xf32> to vector<2x64x32xf32>
    %65 = vector.extract_strided_slice %33 {offsets = [0, 31, 0], sizes = [2, 64, 32], strides = [1, 1, 1]} : vector<2x95x32xf32> to vector<2x64x32xf32>
    %66 = tpu.concatenate %34, %35, %36, %37, %38, %39, %40, %41, %42, %43, %44, %45, %46, %47, %48, %49 in 2 : vector<2x64x32xf32>, vector<2x64x32xf32>, vector<2x64x32xf32>, vector<2x64x32xf32>, vector<2x64x32xf32>, vector<2x64x32xf32>, vector<2x64x32xf32>, vector<2x64x32xf32>, vector<2x64x32xf32>, vector<2x64x32xf32>, vector<2x64x32xf32>, vector<2x64x32xf32>, vector<2x64x32xf32>, vector<2x64x32xf32>, vector<2x64x32xf32>, vector<2x64x32xf32> -> vector<2x64x512xf32>
    %67 = tpu.concatenate %50, %51, %52, %53, %54, %55, %56, %57, %58, %59, %60, %61, %62, %63, %64, %65 in 2 : vector<2x64x32xf32>, vector<2x64x32xf32>, vector<2x64x32xf32>, vector<2x64x32xf32>, vector<2x64x32xf32>, vector<2x64x32xf32>, vector<2x64x32xf32>, vector<2x64x32xf32>, vector<2x64x32xf32>, vector<2x64x32xf32>, vector<2x64x32xf32>, vector<2x64x32xf32>, vector<2x64x32xf32>, vector<2x64x32xf32>, vector<2x64x32xf32>, vector<2x64x32xf32> -> vector<2x64x512xf32>
    %68 = tpu.concatenate %66, %67 in 2 : vector<2x64x512xf32>, vector<2x64x512xf32> -> vector<2x64x1024xf32>
    %69 = vector.shape_cast %68 : vector<2x64x1024xf32> to vector<128x1024xf32>
    %cst_19 = arith.constant dense<0.000000e+00> : vector<128x32xf32>
    %70 = tpu.matmul %69, %28, %cst_19 {dimension_numbers = #tpu.dot_dimension_numbers<[1], [0], [0], [1], [0, 0, 1, 1], [], []>} : vector<128x1024xf32>, vector<1024x32xf32>, vector<128x32xf32> -> vector<128x32xf32>
    %71 = vector.broadcast %29 : vector<1x32xf32> to vector<128x32xf32>
    %72 = arith.addf %70, %71 : vector<128x32xf32>
    %cst_20 = arith.constant 0.000000e+00 : f32
    %73 = vector.broadcast %cst_20 : f32 to vector<128x32xf32>
    %74 = arith.cmpf ogt, %72, %73 : vector<128x32xf32>
    %cst_21 = arith.constant 0.000000e+00 : f32
    %75 = vector.broadcast %cst_21 : f32 to vector<128x32xf32>
    %76 = arith.minimumf %72, %75 : vector<128x32xf32>
    %77 = math.exp %76 : vector<128x32xf32>
    %cst_22 = arith.constant 1.000000e+00 : f32
    %78 = vector.broadcast %cst_22 : f32 to vector<128x32xf32>
    %79 = arith.subf %77, %78 : vector<128x32xf32>
    %80 = arith.select %74, %72, %79 : vector<128x32xi1>, vector<128x32xf32>
    %81 = arith.addf %27, %80 : vector<128x32xf32>
    %c1032 = arith.constant 1032 : index
    %c0_23 = arith.constant 0 : index
    %82 = vector.load %arg4[%c1032, %c0_23] : memref<1896x32xf32, #tpu.memory_space<vmem>>, vector<512x32xf32>
    %83 = vector.extract_strided_slice %1 {offsets = [2, 0], sizes = [1, 32], strides = [1, 1]} : vector<4x32xf32> to vector<1x32xf32>
    %84 = vector.shape_cast %81 : vector<128x32xf32> to vector<2x64x32xf32>
    %cst_24 = arith.constant 0.000000e+00 : f32
    %85 = vector.broadcast %cst_24 : f32 to vector<2x7x32xf32>
    %cst_25 = arith.constant 0.000000e+00 : f32
    %86 = vector.broadcast %cst_25 : f32 to vector<2x8x32xf32>
    %87 = tpu.concatenate %85, %84, %86 in 1 : vector<2x7x32xf32>, vector<2x64x32xf32>, vector<2x8x32xf32> -> vector<2x79x32xf32>
    %88 = vector.extract_strided_slice %87 {offsets = [0, 0, 0], sizes = [2, 64, 32], strides = [1, 1, 1]} : vector<2x79x32xf32> to vector<2x64x32xf32>
    %89 = vector.extract_strided_slice %87 {offsets = [0, 1, 0], sizes = [2, 64, 32], strides = [1, 1, 1]} : vector<2x79x32xf32> to vector<2x64x32xf32>
    %90 = vector.extract_strided_slice %87 {offsets = [0, 2, 0], sizes = [2, 64, 32], strides = [1, 1, 1]} : vector<2x79x32xf32> to vector<2x64x32xf32>
    %91 = vector.extract_strided_slice %87 {offsets = [0, 3, 0], sizes = [2, 64, 32], strides = [1, 1, 1]} : vector<2x79x32xf32> to vector<2x64x32xf32>
    %92 = vector.extract_strided_slice %87 {offsets = [0, 4, 0], sizes = [2, 64, 32], strides = [1, 1, 1]} : vector<2x79x32xf32> to vector<2x64x32xf32>
    %93 = vector.extract_strided_slice %87 {offsets = [0, 5, 0], sizes = [2, 64, 32], strides = [1, 1, 1]} : vector<2x79x32xf32> to vector<2x64x32xf32>
    %94 = vector.extract_strided_slice %87 {offsets = [0, 6, 0], sizes = [2, 64, 32], strides = [1, 1, 1]} : vector<2x79x32xf32> to vector<2x64x32xf32>
    %95 = vector.extract_strided_slice %87 {offsets = [0, 7, 0], sizes = [2, 64, 32], strides = [1, 1, 1]} : vector<2x79x32xf32> to vector<2x64x32xf32>
    %96 = vector.extract_strided_slice %87 {offsets = [0, 8, 0], sizes = [2, 64, 32], strides = [1, 1, 1]} : vector<2x79x32xf32> to vector<2x64x32xf32>
    %97 = vector.extract_strided_slice %87 {offsets = [0, 9, 0], sizes = [2, 64, 32], strides = [1, 1, 1]} : vector<2x79x32xf32> to vector<2x64x32xf32>
    %98 = vector.extract_strided_slice %87 {offsets = [0, 10, 0], sizes = [2, 64, 32], strides = [1, 1, 1]} : vector<2x79x32xf32> to vector<2x64x32xf32>
    %99 = vector.extract_strided_slice %87 {offsets = [0, 11, 0], sizes = [2, 64, 32], strides = [1, 1, 1]} : vector<2x79x32xf32> to vector<2x64x32xf32>
    %100 = vector.extract_strided_slice %87 {offsets = [0, 12, 0], sizes = [2, 64, 32], strides = [1, 1, 1]} : vector<2x79x32xf32> to vector<2x64x32xf32>
    %101 = vector.extract_strided_slice %87 {offsets = [0, 13, 0], sizes = [2, 64, 32], strides = [1, 1, 1]} : vector<2x79x32xf32> to vector<2x64x32xf32>
    %102 = vector.extract_strided_slice %87 {offsets = [0, 14, 0], sizes = [2, 64, 32], strides = [1, 1, 1]} : vector<2x79x32xf32> to vector<2x64x32xf32>
    %103 = vector.extract_strided_slice %87 {offsets = [0, 15, 0], sizes = [2, 64, 32], strides = [1, 1, 1]} : vector<2x79x32xf32> to vector<2x64x32xf32>
    %104 = tpu.concatenate %88, %89, %90, %91, %92, %93, %94, %95, %96, %97, %98, %99, %100, %101, %102, %103 in 2 : vector<2x64x32xf32>, vector<2x64x32xf32>, vector<2x64x32xf32>, vector<2x64x32xf32>, vector<2x64x32xf32>, vector<2x64x32xf32>, vector<2x64x32xf32>, vector<2x64x32xf32>, vector<2x64x32xf32>, vector<2x64x32xf32>, vector<2x64x32xf32>, vector<2x64x32xf32>, vector<2x64x32xf32>, vector<2x64x32xf32>, vector<2x64x32xf32>, vector<2x64x32xf32> -> vector<2x64x512xf32>
    %105 = vector.shape_cast %104 : vector<2x64x512xf32> to vector<128x512xf32>
    %cst_26 = arith.constant dense<0.000000e+00> : vector<128x32xf32>
    %106 = tpu.matmul %105, %82, %cst_26 {dimension_numbers = #tpu.dot_dimension_numbers<[1], [0], [0], [1], [0, 0, 1, 1], [], []>} : vector<128x512xf32>, vector<512x32xf32>, vector<128x32xf32> -> vector<128x32xf32>
    %107 = vector.broadcast %83 : vector<1x32xf32> to vector<128x32xf32>
    %108 = arith.addf %106, %107 : vector<128x32xf32>
    %cst_27 = arith.constant 0.000000e+00 : f32
    %109 = vector.broadcast %cst_27 : f32 to vector<128x32xf32>
    %110 = arith.cmpf ogt, %108, %109 : vector<128x32xf32>
    %cst_28 = arith.constant 0.000000e+00 : f32
    %111 = vector.broadcast %cst_28 : f32 to vector<128x32xf32>
    %112 = arith.minimumf %108, %111 : vector<128x32xf32>
    %113 = math.exp %112 : vector<128x32xf32>
    %cst_29 = arith.constant 1.000000e+00 : f32
    %114 = vector.broadcast %cst_29 : f32 to vector<128x32xf32>
    %115 = arith.subf %113, %114 : vector<128x32xf32>
    %116 = arith.select %110, %108, %115 : vector<128x32xi1>, vector<128x32xf32>
    %117 = arith.addf %27, %116 : vector<128x32xf32>
    %c1544 = arith.constant 1544 : index
    %c0_30 = arith.constant 0 : index
    %118 = vector.load %arg4[%c1544, %c0_30] : memref<1896x32xf32, #tpu.memory_space<vmem>>, vector<352x32xf32>
    %119 = vector.extract_strided_slice %1 {offsets = [3, 0], sizes = [1, 32], strides = [1, 1]} : vector<4x32xf32> to vector<1x32xf32>
    %120 = vector.shape_cast %117 : vector<128x32xf32> to vector<2x64x32xf32>
    %cst_31 = arith.constant 0.000000e+00 : f32
    %121 = vector.broadcast %cst_31 : f32 to vector<2x5x32xf32>
    %cst_32 = arith.constant 0.000000e+00 : f32
    %122 = vector.broadcast %cst_32 : f32 to vector<2x5x32xf32>
    %123 = tpu.concatenate %121, %120, %122 in 1 : vector<2x5x32xf32>, vector<2x64x32xf32>, vector<2x5x32xf32> -> vector<2x74x32xf32>
    %124 = vector.extract_strided_slice %123 {offsets = [0, 0, 0], sizes = [2, 64, 32], strides = [1, 1, 1]} : vector<2x74x32xf32> to vector<2x64x32xf32>
    %125 = vector.extract_strided_slice %123 {offsets = [0, 1, 0], sizes = [2, 64, 32], strides = [1, 1, 1]} : vector<2x74x32xf32> to vector<2x64x32xf32>
    %126 = vector.extract_strided_slice %123 {offsets = [0, 2, 0], sizes = [2, 64, 32], strides = [1, 1, 1]} : vector<2x74x32xf32> to vector<2x64x32xf32>
    %127 = vector.extract_strided_slice %123 {offsets = [0, 3, 0], sizes = [2, 64, 32], strides = [1, 1, 1]} : vector<2x74x32xf32> to vector<2x64x32xf32>
    %128 = vector.extract_strided_slice %123 {offsets = [0, 4, 0], sizes = [2, 64, 32], strides = [1, 1, 1]} : vector<2x74x32xf32> to vector<2x64x32xf32>
    %129 = vector.extract_strided_slice %123 {offsets = [0, 5, 0], sizes = [2, 64, 32], strides = [1, 1, 1]} : vector<2x74x32xf32> to vector<2x64x32xf32>
    %130 = vector.extract_strided_slice %123 {offsets = [0, 6, 0], sizes = [2, 64, 32], strides = [1, 1, 1]} : vector<2x74x32xf32> to vector<2x64x32xf32>
    %131 = vector.extract_strided_slice %123 {offsets = [0, 7, 0], sizes = [2, 64, 32], strides = [1, 1, 1]} : vector<2x74x32xf32> to vector<2x64x32xf32>
    %132 = vector.extract_strided_slice %123 {offsets = [0, 8, 0], sizes = [2, 64, 32], strides = [1, 1, 1]} : vector<2x74x32xf32> to vector<2x64x32xf32>
    %133 = vector.extract_strided_slice %123 {offsets = [0, 9, 0], sizes = [2, 64, 32], strides = [1, 1, 1]} : vector<2x74x32xf32> to vector<2x64x32xf32>
    %134 = vector.extract_strided_slice %123 {offsets = [0, 10, 0], sizes = [2, 64, 32], strides = [1, 1, 1]} : vector<2x74x32xf32> to vector<2x64x32xf32>
    %135 = tpu.concatenate %124, %125, %126, %127, %128, %129, %130, %131, %132, %133, %134 in 2 : vector<2x64x32xf32>, vector<2x64x32xf32>, vector<2x64x32xf32>, vector<2x64x32xf32>, vector<2x64x32xf32>, vector<2x64x32xf32>, vector<2x64x32xf32>, vector<2x64x32xf32>, vector<2x64x32xf32>, vector<2x64x32xf32>, vector<2x64x32xf32> -> vector<2x64x352xf32>
    %136 = vector.shape_cast %135 : vector<2x64x352xf32> to vector<128x352xf32>
    %cst_33 = arith.constant dense<0.000000e+00> : vector<128x32xf32>
    %137 = tpu.matmul %136, %118, %cst_33 {dimension_numbers = #tpu.dot_dimension_numbers<[1], [0], [0], [1], [0, 0, 1, 1], [], []>} : vector<128x352xf32>, vector<352x32xf32>, vector<128x32xf32> -> vector<128x32xf32>
    %138 = vector.broadcast %119 : vector<1x32xf32> to vector<128x32xf32>
    %139 = arith.addf %137, %138 : vector<128x32xf32>
    %cst_34 = arith.constant 0.000000e+00 : f32
    %140 = vector.broadcast %cst_34 : f32 to vector<128x32xf32>
    %141 = arith.cmpf ogt, %139, %140 : vector<128x32xf32>
    %cst_35 = arith.constant 0.000000e+00 : f32
    %142 = vector.broadcast %cst_35 : f32 to vector<128x32xf32>
    %143 = arith.minimumf %139, %142 : vector<128x32xf32>
    %144 = math.exp %143 : vector<128x32xf32>
    %cst_36 = arith.constant 1.000000e+00 : f32
    %145 = vector.broadcast %cst_36 : f32 to vector<128x32xf32>
    %146 = arith.subf %144, %145 : vector<128x32xf32>
    %147 = arith.select %141, %139, %146 : vector<128x32xi1>, vector<128x32xf32>
    %148 = arith.addf %81, %116 : vector<128x32xf32>
    %149 = arith.addf %148, %147 : vector<128x32xf32>
    %c0_37 = arith.constant 0 : index
    %c0_38 = arith.constant 0 : index
    %150 = vector.load %arg6[%c0_37, %c0_38] : memref<18x32xf32, #tpu.memory_space<vmem>>, vector<18x32xf32>
    %cst_39 = arith.constant dense<0.000000e+00> : vector<18x128xf32>
    %151 = tpu.matmul %150, %149, %cst_39 {dimension_numbers = #tpu.dot_dimension_numbers<[1], [1], [0], [0], [0, 0, 1, 0], [], []>} : vector<18x32xf32>, vector<128x32xf32>, vector<18x128xf32> -> vector<18x128xf32>
    %c0_40 = arith.constant 0 : index
    %c0_41 = arith.constant 0 : index
    %152 = vector.load %arg7[%c0_40, %c0_41] : memref<18x1xf32, #tpu.memory_space<vmem>>, vector<18x1xf32>
    %153 = vector.broadcast %152 : vector<18x1xf32> to vector<18x128xf32>
    %154 = arith.addf %151, %153 : vector<18x128xf32>
    %cst_42 = arith.constant 0.000000e+00 : f32
    %155 = vector.broadcast %cst_42 : f32 to vector<18x128xf32>
    %156 = arith.cmpf ogt, %154, %155 : vector<18x128xf32>
    %cst_43 = arith.constant 0.000000e+00 : f32
    %157 = vector.broadcast %cst_43 : f32 to vector<18x128xf32>
    %158 = arith.minimumf %154, %157 : vector<18x128xf32>
    %159 = math.exp %158 : vector<18x128xf32>
    %cst_44 = arith.constant 1.000000e+00 : f32
    %160 = vector.broadcast %cst_44 : f32 to vector<18x128xf32>
    %161 = arith.subf %159, %160 : vector<18x128xf32>
    %162 = arith.select %156, %154, %161 : vector<18x128xi1>, vector<18x128xf32>
    %c0_45 = arith.constant 0 : index
    %c0_46 = arith.constant 0 : index
    %163 = vector.load %arg8[%c0_45, %c0_46] : memref<18x128xf32, #tpu.memory_space<vmem>>, vector<18x128xf32>
    tpu.vector_store %arg8[%c0_45, %c0_46], %162 {strides = array<i32>} : memref<18x128xf32, #tpu.memory_space<vmem>>, vector<18x128xf32>,
    return
  }
  func.func @transform_0(%arg0: i32) -> (i32, i32) {
    %c0_i32 = arith.constant 0 : i32
    %c0_i32_0 = arith.constant 0 : i32
    %c0_i32_1 = arith.constant 0 : i32
    return %c0_i32, %c0_i32_0 : i32, i32
  }
  func.func @transform_1(%arg0: i32) -> (i32, i32) {
    %c0_i32 = arith.constant 0 : i32
    %c0_i32_0 = arith.constant 0 : i32
    %c0_i32_1 = arith.constant 0 : i32
    return %c0_i32, %c0_i32_0 : i32, i32
  }
  func.func @transform_2(%arg0: i32) -> (i32, i32) {
    %c0_i32 = arith.constant 0 : i32
    %c0_i32_0 = arith.constant 0 : i32
    %c0_i32_1 = arith.constant 0 : i32
    return %c0_i32, %c0_i32_0 : i32, i32
  }
  func.func @transform_3(%arg0: i32) -> (i32, i32) {
    %c0_i32 = arith.constant 0 : i32
    %c0_i32_0 = arith.constant 0 : i32
    %c0_i32_1 = arith.constant 0 : i32
    return %c0_i32, %c0_i32_0 : i32, i32
  }
  func.func @transform_4(%arg0: i32) -> (i32, i32) {
    %c0_i32 = arith.constant 0 : i32
    %c0_i32_0 = arith.constant 0 : i32
    %c0_i32_1 = arith.constant 0 : i32
    return %c0_i32, %c0_i32_0 : i32, i32
  }
  func.func @transform_5(%arg0: i32) -> (i32, i32) {
    %c0_i32 = arith.constant 0 : i32
    %c0_i32_0 = arith.constant 0 : i32
    %c0_i32_1 = arith.constant 0 : i32
    return %c0_i32, %c0_i32_0 : i32, i32
  }
  func.func @transform_6(%arg0: i32) -> (i32, i32) {
    %c0_i32 = arith.constant 0 : i32
    %c0_i32_0 = arith.constant 0 : i32
    %c0_i32_1 = arith.constant 0 : i32
    return %c0_i32, %c0_i32_0 : i32, i32
  }
  func.func @transform_7(%arg0: i32) -> (i32, i32) {
    %c0_i32 = arith.constant 0 : i32
    %c0_i32_0 = arith.constant 0 : i32
    %c0_i32_1 = arith.constant 0 : i32
    return %c0_i32, %c0_i32_0 : i32, i32
  }
}

</mosaic_0001>

<bundles_post_ra>
// kernel: cnn_blk_forward.1
= control target key start
LH: loop header
LB: loop body
LE: loop exit
PB: predicated region body
PF: predicated region fallthrough
CT: control target
= control target key end

     0   :  { %vm103_vm0 = vcmask 1042432   ;;  %vm54_vm1 = vcmask 220160   ;;  %vm7208_vm2 = vmmov 1   ;;  %vm353_vm4 = vcmask 64512   ;;  %s7210_s22 = smov 96   ;;  %s7211_s23 = smov 32   ;;  %s11069_s1 = inlined_call_operand.vmem [shape: f32[27,8], index: 1, kind: input, shape index: {}]   ;;  %s11070_s0 = inlined_call_operand.vmem [shape: f32[128,27], index: 0, kind: input, shape index: {}]   ;;  %s11071_s3 = inlined_call_operand.vmem [shape: f32[1896,32], index: 3, kind: input, shape index: {}]   ;;  %s11072_s2 = inlined_call_operand.vmem [shape: f32[1,8], index: 2, kind: input, shape index: {}]   ;;  %s11073_s4 = inlined_call_operand.vmem [shape: f32[4,32], index: 4, kind: input, shape index: {}]   ;;  %s11074_s6 = inlined_call_operand.vmem [shape: f32[18,1], index: 6, kind: input, shape index: {}]   ;;  %s11075_s5 = inlined_call_operand.vmem [shape: f32[18,32], index: 5, kind: input, shape index: {}]   ;;  %s11076_s7 = inlined_call_operand.vmem [shape: f32[18,128], index: 7, kind: output, shape index: {}]  }
   0x1   :  { %v43_v0 = vld [vmem:[%s11069_s1] sm:$0xff]  ;;  %v44_v1 = vld [vmem:[%s11069_s1 + $0x8] sm:$0xff]  ;;  %v45_v2 = vld [vmem:[%s11069_s1 + $0x10] sm:$0xff]  ;;  %s7212_s24 = smov 64  }
   0x2   :  { %v5968_v3 = vpack.c.bf16 %v44_v1, %v43_v0  ;;  %v46_v4 = vld [vmem:[%s11069_s1 + $0x18] sm:$0x7]  ;;  %v26_v5 = vld [vmem:[%s11070_s0] sm:$0xff]  ;;  %vm5973_vm3 = vmpackc.low %vm103_vm0, %vm7208_vm2 }
   0x3   :  { %v5972_v6 = vpack.c.bf16 %v46_v4, %v45_v2  ;;  %5829 = vmatprep.mubr.msk.f32.mxu0 %vm54_vm1, %v26_v5  ;;  %v27_v7 = vld [vmem:[%s11070_s0 + $0x8] sm:$0xff]  ;;  %v28_v8 = vld [vmem:[%s11070_s0 + $0x10] sm:$0xff]  ;;  %v29_v9 = vld [vmem:[%s11070_s0 + $0x18] sm:$0xff] }
   0x4   :  { %5969 = vmatprep.subr.bf16.mxu0 %v5968_v3  ;;  %v30_v10 = vld [vmem:[%s11070_s0 + $0x20] sm:$0xff]  ;;  %v31_v11 = vld [vmem:[%s11070_s0 + $0x28] sm:$0xff]  ;;  %v32_v12 = vld [vmem:[%s11070_s0 + $0x30] sm:$0xff] }
   0x5   :  { %5971 = vmatpush3.bf16.msra.mxu0 %v5968_v3  ;;  %v33_v13 = vld [vmem:[%s11070_s0 + $0x38] sm:$0xff]  ;;  %v34_v14 = vld [vmem:[%s11070_s0 + $0x40] sm:$0xff]  ;;  %v35_v15 = vld [vmem:[%s11070_s0 + $0x48] sm:$0xff] }
   0x6   :  { %5974 = vmatprep.subr.msk.bf16.mxu0 %vm5973_vm3, %v5972_v6  ;;  %v36_v16 = vld [vmem:[%s11070_s0 + $0x50] sm:$0xff]  ;;  %v37_v17 = vld [vmem:[%s11070_s0 + $0x58] sm:$0xff]  ;;  %v38_v18 = vld [vmem:[%s11070_s0 + $0x60] sm:$0xff] }
   0x7   :  { %v39_v19 = vld [vmem:[%s11070_s0 + $0x68] sm:$0xff]  ;;  %v40_v20 = vld [vmem:[%s11070_s0 + $0x70] sm:$0xff]  ;;  %v41_v21 = vld [vmem:[%s11070_s0 + $0x78] sm:$0xff] }
   0x8   :  { %v348_v22 = vld [vmem:[%s11071_s3] sm:$0xff] }
   0x9   :  { %5977 = vmatpush3.bf16.msk.msra.mxu0 %vm5973_vm3, %v5972_v6  ;;  %5853 = vmatprep.subr.mxu1 %v348_v22  ;;  %v7339_v23 = vld [vmem:[%s11072_s2] ss:$0 sm:$0xff] }
   0xa   :  { %5854 = vmatpush3.msra.mxu1 %v348_v22 }
   0xc   :  { %5830 = vmatmul.mubr.msk.f32.vlgmr.msra.gmra.mrb[0].mxu0 %vm54_vm1, %v27_v7 }
   0xd   :  { %5832 = vmatprep.mubr.msk.f32.mxu0 %vm54_vm1, %v28_v8 }
  0x10   :  { %5833 = vmatmul.mubr.msk.f32.gmra.mrb[2].mxu0 %vm54_vm1, %v29_v9 }
  0x11   :  { %5835 = vmatprep.mubr.msk.f32.mxu0 %vm54_vm1, %v30_v10 }
  0x14   :  { %5836 = vmatmul.mubr.msk.f32.gmra.mrb[4].mxu0 %vm54_vm1, %v31_v11 }
  0x15   :  { %5838 = vmatprep.mubr.msk.f32.mxu0 %vm54_vm1, %v32_v12 }
  0x18   :  { %5839 = vmatmul.mubr.msk.f32.gmra.mrb[6].mxu0 %vm54_vm1, %v33_v13 }
  0x19   :  { %5841 = vmatprep.mubr.msk.f32.mxu0 %vm54_vm1, %v34_v14 }
  0x1c   :  { %5842 = vmatmul.mubr.msk.f32.gmra.mrb[8].mxu0 %vm54_vm1, %v35_v15 }
  0x1d   :  { %5844 = vmatprep.mubr.msk.f32.mxu0 %vm54_vm1, %v36_v16 }
  0x20   :  { %5845 = vmatmul.mubr.msk.f32.gmra.mrb[10].mxu0 %vm54_vm1, %v37_v17 }
  0x21   :  { %5847 = vmatprep.mubr.msk.f32.mxu0 %vm54_vm1, %v38_v18 }
  0x24   :  { %5848 = vmatmul.mubr.msk.f32.gmra.mrb[12].mxu0 %vm54_vm1, %v39_v19 }
  0x25   :  { %5850 = vmatprep.mubr.msk.f32.mxu0 %vm54_vm1, %v40_v20 }
  0x28   :  { %5851 = vmatmul.mubr.msk.f32.gmra.mrb[14].mxu0 %vm54_vm1, %v41_v21 }
  0xdf   :  { %v5831_v24 = vpop.f32.mrb[0].mxu0 }
  0xe0   :  { %v7342_v25 = vadd.f32 %v5831_v24, %v7339_v23  ;;  %v173_v26 = vpop.f32.mrb[1].mxu0 }
  0xe1   :  { %v174_v27 = vadd.f32 %v7339_v23, %v173_v26 }
  0xe2   :  { %v269_v28 = vmin.f32 %v7342_v25, 0.0  ;;  %vm253_vm6 = vcmp.gt.f32.partialorder %v7342_v25, 0.0 }
  0xe3   :  { %v268_v29 = vmin.f32 %v174_v27, 0.0  ;;  %v5834_v30 = vpop.f32.mrb[2].mxu0  ;;  %vm252_vm5 = vcmp.gt.f32.partialorder %v174_v27, 0.0 }
  0xe4   :  { %v286_v31 = vmul.f32 1.442695, %v269_v28  ;;  %v7347_v32 = vadd.f32 %v5834_v30, %v7339_v23  ;;  %v183_v33 = vpop.f32.mrb[3].mxu0 }
  0xe5   :  { %v284_v34 = vmul.f32 1.442695, %v268_v29  ;;  %v7350_v35 = vadd.f32 %v7339_v23, %v183_v33 }
  0xe6   :  { %7039 = vpow2.f32 %v286_v31  ;;  %v271_v36 = vmin.f32 %v7347_v32, 0.0  ;;  %vm255_vm7 = vcmp.gt.f32.partialorder %v7347_v32, 0.0 }
  0xe7   :  { %7041 = vpow2.f32 %v284_v34  ;;  %v270_v37 = vmin.f32 %v7350_v35, 0.0  ;;  %v5837_v38 = vpop.f32.mrb[4].mxu0  ;;  %vm254_vm8 = vcmp.gt.f32.partialorder %v7350_v35, 0.0 }
  0xe8   :  { %v290_v39 = vmul.f32 1.442695, %v271_v36  ;;  %v7355_v40 = vadd.f32 %v5837_v38, %v7339_v23  ;;  %v193_v41 = vpop.f32.mrb[5].mxu0 }
  0xe9   :  { %v288_v42 = vmul.f32 1.442695, %v270_v37  ;;  %v7358_v43 = vadd.f32 %v7339_v23, %v193_v41 }
  0xea   :  { %7043 = vpow2.f32 %v290_v39  ;;  %v273_v44 = vmin.f32 %v7355_v40, 0.0  ;;  %vm257_vm10 = vcmp.gt.f32.partialorder %v7355_v40, 0.0 }
  0xeb   :  { %7045 = vpow2.f32 %v288_v42  ;;  %v272_v45 = vmin.f32 %v7358_v43, 0.0  ;;  %v5840_v46 = vpop.f32.mrb[6].mxu0  ;;  %vm256_vm9 = vcmp.gt.f32.partialorder %v7358_v43, 0.0 }
  0xec   :  { %v294_v47 = vmul.f32 1.442695, %v273_v44  ;;  %v7363_v48 = vadd.f32 %v5840_v46, %v7339_v23  ;;  %v203_v49 = vpop.f32.mrb[7].mxu0 }
  0xed   :  { %v292_v50 = vmul.f32 1.442695, %v272_v45  ;;  %v7366_v51 = vadd.f32 %v7339_v23, %v203_v49 }
  0xee   :  { %7047 = vpow2.f32 %v294_v47  ;;  %v275_v52 = vmin.f32 %v7363_v48, 0.0  ;;  %vm259_vm11 = vcmp.gt.f32.partialorder %v7363_v48, 0.0 }
  0xef   :  { %7049 = vpow2.f32 %v292_v50  ;;  %v274_v53 = vmin.f32 %v7366_v51, 0.0  ;;  %v5843_v54 = vpop.f32.mrb[8].mxu0  ;;  %vm258_vm12 = vcmp.gt.f32.partialorder %v7366_v51, 0.0 }
  0xf0   :  { %v7040_v55 = vpop.eup %7039  ;;  %v298_v56 = vmul.f32 1.442695, %v275_v52  ;;  %v7371_v57 = vadd.f32 %v5843_v54, %v7339_v23  ;;  %v213_v58 = vpop.f32.mrb[9].mxu0 }
  0xf1   :  { %v7042_v59 = vpop.eup %7041  ;;  %v296_v60 = vmul.f32 1.442695, %v274_v53  ;;  %v7374_v61 = vadd.f32 %v7339_v23, %v213_v58  ;;  %v5044_v62 = vadd.f32 -1.0, %v7040_v55 }
  0xf2   :  { %7051 = vpow2.f32 %v298_v56  ;;  %v277_v63 = vmin.f32 %v7371_v57, 0.0  ;;  %v5043_v0 = vadd.f32 -1.0, %v7042_v59  ;;  %vm261_vm13 = vcmp.gt.f32.partialorder %v7371_v57, 0.0 }
  0xf3   :  { %7053 = vpow2.f32 %v296_v60  ;;  %v276_v1 = vmin.f32 %v7374_v61, 0.0  ;;  %v5846_v2 = vpop.f32.mrb[10].mxu0  ;;  %v333_v11 = vsel %vm253_vm6, %v7342_v25, %v5044_v62  ;;  %vm260_vm14 = vcmp.gt.f32.partialorder %v7374_v61, 0.0 }
  0xf4   :  { %v7044_v3 = vpop.eup %7043  ;;  %v302_v4 = vmul.f32 1.442695, %v277_v63  ;;  %v7380_v5 = vadd.f32 %v5846_v2, %v7339_v23  ;;  %v223_v6 = vpop.f32.mrb[11].mxu0  ;;  %v332_v7 = vsel %vm252_vm5, %v174_v27, %v5043_v0 }
  0xf5   :  { %v7046_v8 = vpop.eup %7045  ;;  %v300_v9 = vmul.f32 1.442695, %v276_v1  ;;  %v7383_v10 = vadd.f32 %v7339_v23, %v223_v6  ;;  %5855 = vmatprep.mubr.msk.f32.mxu1 %vm353_vm4, %v332_v7  ;;  %v5046_v12 = vadd.f32 -1.0, %v7044_v3 }
  0xf6   :  { %7055 = vpow2.f32 %v302_v4  ;;  %v279_v13 = vmin.f32 %v7380_v5, 0.0  ;;  %5856 = vmatmul.mubr.msk.f32.vlgmr.msra.gmra.mrb[0].mxu1 %vm353_vm4, %v333_v11  ;;  %v5045_v14 = vadd.f32 -1.0, %v7046_v8  ;;  %vm263_vm15 = vcmp.gt.f32.partialorder %v7380_v5, 0.0  ;;  %v42_v11 = vld [vmem:[%s11073_s4] sm:$0xf] }
  0xf7   :  { %7057 = vpow2.f32 %v300_v9  ;;  %v278_v15 = vmin.f32 %v7383_v10, 0.0  ;;  %v5849_v16 = vpop.f32.mrb[12].mxu0  ;;  %v335_v25 = vsel %vm255_vm7, %v7347_v32, %v5046_v12  ;;  %vm262_vm1 = vcmp.gt.f32.partialorder %v7383_v10, 0.0 }
  0xf8   :  { %v7048_v17 = vpop.eup %7047  ;;  %v306_v18 = vmul.f32 1.442695, %v279_v13  ;;  %v334_v19 = vsel %vm254_vm8, %v7350_v35, %v5045_v14  ;;  %v7395_v20 = vadd.f32 %v5849_v16, %v7339_v23  ;;  %v233_v21 = vpop.f32.mrb[13].mxu0  ;;  %v349_v8 = vlaneseq }
  0xf9   :  { %v7050_v22 = vpop.eup %7049  ;;  %v304_v24 = vmul.f32 1.442695, %v278_v15  ;;  %5858 = vmatprep.mubr.msk.f32.mxu1 %vm353_vm4, %v334_v19  ;;  %v5048_v26 = vadd.f32 -1.0, %v7048_v17  ;;  %v7400_v27 = vadd.f32 %v7339_v23, %v233_v21  ;;  %v659_v17 = vld [vmem:[%s11071_s3 + $0x88] sm:$0xff]  ;;  %vm787_vm7 = vcmask 1046528  }
  0xfa   :  { %7059 = vpow2.f32 %v306_v18  ;;  %5859 = vmatmul.mubr.msk.f32.gmra.mrb[2].mxu1 %vm353_vm4, %v335_v25  ;;  %v5047_v28 = vadd.f32 -1.0, %v7050_v22  ;;  %v281_v29 = vmin.f32 %v7395_v20, 0.0  ;;  %vm265_vm2 = vcmp.gt.f32.partialorder %v7395_v20, 0.0  ;;  %v660_v18 = vld [vmem:[%s11071_s3 + $0x90] sm:$0xff] }
  0xfb   :  { %7061 = vpow2.f32 %v304_v24  ;;  %v280_v30 = vmin.f32 %v7400_v27, 0.0  ;;  %v5852_v31 = vpop.f32.mrb[14].mxu0  ;;  %v337_v38 = vsel %vm257_vm10, %v7355_v40, %v5048_v26  ;;  %vm264_vm3 = vcmp.gt.f32.partialorder %v7400_v27, 0.0 }
  0xfc   :  { %v7052_v33 = vpop.eup %7051  ;;  %v336_v32 = vsel %vm256_vm9, %v7358_v43, %v5047_v28  ;;  %v310_v34 = vmul.f32 1.442695, %v281_v29  ;;  %v249_v35 = vadd.f32 %v5852_v31, %v7339_v23  ;;  %v243_v36 = vpop.f32.mrb[15].mxu0  ;;  %v7446_v9 = vshrl.u32 %v349_v8, 7  ;;  %v644_v28 = vld [vmem:[%s11071_s3 + $0x10] sm:$0xff]  ;;  %v661_v29 = vld [vmem:[%s11071_s3 + $0x98] sm:$0xff] }
  0xfd   :  { %v7054_v37 = vpop.eup %7053  ;;  %5861 = vmatprep.mubr.msk.f32.mxu1 %vm353_vm4, %v336_v32  ;;  %v308_v39 = vmul.f32 1.442695, %v280_v30  ;;  %v5050_v41 = vadd.f32 -1.0, %v7052_v33  ;;  %v244_v42 = vadd.f32 %v7339_v23, %v243_v36  ;;  %v5978_v19 = vpack.c.bf16 %v660_v18, %v659_v17  ;;  %v662_v31 = vld [vmem:[%s11071_s3 + $0xa0] sm:$0xff] }
  0xfe   :  { %5862 = vmatmul.mubr.msk.f32.gmra.mrb[4].mxu1 %vm353_vm4, %v337_v38  ;;  %7063 = vpow2.f32 %v310_v34  ;;  %v5049_v44 = vadd.f32 -1.0, %v7054_v37  ;;  %v283_v43 = vmin.f32 %v249_v35, 0.0  ;;  %vm267_vm5 = vcmp.gt.f32.partialorder %v249_v35, 0.0  ;;  %v645_v37 = vld [vmem:[%s11071_s3 + $0x18] sm:$0xff]  ;;  %v646_v38 = vld [vmem:[%s11071_s3 + $0x20] sm:$0xff] }
  0xff   :  { %7065 = vpow2.f32 %v308_v39  ;;  %v339_v45 = vsel %vm259_vm11, %v7363_v48, %v5050_v41  ;;  %v282_v46 = vmin.f32 %v244_v42, 0.0  ;;  %vm266_vm6 = vcmp.gt.f32.partialorder %v244_v42, 0.0  ;;  %5979 = vmatprep.subr.bf16.mxu0 %v5978_v19  ;;  %6258 = vmatprep.subr.bf16.mxu1 %v5978_v19  ;;  %v663_v39 = vld [vmem:[%s11071_s3 + $0xa8] sm:$0xff] }
 0x100   :  { %v7056_v47 = vpop.eup %7055  ;;  %v338_v40 = vsel %vm258_vm12, %v7366_v51, %v5049_v44  ;;  %v314_v49 = vmul.f32 1.442695, %v283_v43  ;;  %v664_v44 = vld [vmem:[%s11071_s3 + $0xb0] sm:$0xff]  ;;  %vm1006_vm8 = vcmask 1044480   ;;  %vm1301_vm9 = vcmask 1040384  }
 0x101   :  { %v7058_v23 = vpop.eup %7057  ;;  %5864 = vmatprep.mubr.msk.f32.mxu1 %vm353_vm4, %v338_v40  ;;  %v5052_v50 = vadd.f32 -1.0, %v7056_v47  ;;  %v312_v52 = vmul.f32 1.442695, %v282_v46  ;;  %v5986_v46 = vpack.c.bf16 %v664_v44, %v663_v39  ;;  %v647_v40 = vld [vmem:[%s11071_s3 + $0x28] sm:$0xff]  ;;  %vm924_vm12 = vcmask 1045504  }
 0x102   :  { %5865 = vmatmul.mubr.msk.f32.gmra.mrb[6].mxu1 %vm353_vm4, %v339_v45  ;;  %v5051_v53 = vadd.f32 -1.0, %v7058_v23  ;;  %7067 = vpow2.f32 %v314_v49  ;;  %v648_v49 = vld [vmem:[%s11071_s3 + $0x30] sm:$0xff]  ;;  %v665_v23 = vld [vmem:[%s11071_s3 + $0xb8] sm:$0xff] }
 0x103   :  { %v341_v48 = vsel %vm261_vm13, %v7371_v57, %v5052_v50  ;;  %7069 = vpow2.f32 %v312_v52 }
 0x104   :  { %v7060_v54 = vpop.eup %7059  ;;  %v340_v51 = vsel %vm260_vm14, %v7374_v61, %v5051_v53  ;;  %v5988_v53 = vpack.c.bf16 %v648_v49, %v647_v40  ;;  %vm1219_vm14 = vcmask 1041408  }
 0x105   :  { %v7062_v55 = vpop.eup %7061  ;;  %5867 = vmatprep.mubr.msk.f32.mxu1 %vm353_vm4, %v340_v51  ;;  %v5054_v56 = vadd.f32 -1.0, %v7060_v54 }
 0x106   :  { %5868 = vmatmul.mubr.msk.f32.gmra.mrb[8].mxu1 %vm353_vm4, %v341_v48  ;;  %v5053_v58 = vadd.f32 -1.0, %v7062_v55  ;;  %v666_v48 = vld [vmem:[%s11071_s3 + $0xc0] sm:$0xff] }
 0x107   :  { %v343_v59 = vsel %vm263_vm15, %v7380_v5, %v5054_v56  ;;  %v5990_v55 = vpack.c.bf16 %v666_v48, %v665_v23 }
 0x108   :  { %v7064_v60 = vpop.eup %7063  ;;  %v342_v57 = vsel %vm262_vm1, %v7383_v10, %v5053_v58  ;;  %v351_v10 = vsub.s32 0, %v7446_v9 }
 0x109   :  { %v7066_v62 = vpop.eup %7065  ;;  %5870 = vmatprep.mubr.msk.f32.mxu1 %vm353_vm4, %v342_v57  ;;  %v5056_v61 = vadd.f32 -1.0, %v7064_v60 }
 0x10a   :  { %5871 = vmatmul.mubr.msk.f32.gmra.mrb[10].mxu1 %vm353_vm4, %v343_v59  ;;  %v5055_v63 = vadd.f32 -1.0, %v7066_v62  ;;  %v7452_v12 = vrot.slane %v42_v11, %v351_v10 }
 0x10b   :  { %v345_v0 = vsel %vm265_vm2, %v7395_v20, %v5056_v61 }
 0x10c   :  { %v7068_v1 = vpop.eup %7067  ;;  %v344_v2 = vsel %vm264_vm3, %v7400_v27, %v5055_v63  ;;  %v643_v27 = vld [vmem:[%s11071_s3 + $0x8] sm:$0xff] }
 0x10d   :  { %v7070_v3 = vpop.eup %7069  ;;  %5873 = vmatprep.mubr.msk.f32.mxu1 %vm353_vm4, %v344_v2  ;;  %v5058_v4 = vadd.f32 -1.0, %v7068_v1  ;;  %v5980_v30 = vpack.c.bf16 %v644_v28, %v643_v27 }
 0x10e   :  { %5874 = vmatmul.mubr.msk.f32.gmra.mrb[12].mxu1 %vm353_vm4, %v345_v0  ;;  %v5057_v5 = vadd.f32 -1.0, %v7070_v3 }
 0x10f   :  { %v347_v6 = vsel %vm267_vm5, %v249_v35, %v5058_v4  ;;  %v5982_v35 = vpack.c.bf16 %v662_v31, %v661_v29  ;;  %5981 = vmatpush3.bf16.msra.mxu0 %v5980_v30  ;;  %6266 = vmatpush3.bf16.msra.mxu1 %v5980_v30 }
 0x110   :  { %v346_v7 = vsel %vm266_vm6, %v244_v42, %v5057_v5  ;;  %v5984_v42 = vpack.c.bf16 %v646_v38, %v645_v37 }
 0x111   :  { %5876 = vmatprep.mubr.msk.f32.mxu1 %vm353_vm4, %v346_v7  ;;  %5983 = vmatprep.subr.bf16.mxu0 %v5982_v35 }
 0x112   :  { %5877 = vmatmul.mubr.msk.f32.gmra.mrb[14].mxu1 %vm353_vm4, %v347_v6  ;;  %6259 = vmatprep.subr.bf16.mxu1 %v5982_v35 }
 0x113   :  { %5985 = vmatpush3.bf16.msra.mxu0 %v5984_v42  ;;  %6267 = vmatpush3.bf16.msra.mxu1 %v5984_v42 }
 0x114   :  { %5987 = vmatprep.subr.bf16.mxu0 %v5986_v46  ;;  %6260 = vmatprep.subr.bf16.mxu1 %v5986_v46 }
 0x117   :  { %5989 = vmatpush3.bf16.msra.mxu0 %v5988_v53  ;;  %6268 = vmatpush3.bf16.msra.mxu1 %v5988_v53 }
 0x118   :  { %5991 = vmatprep.subr.bf16.mxu0 %v5990_v55  ;;  %6261 = vmatprep.subr.bf16.mxu1 %v5990_v55 }
 0x1c9   :  { %v5857_v13 = vpop.f32.mrb[0].mxu1 }
 0x1ca   :  { %v7455_v14 = vadd.f32 %v5857_v13, %v7452_v12  ;;  %v468_v15 = vpop.f32.mrb[1].mxu1 }
 0x1cb   :  { %v7458_v16 = vadd.f32 %v468_v15, %v7452_v12  ;;  %v11077_v15 = vmov 0.0  }
 0x1cc   :  { %v564_v20 = vmin.f32 %v7455_v14, 0.0  ;;  %v7546_v17 = vrot.slane %v11077_v15, 7  ;;  %vm548_vm10 = vcmp.gt.f32.partialorder %v7455_v14, 0.0  ;;  %v7560_v28 = vrot.slane %v11077_v15, 5 }
 0x1cd   :  { %v563_v21 = vmin.f32 %v7458_v16, 0.0  ;;  %v5860_v22 = vpop.f32.mrb[2].mxu1  ;;  %vm547_vm4 = vcmp.gt.f32.partialorder %v7458_v16, 0.0  ;;  %v7596_v49 = vrot.slane %v11077_v15, 2  ;;  %v7599_v23 = vrot.slane %v11077_v15, 6 }
 0x1ce   :  { %v478_v24 = vpop.f32.mrb[3].mxu1  ;;  %v581_v33 = vmul.f32 1.442695, %v564_v20  ;;  %v7494_v41 = vadd.f32 %v5860_v22, %v7452_v12  ;;  %11159 = vst [vmem:[#allocation4_spill] sm:$0xff] %v7546_v17  ;;  %11161 = vst [vmem:[#allocation6_spill] sm:$0xff] %v7560_v28 }
 0x1cf   :  { %v579_v25 = vmul.f32 1.442695, %v563_v21  ;;  %v7469_v26 = vadd.f32 %v478_v24, %v7452_v12  ;;  %v7554_v24 = vrot.slane %v11077_v15, 1  ;;  %11164 = vst [vmem:[#allocation9_spill] sm:$0xff] %v7596_v49  ;;  %11165 = vst [vmem:[#allocation10_spill] sm:$0xff] %v7599_v23 }
 0x1d0   :  { %v566_v50 = vmin.f32 %v7494_v41, 0.0  ;;  %vm550_vm13 = vcmp.gt.f32.partialorder %v7494_v41, 0.0 }
 0x1d1   :  { %7071 = vpow2.f32 %v579_v25  ;;  %v565_v32 = vmin.f32 %v7469_v26, 0.0  ;;  %v5863_v34 = vpop.f32.mrb[4].mxu1  ;;  %11160 = vst [vmem:[#allocation5_spill] sm:$0xff] %v7554_v24  ;;  %vm549_vm11 = vcmp.gt.f32.partialorder %v7469_v26, 0.0 }
 0x1d2   :  { %v488_v36 = vpop.f32.mrb[5].mxu1  ;;  %7073 = vpow2.f32 %v581_v33  ;;  %v7510_v52 = vadd.f32 %v5863_v34, %v7452_v12  ;;  %v585_v57 = vmul.f32 1.442695, %v566_v50 }
 0x1d3   :  { %v583_v43 = vmul.f32 1.442695, %v565_v32  ;;  %v7516_v54 = vadd.f32 %v488_v36, %v7452_v12 }
 0x1d4   :  { %v568_v62 = vmin.f32 %v7510_v52, 0.0  ;;  %vm552_vm15 = vcmp.gt.f32.partialorder %v7510_v52, 0.0 }
 0x1d5   :  { %v5866_v45 = vpop.f32.mrb[6].mxu1  ;;  %7075 = vpow2.f32 %v583_v43  ;;  %v567_v61 = vmin.f32 %v7516_v54, 0.0  ;;  %vm551_vm1 = vcmp.gt.f32.partialorder %v7516_v54, 0.0 }
 0x1d6   :  { %v498_v47 = vpop.f32.mrb[7].mxu1  ;;  %7077 = vpow2.f32 %v585_v57  ;;  %v589_v6 = vmul.f32 1.442695, %v568_v62  ;;  %v7540_v10 = vadd.f32 %v5866_v45, %v7452_v12 }
 0x1d7   :  { %v587_v8 = vmul.f32 1.442695, %v567_v61  ;;  %v7549_v20 = vadd.f32 %v498_v47, %v7452_v12 }
 0x1d8   :  { %7079 = vpow2.f32 %v589_v6  ;;  %v570_v27 = vmin.f32 %v7540_v10, 0.0  ;;  %vm554_vm2 = vcmp.gt.f32.partialorder %v7540_v10, 0.0 }
 0x1d9   :  { %v5869_v51 = vpop.f32.mrb[8].mxu1  ;;  %7081 = vpow2.f32 %v587_v8  ;;  %v569_v35 = vmin.f32 %v7549_v20, 0.0  ;;  %vm553_vm3 = vcmp.gt.f32.partialorder %v7549_v20, 0.0 }
 0x1da   :  { %v7519_v56 = vadd.f32 %v5869_v51, %v7452_v12  ;;  %v7521_v58 = vpop.f32.mrb[9].mxu1  ;;  %v593_v45 = vmul.f32 1.442695, %v570_v27 }
 0x1db   :  { %v7072_v59 = vpop.eup %7071  ;;  %v591_v47 = vmul.f32 1.442695, %v569_v35  ;;  %v7607_v48 = vadd.f32 %v7521_v58, %v7452_v12 }
 0x1dc   :  { %v5075_v60 = vadd.f32 -1.0, %v7072_v59  ;;  %v7074_v3 = vpop.eup %7073  ;;  %7083 = vpow2.f32 %v593_v45  ;;  %v572_v58 = vmin.f32 %v7519_v56, 0.0  ;;  %vm556_vm6 = vcmp.gt.f32.partialorder %v7519_v56, 0.0 }
 0x1dd   :  { %v5872_v63 = vpop.f32.mrb[10].mxu1  ;;  %v5076_v13 = vadd.f32 -1.0, %v7074_v3  ;;  %7085 = vpow2.f32 %v591_v47  ;;  %v571_v3 = vmin.f32 %v7607_v48, 0.0  ;;  %vm555_vm5 = vcmp.gt.f32.partialorder %v7607_v48, 0.0 }
 0x1de   :  { %v7527_v0 = vsel %vm547_vm4, %v7458_v16, %v5075_v60  ;;  %v7530_v1 = vadd.f32 %v5872_v63, %v7452_v12  ;;  %v518_v2 = vpop.f32.mrb[11].mxu1  ;;  %v7543_v16 = vrot.slane %v11077_v15, 3 }
 0x1df   :  { %11157 = vst [vmem:[#allocation2_spill] sm:$0xff] %v7527_v0  ;;  %v788_v4 = vrot.slane %v7527_v0, 1  ;;  %v7534_v5 = vadd.f32 %v518_v2, %v7452_v12  ;;  %v7076_v19 = vpop.eup %7075  ;;  %v7565_v30 = vsel %vm548_vm10, %v7455_v14, %v5076_v13 }
 0x1e0   :  { %11158 = vst [vmem:[#allocation3_spill] sm:$0xff] %v7543_v16  ;;  %11162 = vst [vmem:[#allocation7_spill] sm:$0xff] %v7565_v30  ;;  %v5077_v31 = vadd.f32 -1.0, %v7076_v19  ;;  %v789_v39 = vrot.slane %v7565_v30, 1  ;;  %v7078_v44 = vpop.eup %7077  ;;  %vm558_vm10 = vcmp.gt.f32.partialorder %v7530_v1, 0.0 }
 0x1e1   :  { %v7537_v7 = vsel %vm787_vm7, 0.0, %v788_v4  ;;  %v5875_v11 = vpop.f32.mrb[12].mxu1  ;;  %v5078_v53 = vadd.f32 -1.0, %v7078_v44  ;;  %vm557_vm4 = vcmp.gt.f32.partialorder %v7534_v5, 0.0 }
 0x1e2   :  { %v528_v18 = vpop.f32.mrb[13].mxu1  ;;  %v1008_v21 = vrot.slane %v7537_v7, 3  ;;  %v1303_v22 = vrot.slane %v7537_v7, 7  ;;  %v844_v25 = vrot.slane %v7537_v7, 1  ;;  %v1139_v37 = vrot.slane %v7537_v7, 5  ;;  %v7080_v51 = vpop.eup %7079 }
 0x1e3   :  { %v7582_v38 = vadd.f32 %v5875_v11, %v7452_v12  ;;  %v7588_v42 = vadd.f32 %v528_v18, %v7452_v12  ;;  %v7591_v43 = vsel %vm549_vm11, %v7469_v26, %v5077_v31  ;;  %v7602_v50 = vsel %vm787_vm7, %v788_v4, %v789_v39  ;;  %v7082_v59 = vpop.eup %7081 }
 0x1e4   :  { %v1009_v33 = vsel %vm1006_vm8, %v7543_v16, %v1008_v21  ;;  %v1304_v32 = vsel %vm1301_vm9, %v7546_v17, %v1303_v22  ;;  %v845_v14 = vsel %vm787_vm7, %v7554_v24, %v844_v25  ;;  %11163 = vst [vmem:[#allocation8_spill] sm:$0xff] %v7591_v43  ;;  %v1140_v46 = vsel %vm103_vm0, %v7560_v28, %v1139_v37 }
 0x1e5   :  { %v7562_v29 = vpop.f32.mrb[14].mxu1  ;;  %v6292_v36 = vpack.i.bf16 %v1009_v33, %v1304_v32  ;;  %v6282_v40 = vpack.i.bf16 %v845_v14, %v1140_v46  ;;  %v791_v26 = vrot.slane %v7591_v43, 1  ;;  %v926_v55 = vrot.slane %v7537_v7, 2 }
 0x1e6   :  { %v7575_v34 = vpop.f32.mrb[15].mxu1  ;;  %v1221_v60 = vrot.slane %v7537_v7, 6  ;;  %v846_v62 = vrot.slane %v7602_v50, 1  ;;  %v1141_v61 = vrot.slane %v7602_v50, 5  ;;  %v7621_v63 = vsel %vm550_vm13, %v7494_v41, %v5078_v53  ;;  %v7084_v53 = vpop.eup %7083 }
 0x1e7   :  { %6293 = vrot.lane.b32.xlu1 %v6292_v36, %s7210_s22  ;;  %6283 = vrot.lane.b32.xlu0 %v6282_v40, %s7211_s23  ;;  %v927_v57 = vsel %vm924_vm12, %v7596_v49, %v926_v55  ;;  %11166 = vst [vmem:[#allocation11_spill] sm:$0xff] %v7621_v63  ;;  %v7626_v2 = vsel %vm787_vm7, %v789_v39, %v791_v26  ;;  %v5080_v6 = vadd.f32 -1.0, %v7080_v51  ;;  %v5079_v8 = vadd.f32 -1.0, %v7082_v59  ;;  %v7086_v59 = vpop.eup %7085 }
 0x1e8   :  { %v1222_v4 = vsel %vm1219_vm14, %v7599_v23, %v1221_v60  ;;  %v847_v13 = vsel %vm787_vm7, %v844_v25, %v846_v62  ;;  %v1142_v18 = vsel %vm103_vm0, %v1139_v37, %v1141_v61  ;;  %v928_v41 = vrot.slane %v7602_v50, 2 }
 0x1e9   :  { %v6287_v11 = vpack.i.bf16 %v927_v57, %v1222_v4  ;;  %v1223_v19 = vrot.slane %v7602_v50, 6  ;;  %v1010_v27 = vrot.slane %v7602_v50, 3  ;;  %v597_v31 = vmul.f32 1.442695, %v572_v58 }
 0x1ea   :  { %v6297_v33 = vpack.i.bf16 %v847_v13, %v1142_v18  ;;  %v1305_v32 = vrot.slane %v7602_v50, 7  ;;  %v848_v35 = vrot.slane %v7626_v2, 1  ;;  %v793_v36 = vrot.slane %v7621_v63, 1  ;;  %v8692_v63 = vld [vmem:[%s11071_s3 + $0x368] sm:$0xff] }
 0x1eb   :  { %6288 = vrot.lane.b32.xlu0 %v6287_v11, %s7212_s24  ;;  %v929_v25 = vsel %vm924_vm12, %v926_v55, %v928_v41  ;;  %v1224_v14 = vsel %vm1219_vm14, %v1221_v60, %v1223_v19  ;;  %v1011_v37 = vsel %vm1006_vm8, %v1008_v21, %v1010_v27  ;;  %v7648_v39 = vsel %vm552_vm15, %v7510_v52, %v5080_v6 }
 0x1ec   :  { %11167 = vst [vmem:[#allocation12_spill] sm:$0xff] %v7648_v39  ;;  %6298 = vrot.lane.b32.xlu1 %v6297_v33, %s7211_s23  ;;  %v6302_v44 = vpack.i.bf16 %v929_v25, %v1224_v14  ;;  %v1306_v45 = vsel %vm1301_vm9, %v1303_v22, %v1305_v32  ;;  %v1143_v46 = vrot.slane %v7626_v2, 5  ;;  %v7658_v47 = vsel %vm551_vm1, %v7516_v54, %v5079_v8 }
 0x1ed   :  { %11168 = vst [vmem:[#allocation13_spill] sm:$0xff] %v7658_v47  ;;  %v6307_v21 = vpack.i.bf16 %v1011_v37, %v1306_v45  ;;  %v849_v40 = vsel %vm787_vm7, %v846_v62, %v848_v35  ;;  %v930_v52 = vrot.slane %v7626_v2, 2  ;;  %v1225_v55 = vrot.slane %v7626_v2, 6 }
 0x1ee   :  { %v1144_v51 = vsel %vm103_vm0, %v1141_v61, %v1143_v46  ;;  %v7667_v22 = vadd.f32 %v7562_v29, %v7452_v12  ;;  %v7671_v54 = vadd.f32 %v7575_v34, %v7452_v12  ;;  %v595_v60 = vmul.f32 1.442695, %v571_v3 }
 0x1ef   :  { %6303 = vrot.lane.b32.xlu0 %v6302_v44, %s7212_s24  ;;  %v931_v58 = vsel %vm924_vm12, %v928_v41, %v930_v52  ;;  %v1012_v57 = vrot.slane %v7626_v2, 3  ;;  %v1307_v62 = vrot.slane %v7626_v2, 7  ;;  %v6312_v61 = vpack.i.bf16 %v849_v40, %v1144_v51 }
 0x1f0   :  { %6308 = vrot.lane.b32.xlu1 %v6307_v21, %s7210_s22  ;;  %v1226_v4 = vsel %vm1219_vm14, %v1223_v19, %v1225_v55  ;;  %v7681_v29 = vsel %vm787_vm7, %v791_v26, %v793_v36  ;;  %v797_v12 = vrot.slane %v7648_v39, 1  ;;  %v795_v34 = vrot.slane %v7658_v47, 1 }
 0x1f1   :  { %7087 = vpow2.f32 %v597_v31  ;;  %v5081_v3 = vadd.f32 -1.0, %v7086_v59  ;;  %v6317_v6 = vpack.i.bf16 %v931_v58, %v1226_v4  ;;  %v1013_v8 = vsel %vm1006_vm8, %v1010_v27, %v1012_v57 }
 0x1f2   :  { %v1308_v11 = vsel %vm1301_vm9, %v1305_v32, %v1307_v62  ;;  %7089 = vpow2.f32 %v595_v60  ;;  %v573_v26 = vmin.f32 %v7534_v5, 0.0  ;;  %v5082_v13 = vadd.f32 -1.0, %v7084_v53 }
 0x1f3   :  { %6313 = vrot.lane.b32.xlu0 %v6312_v61, %s7211_s23  ;;  %v6322_v18 = vpack.i.bf16 %v1013_v8, %v1308_v11  ;;  %v850_v41 = vrot.slane %v7681_v29, 1  ;;  %v1145_v19 = vrot.slane %v7681_v29, 5  ;;  %v7695_v31 = vsel %vm787_vm7, %v793_v36, %v795_v34 }
 0x1f4   :  { %6318 = vrot.lane.b32.xlu1 %v6317_v6, %s7212_s24  ;;  %v932_v27 = vrot.slane %v7681_v29, 2  ;;  %v1227_v33 = vrot.slane %v7681_v29, 6  ;;  %v1014_v32 = vrot.slane %v7681_v29, 3  ;;  %v7701_v25 = vsel %vm787_vm7, %v795_v34, %v797_v12 }
 0x1f5   :  { %v7704_v14 = vsel %vm553_vm3, %v7549_v20, %v5081_v3  ;;  %v851_v37 = vsel %vm787_vm7, %v848_v35, %v850_v41  ;;  %v1146_v44 = vsel %vm103_vm0, %v1143_v46, %v1145_v19  ;;  %v1309_v51 = vrot.slane %v7681_v29, 7 }
 0x1f6   :  { %11169 = vst [vmem:[#allocation14_spill] sm:$0xff] %v7704_v14  ;;  %v6327_v36 = vpack.i.bf16 %v851_v37, %v1146_v44  ;;  %v933_v45 = vsel %vm924_vm12, %v930_v52, %v932_v27  ;;  %v1228_v21 = vsel %vm1219_vm14, %v1225_v55, %v1227_v33  ;;  %v1015_v40 = vsel %vm1006_vm8, %v1012_v57, %v1014_v32 }
 0x1f7   :  { %6323 = vrot.lane.b32.xlu0 %v6322_v18, %s7210_s22  ;;  %v6332_v53 = vpack.i.bf16 %v933_v45, %v1228_v21  ;;  %v852_v59 = vrot.slane %v7695_v31, 1  ;;  %v1147_v20 = vrot.slane %v7695_v31, 5  ;;  %v934_v35 = vrot.slane %v7695_v31, 2 }
 0x1f8   :  { %6328 = vrot.lane.b32.xlu1 %v6327_v36, %s7211_s23  ;;  %v1229_v46 = vrot.slane %v7695_v31, 6  ;;  %v1016_v60 = vrot.slane %v7695_v31, 3  ;;  %v1311_v52 = vrot.slane %v7695_v31, 7  ;;  %v799_v55 = vrot.slane %v7704_v14, 1 }
 0x1f9   :  { %v1310_v58 = vsel %vm1301_vm9, %v1307_v62, %v1309_v51  ;;  %v853_v57 = vsel %vm787_vm7, %v850_v41, %v852_v59  ;;  %v1148_v61 = vsel %vm103_vm0, %v1145_v19, %v1147_v20  ;;  %v935_v3 = vsel %vm924_vm12, %v932_v27, %v934_v35 }
 0x1fa   :  { %v6337_v34 = vpack.i.bf16 %v1015_v40, %v1310_v58  ;;  %v1230_v6 = vsel %vm1219_vm14, %v1227_v33, %v1229_v46  ;;  %v854_v8 = vrot.slane %v7701_v25, 1  ;;  %v7731_v11 = vsel %vm554_vm2, %v7540_v10, %v5082_v13 }
 0x1fb   :  { %6333 = vrot.lane.b32.xlu0 %v6332_v53, %s7212_s24  ;;  %v7088_v4 = vpop.eup %7087  ;;  %11170 = vst [vmem:[#allocation15_spill] sm:$0xff] %v7731_v11  ;;  %v6342_v18 = vpack.i.bf16 %v853_v57, %v1148_v61  ;;  %v1017_v62 = vsel %vm1006_vm8, %v1014_v32, %v1016_v60  ;;  %v1312_v41 = vsel %vm1301_vm9, %v1309_v51, %v1311_v52  ;;  %v1149_v19 = vrot.slane %v7701_v25, 5 }
 0x1fc   :  { %v7090_v37 = vpop.eup %7089  ;;  %6338 = vrot.lane.b32.xlu1 %v6337_v34, %s7210_s22  ;;  %v936_v27 = vrot.slane %v7701_v25, 2  ;;  %v1231_v33 = vrot.slane %v7701_v25, 6  ;;  %v7740_v44 = vsel %vm787_vm7, %v797_v12, %v799_v55  ;;  %v574_v10 = vmin.f32 %v7530_v1, 0.0 }
 0x1fd   :  { %v599_v13 = vmul.f32 1.442695, %v573_v26  ;;  %v6347_v32 = vpack.i.bf16 %v935_v3, %v1230_v6  ;;  %v855_v36 = vsel %vm787_vm7, %v852_v59, %v854_v8  ;;  %v1150_v45 = vsel %vm103_vm0, %v1147_v20, %v1149_v19 }
 0x1fe   :  { %v1018_v21 = vrot.slane %v7701_v25, 3  ;;  %v1313_v40 = vrot.slane %v7701_v25, 7  ;;  %v801_v53 = vrot.slane %v7731_v11, 1  ;;  %v6352_v12 = vpack.i.bf16 %v1017_v62, %v1312_v41 }
 0x1ff   :  { %6343 = vrot.lane.b32.xlu0 %v6342_v18, %s7211_s23  ;;  %v937_v26 = vsel %vm924_vm12, %v934_v35, %v936_v27  ;;  %v1232_v51 = vsel %vm1219_vm14, %v1229_v46, %v1231_v33  ;;  %v856_v58 = vrot.slane %v7740_v44, 1  ;;  %v1151_v59 = vrot.slane %v7740_v44, 5 }
 0x200   :  { %6348 = vrot.lane.b32.xlu1 %v6347_v32, %s7212_s24  ;;  %v5083_v20 = vadd.f32 -1.0, %v7090_v37  ;;  %v601_v57 = vmul.f32 1.442695, %v574_v10  ;;  %7091 = vpow2.f32 %v599_v13  ;;  %v6357_v61 = vpack.i.bf16 %v855_v36, %v1150_v45 }
 0x201   :  { %v1019_v34 = vsel %vm1006_vm8, %v1016_v60, %v1018_v21  ;;  %v1314_v3 = vsel %vm1301_vm9, %v1311_v52, %v1313_v40  ;;  %v938_v6 = vrot.slane %v7740_v44, 2  ;;  %v1233_v35 = vrot.slane %v7740_v44, 6 }
 0x202   :  { %v7761_v46 = vsel %vm787_vm7, %v799_v55, %v801_v53  ;;  %v575_v18 = vmin.f32 %v7588_v42, 0.0  ;;  %v6362_v62 = vpack.i.bf16 %v937_v26, %v1232_v51  ;;  %v857_v37 = vsel %vm787_vm7, %v854_v8, %v856_v58 }
 0x203   :  { %6353 = vrot.lane.b32.xlu0 %v6352_v12, %s7210_s22  ;;  %v1152_v41 = vsel %vm103_vm0, %v1149_v19, %v1151_v59  ;;  %v1020_v60 = vrot.slane %v7740_v44, 3  ;;  %v1315_v52 = vrot.slane %v7740_v44, 7  ;;  %v7773_v55 = vsel %vm555_vm5, %v7607_v48, %v5083_v20 }
 0x204   :  { %6358 = vrot.lane.b32.xlu1 %v6357_v61, %s7211_s23  ;;  %11171 = vst [vmem:[#allocation16_spill] sm:$0xff] %v7773_v55  ;;  %7093 = vpow2.f32 %v601_v57  ;;  %v6367_v10 = vpack.i.bf16 %v1019_v34, %v1314_v3  ;;  %v939_v13 = vsel %vm924_vm12, %v936_v27, %v938_v6  ;;  %v1234_v8 = vsel %vm1219_vm14, %v1231_v33, %v1233_v35 }
 0x205   :  { %v858_v19 = vrot.slane %v7761_v46, 1  ;;  %v1153_v32 = vrot.slane %v7761_v46, 5  ;;  %v5084_v36 = vadd.f32 -1.0, %v7088_v4  ;;  %v576_v45 = vmin.f32 %v7582_v38, 0.0 }
 0x206   :  { %v603_v12 = vmul.f32 1.442695, %v575_v18  ;;  %v6372_v26 = vpack.i.bf16 %v857_v37, %v1152_v41  ;;  %v1021_v48 = vsel %vm1006_vm8, %v1018_v21, %v1020_v60  ;;  %v1316_v51 = vsel %vm1301_vm9, %v1313_v40, %v1315_v52 }
 0x207   :  { %6363 = vrot.lane.b32.xlu0 %v6362_v62, %s7212_s24  ;;  %v940_v20 = vrot.slane %v7761_v46, 2  ;;  %v1235_v27 = vrot.slane %v7761_v46, 6  ;;  %v7787_v33 = vsel %vm787_vm7, %v801_v53, 0.0  ;;  %v803_v57 = vrot.slane %v7773_v55, 1 }
 0x208   :  { %6368 = vrot.lane.b32.xlu1 %v6367_v10, %s7210_s22  ;;  %v6377_v4 = vpack.i.bf16 %v939_v13, %v1234_v8  ;;  %v859_v61 = vsel %vm787_vm7, %v856_v58, %v858_v19  ;;  %v1154_v34 = vsel %vm103_vm0, %v1151_v59, %v1153_v32  ;;  %v1022_v21 = vrot.slane %v7761_v46, 3 }
 0x209   :  { %v1317_v40 = vrot.slane %v7761_v46, 7  ;;  %v7798_v18 = vsel %vm556_vm6, %v7519_v56, %v5084_v36  ;;  %v605_v53 = vmul.f32 1.442695, %v576_v45  ;;  %7095 = vpow2.f32 %v603_v12 }
 0x20a   :  { %v7092_v3 = vpop.eup %7091  ;;  %11172 = vst [vmem:[#allocation17_spill] sm:$0xff] %v7798_v18  ;;  %v6382_v62 = vpack.i.bf16 %v1021_v48, %v1316_v51  ;;  %v941_v37 = vsel %vm924_vm12, %v938_v6, %v940_v20  ;;  %v1236_v58 = vsel %vm1219_vm14, %v1233_v35, %v1235_v27  ;;  %v11084_v59 = vrot.slane %v7787_v33, 1 }
 0x20b   :  { %6373 = vrot.lane.b32.xlu0 %v6372_v26, %s7211_s23  ;;  %v11083_v41 = vrot.slane %v7787_v33, 5  ;;  %v7806_v10 = vsel %vm787_vm7, 0.0, %v803_v57  ;;  %v6387_v56 = vpack.i.bf16 %v859_v61, %v1154_v34  ;;  %v1023_v13 = vsel %vm1006_vm8, %v1020_v60, %v1022_v21 }
 0x20c   :  { %6378 = vrot.lane.b32.xlu1 %v6377_v4, %s7212_s24  ;;  %v1318_v8 = vsel %vm1301_vm9, %v1315_v52, %v1317_v40  ;;  %v11082_v6 = vrot.slane %v7787_v33, 2  ;;  %v11081_v35 = vrot.slane %v7787_v33, 6  ;;  %v804_v45 = vrot.slane %v7798_v18, 1 }
 0x20d   :  { %v5085_v12 = vadd.f32 -1.0, %v7092_v3  ;;  %7097 = vpow2.f32 %v605_v53  ;;  %v6392_v26 = vpack.i.bf16 %v941_v37, %v1236_v58  ;;  %v1386_v48 = vsel %vm787_vm7, %v858_v19, %v11084_v59 }
 0x20e   :  { %v7094_v36 = vpop.eup %7093  ;;  %v1422_v60 = vsel %vm103_vm0, %v1153_v32, %v11083_v41  ;;  %v860_v52 = vrot.slane %v7806_v10, 1  ;;  %v1155_v51 = vrot.slane %v7806_v10, 5  ;;  %v577_v4 = vmin.f32 %v7671_v54, 0.0 }
 0x20f   :  { %6383 = vrot.lane.b32.xlu0 %v6382_v62, %s7210_s22  ;;  %v6397_v61 = vpack.i.bf16 %v1023_v13, %v1318_v8  ;;  %v11080_v34 = vrot.slane %v7787_v33, 3  ;;  %v11079_v3 = vrot.slane %v7787_v33, 7  ;;  %v1396_v19 = vsel %vm924_vm12, %v940_v20, %v11082_v6 }
 0x210   :  { %6388 = vrot.lane.b32.xlu1 %v6387_v56, %s7211_s23  ;;  %v1432_v32 = vsel %vm1219_vm14, %v1235_v27, %v11081_v35  ;;  %v942_v53 = vrot.slane %v7806_v10, 2  ;;  %v1237_v62 = vrot.slane %v7806_v10, 6  ;;  %v7837_v37 = vsel %vm787_vm7, %v803_v57, %v804_v45 }
 0x211   :  { %v5086_v58 = vadd.f32 -1.0, %v7094_v36  ;;  %v6402_v56 = vpack.i.bf16 %v1386_v48, %v1422_v60  ;;  %v7843_v13 = vsel %vm557_vm4, %v7534_v5, %v5085_v12  ;;  %v578_v20 = vmin.f32 %v7667_v22, 0.0 }
 0x212   :  { %11173 = vst [vmem:[#allocation18_spill] sm:$0xff] %v7843_v13  ;;  %v861_v27 = vsel %vm787_vm7, %v7554_v24, %v860_v52  ;;  %v1156_v57 = vsel %vm103_vm0, %v7560_v28, %v1155_v51  ;;  %v6407_v36 = vpack.i.bf16 %v1396_v19, %v1432_v32  ;;  %v1406_v5 = vsel %vm1006_vm8, %v1022_v21, %v11080_v34 }
 0x213   :  { %6393 = vrot.lane.b32.xlu0 %v6392_v26, %s7212_s24  ;;  %v7096_v8 = vpop.eup %7095  ;;  %v607_v26 = vmul.f32 1.442695, %v577_v4  ;;  %v1442_v12 = vsel %vm1301_vm9, %v1317_v40, %v11079_v3  ;;  %v943_v48 = vsel %vm924_vm12, %v7596_v49, %v942_v53  ;;  %v1238_v60 = vsel %vm1219_vm14, %v7599_v23, %v1237_v62 }
 0x214   :  { %6398 = vrot.lane.b32.xlu1 %v6397_v61, %s7210_s22  ;;  %v862_v61 = vrot.slane %v7837_v37, 1  ;;  %v1157_v4 = vrot.slane %v7837_v37, 5  ;;  %v1024_v19 = vrot.slane %v7806_v10, 3  ;;  %v1319_v32 = vrot.slane %v7806_v10, 7 }
 0x215   :  { %v7869_v21 = vsel %vm558_vm10, %v7530_v1, %v5086_v58  ;;  %v806_v40 = vrot.slane %v7843_v13, 1  ;;  %vm559_vm11 = vcmp.gt.f32.partialorder %v7588_v42, 0.0  ;;  %v5087_v15 = vadd.f32 -1.0, %v7096_v8 }
 0x216   :  { %11174 = vst [vmem:[#allocation19_spill] sm:$0xff] %v7869_v21  ;;  %v609_v34 = vmul.f32 1.442695, %v578_v20  ;;  %7099 = vpow2.f32 %v607_v26  ;;  %v863_v35 = vsel %vm787_vm7, %v860_v52, %v862_v61  ;;  %v1158_v6 = vsel %vm103_vm0, %v1155_v51, %v1157_v4 }
 0x217   :  { %6403 = vrot.lane.b32.xlu0 %v6402_v56, %s7211_s23  ;;  %v6417_v56 = vpack.i.bf16 %v861_v27, %v1156_v57  ;;  %v7098_v3 = vpop.eup %7097  ;;  %v6412_v27 = vpack.i.bf16 %v1406_v5, %v1442_v12  ;;  %v6422_v57 = vpack.i.bf16 %v943_v48, %v1238_v60  ;;  %v944_v1 = vrot.slane %v7837_v37, 2 }
 0x218   :  { %6408 = vrot.lane.b32.xlu1 %v6407_v36, %s7212_s24  ;;  %v1239_v58 = vrot.slane %v7837_v37, 6  ;;  %v1025_v8 = vsel %vm1006_vm8, %v7543_v16, %v1024_v19  ;;  %v1320_v36 = vsel %vm1301_vm9, %v7546_v17, %v1319_v32  ;;  %v1026_v20 = vrot.slane %v7837_v37, 3 }
 0x219   :  { %v1321_v26 = vrot.slane %v7837_v37, 7  ;;  %v808_v5 = vrot.slane %v7869_v21, 1  ;;  %v7887_v52 = vsel %vm787_vm7, %v804_v45, %v806_v40  ;;  %vm560_vm13 = vcmp.gt.f32.partialorder %v7582_v38, 0.0 }
 0x21a   :  { %v5088_v51 = vadd.f32 -1.0, %v7098_v3  ;;  %v7894_v12 = vsel %vm559_vm11, %v7588_v42, %v5087_v15  ;;  %7101 = vpow2.f32 %v609_v34  ;;  %v6427_v48 = vpack.i.bf16 %v863_v35, %v1158_v6 }
 0x21b   :  { %6418 = vrot.lane.b32.xlu0 %v6417_v56, %s7211_s23  ;;  %11175 = vst [vmem:[#allocation20_spill] sm:$0xff] %v7894_v12  ;;  %v6432_v60 = vpack.i.bf16 %v1025_v8, %v1320_v36  ;;  %v945_v56 = vsel %vm924_vm12, %v942_v53, %v944_v1  ;;  %v1240_v45 = vsel %vm1219_vm14, %v1237_v62, %v1239_v58  ;;  %v864_v3 = vrot.slane %v7887_v52, 1 }
 0x21c   :  { %6413 = vrot.lane.b32.xlu1 %v6412_v27, %s7210_s22  ;;  %v1027_v41 = vsel %vm1006_vm8, %v1024_v19, %v1026_v20  ;;  %v1322_v27 = vsel %vm1301_vm9, %v1319_v32, %v1321_v26  ;;  %v1159_v59 = vrot.slane %v7887_v52, 5  ;;  %v7904_v15 = vsel %vm787_vm7, %v806_v40, %v808_v5 }
 0x21d   :  { %v946_v42 = vrot.slane %v7887_v52, 2  ;;  %v1241_v6 = vrot.slane %v7887_v52, 6  ;;  %v7912_v35 = vsel %vm560_vm13, %v7582_v38, %v5088_v51  ;;  %v810_v34 = vrot.slane %v7894_v12, 1 }
 0x21e   :  { %11176 = vst [vmem:[#allocation21_spill] sm:$0xff] %v7912_v35  ;;  %v6437_v53 = vpack.i.bf16 %v945_v56, %v1240_v45  ;;  %v6442_v62 = vpack.i.bf16 %v1027_v41, %v1322_v27  ;;  %v1028_v19 = vrot.slane %v7887_v52, 3  ;;  %v1323_v32 = vrot.slane %v7887_v52, 7 }
 0x21f   :  { %6423 = vrot.lane.b32.xlu0 %v6422_v57, %s7212_s24  ;;  %v865_v57 = vsel %vm787_vm7, %v862_v61, %v864_v3  ;;  %v1160_v8 = vsel %vm103_vm0, %v1157_v4, %v1159_v59  ;;  %v866_v36 = vrot.slane %v7904_v15, 1  ;;  %v1161_v38 = vrot.slane %v7904_v15, 5 }
 0x220   :  { %6428 = vrot.lane.b32.xlu1 %v6427_v48, %s7211_s23  ;;  %v7100_v40 = vpop.eup %7099  ;;  %v947_v51 = vsel %vm924_vm12, %v944_v1, %v946_v42  ;;  %v1242_v48 = vsel %vm1219_vm14, %v1239_v58, %v1241_v6  ;;  %v7926_v41 = vsel %vm787_vm7, %v808_v5, %v810_v34  ;;  %vm561_vm15 = vcmp.gt.f32.partialorder %v7671_v54, 0.0 }
 0x221   :  { %v948_v61 = vrot.slane %v7904_v15, 2  ;;  %v1243_v4 = vrot.slane %v7904_v15, 6  ;;  %v5089_v56 = vadd.f32 -1.0, %v7100_v40  ;;  %v6447_v45 = vpack.i.bf16 %v865_v57, %v1160_v8  ;;  %v649_v8 = vld [vmem:[%s11071_s3 + $0x38] sm:$0xff] }
 0x222   :  { %v1029_v27 = vsel %vm1006_vm8, %v1026_v20, %v1028_v19  ;;  %v1324_v58 = vsel %vm1301_vm9, %v1321_v26, %v1323_v32  ;;  %v867_v5 = vsel %vm787_vm7, %v864_v3, %v866_v36  ;;  %v1162_v12 = vsel %vm103_vm0, %v1159_v59, %v1161_v38 }
 0x223   :  { %6433 = vrot.lane.b32.xlu0 %v6432_v60, %s7210_s22  ;;  %v1325_v21 = vrot.slane %v7904_v15, 7  ;;  %v868_v60 = vrot.slane %v7926_v41, 1  ;;  %v1163_v40 = vrot.slane %v7926_v41, 5  ;;  %v949_v20 = vsel %vm924_vm12, %v946_v42, %v948_v61 }
 0x224   :  { %6438 = vrot.lane.b32.xlu1 %v6437_v53, %s7212_s24  ;;  %v7102_v1 = vpop.eup %7101  ;;  %v6452_v53 = vpack.i.bf16 %v947_v51, %v1242_v48  ;;  %v1244_v26 = vsel %vm1219_vm14, %v1241_v6, %v1243_v4  ;;  %v11089_v3 = vrot.slane %v7926_v41, 2  ;;  %v6457_v57 = vpack.i.bf16 %v1029_v27, %v1324_v58  ;;  %v650_v6 = vld [vmem:[%s11071_s3 + $0x40] sm:$0xff]  ;;  %v667_v27 = vld [vmem:[%s11071_s3 + $0xc8] sm:$0xff] }
 0x225   :  { %v11177_v51 = vrot.slane %v7912_v35, 1  ;;  %vm562_vm1 = vcmp.gt.f32.partialorder %v7667_v22, 0.0  ;;  %v6462_v42 = vpack.i.bf16 %v867_v5, %v1162_v12  ;;  %v6467_v12 = vpack.i.bf16 %v949_v20, %v1244_v26 }
 0x226   :  { %v1326_v58 = vsel %vm1301_vm9, %v1323_v32, %v1325_v21  ;;  %v869_v5 = vsel %vm787_vm7, %v866_v36, %v868_v60  ;;  %v951_v59 = vsel %vm924_vm12, %v948_v61, %v11089_v3  ;;  %v652_v32 = vld [vmem:[%s11071_s3 + $0x50] sm:$0xff]  ;;  %v1032_v36 = vrot.slane %v7926_v41, 3  ;;  %v669_v61 = vld [vmem:[%s11071_s3 + $0xd8] sm:$0xff] }
 0x227   :  { %6443 = vrot.lane.b32.xlu0 %v6442_v62, %s7210_s22  ;;  %v1030_v62 = vrot.slane %v7904_v15, 3  ;;  %v7953_v48 = vsel %vm787_vm7, %v810_v34, %v11177_v51  ;;  %v7968_v34 = vsel %vm561_vm15, %v7671_v54, %v5089_v56  ;;  %v1164_v51 = vsel %vm103_vm0, %v1161_v38, %v1163_v40 }
 0x228   :  { %6448 = vrot.lane.b32.xlu1 %v6447_v45, %s7211_s23  ;;  %v5090_v45 = vadd.f32 -1.0, %v7102_v1  ;;  %11178 = vst [vmem:[#allocation22_spill] sm:$0xff] %v7968_v34  ;;  %v11179_v54 = vrot.slane %v7926_v41, 6  ;;  %v1327_v38 = vrot.slane %v7926_v41, 7  ;;  %v5992_v20 = vpack.c.bf16 %v650_v6, %v649_v8 }
 0x229   :  { %v1031_v1 = vsel %vm1006_vm8, %v1028_v19, %v1030_v62  ;;  %v651_v19 = vld [vmem:[%s11071_s3 + $0x48] sm:$0xff]  ;;  %v814_v8 = vrot.slane %v7968_v34, 1  ;;  %vm1088_vm2 = vcmask 1043456   ;;  %vm1451_vm3 = vcmask 261120  }
 0x22a   :  { %v1246_v56 = vsel %vm1219_vm14, %v1243_v4, %v11179_v54  ;;  %v670_v4 = vld [vmem:[%s11071_s3 + $0xe0] sm:$0xff]  ;;  %v11090_v54 = vrot.slane %v7953_v48, 5  ;;  %v8001_v3 = vsel %vm562_vm1, %v7667_v22, %v5090_v45  ;;  %5993 = vmatpush3.bf16.msra.mxu0 %v5992_v20  ;;  %v5996_v6 = vpack.c.bf16 %v652_v32, %v651_v19  ;;  %6269 = vmatpush3.bf16.msra.mxu1 %v5992_v20  ;;  %v655_v20 = vld [vmem:[%s11071_s3 + $0x68] sm:$0xff] }
 0x22b   :  { %6453 = vrot.lane.b32.xlu0 %v6452_v53, %s7212_s24  ;;  %v668_v53 = vld [vmem:[%s11071_s3 + $0xd0] sm:$0xff]  ;;  %11180 = vst [vmem:[#allocation23_spill] sm:$0xff] %v8001_v3  ;;  %v654_v22 = vld [vmem:[%s11071_s3 + $0x60] sm:$0xff]  ;;  %v1033_v45 = vsel %vm1006_vm8, %v1030_v62, %v1032_v36  ;;  %v952_v19 = vrot.slane %v7953_v48, 2  ;;  %v1247_v32 = vrot.slane %v7953_v48, 6  ;;  %v1034_v62 = vrot.slane %v7953_v48, 3 }
 0x22c   :  { %6458 = vrot.lane.b32.xlu1 %v6457_v57, %s7210_s22  ;;  %v5994_v26 = vpack.c.bf16 %v668_v53, %v667_v27  ;;  %v6472_v57 = vpack.i.bf16 %v1031_v1, %v1326_v58  ;;  %v6477_v27 = vpack.i.bf16 %v869_v5, %v1164_v51  ;;  %v6482_v53 = vpack.i.bf16 %v951_v59, %v1246_v56  ;;  %v653_v58 = vld [vmem:[%s11071_s3 + $0x58] sm:$0xff]  ;;  %v671_v59 = vld [vmem:[%s11071_s3 + $0xe8] sm:$0xff]  ;;  %v672_v5 = vld [vmem:[%s11071_s3 + $0xf0] sm:$0xff] }
 0x22d   :  { %v5998_v1 = vpack.c.bf16 %v670_v4, %v669_v61  ;;  %v11092_v56 = vrot.slane %v7953_v48, 7  ;;  %v816_v61 = vrot.slane %v8001_v3, 1  ;;  %v11181_v4 = vrot.slane %v7912_v35, 1 }
 0x22e   :  { %5995 = vmatprep.subr.bf16.mxu0 %v5994_v26  ;;  %6262 = vmatprep.subr.bf16.mxu1 %v5994_v26  ;;  %v656_v26 = vld [vmem:[%s11071_s3 + $0x70] sm:$0xff]  ;;  %vm1468_vm5 = vcmask 523264   ;;  %vm1485_vm6 = vcmask 785408   ;;  %v11195_v14 = vrot.slane %v7787_v33, 4  ;;  %v11196_v39 = vrot.slane %v7761_v46, 4 }
 0x22f   :  { %6463 = vrot.lane.b32.xlu0 %v6462_v42, %s7211_s23  ;;  %v11091_v42 = vrot.slane %v7953_v48, 1  ;;  %5997 = vmatpush3.bf16.msra.mxu0 %v5996_v6 }
 0x230   :  { %6468 = vrot.lane.b32.xlu1 %v6467_v12, %s7212_s24  ;;  %v1328_v12 = vsel %vm1301_vm9, %v1325_v21, %v1327_v38  ;;  %v1166_v21 = vsel %vm103_vm0, %v1163_v40, %v11090_v54  ;;  %5999 = vmatprep.subr.bf16.mxu0 %v5998_v1  ;;  %v6002_v40 = vpack.c.bf16 %v672_v5, %v671_v59  ;;  %v674_v59 = vld [vmem:[%s11071_s3 + $0x100] sm:$0xff] }
 0x231   :  { %v871_v51 = vsel %vm787_vm7, %v868_v60, %v11091_v42  ;;  %v6000_v60 = vpack.c.bf16 %v654_v22, %v653_v58  ;;  %v6487_v54 = vpack.i.bf16 %v1033_v45, %v1328_v12  ;;  %v11183_v58 = vrot.slane %v7926_v41, 6  ;;  %v673_v22 = vld [vmem:[%s11071_s3 + $0xf8] sm:$0xff]  ;;  %6270 = vmatpush3.bf16.msra.mxu1 %v5996_v6 }
 0x232   :  { %v6492_v42 = vpack.i.bf16 %v871_v51, %v1166_v21  ;;  %v1035_v45 = vsel %vm1006_vm8, %v1032_v36, %v1034_v62  ;;  %v1330_v12 = vsel %vm1301_vm9, %v1327_v38, %v11092_v56  ;;  %6263 = vmatprep.subr.bf16.mxu1 %v5998_v1  ;;  %v8063_v21 = vsel %vm787_vm7, %v814_v8, %v816_v61 }
 0x233   :  { %6473 = vrot.lane.b32.xlu0 %v6472_v57, %s7210_s22  ;;  %v8034_v57 = vsel %vm787_vm7, %v11181_v4, %v814_v8  ;;  %v11182_v4 = vrot.slane %v7926_v41, 2  ;;  %6001 = vmatpush3.bf16.msra.mxu0 %v6000_v60  ;;  %v6004_v36 = vpack.c.bf16 %v656_v26, %v655_v20  ;;  %v6006_v38 = vpack.c.bf16 %v674_v59, %v673_v22  ;;  %v658_v8 = vld [vmem:[%s11071_s3 + $0x80] sm:$0xff]  ;;  %v691_v20 = vld [vmem:[%s11071_s3 + $0x188] sm:$0xff] }
 0x234   :  { %6478 = vrot.lane.b32.xlu1 %v6477_v27, %s7211_s23  ;;  %v872_v5 = vrot.slane %v8034_v57, 1  ;;  %v1167_v51 = vrot.slane %v8034_v57, 5  ;;  %v1249_v6 = vrot.slane %v8034_v57, 6  ;;  %6003 = vmatprep.subr.bf16.mxu0 %v6002_v40  ;;  %v1036_v56 = vrot.slane %v8034_v57, 3 }
 0x235   :  { %v953_v27 = vsel %vm924_vm12, %v11182_v4, %v952_v19  ;;  %v954_v4 = vrot.slane %v8034_v57, 2  ;;  %6271 = vmatpush3.bf16.msra.mxu1 %v6000_v60  ;;  %v11184_v26 = vrot.slane %v7953_v48, 1  ;;  %v11185_v59 = vrot.slane %v7953_v48, 5 }
 0x236   :  { %6264 = vmatprep.subr.bf16.mxu1 %v6002_v40  ;;  %v1250_v3 = vsel %vm1219_vm14, %v1247_v32, %v1249_v6  ;;  %v1169_v60 = vrot.slane %v8063_v21, 5  ;;  %v1037_v40 = vsel %vm1006_vm8, %v1034_v62, %v1036_v56  ;;  %v8538_v47 = vsel %vm1088_vm2, %v11196_v39, %v11195_v14 }
 0x237   :  { %6483 = vrot.lane.b32.xlu0 %v6482_v53, %s7212_s24  ;;  %v1248_v53 = vsel %vm1219_vm14, %v11183_v58, %v1247_v32  ;;  %v657_v58 = vld [vmem:[%s11071_s3 + $0x78] sm:$0xff]  ;;  %v873_v22 = vsel %vm787_vm7, %v11184_v26, %v872_v5  ;;  %6005 = vmatpush3.bf16.msra.mxu0 %v6004_v36  ;;  %v724_v32 = vld [vmem:[%s11071_s3 + $0x290] sm:$0xff]  ;;  %v11126_v39 = vrot.slane %v7926_v41, 4 }
 0x238   :  { %6488 = vrot.lane.b32.xlu1 %v6487_v54, %s7210_s22  ;;  %v6497_v1 = vpack.i.bf16 %v953_v27, %v1248_v53  ;;  %v6502_v54 = vpack.i.bf16 %v1035_v45, %v1330_v12  ;;  %v1168_v27 = vsel %vm103_vm0, %v11185_v59, %v1167_v51  ;;  %v1331_v53 = vrot.slane %v8034_v57, 7  ;;  %6007 = vmatprep.subr.bf16.mxu0 %v6006_v38 }
 0x239   :  { %v874_v45 = vrot.slane %v8063_v21, 1  ;;  %v955_v12 = vsel %vm924_vm12, %v952_v19, %v954_v4  ;;  %v6008_v34 = vpack.c.bf16 %v658_v8, %v657_v58  ;;  %v8096_v59 = vsel %vm787_vm7, %v816_v61, 0.0  ;;  %6272 = vmatpush3.bf16.msra.mxu1 %v6004_v36  ;;  %v723_v19 = vld [vmem:[%s11071_s3 + $0x288] sm:$0xff] }
 0x23a   :  { %v6507_v35 = vpack.i.bf16 %v873_v22, %v1168_v27  ;;  %v6512_v58 = vpack.i.bf16 %v955_v12, %v1250_v3  ;;  %v11186_v8 = vrot.slane %v7953_v48, 7  ;;  %v956_v61 = vrot.slane %v8063_v21, 2  ;;  %6265 = vmatprep.subr.bf16.mxu1 %v6006_v38 }
 0x23b   :  { %6493 = vrot.lane.b32.xlu0 %v6492_v42, %s7211_s23  ;;  %v692_v42 = vld [vmem:[%s11071_s3 + $0x190] sm:$0xff]  ;;  %v875_v62 = vsel %vm787_vm7, %v872_v5, %v874_v45  ;;  %v1170_v36 = vsel %vm103_vm0, %v1167_v51, %v1169_v60  ;;  %6009 = vmatpush3.bf16.msra.mxu0 %v6008_v34  ;;  %v6042_v3 = vpack.c.bf16 %v724_v32, %v723_v19  ;;  %v1387_v27 = vrot.slane %v8096_v59, 1 }
 0x23c   :  { %6498 = vrot.lane.b32.xlu1 %v6497_v1, %s7212_s24  ;;  %v6010_v26 = vpack.c.bf16 %v692_v42, %v691_v20  ;;  %v1332_v1 = vsel %vm1301_vm9, %v11186_v8, %v1331_v53  ;;  %v1038_v20 = vrot.slane %v8063_v21, 3  ;;  %v1333_v42 = vrot.slane %v8063_v21, 7 }
 0x23d   :  { %v6517_v22 = vpack.i.bf16 %v1037_v40, %v1332_v1  ;;  %6273 = vmatpush3.bf16.msra.mxu1 %v6008_v34  ;;  %v6522_v38 = vpack.i.bf16 %v875_v62, %v1170_v36  ;;  %v1423_v51 = vrot.slane %v8096_v59, 5  ;;  %v1433_v40 = vrot.slane %v8096_v59, 6 }
 0x23e   :  { %6011 = vmatprep.subr.bf16.mxu0 %v6010_v26  ;;  %6043 = vmatprep.subr.bf16.mxu1 %v6042_v3  ;;  %v1039_v12 = vsel %vm1006_vm8, %v1036_v56, %v1038_v20  ;;  %v1397_v26 = vrot.slane %v8096_v59, 2  ;;  %v1407_v32 = vrot.slane %v8096_v59, 3  ;;  %v1443_v8 = vrot.slane %v8096_v59, 7 }
 0x23f   :  { %6503 = vrot.lane.b32.xlu0 %v6502_v54, %s7210_s22  ;;  %v1251_v54 = vrot.slane %v8063_v21, 6 }
 0x240   :  { %6508 = vrot.lane.b32.xlu1 %v6507_v35, %s7211_s23  ;;  %v957_v35 = vsel %vm924_vm12, %v954_v4, %v956_v61  ;;  %v1388_v4 = vsel %vm787_vm7, %v874_v45, %v1387_v27  ;;  %v1398_v56 = vsel %vm924_vm12, %v956_v61, %v1397_v26  ;;  %v1408_v36 = vsel %vm1006_vm8, %v1038_v20, %v1407_v32 }
 0x241   :  { %v1252_v5 = vsel %vm1219_vm14, %v1249_v6, %v1251_v54  ;;  %v1424_v6 = vsel %vm103_vm0, %v1169_v60, %v1423_v51  ;;  %v1444_v45 = vsel %vm1301_vm9, %v1333_v42, %v1443_v8  ;;  %v11187_v60 = vrot.slane %v7787_v33, 1 }
 0x242   :  { %v6527_v34 = vpack.i.bf16 %v957_v35, %v1252_v5  ;;  %v6537_v1 = vpack.i.bf16 %v1388_v4, %v1424_v6  ;;  %v11188_v61 = vrot.slane %v7787_v33, 5  ;;  %v11189_v20 = vrot.slane %v7787_v33, 2 }
 0x243   :  { %6513 = vrot.lane.b32.xlu0 %v6512_v58, %s7212_s24  ;;  %v1334_v58 = vsel %vm1301_vm9, %v1331_v53, %v1333_v42  ;;  %v1434_v53 = vsel %vm1219_vm14, %v1251_v54, %v1433_v40  ;;  %v1562_v3 = vsel %vm787_vm7, %v11187_v60, %v7554_v24  ;;  %v11190_v35 = vrot.slane %v7787_v33, 6 }
 0x244   :  { %6518 = vrot.lane.b32.xlu1 %v6517_v22, %s7210_s22  ;;  %v6532_v19 = vpack.i.bf16 %v1039_v12, %v1334_v58  ;;  %v6542_v62 = vpack.i.bf16 %v1398_v56, %v1434_v53  ;;  %v1590_v54 = vsel %vm103_vm0, %v11188_v61, %v7560_v28  ;;  %v6547_v22 = vpack.i.bf16 %v1408_v36, %v1444_v45 }
 0x245   :  { %v1570_v42 = vsel %vm924_vm12, %v11189_v20, %v7596_v49  ;;  %v1598_v5 = vsel %vm1219_vm14, %v11190_v35, %v7599_v23  ;;  %v11191_v12 = vrot.slane %v7787_v33, 3  ;;  %v6567_v56 = vpack.i.bf16 %v7554_v24, %v7560_v28 }
 0x246   :  { %v1563_v36 = vsel %vm787_vm7, %v1387_v27, %v7554_v24  ;;  %v1591_v45 = vsel %vm103_vm0, %v1423_v51, %v7560_v28  ;;  %v11193_v60 = vmov 0.0   ;;  %v1090_v61 = vrot.slane %v7537_v7, 4  ;;  %v675_v51 = vld [vmem:[%s11071_s3 + $0x108] sm:$0xff] }
 0x247   :  { %6523 = vrot.lane.b32.xlu0 %v6522_v38, %s7211_s23  ;;  %v6552_v38 = vpack.i.bf16 %v1562_v3, %v1590_v54  ;;  %v1578_v58 = vsel %vm1006_vm8, %v11191_v12, %v7543_v16  ;;  %v8175_v3 = vrot.slane %v11193_v60, 4  ;;  %v6577_v54 = vpack.i.bf16 %v7543_v16, %v7546_v17 }
 0x248   :  { %6528 = vrot.lane.b32.xlu1 %v6527_v34, %s7212_s24  ;;  %v11192_v34 = vrot.slane %v7787_v33, 7  ;;  %v6582_v35 = vpack.i.bf16 %v1563_v36, %v1591_v45  ;;  %v1579_v12 = vsel %vm1006_vm8, %v1407_v32, %v7543_v16 }
 0x24a   :  { %v1606_v4 = vsel %vm1301_vm9, %v11192_v34, %v7546_v17 }
 0x24b   :  { %6533 = vrot.lane.b32.xlu0 %v6532_v19, %s7210_s22  ;;  %v6557_v19 = vpack.i.bf16 %v1570_v42, %v1598_v5  ;;  %v6562_v6 = vpack.i.bf16 %v1578_v58, %v1606_v4  ;;  %v676_v42 = vld [vmem:[%s11071_s3 + $0x110] sm:$0xff]  ;;  %v1607_v58 = vsel %vm1301_vm9, %v1443_v8, %v7546_v17 }
 0x24c   :  { %6538 = vrot.lane.b32.xlu1 %v6537_v1, %s7211_s23  ;;  %v6572_v1 = vpack.i.bf16 %v7596_v49, %v7599_v23  ;;  %v6592_v17 = vpack.i.bf16 %v1579_v12, %v1607_v58  ;;  %v695_v12 = vld [vmem:[%s11071_s3 + $0x1a8] sm:$0xff]  ;;  %v696_v58 = vld [vmem:[%s11071_s3 + $0x1b0] sm:$0xff] }
 0x24f   :  { %6543 = vrot.lane.b32.xlu0 %v6542_v62, %s7212_s24 }
 0x250   :  { %6548 = vrot.lane.b32.xlu1 %v6547_v22, %s7210_s22  ;;  %v1571_v22 = vsel %vm924_vm12, %v1397_v26, %v7596_v49 }
 0x253   :  { %6553 = vrot.lane.b32.xlu0 %v6552_v38, %s7211_s23  ;;  %v1599_v38 = vsel %vm1219_vm14, %v1433_v40, %v7599_v23  ;;  %v1091_v40 = vsel %vm1088_vm2, %v8175_v3, %v1090_v61 }
 0x254   :  { %6558 = vrot.lane.b32.xlu1 %v6557_v19, %s7212_s24  ;;  %v6587_v5 = vpack.i.bf16 %v1571_v22, %v1599_v38  ;;  %v1092_v19 = vrot.slane %v7602_v50, 4 }
 0x257   :  { %6563 = vrot.lane.b32.xlu0 %v6562_v6, %s7210_s22  ;;  %v6012_v6 = vpack.c.bf16 %v676_v42, %v675_v51 }
 0x258   :  { %6568 = vrot.lane.b32.xlu1 %v6567_v56, %s7211_s23  ;;  %v693_v56 = vld [vmem:[%s11071_s3 + $0x198] sm:$0xff] }
 0x259   :  { %v6284_v53 = vpop.permute.xlu0 %6283  ;;  %v6294_v62 = vpop.permute.xlu1 %6293 }
 0x25a   :  { %v6286_v27 = vunpack.i.h.bf16 %v6284_v53  ;;  %v6285_v20 = vunpack.i.l.bf16 %v6284_v53  ;;  %v694_v53 = vld [vmem:[%s11071_s3 + $0x1a0] sm:$0xff]  ;;  %v6295_v32 = vunpack.i.l.bf16 %v6294_v62 }
 0x25b   :  { %6573 = vrot.lane.b32.xlu0 %v6572_v1, %s7212_s24  ;;  %v6296_v1 = vunpack.i.h.bf16 %v6294_v62  ;;  %v6014_v62 = vpack.c.bf16 %v694_v53, %v693_v56  ;;  %v1094_v56 = vrot.slane %v7626_v2, 4 }
 0x25c   :  { %6578 = vrot.lane.b32.xlu1 %v6577_v54, %s7210_s22  ;;  %v1452_v36 = vsel %vm1451_vm3, 0.0, %v6286_v27  ;;  %v1502_v45 = vsel %vm1451_vm3, %v1091_v40, %v6285_v20  ;;  %v677_v27 = vld [vmem:[%s11071_s3 + $0x118] sm:$0xff]  ;;  %v1093_v40 = vsel %vm1088_vm2, %v1090_v61, %v1092_v19 }
 0x25d   :  { %v6289_v26 = vpop.permute.xlu0 %6288 }
 0x25e   :  { %v6291_v34 = vunpack.i.h.bf16 %v6289_v26  ;;  %v6290_v4 = vunpack.i.l.bf16 %v6289_v26  ;;  %v6299_v8 = vpop.permute.xlu1 %6298 }
 0x25f   :  { %6583 = vrot.lane.b32.xlu0 %v6582_v35, %s7211_s23  ;;  %v6301_v54 = vunpack.i.h.bf16 %v6299_v8  ;;  %v6300_v22 = vunpack.i.l.bf16 %v6299_v8 }
 0x260   :  { %v1518_v38 = vsel %vm1468_vm5, %v1502_v45, %v6290_v4  ;;  %v1469_v51 = vsel %vm1468_vm5, %v1452_v36, %v6291_v34  ;;  %6588 = vrot.lane.b32.xlu1 %v6587_v5, %s7212_s24  ;;  %v678_v34 = vld [vmem:[%s11071_s3 + $0x120] sm:$0xff] }
 0x261   :  { %v6304_v42 = vpop.permute.xlu0 %6303  ;;  %v1534_v26 = vsel %vm1485_vm6, %v1518_v38, %v6295_v32  ;;  %v1486_v60 = vsel %vm1485_vm6, %v1469_v51, %v6296_v1  ;;  %v1503_v5 = vsel %vm1451_vm3, %v1093_v40, %v6300_v22  ;;  %v1453_v61 = vsel %vm1451_vm3, %v7537_v7, %v6301_v54  ;;  %v679_v54 = vld [vmem:[%s11071_s3 + $0x128] sm:$0xff] }
 0x262   :  { %v6306_v20 = vunpack.i.h.bf16 %v6304_v42  ;;  %v6305_v35 = vunpack.i.l.bf16 %v6304_v42  ;;  %1726 = vmatprep.mubr.f32.mxu0 %v1534_v26  ;;  %v6309_v4 = vpop.permute.xlu1 %6308  ;;  %v6016_v45 = vpack.c.bf16 %v678_v34, %v677_v27  ;;  %v1095_v42 = vsel %vm1088_vm2, %v1092_v19, %v1094_v56  ;;  %v697_v26 = vld [vmem:[%s11071_s3 + $0x1b8] sm:$0xff] }
 0x263   :  { %1727 = vmatmul.mubr.f32.vlgmr.msra.gmra.mrb[16].mxu0 %v1486_v60  ;;  %6593 = vrot.lane.b32.xlu0 %v6592_v17, %s7210_s22  ;;  %v6311_v53 = vunpack.i.h.bf16 %v6309_v4  ;;  %v6310_v1 = vunpack.i.l.bf16 %v6309_v4  ;;  %v6018_v60 = vpack.c.bf16 %v696_v58, %v695_v12  ;;  %v1096_v4 = vrot.slane %v7681_v29, 4 }
 0x264   :  { %v1519_v32 = vsel %vm1468_vm5, %v1503_v5, %v6305_v35  ;;  %v1470_v36 = vsel %vm1468_vm5, %v1453_v61, %v6306_v20  ;;  %6013 = vmatpush3.bf16.msra.mxu0 %v6012_v6  ;;  %v680_v6 = vld [vmem:[%s11071_s3 + $0x130] sm:$0xff]  ;;  %v681_v61 = vld [vmem:[%s11071_s3 + $0x138] sm:$0xff] }
 0x265   :  { %v6314_v8 = vpop.permute.xlu0 %6313  ;;  %6015 = vmatprep.subr.bf16.mxu0 %v6014_v62  ;;  %v8235_v22 = vsel %vm1485_vm6, %v1519_v32, %v6310_v1  ;;  %v8238_v7 = vsel %vm1485_vm6, %v1470_v36, %v6311_v53  ;;  %v698_v62 = vld [vmem:[%s11071_s3 + $0x1c0] sm:$0xff]  ;;  %v6020_v19 = vpack.c.bf16 %v680_v6, %v679_v54  ;;  %v699_v32 = vld [vmem:[%s11071_s3 + $0x1c8] sm:$0xff]  ;;  %v700_v36 = vld [vmem:[%s11071_s3 + $0x1d0] sm:$0xff] }
 0x266   :  { %v6316_v38 = vunpack.i.h.bf16 %v6314_v8  ;;  %v6315_v17 = vunpack.i.l.bf16 %v6314_v8  ;;  %v6319_v51 = vpop.permute.xlu1 %6318  ;;  %1731 = vmatprep.mubr.f32.mxu0 %v8235_v22  ;;  %v6022_v5 = vpack.c.bf16 %v698_v62, %v697_v26  ;;  %v682_v53 = vld [vmem:[%s11071_s3 + $0x140] sm:$0xff]  ;;  %v1097_v26 = vsel %vm1088_vm2, %v1094_v56, %v1096_v4 }
 0x267   :  { %v6321_v27 = vunpack.i.h.bf16 %v6319_v51  ;;  %v6320_v20 = vunpack.i.l.bf16 %v6319_v51  ;;  %1732 = vmatmul.mubr.f32.gmra.mrb[18].mxu0 %v8238_v7  ;;  %v6024_v6 = vpack.c.bf16 %v682_v53, %v681_v61  ;;  %v6026_v62 = vpack.c.bf16 %v700_v36, %v699_v32 }
 0x268   :  { %v1504_v35 = vsel %vm1451_vm3, %v1095_v42, %v6315_v17  ;;  %v1454_v40 = vsel %vm1451_vm3, %v7602_v50, %v6316_v38  ;;  %6017 = vmatpush3.bf16.msra.mxu0 %v6016_v45 }
 0x269   :  { %v6324_v34 = vpop.permute.xlu0 %6323  ;;  %6019 = vmatprep.subr.bf16.mxu0 %v6018_v60  ;;  %v1520_v1 = vsel %vm1468_vm5, %v1504_v35, %v6320_v20  ;;  %v1471_v50 = vsel %vm1468_vm5, %v1454_v40, %v6321_v27  ;;  %v1098_v35 = vrot.slane %v7695_v31, 4  ;;  %v683_v40 = vld [vmem:[%s11071_s3 + $0x148] sm:$0xff] }
 0x26a   :  { %v6326_v12 = vunpack.i.h.bf16 %v6324_v34  ;;  %v6325_v58 = vunpack.i.l.bf16 %v6324_v34  ;;  %v6329_v8 = vpop.permute.xlu1 %6328  ;;  %v684_v34 = vld [vmem:[%s11071_s3 + $0x150] sm:$0xff] }
 0x26b   :  { %v6331_v38 = vunpack.i.h.bf16 %v6329_v8  ;;  %v6330_v17 = vunpack.i.l.bf16 %v6329_v8  ;;  %v6028_v32 = vpack.c.bf16 %v684_v34, %v683_v40 }
 0x26c   :  { %v8274_v45 = vsel %vm1485_vm6, %v1520_v1, %v6325_v58  ;;  %v8277_v60 = vsel %vm1485_vm6, %v1471_v50, %v6326_v12  ;;  %6021 = vmatpush3.bf16.msra.mxu0 %v6020_v19  ;;  %v701_v58 = vld [vmem:[%s11071_s3 + $0x1d8] sm:$0xff] }
 0x26d   :  { %v6334_v54 = vpop.permute.xlu0 %6333  ;;  %1736 = vmatprep.mubr.f32.mxu0 %v8274_v45  ;;  %6023 = vmatprep.subr.bf16.mxu0 %v6022_v5  ;;  %v1505_v27 = vsel %vm1451_vm3, %v1097_v26, %v6330_v17  ;;  %v1455_v20 = vsel %vm1451_vm3, %v7626_v2, %v6331_v38  ;;  %v702_v2 = vld [vmem:[%s11071_s3 + $0x1e0] sm:$0xff]  ;;  %v1099_v38 = vsel %vm1088_vm2, %v1096_v4, %v1098_v35 }
 0x26e   :  { %v6336_v51 = vunpack.i.h.bf16 %v6334_v54  ;;  %v6335_v42 = vunpack.i.l.bf16 %v6334_v54  ;;  %1737 = vmatmul.mubr.f32.gmra.mrb[20].mxu0 %v8277_v60  ;;  %v6339_v19 = vpop.permute.xlu1 %6338  ;;  %v6030_v17 = vpack.c.bf16 %v702_v2, %v701_v58  ;;  %v686_v26 = vld [vmem:[%s11071_s3 + $0x160] sm:$0xff] }
 0x26f   :  { %v6341_v5 = vunpack.i.h.bf16 %v6339_v19  ;;  %v6340_v61 = vunpack.i.l.bf16 %v6339_v19  ;;  %v1100_v19 = vrot.slane %v7701_v25, 4 }
 0x270   :  { %v1521_v56 = vsel %vm1468_vm5, %v1505_v27, %v6335_v42  ;;  %v1472_v12 = vsel %vm1468_vm5, %v1455_v20, %v6336_v51  ;;  %6025 = vmatpush3.bf16.msra.mxu0 %v6024_v6  ;;  %v685_v42 = vld [vmem:[%s11071_s3 + $0x158] sm:$0xff]  ;;  %v703_v20 = vld [vmem:[%s11071_s3 + $0x1e8] sm:$0xff] }
 0x271   :  { %v6344_v53 = vpop.permute.xlu0 %6343  ;;  %6027 = vmatprep.subr.bf16.mxu0 %v6026_v62  ;;  %v8301_v36 = vsel %vm1485_vm6, %v1521_v56, %v6340_v61  ;;  %v8304_v8 = vsel %vm1485_vm6, %v1472_v12, %v6341_v5  ;;  %v6032_v58 = vpack.c.bf16 %v686_v26, %v685_v42  ;;  %v1101_v26 = vsel %vm1088_vm2, %v1098_v35, %v1100_v19  ;;  %v689_v35 = vld [vmem:[%s11071_s3 + $0x178] sm:$0xff] }
 0x272   :  { %v6346_v1 = vunpack.i.h.bf16 %v6344_v53  ;;  %v6345_v50 = vunpack.i.l.bf16 %v6344_v53  ;;  %v6349_v54 = vpop.permute.xlu1 %6348  ;;  %1741 = vmatprep.mubr.f32.mxu0 %v8301_v36 }
 0x273   :  { %v6351_v62 = vunpack.i.h.bf16 %v6349_v54  ;;  %v6350_v27 = vunpack.i.l.bf16 %v6349_v54  ;;  %1742 = vmatmul.mubr.f32.gmra.mrb[22].mxu0 %v8304_v8  ;;  %v705_v54 = vld [vmem:[%s11071_s3 + $0x1f8] sm:$0xff] }
 0x274   :  { %v1506_v51 = vsel %vm1451_vm3, %v1099_v38, %v6345_v50  ;;  %v1456_v6 = vsel %vm1451_vm3, %v7681_v29, %v6346_v1  ;;  %v704_v29 = vld [vmem:[%s11071_s3 + $0x1f0] sm:$0xff]  ;;  %6029 = vmatpush3.bf16.msra.mxu0 %v6028_v32  ;;  %v687_v1 = vld [vmem:[%s11071_s3 + $0x168] sm:$0xff] }
 0x275   :  { %v6354_v4 = vpop.permute.xlu0 %6353  ;;  %v1522_v56 = vsel %vm1468_vm5, %v1506_v51, %v6350_v27  ;;  %v1473_v12 = vsel %vm1468_vm5, %v1456_v6, %v6351_v62  ;;  %6031 = vmatprep.subr.bf16.mxu0 %v6030_v17  ;;  %v6034_v53 = vpack.c.bf16 %v704_v29, %v703_v20  ;;  %v688_v50 = vld [vmem:[%s11071_s3 + $0x170] sm:$0xff]  ;;  %v706_v51 = vld [vmem:[%s11071_s3 + $0x200] sm:$0xff] }
 0x276   :  { %v6356_v40 = vunpack.i.h.bf16 %v6354_v4  ;;  %v6355_v34 = vunpack.i.l.bf16 %v6354_v4  ;;  %v6359_v2 = vpop.permute.xlu1 %6358  ;;  %v1102_v4 = vrot.slane %v7740_v44, 4  ;;  %v6036_v20 = vpack.c.bf16 %v688_v50, %v687_v1  ;;  %v755_v1 = vld [vmem:[%s11071_s3 + $0x388] sm:$0xff] }
 0x277   :  { %v6361_v32 = vunpack.i.h.bf16 %v6359_v2  ;;  %v6360_v38 = vunpack.i.l.bf16 %v6359_v2 }
 0x278   :  { %v8328_v5 = vsel %vm1485_vm6, %v1522_v56, %v6355_v34  ;;  %v8331_v61 = vsel %vm1485_vm6, %v1473_v12, %v6356_v40  ;;  %6033 = vmatpush3.bf16.msra.mxu0 %v6032_v58  ;;  %v6038_v56 = vpack.c.bf16 %v706_v51, %v705_v54  ;;  %v690_v12 = vld [vmem:[%s11071_s3 + $0x180] sm:$0xff]  ;;  %v1103_v54 = vsel %vm1088_vm2, %v1100_v19, %v1102_v4 }
 0x279   :  { %v6364_v17 = vpop.permute.xlu0 %6363  ;;  %1746 = vmatprep.mubr.f32.mxu0 %v8328_v5  ;;  %v1507_v62 = vsel %vm1451_vm3, %v1101_v26, %v6360_v38  ;;  %v1457_v27 = vsel %vm1451_vm3, %v7695_v31, %v6361_v32  ;;  %6035 = vmatprep.subr.bf16.mxu0 %v6034_v53  ;;  %v756_v53 = vld [vmem:[%s11071_s3 + $0x390] sm:$0xff]  ;;  %v6040_v51 = vpack.c.bf16 %v690_v12, %v689_v35  ;;  %v11101_v19 = vrot.slane %v7761_v46, 4 }
 0x27a   :  { %v6366_v6 = vunpack.i.h.bf16 %v6364_v17  ;;  %v6365_v42 = vunpack.i.l.bf16 %v6364_v17  ;;  %1747 = vmatmul.mubr.f32.gmra.mrb[24].mxu0 %v8331_v61  ;;  %v6369_v29 = vpop.permute.xlu1 %6368 }
 0x27b   :  { %v6371_v31 = vunpack.i.h.bf16 %v6369_v29  ;;  %v6370_v58 = vunpack.i.l.bf16 %v6369_v29 }
 0x27c   :  { %v1523_v40 = vsel %vm1468_vm5, %v1507_v62, %v6365_v42  ;;  %v1474_v34 = vsel %vm1468_vm5, %v1457_v27, %v6366_v6  ;;  %6037 = vmatpush3.bf16.msra.mxu0 %v6036_v20  ;;  %v6074_v62 = vpack.c.bf16 %v756_v53, %v755_v1 }
 0x27d   :  { %v6374_v2 = vpop.permute.xlu0 %6373  ;;  %v8367_v38 = vsel %vm1485_vm6, %v1523_v40, %v6370_v58  ;;  %v8370_v17 = vsel %vm1485_vm6, %v1474_v34, %v6371_v31  ;;  %6039 = vmatprep.subr.bf16.mxu0 %v6038_v56 }
 0x27e   :  { %v6376_v50 = vunpack.i.h.bf16 %v6374_v2  ;;  %v6375_v32 = vunpack.i.l.bf16 %v6374_v2  ;;  %v6379_v6 = vpop.permute.xlu1 %6378  ;;  %1751 = vmatprep.mubr.f32.mxu0 %v8367_v38 }
 0x27f   :  { %v6381_v27 = vunpack.i.h.bf16 %v6379_v6  ;;  %v6380_v29 = vunpack.i.l.bf16 %v6379_v6  ;;  %1752 = vmatmul.mubr.f32.gmra.mrb[26].mxu0 %v8370_v17 }
 0x280   :  { %v1508_v42 = vsel %vm1451_vm3, %v1103_v54, %v6375_v32  ;;  %v1458_v26 = vsel %vm1451_vm3, %v7701_v25, %v6376_v50  ;;  %6041 = vmatpush3.bf16.msra.mxu0 %v6040_v51  ;;  %v1105_v32 = vsel %vm1088_vm2, %v1102_v4, %v11101_v19  ;;  %v739_v4 = vld [vmem:[%s11071_s3 + $0x308] sm:$0xff]  ;;  %v8468_v19 = vld [vmem:[%s11071_s3 + $0x3c0] sm:$0xff] }
 0x281   :  { %v6384_v40 = vpop.permute.xlu0 %6383  ;;  %v1524_v20 = vsel %vm1468_vm5, %v1508_v42, %v6380_v29  ;;  %v1475_v35 = vsel %vm1468_vm5, %v1458_v26, %v6381_v27  ;;  %6075 = vmatprep.subr.bf16.mxu0 %v6074_v62 }
 0x282   :  { %v6386_v34 = vunpack.i.h.bf16 %v6384_v40  ;;  %v6385_v31 = vunpack.i.l.bf16 %v6384_v40  ;;  %v6389_v12 = vpop.permute.xlu1 %6388 }
 0x283   :  { %v6391_v56 = vunpack.i.h.bf16 %v6389_v12  ;;  %v6390_v2 = vunpack.i.l.bf16 %v6389_v12 }
 0x284   :  { %v8382_v58 = vsel %vm1485_vm6, %v1524_v20, %v6385_v31  ;;  %v8385_v25 = vsel %vm1485_vm6, %v1475_v35, %v6386_v34  ;;  %v757_v20 = vld [vmem:[%s11071_s3 + $0x398] sm:$0xff]  ;;  %v758_v35 = vld [vmem:[%s11071_s3 + $0x3a0] sm:$0xff] }
 0x285   :  { %v6394_v1 = vpop.permute.xlu0 %6393  ;;  %1756 = vmatprep.mubr.f32.mxu0 %v8382_v58  ;;  %v1509_v54 = vsel %vm1451_vm3, %v1105_v32, %v6390_v2  ;;  %v1459_v51 = vsel %vm1451_vm3, %v7740_v44, %v6391_v56  ;;  %v740_v44 = vld [vmem:[%s11071_s3 + $0x310] sm:$0xff]  ;;  %v741_v2 = vld [vmem:[%s11071_s3 + $0x318] sm:$0xff] }
 0x286   :  { %v6396_v53 = vunpack.i.h.bf16 %v6394_v1  ;;  %v6395_v50 = vunpack.i.l.bf16 %v6394_v1  ;;  %1757 = vmatmul.mubr.f32.gmra.mrb[28].mxu0 %v8385_v25  ;;  %v6399_v6 = vpop.permute.xlu1 %6398  ;;  %v6076_v56 = vpack.c.bf16 %v740_v44, %v739_v4  ;;  %v742_v1 = vld [vmem:[%s11071_s3 + $0x320] sm:$0xff]  ;;  %v760_v32 = vld [vmem:[%s11071_s3 + $0x3b0] sm:$0xff] }
 0x287   :  { %v6401_v62 = vunpack.i.h.bf16 %v6399_v6  ;;  %v6400_v27 = vunpack.i.l.bf16 %v6399_v6  ;;  %v1108_v6 = vrot.slane %v7837_v37, 4  ;;  %v6080_v16 = vpack.c.bf16 %v742_v1, %v741_v2 }
 0x288   :  { %v1525_v42 = vsel %vm1468_vm5, %v1509_v54, %v6395_v50  ;;  %v1476_v26 = vsel %vm1468_vm5, %v1459_v51, %v6396_v53  ;;  %v6078_v53 = vpack.c.bf16 %v758_v35, %v757_v20  ;;  %v759_v50 = vld [vmem:[%s11071_s3 + $0x3a8] sm:$0xff]  ;;  %v1106_v51 = vrot.slane %v7806_v10, 4  ;;  %v8463_v35 = vld [vmem:[%s11071_s3 + $0x3b8] sm:$0xff]  ;;  %v8479_v20 = vld [vmem:[%s11071_s3 + $0x340] sm:$0xff] }
 0x289   :  { %v8397_v29 = vpop.permute.xlu0 %6403  ;;  %v8400_v40 = vsel %vm1485_vm6, %v1525_v42, %v6400_v27  ;;  %v8403_v34 = vsel %vm1485_vm6, %v1476_v26, %v6401_v62  ;;  %v8446_v42 = vld [vmem:[%s11071_s3 + $0x330] sm:$0xff]  ;;  %v8451_v26 = vld [vmem:[%s11071_s3 + $0x208] sm:$0xff] }
 0x28a   :  { %v8411_v31 = vpop.permute.xlu1 %6408  ;;  %1761 = vmatprep.mubr.f32.mxu0 %v8400_v40  ;;  %v8456_v62 = vld [vmem:[%s11071_s3 + $0x210] sm:$0xff]  ;;  %v1107_v1 = vsel %vm1088_vm2, %v8175_v3, %v1106_v51 }
 0x28b   :  { %1762 = vmatmul.mubr.f32.gmra.mrb[30].mxu0 %v8403_v34 }
 0x28c   :  { %1871 = vmatprep.mubr.f32.mxu0 %v8235_v22  ;;  %v8437_v22 = vld [vmem:[%s11071_s3 + $0x328] sm:$0xff] }
 0x28d   :  { %v6419_v12 = vpop.permute.xlu0 %6418  ;;  %v6084_v23 = vpack.c.bf16 %v8446_v42, %v8437_v22  ;;  %v726_v22 = vld [vmem:[%s11071_s3 + $0x2a0] sm:$0xff] }
 0x28e   :  { %v8439_v54 = vpop.permute.xlu1 %6413  ;;  %v6421_v27 = vunpack.i.h.bf16 %v6419_v12  ;;  %v6420_v4 = vunpack.i.l.bf16 %v6419_v12  ;;  %v6082_v12 = vpack.c.bf16 %v760_v32, %v759_v50  ;;  %v1109_v50 = vsel %vm1088_vm2, %v1106_v51, %v1108_v6 }
 0x28f   :  { %1872 = vmatmul.mubr.f32.vlgmr.msra.gmra.mrb[32].mxu0 %v8238_v7  ;;  %v8474_v7 = vld [vmem:[%s11071_s3 + $0x338] sm:$0xff]  ;;  %v6086_v32 = vpack.c.bf16 %v8468_v19, %v8463_v35 }
 0x290   :  { %1876 = vmatprep.mubr.f32.mxu0 %v8274_v45  ;;  %6077 = vmatpush3.bf16.msra.mxu0 %v6076_v56  ;;  %v6044_v56 = vpack.c.bf16 %v8456_v62, %v8451_v26  ;;  %v1460_v42 = vsel %vm1451_vm3, 0.0, %v6421_v27  ;;  %v1510_v51 = vsel %vm1451_vm3, %v1107_v1, %v6420_v4  ;;  %v11194_v62 = vrot.slane %v7887_v52, 4  ;;  %v8510_v35 = vld [vmem:[%s11071_s3 + $0x218] sm:$0xff]  ;;  %v8515_v27 = vld [vmem:[%s11071_s3 + $0x220] sm:$0xff] }
 0x291   :  { %v6424_v44 = vpop.permute.xlu0 %6423  ;;  %6079 = vmatprep.subr.bf16.mxu0 %v6078_v53  ;;  %v725_v53 = vld [vmem:[%s11071_s3 + $0x298] sm:$0xff] }
 0x292   :  { %v6426_v28 = vunpack.i.h.bf16 %v6424_v44  ;;  %v6425_v24 = vunpack.i.l.bf16 %v6424_v44  ;;  %v6429_v2 = vpop.permute.xlu1 %6428  ;;  %v8503_v19 = vsel %vm1088_vm2, %v1108_v6, %v11194_v62  ;;  %v8521_v62 = vld [vmem:[%s11071_s3 + $0x2a8] sm:$0xff]  ;;  %v8526_v44 = vld [vmem:[%s11071_s3 + $0x2b0] sm:$0xff]  ;;  %v6046_v55 = vpack.c.bf16 %v726_v22, %v725_v53 }
 0x293   :  { %1877 = vmatmul.mubr.f32.gmra.mrb[34].mxu0 %v8277_v60  ;;  %v6431_v49 = vunpack.i.h.bf16 %v6429_v2  ;;  %v6430_v4 = vunpack.i.l.bf16 %v6429_v2  ;;  %v1112_v2 = vrot.slane %v7904_v15, 4  ;;  %v6050_v14 = vpack.c.bf16 %v8526_v44, %v8521_v62  ;;  %v763_v22 = vld [vmem:[%s11071_s3 + $0x3c8] sm:$0xff] }
 0x294   :  { %1881 = vmatprep.mubr.f32.mxu0 %v8301_v36  ;;  %6081 = vmatpush3.bf16.msra.mxu0 %v6080_v16  ;;  %v1526_v13 = vsel %vm1468_vm5, %v1510_v51, %v6425_v24  ;;  %v1477_v18 = vsel %vm1468_vm5, %v1460_v42, %v6426_v28  ;;  %v6048_v24 = vpack.c.bf16 %v8515_v27, %v8510_v35  ;;  %v8545_v28 = vld [vmem:[%s11071_s3 + $0x228] sm:$0xff]  ;;  %v764_v42 = vld [vmem:[%s11071_s3 + $0x3d0] sm:$0xff] }
 0x295   :  { %v6434_v26 = vpop.permute.xlu0 %6433  ;;  %6083 = vmatprep.subr.bf16.mxu0 %v6082_v12  ;;  %v1511_v27 = vsel %vm1451_vm3, %v1109_v50, %v6430_v4  ;;  %v8569_v44 = vld [vmem:[%s11071_s3 + $0x348] sm:$0xff] }
 0x296   :  { %v6436_v1 = vunpack.i.h.bf16 %v6434_v26  ;;  %v6435_v6 = vunpack.i.l.bf16 %v6434_v26  ;;  %v6439_v26 = vpop.permute.xlu1 %6438 }
 0x297   :  { %v6440_v12 = vunpack.i.l.bf16 %v6439_v26  ;;  %1882 = vmatmul.mubr.f32.gmra.mrb[36].mxu0 %v8304_v8 }
 0x298   :  { %v1542_v16 = vsel %vm1485_vm6, %v1526_v13, %v6435_v6  ;;  %v1494_v11 = vsel %vm1485_vm6, %v1477_v18, %v6436_v1  ;;  %v8550_v13 = vld [vmem:[%s11071_s3 + $0x230] sm:$0xff]  ;;  %v6441_v18 = vunpack.i.h.bf16 %v6439_v26  ;;  %1886 = vmatprep.mubr.f32.mxu0 %v8328_v5  ;;  %v1461_v1 = vsel %vm1451_vm3, %v7806_v10, %v6431_v49  ;;  %6085 = vmatpush3.bf16.msra.mxu0 %v6084_v23  ;;  %v8583_v49 = vld [vmem:[%s11071_s3 + $0x2b8] sm:$0xff]  ;;  %v8588_v10 = vld [vmem:[%s11071_s3 + $0x2c0] sm:$0xff] }
 0x299   :  { %v6444_v53 = vpop.permute.xlu0 %6443  ;;  %1766 = vmatprep.mubr.f32.mxu1 %v1542_v16  ;;  %v8574_v6 = vld [vmem:[%s11071_s3 + $0x350] sm:$0xff]  ;;  %v1527_v62 = vsel %vm1468_vm5, %v1511_v27, %v6440_v12  ;;  %6087 = vmatprep.subr.bf16.mxu0 %v6086_v32  ;;  %v8599_v16 = vld [vmem:[%s11071_s3 + $0x238] sm:$0xff]  ;;  %v11199_v0 = vpack.c.bf16 %v8550_v13, %v8545_v28 }
 0x29a   :  { %v6446_v51 = vunpack.i.h.bf16 %v6444_v53  ;;  %v6445_v35 = vunpack.i.l.bf16 %v6444_v53  ;;  %1767 = vmatmul.mubr.f32.vlgmr.msra.gmra.mrb[16].mxu1 %v1494_v11  ;;  %v1478_v26 = vsel %vm1468_vm5, %v1461_v1, %v6441_v18  ;;  %v6449_v50 = vpop.permute.xlu1 %6448  ;;  %v8604_v18 = vld [vmem:[%s11071_s3 + $0x240] sm:$0xff] }
 0x29b   :  { %6045 = vmatpush3.bf16.msra.mxu1 %v6044_v56  ;;  %v6090_v56 = vpack.c.bf16 %v764_v42, %v763_v22  ;;  %v6451_v12 = vunpack.i.h.bf16 %v6449_v50  ;;  %v6450_v53 = vunpack.i.l.bf16 %v6449_v50  ;;  %1887 = vmatmul.mubr.f32.gmra.mrb[38].mxu0 %v8331_v61  ;;  %v6092_v22 = vpack.c.bf16 %v8574_v6, %v8569_v44  ;;  %v8616_v42 = vld [vmem:[%s11071_s3 + $0x2c8] sm:$0xff]  ;;  %v765_v50 = vld [vmem:[%s11071_s3 + $0x3d8] sm:$0xff] }
 0x29c   :  { %v8591_v4 = vsel %vm1485_vm6, %v1527_v62, %v6445_v35  ;;  %v8594_v23 = vsel %vm1485_vm6, %v1478_v26, %v6446_v51  ;;  %6047 = vmatprep.subr.bf16.mxu1 %v6046_v55  ;;  %v11197_v55 = vrot.slane %v7887_v52, 4  ;;  %v8621_v51 = vld [vmem:[%s11071_s3 + $0x2d0] sm:$0xff]  ;;  %1891 = vmatprep.mubr.f32.mxu0 %v8367_v38  ;;  %v8628_v44 = vsel %vm1088_vm2, %v1112_v2, %v11126_v39  ;;  %v8635_v62 = vld [vmem:[%s11071_s3 + $0x248] sm:$0xff]  ;;  %v749_v39 = vld [vmem:[%s11071_s3 + $0x358] sm:$0xff] }
 0x29d   :  { %v6454_v35 = vpop.permute.xlu0 %6453  ;;  %1771 = vmatprep.mubr.f32.mxu1 %v8591_v4  ;;  %v6054_v6 = vpack.c.bf16 %v8588_v10, %v8583_v49  ;;  %v8640_v26 = vld [vmem:[%s11071_s3 + $0x250] sm:$0xff]  ;;  %v1462_v49 = vsel %vm1451_vm3, %v7837_v37, %v6451_v12  ;;  %v11198_v10 = vpack.c.bf16 %v8479_v20, %v8474_v7  ;;  %v750_v37 = vld [vmem:[%s11071_s3 + $0x360] sm:$0xff] }
 0x29e   :  { %v1113_v32 = vsel %vm1088_vm2, %v11197_v55, %v1112_v2  ;;  %v6456_v27 = vunpack.i.h.bf16 %v6454_v35  ;;  %v6455_v1 = vunpack.i.l.bf16 %v6454_v35  ;;  %1772 = vmatmul.mubr.f32.gmra.mrb[18].mxu1 %v8594_v23  ;;  %v1512_v2 = vsel %vm1451_vm3, %v8503_v19, %v6450_v53  ;;  %v766_v55 = vld [vmem:[%s11071_s3 + $0x3e0] sm:$0xff]  ;;  %v6459_v19 = vpop.permute.xlu1 %6458  ;;  %v8671_v53 = vld [vmem:[%s11071_s3 + $0x2d8] sm:$0xff] }
 0x29f   :  { %6089 = vmatpush3.bf16.msra.mxu0 %v11198_v10  ;;  %6049 = vmatpush3.bf16.msra.mxu1 %v6048_v24  ;;  %v8676_v10 = vld [vmem:[%s11071_s3 + $0x2e0] sm:$0xff]  ;;  %v768_v24 = vld [vmem:[%s11071_s3 + $0x3f0] sm:$0xff]  ;;  %v6094_v11 = vpack.c.bf16 %v766_v55, %v765_v50 }
 0x2a0   :  { %v1528_v20 = vsel %vm1468_vm5, %v1512_v2, %v6455_v1  ;;  %v1479_v7 = vsel %vm1468_vm5, %v1462_v49, %v6456_v27  ;;  %6051 = vmatprep.subr.bf16.mxu1 %v6050_v14  ;;  %6091 = vmatprep.subr.bf16.mxu0 %v6090_v56  ;;  %v6405_v1 = vunpack.i.l.bf16 %v8397_v29  ;;  %v6461_v27 = vunpack.i.h.bf16 %v6459_v19  ;;  %v767_v49 = vld [vmem:[%s11071_s3 + $0x3e8] sm:$0xff]  ;;  %v752_v50 = vld [vmem:[%s11071_s3 + $0x370] sm:$0xff]  ;;  %v8717_v55 = vld [vmem:[%s11071_s3 + $0x400] sm:$0xff] }
 0x2a1   :  { %v6460_v14 = vunpack.i.l.bf16 %v6459_v19  ;;  %1892 = vmatmul.mubr.f32.gmra.mrb[40].mxu0 %v8370_v17  ;;  %v6464_v56 = vpop.permute.xlu0 %6463  ;;  %v6096_v19 = vpack.c.bf16 %v750_v37, %v749_v39  ;;  %v6406_v2 = vunpack.i.h.bf16 %v8397_v29  ;;  %v6062_v39 = vpack.c.bf16 %v8676_v10, %v8671_v53  ;;  %v8712_v29 = vld [vmem:[%s11071_s3 + $0x3f8] sm:$0xff]  ;;  %v738_v53 = vld [vmem:[%s11071_s3 + $0x300] sm:$0xff] }
 0x2a2   :  { %1896 = vmatprep.mubr.f32.mxu0 %v8382_v58  ;;  %v6466_v12 = vunpack.i.h.bf16 %v6464_v56  ;;  %v6465_v35 = vunpack.i.l.bf16 %v6464_v56  ;;  %v8699_v30 = vsel %vm1485_vm6, %v1479_v7, %v6461_v27  ;;  %v6469_v28 = vpop.permute.xlu1 %6468  ;;  %v6098_v37 = vpack.c.bf16 %v768_v24, %v767_v49  ;;  %v8739_v24 = vld [vmem:[%s11071_s3 + $0x2e8] sm:$0xff] }
 0x2a3   :  { %v8696_v43 = vsel %vm1485_vm6, %v1528_v20, %v6460_v14  ;;  %6053 = vmatpush3.bf16.msra.mxu1 %v11199_v0  ;;  %6093 = vmatpush3.bf16.msra.mxu0 %v6092_v22  ;;  %v6410_v0 = vunpack.i.l.bf16 %v8411_v31  ;;  %v6415_v20 = vunpack.i.l.bf16 %v8439_v54  ;;  %v6471_v7 = vunpack.i.h.bf16 %v6469_v28 }
 0x2a4   :  { %1776 = vmatprep.mubr.f32.mxu1 %v8696_v43  ;;  %v1513_v13 = vsel %vm1451_vm3, %v1113_v32, %v6465_v35  ;;  %v1463_v22 = vsel %vm1451_vm3, %v7887_v52, %v6466_v12  ;;  %6055 = vmatprep.subr.bf16.mxu1 %v6054_v6  ;;  %v6470_v27 = vunpack.i.l.bf16 %v6469_v28  ;;  %v1556_v56 = vsel %vm1451_vm3, %v8538_v47, %v6405_v1  ;;  %v717_v52 = vld [vmem:[%s11071_s3 + $0x258] sm:$0xff]  ;;  %v718_v6 = vld [vmem:[%s11071_s3 + $0x260] sm:$0xff] }
 0x2a5   :  { %1777 = vmatmul.mubr.f32.gmra.mrb[20].mxu1 %v8699_v30  ;;  %1897 = vmatmul.mubr.f32.gmra.mrb[42].mxu0 %v8385_v25  ;;  %v6474_v14 = vpop.permute.xlu0 %6473  ;;  %v6100_v47 = vpack.c.bf16 %v752_v50, %v8692_v63  ;;  %v6102_v12 = vpack.c.bf16 %v8717_v55, %v8712_v29  ;;  %v1480_v49 = vsel %vm1468_vm5, %v1463_v22, %v6471_v7  ;;  %v736_v63 = vld [vmem:[%s11071_s3 + $0x2f0] sm:$0xff]  ;;  %v754_v50 = vld [vmem:[%s11071_s3 + $0x380] sm:$0xff]  ;;  %v6416_v29 = vunpack.i.h.bf16 %v8439_v54 }
 0x2a6   :  { %1901 = vmatprep.mubr.f32.mxu0 %v8400_v40  ;;  %v6476_v32 = vunpack.i.h.bf16 %v6474_v14  ;;  %v6475_v35 = vunpack.i.l.bf16 %v6474_v14  ;;  %6095 = vmatprep.subr.bf16.mxu0 %v6094_v11  ;;  %v6411_v11 = vunpack.i.h.bf16 %v8411_v31  ;;  %v1529_v1 = vsel %vm1468_vm5, %v1513_v13, %v6470_v27  ;;  %v753_v31 = vld [vmem:[%s11071_s3 + $0x378] sm:$0xff] }
 0x2a7   :  { %v1550_v28 = vsel %vm1451_vm3, %v7761_v46, %v6406_v2  ;;  %v11200_v14 = vpack.c.bf16 %v8604_v18, %v8599_v16  ;;  %6097 = vmatpush3.bf16.msra.mxu0 %v6096_v19  ;;  %v6479_v46 = vpop.permute.xlu1 %6478  ;;  %v1558_v2 = vsel %vm1468_vm5, %v1556_v56, %v6410_v0  ;;  %v11201_v19 = vpack.c.bf16 %v8621_v51, %v8616_v42 }
 0x2a8   :  { %v8764_v16 = vsel %vm1485_vm6, %v1529_v1, %v6475_v35  ;;  %v8767_v18 = vsel %vm1485_vm6, %v1480_v49, %v6476_v32  ;;  %6099 = vmatprep.subr.bf16.mxu0 %v6098_v37  ;;  %v6481_v55 = vunpack.i.h.bf16 %v6479_v46  ;;  %v6480_v13 = vunpack.i.l.bf16 %v6479_v46  ;;  %v721_v46 = vld [vmem:[%s11071_s3 + $0x278] sm:$0xff] }
 0x2a9   :  { %6057 = vmatpush3.bf16.msra.mxu1 %v11200_v14  ;;  %1902 = vmatmul.mubr.f32.gmra.mrb[44].mxu0 %v8403_v34  ;;  %v8774_v54 = vsel %vm1485_vm6, %v1558_v2, %v6415_v20  ;;  %v6484_v22 = vpop.permute.xlu0 %6483  ;;  %v6064_v0 = vpack.c.bf16 %v718_v6, %v717_v52  ;;  %v6066_v42 = vpack.c.bf16 %v736_v63, %v8739_v24  ;;  %v11203_v1 = vrot.slane %v7953_v48, 4  ;;  %v722_v2 = vld [vmem:[%s11071_s3 + $0x280] sm:$0xff] }
 0x2aa   :  { %6059 = vmatprep.subr.bf16.mxu1 %v11201_v19  ;;  %1781 = vmatprep.mubr.f32.mxu1 %v8764_v16  ;;  %v6486_v7 = vunpack.i.h.bf16 %v6484_v22  ;;  %v6485_v27 = vunpack.i.l.bf16 %v6484_v22  ;;  %v6104_v51 = vpack.c.bf16 %v754_v50, %v753_v31  ;;  %v1552_v37 = vsel %vm1468_vm5, %v1550_v28, %v6411_v11  ;;  %v737_v11 = vld [vmem:[%s11071_s3 + $0x2f8] sm:$0xff] }
 0x2ab   :  { %1906 = vmatprep.mubr.f32.mxu0 %v8774_v54  ;;  %1782 = vmatmul.mubr.f32.gmra.mrb[22].mxu1 %v8767_v18  ;;  %v1514_v56 = vsel %vm1451_vm3, %v8628_v44, %v6480_v13  ;;  %v1464_v20 = vsel %vm1451_vm3, %v7904_v15, %v6481_v55  ;;  %v11202_v32 = vpack.c.bf16 %v8640_v26, %v8635_v62  ;;  %v6489_v35 = vpop.permute.xlu1 %6488  ;;  %v719_v15 = vld [vmem:[%s11071_s3 + $0x268] sm:$0xff]  ;;  %v720_v44 = vld [vmem:[%s11071_s3 + $0x270] sm:$0xff] }
 0x2ac   :  { %6101 = vmatpush3.bf16.msra.mxu0 %v6100_v47  ;;  %v8789_v52 = vsel %vm1485_vm6, %v1552_v37, %v6416_v29  ;;  %v1530_v6 = vsel %vm1468_vm5, %v1514_v56, %v6485_v27  ;;  %v1481_v24 = vsel %vm1468_vm5, %v1464_v20, %v6486_v7  ;;  %v6491_v62 = vunpack.i.h.bf16 %v6489_v35 }
 0x2ad   :  { %6061 = vmatpush3.bf16.msra.mxu1 %v11202_v32  ;;  %6103 = vmatprep.subr.bf16.mxu0 %v6102_v12  ;;  %v6490_v26 = vunpack.i.l.bf16 %v6489_v35  ;;  %v6494_v47 = vpop.permute.xlu0 %6493  ;;  %v11204_v12 = vrot.slane %v7926_v41, 4  ;;  %v6068_v63 = vpack.c.bf16 %v720_v44, %v719_v15  ;;  %v6070_v29 = vpack.c.bf16 %v738_v53, %v737_v11 }
 0x2ae   :  { %6063 = vmatprep.subr.bf16.mxu1 %v6062_v39  ;;  %1907 = vmatmul.mubr.f32.gmra.mrb[46].mxu0 %v8789_v52  ;;  %v6496_v10 = vunpack.i.h.bf16 %v6494_v47  ;;  %v6495_v39 = vunpack.i.l.bf16 %v6494_v47  ;;  %v8819_v14 = vsel %vm1485_vm6, %v1481_v24, %v6491_v62  ;;  %v11205_v24 = vmov %v11203_v1 }
 0x2af   :  { %1911 = vmatprep.mubr.f32.mxu0 %v8591_v4  ;;  %v1117_v49 = vsel %vm1088_vm2, %v11204_v12, %v11203_v1  ;;  %v8816_v28 = vsel %vm1485_vm6, %v1530_v6, %v6490_v26  ;;  %v6499_v31 = vpop.permute.xlu1 %6498  ;;  %v1120_v26 = vrot.slane %v8063_v21, 4 }
 0x2b0   :  { %6105 = vmatpush3.bf16.msra.mxu0 %v6104_v51  ;;  %1786 = vmatprep.mubr.f32.mxu1 %v8816_v28  ;;  %v1515_v4 = vsel %vm1451_vm3, %v1117_v49, %v6495_v39  ;;  %v1465_v50 = vsel %vm1451_vm3, %v7926_v41, %v6496_v10  ;;  %v6501_v19 = vunpack.i.h.bf16 %v6499_v31  ;;  %v6500_v55 = vunpack.i.l.bf16 %v6499_v31 }
 0x2b1   :  { %6065 = vmatpush3.bf16.msra.mxu1 %v6064_v0  ;;  %v6504_v13 = vpop.permute.xlu0 %6503  ;;  %v1118_v0 = vrot.slane %v8034_v57, 4 }
 0x2b2   :  { %6067 = vmatprep.subr.bf16.mxu1 %v6066_v42  ;;  %1787 = vmatmul.mubr.f32.gmra.mrb[24].mxu1 %v8819_v14  ;;  %v6506_v41 = vunpack.i.h.bf16 %v6504_v13  ;;  %v6505_v22 = vunpack.i.l.bf16 %v6504_v13  ;;  %v1531_v7 = vsel %vm1468_vm5, %v1515_v4, %v6500_v55  ;;  %v1482_v27 = vsel %vm1468_vm5, %v1465_v50, %v6501_v19 }
 0x2b3   :  { %1912 = vmatmul.mubr.f32.gmra.mrb[48].mxu0 %v8594_v23  ;;  %v6072_v42 = vpack.c.bf16 %v722_v2, %v721_v46  ;;  %v6509_v51 = vpop.permute.xlu1 %6508  ;;  %v1119_v15 = vsel %vm1088_vm2, %v11205_v24, %v1118_v0  ;;  %v1121_v31 = vsel %vm1088_vm2, %v1118_v0, %v1120_v26 }
 0x2b4   :  { %1916 = vmatprep.mubr.f32.mxu0 %v8696_v43  ;;  %v8838_v37 = vsel %vm1485_vm6, %v1531_v7, %v6505_v22  ;;  %v8841_v56 = vsel %vm1485_vm6, %v1482_v27, %v6506_v41  ;;  %v6511_v23 = vunpack.i.h.bf16 %v6509_v51  ;;  %v6510_v20 = vunpack.i.l.bf16 %v6509_v51 }
 0x2b5   :  { %6069 = vmatpush3.bf16.msra.mxu1 %v6068_v63  ;;  %v6514_v32 = vpop.permute.xlu0 %6513  ;;  %1791 = vmatprep.mubr.f32.mxu1 %v8838_v37  ;;  %v1417_v27 = vrot.slane %v8096_v59, 4 }
 0x2b6   :  { %6071 = vmatprep.subr.bf16.mxu1 %v6070_v29  ;;  %v6516_v35 = vunpack.i.h.bf16 %v6514_v32  ;;  %v6515_v6 = vunpack.i.l.bf16 %v6514_v32  ;;  %1792 = vmatmul.mubr.f32.gmra.mrb[26].mxu1 %v8841_v56  ;;  %v1516_v44 = vsel %vm1451_vm3, %v1119_v15, %v6510_v20  ;;  %v1466_v62 = vsel %vm1451_vm3, %v7953_v48, %v6511_v23 }
 0x2b7   :  { %1917 = vmatmul.mubr.f32.gmra.mrb[50].mxu0 %v8699_v30  ;;  %v6519_v47 = vpop.permute.xlu1 %6518 }
 0x2b8   :  { %1921 = vmatprep.mubr.f32.mxu0 %v8764_v16  ;;  %v1532_v11 = vsel %vm1468_vm5, %v1516_v44, %v6515_v6  ;;  %v1483_v53 = vsel %vm1468_vm5, %v1466_v62, %v6516_v35  ;;  %v6521_v10 = vunpack.i.h.bf16 %v6519_v47  ;;  %v6520_v39 = vunpack.i.l.bf16 %v6519_v47 }
 0x2b9   :  { %6073 = vmatpush3.bf16.msra.mxu1 %v6072_v42  ;;  %v6524_v1 = vpop.permute.xlu0 %6523  ;;  %v1418_v35 = vsel %vm1088_vm2, %v1120_v26, %v1417_v27 }
 0x2ba   :  { %v6526_v12 = vunpack.i.h.bf16 %v6524_v1  ;;  %v6525_v49 = vunpack.i.l.bf16 %v6524_v1  ;;  %v8859_v63 = vsel %vm1485_vm6, %v1532_v11, %v6520_v39  ;;  %v8862_v48 = vsel %vm1485_vm6, %v1483_v53, %v6521_v10 }
 0x2bb   :  { %1922 = vmatmul.mubr.f32.gmra.mrb[52].mxu0 %v8767_v18  ;;  %v6529_v4 = vpop.permute.xlu1 %6528  ;;  %1796 = vmatprep.mubr.f32.mxu1 %v8859_v63 }
 0x2bc   :  { %1926 = vmatprep.mubr.f32.mxu0 %v8816_v28  ;;  %v1517_v50 = vsel %vm1451_vm3, %v1121_v31, %v6525_v49  ;;  %v1467_v29 = vsel %vm1451_vm3, %v8034_v57, %v6526_v12  ;;  %v6531_v46 = vunpack.i.h.bf16 %v6529_v4  ;;  %v6530_v2 = vunpack.i.l.bf16 %v6529_v4  ;;  %1797 = vmatmul.mubr.f32.gmra.mrb[28].mxu1 %v8862_v48 }
 0x2bd   :  { %v6534_v19 = vpop.permute.xlu0 %6533 }
 0x2be   :  { %v6536_v55 = vunpack.i.h.bf16 %v6534_v19  ;;  %v6535_v13 = vunpack.i.l.bf16 %v6534_v19  ;;  %v1533_v41 = vsel %vm1468_vm5, %v1517_v50, %v6530_v2  ;;  %v1484_v22 = vsel %vm1468_vm5, %v1467_v29, %v6531_v46 }
 0x2bf   :  { %1927 = vmatmul.mubr.f32.gmra.mrb[54].mxu0 %v8819_v14  ;;  %v6539_v0 = vpop.permute.xlu1 %6538 }
 0x2c0   :  { %1931 = vmatprep.mubr.f32.mxu0 %v8838_v37  ;;  %v8875_v7 = vsel %vm1485_vm6, %v1533_v41, %v6535_v13  ;;  %v8878_v57 = vsel %vm1485_vm6, %v1484_v22, %v6536_v55  ;;  %v6540_v42 = vunpack.i.l.bf16 %v6539_v0  ;;  %v6541_v20 = vunpack.i.h.bf16 %v6539_v0 }
 0x2c1   :  { %v6544_v51 = vpop.permute.xlu0 %6543  ;;  %1801 = vmatprep.mubr.f32.mxu1 %v8875_v7 }
 0x2c2   :  { %v6545_v23 = vunpack.i.l.bf16 %v6544_v51  ;;  %1802 = vmatmul.mubr.f32.gmra.mrb[30].mxu1 %v8878_v57  ;;  %v6546_v6 = vunpack.i.h.bf16 %v6544_v51  ;;  %v1557_v15 = vsel %vm1451_vm3, %v1418_v35, %v6540_v42  ;;  %v1551_v62 = vsel %vm1451_vm3, %v8063_v21, %v6541_v20 }
 0x2c3   :  { %1932 = vmatmul.mubr.f32.gmra.mrb[56].mxu0 %v8841_v56  ;;  %2016 = vmatprep.mubr.f32.mxu1 %v8274_v45  ;;  %v6549_v32 = vpop.permute.xlu1 %6548 }
 0x2c4   :  { %1936 = vmatprep.mubr.f32.mxu0 %v8859_v63  ;;  %v6550_v24 = vunpack.i.l.bf16 %v6549_v32  ;;  %v1559_v44 = vsel %vm1468_vm5, %v1557_v15, %v6545_v23  ;;  %v6551_v45 = vunpack.i.h.bf16 %v6549_v32  ;;  %v1553_v47 = vsel %vm1468_vm5, %v1551_v62, %v6546_v6 }
 0x2c5   :  { %v6554_v21 = vpop.permute.xlu0 %6553 }
 0x2c6   :  { %2017 = vmatmul.mubr.f32.vlgmr.msra.gmra.mrb[32].mxu1 %v8277_v60  ;;  %v8899_v26 = vsel %vm1485_vm6, %v1559_v44, %v6550_v24  ;;  %v8906_v60 = vsel %vm1485_vm6, %v1553_v47, %v6551_v45  ;;  %v6555_v11 = vunpack.i.l.bf16 %v6554_v21  ;;  %v6556_v10 = vunpack.i.h.bf16 %v6554_v21 }
 0x2c7   :  { %1937 = vmatmul.mubr.f32.gmra.mrb[58].mxu0 %v8862_v48  ;;  %2021 = vmatprep.mubr.f32.mxu1 %v8301_v36  ;;  %v6559_v53 = vpop.permute.xlu1 %6558 }
 0x2c8   :  { %1941 = vmatprep.mubr.f32.mxu0 %v8875_v7  ;;  %v6560_v39 = vunpack.i.l.bf16 %v6559_v53  ;;  %v1640_v4 = vsel %vm1451_vm3, %v7787_v33, %v6556_v10 }
 0x2ca   :  { %2022 = vmatmul.mubr.f32.gmra.mrb[34].mxu1 %v8304_v8 }
 0x2cb   :  { %1942 = vmatmul.mubr.f32.gmra.mrb[60].mxu0 %v8878_v57  ;;  %2026 = vmatprep.mubr.f32.mxu1 %v8328_v5  ;;  %v6569_v12 = vpop.permute.xlu1 %6568 }
 0x2cc   :  { %1946 = vmatprep.mubr.f32.mxu0 %v8899_v26  ;;  %v6570_v31 = vunpack.i.l.bf16 %v6569_v12  ;;  %v6571_v29 = vunpack.i.h.bf16 %v6569_v12 }
 0x2ce   :  { %2027 = vmatmul.mubr.f32.gmra.mrb[36].mxu1 %v8331_v61  ;;  %v1655_v19 = vsel %vm1451_vm3, %v8175_v3, %v6570_v31  ;;  %v1652_v13 = vsel %vm1451_vm3, 0.0, %v6571_v29 }
 0x2cf   :  { %1947 = vmatmul.mubr.f32.gmra.mrb[62].mxu0 %v8906_v60  ;;  %2031 = vmatprep.mubr.f32.mxu1 %v8367_v38 }
 0x2d0   :  { %2161 = vmatprep.mubr.f32.mxu0 %v8301_v36  ;;  %v6564_v36 = vpop.permute.xlu0 %6563 }
 0x2d1   :  { %v6565_v1 = vunpack.i.l.bf16 %v6564_v36  ;;  %v6566_v49 = vunpack.i.h.bf16 %v6564_v36 }
 0x2d2   :  { %2032 = vmatmul.mubr.f32.gmra.mrb[38].mxu1 %v8370_v17 }
 0x2d3   :  { %2162 = vmatmul.mubr.f32.vlgmr.msra.gmra.mrb[64].mxu0 %v8304_v8  ;;  %2036 = vmatprep.mubr.f32.mxu1 %v8382_v58  ;;  %v11206_v8 = vrot.slane %v7787_v33, 4  ;;  %v6579_v33 = vpop.permute.xlu1 %6578 }
 0x2d4   :  { %2166 = vmatprep.mubr.f32.mxu0 %v8328_v5  ;;  %v6574_v50 = vpop.permute.xlu0 %6573  ;;  %v6580_v55 = vunpack.i.l.bf16 %v6579_v33 }
 0x2d5   :  { %v1586_v5 = vsel %vm1088_vm2, %v11206_v8, %v8175_v3  ;;  %v6575_v46 = vunpack.i.l.bf16 %v6574_v50 }
 0x2d6   :  { %2037 = vmatmul.mubr.f32.gmra.mrb[40].mxu1 %v8385_v25 }
 0x2d7   :  { %2167 = vmatmul.mubr.f32.gmra.mrb[66].mxu0 %v8331_v61  ;;  %2041 = vmatprep.mubr.f32.mxu1 %v8400_v40  ;;  %v1646_v61 = vsel %vm1451_vm3, %v1586_v5, %v6555_v11  ;;  %v1656_v41 = vsel %vm1468_vm5, %v1655_v19, %v6575_v46  ;;  %v6589_v0 = vpop.permute.xlu1 %6588  ;;  %v1660_v5 = vsub.s32 1, %v7446_v9 }
 0x2d8   :  { %2171 = vmatprep.mubr.f32.mxu0 %v8367_v38  ;;  %v6561_v38 = vunpack.i.h.bf16 %v6559_v53  ;;  %v1657_v22 = vsel %vm1485_vm6, %v1656_v41, %v6580_v55  ;;  %v6590_v51 = vunpack.i.l.bf16 %v6589_v0 }
 0x2da   :  { %2042 = vmatmul.mubr.f32.gmra.mrb[42].mxu1 %v8403_v34  ;;  %v1642_v2 = vsel %vm1468_vm5, %v1640_v4, %v6561_v38  ;;  %v7205_v38 = vld [vmem:[%s11073_s4] sm:$0xf] }
 0x2db   :  { %2172 = vmatmul.mubr.f32.gmra.mrb[68].mxu0 %v8370_v17  ;;  %2046 = vmatprep.mubr.f32.mxu1 %v8774_v54  ;;  %v1648_v17 = vsel %vm1468_vm5, %v1646_v61, %v6560_v39  ;;  %v8989_v12 = vrot.slane %v7205_v38, %v1660_v5 }
 0x2dc   :  { %2176 = vmatprep.mubr.f32.mxu0 %v8382_v58  ;;  %v1650_v58 = vsel %vm1485_vm6, %v1648_v17, %v6565_v1 }
 0x2de   :  { %2047 = vmatmul.mubr.f32.gmra.mrb[44].mxu1 %v8789_v52 }
 0x2df   :  { %2177 = vmatmul.mubr.f32.gmra.mrb[70].mxu0 %v8385_v25  ;;  %2051 = vmatprep.mubr.f32.mxu1 %v1650_v58  ;;  %v1644_v25 = vsel %vm1485_vm6, %v1642_v2, %v6566_v49 }
 0x2e0   :  { %2181 = vmatprep.mubr.f32.mxu0 %v8400_v40  ;;  %v6576_v40 = vunpack.i.h.bf16 %v6574_v50 }
 0x2e2   :  { %2052 = vmatmul.mubr.f32.gmra.mrb[46].mxu1 %v1644_v25 }
 0x2e3   :  { %2182 = vmatmul.mubr.f32.gmra.mrb[72].mxu0 %v8403_v34  ;;  %2056 = vmatprep.mubr.f32.mxu1 %v8696_v43  ;;  %v6581_v34 = vunpack.i.h.bf16 %v6579_v33 }
 0x2e4   :  { %2186 = vmatprep.mubr.f32.mxu0 %v8774_v54  ;;  %v1653_v54 = vsel %vm1468_vm5, %v1652_v13, %v6576_v40 }
 0x2e5   :  { %v1654_v43 = vsel %vm1485_vm6, %v1653_v54, %v6581_v34 }
 0x2e6   :  { %2057 = vmatmul.mubr.f32.gmra.mrb[48].mxu1 %v8699_v30  ;;  %v6584_v30 = vpop.permute.xlu0 %6583 }
 0x2e7   :  { %2187 = vmatmul.mubr.f32.gmra.mrb[74].mxu0 %v8789_v52  ;;  %2061 = vmatprep.mubr.f32.mxu1 %v8764_v16  ;;  %v6585_v52 = vunpack.i.l.bf16 %v6584_v30  ;;  %v6586_v42 = vunpack.i.h.bf16 %v6584_v30 }
 0x2e8   :  { %2191 = vmatprep.mubr.f32.mxu0 %v1650_v58 }
 0x2e9   :  { %v1641_v20 = vsel %vm1451_vm3, %v8096_v59, %v6586_v42 }
 0x2ea   :  { %2062 = vmatmul.mubr.f32.gmra.mrb[50].mxu1 %v8767_v18 }
 0x2eb   :  { %2192 = vmatmul.mubr.f32.gmra.mrb[76].mxu0 %v1644_v25  ;;  %2066 = vmatprep.mubr.f32.mxu1 %v8816_v28 }
 0x2ec   :  { %2196 = vmatprep.mubr.f32.mxu0 %v1657_v22 }
 0x2ee   :  { %2067 = vmatmul.mubr.f32.gmra.mrb[52].mxu1 %v8819_v14 }
 0x2ef   :  { %2197 = vmatmul.mubr.f32.gmra.mrb[78].mxu0 %v1654_v43  ;;  %2071 = vmatprep.mubr.f32.mxu1 %v8838_v37 }
 0x2f0   :  { %2201 = vmatprep.mubr.f32.mxu0 %v8764_v16  ;;  %v6594_v16 = vpop.permute.xlu0 %6593 }
 0x2f1   :  { %v6596_v23 = vunpack.i.h.bf16 %v6594_v16 }
 0x2f2   :  { %2072 = vmatmul.mubr.f32.gmra.mrb[54].mxu1 %v8841_v56 }
 0x2f3   :  { %2202 = vmatmul.mubr.f32.gmra.mrb[80].mxu0 %v8767_v18  ;;  %2076 = vmatprep.mubr.f32.mxu1 %v8859_v63  ;;  %v1587_v18 = vsel %vm1088_vm2, %v1417_v27, %v8175_v3 }
 0x2f4   :  { %2206 = vmatprep.mubr.f32.mxu0 %v8816_v28  ;;  %v6595_v28 = vunpack.i.l.bf16 %v6594_v16 }
 0x2f6   :  { %2077 = vmatmul.mubr.f32.gmra.mrb[56].mxu1 %v8862_v48 }
 0x2f7   :  { %2207 = vmatmul.mubr.f32.gmra.mrb[82].mxu0 %v8819_v14  ;;  %2081 = vmatprep.mubr.f32.mxu1 %v8875_v7  ;;  %v1647_v14 = vsel %vm1451_vm3, %v1587_v18, %v6585_v52 }
 0x2f8   :  { %2211 = vmatprep.mubr.f32.mxu0 %v8838_v37  ;;  %v6591_v37 = vunpack.i.h.bf16 %v6589_v0 }
 0x2fa   :  { %2082 = vmatmul.mubr.f32.gmra.mrb[58].mxu1 %v8878_v57  ;;  %v1643_v27 = vsel %vm1468_vm5, %v1641_v20, %v6591_v37 }
 0x2fb   :  { %2212 = vmatmul.mubr.f32.gmra.mrb[84].mxu0 %v8841_v56  ;;  %2086 = vmatprep.mubr.f32.mxu1 %v8899_v26  ;;  %v1649_v56 = vsel %vm1468_vm5, %v1647_v14, %v6590_v51  ;;  %v1645_v32 = vsel %vm1485_vm6, %v1643_v27, %v6596_v23 }
 0x2fc   :  { %2216 = vmatprep.mubr.f32.mxu0 %v8859_v63  ;;  %v1651_v63 = vsel %vm1485_vm6, %v1649_v56, %v6595_v28 }
 0x2fe   :  { %2087 = vmatmul.mubr.f32.gmra.mrb[60].mxu1 %v8906_v60 }
 0x2ff   :  { %2217 = vmatmul.mubr.f32.gmra.mrb[86].mxu0 %v8862_v48  ;;  %2091 = vmatprep.mubr.f32.mxu1 %v1651_v63 }
 0x300   :  { %2221 = vmatprep.mubr.f32.mxu0 %v8875_v7 }
 0x302   :  { %2092 = vmatmul.mubr.f32.gmra.mrb[62].mxu1 %v1645_v32 }
 0x303   :  { %2222 = vmatmul.mubr.f32.gmra.mrb[88].mxu0 %v8878_v57 }
 0x304   :  { %2226 = vmatprep.mubr.f32.mxu0 %v8899_v26 }
 0x307   :  { %2227 = vmatmul.mubr.f32.gmra.mrb[90].mxu0 %v8906_v60 }
 0x308   :  { %2231 = vmatprep.mubr.f32.mxu0 %v1651_v63 }
 0x30b   :  { %2232 = vmatmul.mubr.f32.gmra.mrb[92].mxu0 %v1645_v32 }
 0x30c   :  { %2236 = vmatprep.mubr.f32.mxu0 %v1657_v22 }
 0x30f   :  { %2237 = vmatmul.mubr.f32.gmra.mrb[94].mxu0 %v1654_v43 }
 0x336   :  { %v5246_v59 = vpop.f32.mrb[16].mxu0 }
 0x337   :  { %v5247_v48 = vpop.f32.mrb[17].mxu0 }
 0x338   :  { %v5248_v7 = vadd.f32 %v5247_v48, %v5246_v59 }
 0x33a   :  { %v5249_v35 = vpop.f32.mrb[18].mxu0  ;;  %v1729_v4 = vadd.f32 %v5248_v7, %v8989_v12 }
 0x33b   :  { %v5250_v6 = vpop.f32.mrb[19].mxu0 }
 0x33c   :  { %v5251_v24 = vadd.f32 %v5250_v6, %v5249_v35 }
 0x33e   :  { %v1734_v2 = vadd.f32 %v5251_v24, %v8989_v12 }
 0x341   :  { %v5252_v15 = vpop.f32.mrb[20].mxu0 }
 0x342   :  { %v5253_v44 = vpop.f32.mrb[21].mxu0 }
 0x343   :  { %v5254_v57 = vadd.f32 %v5253_v44, %v5252_v15 }
 0x345   :  { %v1739_v13 = vadd.f32 %v5254_v57, %v8989_v12 }
 0x346   :  { %v5255_v45 = vpop.f32.mrb[22].mxu0 }
 0x347   :  { %v5256_v62 = vpop.f32.mrb[23].mxu0 }
 0x348   :  { %v5257_v47 = vadd.f32 %v5256_v62, %v5255_v45 }
 0x34a   :  { %v1744_v0 = vadd.f32 %v5257_v47, %v8989_v12 }
 0x34d   :  { %v5258_v26 = vpop.f32.mrb[24].mxu0 }
 0x34e   :  { %v5259_v21 = vpop.f32.mrb[25].mxu0 }
 0x34f   :  { %v5260_v11 = vadd.f32 %v5259_v21, %v5258_v26 }
 0x351   :  { %v1749_v37 = vadd.f32 %v5260_v11, %v8989_v12 }
 0x352   :  { %v5261_v60 = vpop.f32.mrb[26].mxu0 }
 0x353   :  { %v5262_v53 = vpop.f32.mrb[27].mxu0 }
 0x354   :  { %v5263_v36 = vadd.f32 %v5262_v53, %v5261_v60 }
 0x356   :  { %v1754_v59 = vadd.f32 %v5263_v36, %v8989_v12 }
 0x359   :  { %v5264_v10 = vpop.f32.mrb[28].mxu0 }
 0x35a   :  { %v5265_v39 = vpop.f32.mrb[29].mxu0 }
 0x35b   :  { %v5266_v8 = vadd.f32 %v5265_v39, %v5264_v10 }
 0x35d   :  { %v1759_v44 = vadd.f32 %v5266_v8, %v8989_v12 }
 0x35e   :  { %v5267_v1 = vpop.f32.mrb[30].mxu0 }
 0x35f   :  { %v5268_v61 = vpop.f32.mrb[31].mxu0 }
 0x360   :  { %v5269_v49 = vadd.f32 %v5268_v61, %v5267_v1 }
 0x362   :  { %v5326_v31 = vpop.f32.mrb[32].mxu0  ;;  %v1764_v11 = vadd.f32 %v5269_v49, %v8989_v12 }
 0x363   :  { %v5327_v17 = vpop.f32.mrb[33].mxu0 }
 0x364   :  { %v5328_v58 = vadd.f32 %v5327_v17, %v5326_v31 }
 0x366   :  { %v8992_v50 = vadd.f32 %v5328_v58, %v1729_v4  ;;  %v5329_v29 = vpop.f32.mrb[34].mxu0 }
 0x367   :  { %v5330_v46 = vpop.f32.mrb[35].mxu0 }
 0x368   :  { %v5331_v25 = vadd.f32 %v5330_v46, %v5329_v29 }
 0x36a   :  { %v8995_v19 = vadd.f32 %v5331_v25, %v1734_v2  ;;  %v5332_v33 = vpop.f32.mrb[36].mxu0 }
 0x36b   :  { %v5333_v40 = vpop.f32.mrb[37].mxu0 }
 0x36c   :  { %v5334_v41 = vadd.f32 %v5333_v40, %v5332_v33 }
 0x36d   :  { %v5270_v55 = vpop.f32.mrb[16].mxu1 }
 0x36e   :  { %v5271_v34 = vpop.f32.mrb[17].mxu1  ;;  %v8998_v54 = vadd.f32 %v5334_v41, %v1739_v13  ;;  %v5335_v43 = vpop.f32.mrb[38].mxu0 }
 0x36f   :  { %v5272_v22 = vadd.f32 %v5271_v34, %v5270_v55  ;;  %v5336_v30 = vpop.f32.mrb[39].mxu0 }
 0x370   :  { %v5337_v16 = vadd.f32 %v5336_v30, %v5335_v43 }
 0x371   :  { %v5273_v52 = vpop.f32.mrb[18].mxu1  ;;  %v1769_v1 = vadd.f32 %v5272_v22, %v8989_v12 }
 0x372   :  { %v5274_v42 = vpop.f32.mrb[19].mxu1  ;;  %v9001_v18 = vadd.f32 %v5337_v16, %v1744_v0 }
 0x373   :  { %v5275_v51 = vadd.f32 %v5274_v42, %v5273_v52 }
 0x374   :  { %v5338_v28 = vpop.f32.mrb[40].mxu0 }
 0x375   :  { %v5339_v14 = vpop.f32.mrb[41].mxu0  ;;  %v1774_v58 = vadd.f32 %v5275_v51, %v8989_v12 }
 0x376   :  { %v5340_v23 = vadd.f32 %v5339_v14, %v5338_v28 }
 0x378   :  { %v9004_v56 = vadd.f32 %v5340_v23, %v1749_v37  ;;  %v5276_v20 = vpop.f32.mrb[20].mxu1  ;;  %v5341_v63 = vpop.f32.mrb[42].mxu0 }
 0x379   :  { %v5277_v27 = vpop.f32.mrb[21].mxu1  ;;  %v5342_v32 = vpop.f32.mrb[43].mxu0 }
 0x37a   :  { %v5278_v48 = vadd.f32 %v5277_v27, %v5276_v20  ;;  %v5343_v7 = vadd.f32 %v5342_v32, %v5341_v63 }
 0x37c   :  { %v9007_v35 = vadd.f32 %v5343_v7, %v1754_v59  ;;  %v5344_v6 = vpop.f32.mrb[44].mxu0  ;;  %v1779_v40 = vadd.f32 %v5278_v48, %v8989_v12 }
 0x37d   :  { %v5345_v24 = vpop.f32.mrb[45].mxu0 }
 0x37e   :  { %v5279_v15 = vpop.f32.mrb[22].mxu1  ;;  %v5346_v57 = vadd.f32 %v5345_v24, %v5344_v6 }
 0x37f   :  { %v5280_v45 = vpop.f32.mrb[23].mxu1 }
 0x380   :  { %v5281_v62 = vadd.f32 %v5280_v45, %v5279_v15  ;;  %v9010_v47 = vadd.f32 %v5346_v57, %v1759_v44 }
 0x381   :  { %v5347_v26 = vpop.f32.mrb[46].mxu0 }
 0x382   :  { %v5348_v21 = vpop.f32.mrb[47].mxu0  ;;  %v1784_v30 = vadd.f32 %v5281_v62, %v8989_v12 }
 0x383   :  { %v5349_v60 = vadd.f32 %v5348_v21, %v5347_v26 }
 0x385   :  { %v9013_v53 = vadd.f32 %v5349_v60, %v1764_v11  ;;  %v5282_v36 = vpop.f32.mrb[24].mxu1 }
 0x386   :  { %v5350_v10 = vpop.f32.mrb[48].mxu0  ;;  %v5283_v39 = vpop.f32.mrb[25].mxu1 }
 0x387   :  { %v5351_v5 = vpop.f32.mrb[49].mxu0  ;;  %v5284_v61 = vadd.f32 %v5283_v39, %v5282_v36 }
 0x388   :  { %v5352_v8 = vadd.f32 %v5351_v5, %v5350_v10 }
 0x389   :  { %v5285_v4 = vpop.f32.mrb[26].mxu1  ;;  %v1789_v14 = vadd.f32 %v5284_v61, %v8989_v12 }
 0x38a   :  { %v9016_v38 = vadd.f32 %v5352_v8, %v1769_v1  ;;  %v5353_v31 = vpop.f32.mrb[50].mxu0  ;;  %v5286_v49 = vpop.f32.mrb[27].mxu1 }
 0x38b   :  { %v5354_v17 = vpop.f32.mrb[51].mxu0  ;;  %v5287_v46 = vadd.f32 %v5286_v49, %v5285_v4  ;;  %v2354_v4 = vld [vmem:[%s11071_s3 + $0x408] sm:$0xff]  ;;  %v2403_v49 = vld [vmem:[%s11071_s3 + $0x590] sm:$0xff] }
 0x38c   :  { %v5355_v29 = vadd.f32 %v5354_v17, %v5353_v31  ;;  %v2371_v17 = vld [vmem:[%s11071_s3 + $0x490] sm:$0xff] }
 0x38d   :  { %v1794_v48 = vadd.f32 %v5287_v46, %v8989_v12 }
 0x38e   :  { %v9019_v2 = vadd.f32 %v5355_v29, %v1774_v58  ;;  %v5356_v25 = vpop.f32.mrb[52].mxu0  ;;  %v2402_v29 = vld [vmem:[%s11071_s3 + $0x588] sm:$0xff] }
 0x38f   :  { %v5357_v33 = vpop.f32.mrb[53].mxu0  ;;  %v5288_v41 = vpop.f32.mrb[28].mxu1 }
 0x390   :  { %v5358_v55 = vadd.f32 %v5357_v33, %v5356_v25  ;;  %v5289_v22 = vpop.f32.mrb[29].mxu1 }
 0x391   :  { %v5290_v52 = vadd.f32 %v5289_v22, %v5288_v41  ;;  %v2387_v41 = vld [vmem:[%s11071_s3 + $0x510] sm:$0xff] }
 0x392   :  { %v9022_v13 = vadd.f32 %v5358_v55, %v1779_v40  ;;  %v5359_v34 = vpop.f32.mrb[54].mxu0  ;;  %v6138_v40 = vpack.c.bf16 %v2403_v49, %v2402_v29  ;;  %v2386_v55 = vld [vmem:[%s11071_s3 + $0x508] sm:$0xff] }
 0x393   :  { %v5360_v43 = vpop.f32.mrb[55].mxu0  ;;  %v1799_v26 = vadd.f32 %v5290_v52, %v8989_v12 }
 0x394   :  { %v5361_v0 = vadd.f32 %v5360_v43, %v5359_v34  ;;  %6139 = vmatprep.subr.bf16.mxu0 %v6138_v40  ;;  %v2375_v40 = vld [vmem:[%s11071_s3 + $0x4b0] sm:$0xff] }
 0x395   :  { %v5291_v28 = vpop.f32.mrb[30].mxu1 }
 0x396   :  { %v9025_v16 = vadd.f32 %v5361_v0, %v1784_v30  ;;  %v5362_v42 = vpop.f32.mrb[56].mxu0  ;;  %v5292_v23 = vpop.f32.mrb[31].mxu1  ;;  %v6140_v30 = vpack.c.bf16 %v2387_v41, %v2386_v55  ;;  %v2358_v55 = vld [vmem:[%s11071_s3 + $0x428] sm:$0xff] }
 0x397   :  { %v5363_v51 = vpop.f32.mrb[57].mxu0  ;;  %v5293_v20 = vadd.f32 %v5292_v23, %v5291_v28 }
 0x398   :  { %v5364_v37 = vadd.f32 %v5363_v51, %v5362_v42  ;;  %6141 = vmatpush3.bf16.msra.mxu0 %v6140_v30 }
 0x399   :  { %v5406_v59 = vpop.f32.mrb[32].mxu1  ;;  %v1804_v61 = vadd.f32 %v5293_v20, %v8989_v12  ;;  %v2355_v12 = vld [vmem:[%s11071_s3 + $0x410] sm:$0xff] }
 0x39a   :  { %v9028_v63 = vadd.f32 %v5364_v37, %v1789_v14  ;;  %v5365_v27 = vpop.f32.mrb[58].mxu0  ;;  %v5407_v6 = vpop.f32.mrb[33].mxu1  ;;  %v6108_v33 = vpack.c.bf16 %v2355_v12, %v2354_v4 }
 0x39b   :  { %v5366_v32 = vpop.f32.mrb[59].mxu0  ;;  %v5408_v24 = vadd.f32 %v5407_v6, %v5406_v59  ;;  %v2373_v59 = vld [vmem:[%s11071_s3 + $0x4a0] sm:$0xff] }
 0x39c   :  { %v5367_v7 = vadd.f32 %v5366_v32, %v5365_v27  ;;  %v2372_v32 = vld [vmem:[%s11071_s3 + $0x498] sm:$0xff]  ;;  %v2357_v6 = vld [vmem:[%s11071_s3 + $0x420] sm:$0xff] }
 0x39d   :  { %v2019_v57 = vadd.f32 %v5408_v24, %v8992_v50  ;;  %v5409_v62 = vpop.f32.mrb[34].mxu1  ;;  %v2370_v50 = vld [vmem:[%s11071_s3 + $0x488] sm:$0xff]  ;;  %v2404_v24 = vld [vmem:[%s11071_s3 + $0x598] sm:$0xff] }
 0x39e   :  { %v9031_v15 = vadd.f32 %v5367_v7, %v1794_v48  ;;  %v5368_v44 = vpop.f32.mrb[60].mxu0  ;;  %v5410_v11 = vpop.f32.mrb[35].mxu1  ;;  %v2356_v48 = vld [vmem:[%s11071_s3 + $0x418] sm:$0xff] }
 0x39f   :  { %v5369_v45 = vpop.f32.mrb[61].mxu0  ;;  %v5411_v60 = vadd.f32 %v5410_v11, %v5409_v62  ;;  %v2388_v11 = vld [vmem:[%s11071_s3 + $0x518] sm:$0xff] }
 0x3a0   :  { %v5370_v21 = vadd.f32 %v5369_v45, %v5368_v44  ;;  %v2405_v44 = vld [vmem:[%s11071_s3 + $0x5a0] sm:$0xff] }
 0x3a1   :  { %v2024_v39 = vadd.f32 %v5411_v60, %v8995_v19  ;;  %v5412_v1 = vpop.f32.mrb[36].mxu1  ;;  %v6106_v19 = vpack.c.bf16 %v2371_v17, %v2370_v50  ;;  %v2389_v60 = vld [vmem:[%s11071_s3 + $0x520] sm:$0xff] }
 0x3a2   :  { %v9035_v36 = vadd.f32 %v5370_v21, %v1799_v26  ;;  %v5371_v10 = vpop.f32.mrb[62].mxu0  ;;  %v5413_v31 = vpop.f32.mrb[37].mxu1  ;;  %v6112_v26 = vpack.c.bf16 %v2357_v6, %v2356_v48  ;;  %v6142_v21 = vpack.c.bf16 %v2405_v44, %v2404_v24 }
 0x3a3   :  { %v5372_v5 = vpop.f32.mrb[63].mxu0  ;;  %v5414_v58 = vadd.f32 %v5413_v31, %v5412_v1  ;;  %6107 = vmatprep.subr.bf16.mxu1 %v6106_v19 }
 0x3a4   :  { %v5373_v8 = vadd.f32 %v5372_v5, %v5371_v10  ;;  %6109 = vmatpush3.bf16.msra.mxu1 %v6108_v33  ;;  %6143 = vmatprep.subr.bf16.mxu0 %v6142_v21  ;;  %v2374_v33 = vld [vmem:[%s11071_s3 + $0x4a8] sm:$0xff] }
 0x3a5   :  { %v2029_v34 = vadd.f32 %v5414_v58, %v8998_v54  ;;  %v5415_v43 = vpop.f32.mrb[38].mxu1  ;;  %v6114_v41 = vpack.c.bf16 %v2375_v40, %v2374_v33 }
 0x3a6   :  { %v9057_v46 = vadd.f32 %v5373_v8, %v1804_v61  ;;  %v5486_v25 = vpop.f32.mrb[64].mxu0  ;;  %v5416_v0 = vpop.f32.mrb[39].mxu1  ;;  %v6144_v61 = vpack.c.bf16 %v2389_v60, %v2388_v11  ;;  %v2376_v60 = vld [vmem:[%s11071_s3 + $0x4b8] sm:$0xff] }
 0x3a7   :  { %v5487_v22 = vpop.f32.mrb[65].mxu0  ;;  %v5417_v42 = vadd.f32 %v5416_v0, %v5415_v43  ;;  %v2407_v43 = vld [vmem:[%s11071_s3 + $0x5b0] sm:$0xff] }
 0x3a8   :  { %v5488_v52 = vadd.f32 %v5487_v22, %v5486_v25  ;;  %6145 = vmatpush3.bf16.msra.mxu0 %v6144_v61  ;;  %v2406_v22 = vld [vmem:[%s11071_s3 + $0x5a8] sm:$0xff] }
 0x3a9   :  { %v2034_v14 = vadd.f32 %v5417_v42, %v9001_v18  ;;  %v5418_v23 = vpop.f32.mrb[40].mxu1  ;;  %v6110_v18 = vpack.c.bf16 %v2373_v59, %v2372_v32 }
 0x3aa   :  { %v9066_v51 = vadd.f32 %v5488_v52, %v2019_v57  ;;  %v5489_v28 = vpop.f32.mrb[66].mxu0  ;;  %v5419_v27 = vpop.f32.mrb[41].mxu1 }
 0x3ab   :  { %v5490_v37 = vpop.f32.mrb[67].mxu0  ;;  %v5420_v7 = vadd.f32 %v5419_v27, %v5418_v23  ;;  %6111 = vmatprep.subr.bf16.mxu1 %v6110_v18  ;;  %v2391_v23 = vld [vmem:[%s11071_s3 + $0x530] sm:$0xff] }
 0x3ac   :  { %v2258_v20 = vmin.f32 %v9066_v51, 0.0  ;;  %v5491_v54 = vadd.f32 %v5490_v37, %v5489_v28  ;;  %6113 = vmatpush3.bf16.msra.mxu1 %v6112_v26  ;;  %v6146_v28 = vpack.c.bf16 %v2407_v43, %v2406_v22  ;;  %v2390_v37 = vld [vmem:[%s11071_s3 + $0x528] sm:$0xff]  ;;  %vm2242_vm4 = vcmp.gt.f32.partialorder %v9066_v51, 0.0 }
 0x3ad   :  { %v2039_v10 = vadd.f32 %v5420_v7, %v9004_v56  ;;  %v5421_v1 = vpop.f32.mrb[42].mxu1  ;;  %6115 = vmatprep.subr.bf16.mxu1 %v6114_v41  ;;  %v6148_v32 = vpack.c.bf16 %v2391_v23, %v2390_v37 }
 0x3ae   :  { %v2274_v57 = vmul.f32 1.442695, %v2258_v20  ;;  %v9088_v45 = vadd.f32 %v5491_v54, %v2024_v39  ;;  %v5492_v62 = vpop.f32.mrb[68].mxu0  ;;  %v5422_v31 = vpop.f32.mrb[43].mxu1  ;;  %6147 = vmatprep.subr.bf16.mxu0 %v6146_v28 }
 0x3af   :  { %v5493_v5 = vpop.f32.mrb[69].mxu0  ;;  %v5423_v50 = vadd.f32 %v5422_v31, %v5421_v1  ;;  %6149 = vmatpush3.bf16.msra.mxu0 %v6148_v32  ;;  %v2408_v31 = vld [vmem:[%s11071_s3 + $0x5b8] sm:$0xff] }
 0x3b0   :  { %7103 = vpow2.f32 %v2274_v57  ;;  %v2259_v39 = vmin.f32 %v9088_v45, 0.0  ;;  %v5494_v8 = vadd.f32 %v5493_v5, %v5492_v62  ;;  %v2360_v5 = vld [vmem:[%s11071_s3 + $0x438] sm:$0xff]  ;;  %vm2243_vm10 = vcmp.gt.f32.partialorder %v9088_v45, 0.0 }
 0x3b1   :  { %v2044_v19 = vadd.f32 %v5423_v50, %v9007_v35  ;;  %v5424_v12 = vpop.f32.mrb[44].mxu1  ;;  %v2409_v50 = vld [vmem:[%s11071_s3 + $0x5c0] sm:$0xff] }
 0x3b2   :  { %v2276_v17 = vmul.f32 1.442695, %v2259_v39  ;;  %v9098_v4 = vadd.f32 %v5494_v8, %v2029_v34  ;;  %v5495_v58 = vpop.f32.mrb[70].mxu0  ;;  %v5425_v25 = vpop.f32.mrb[45].mxu1  ;;  %v2359_v34 = vld [vmem:[%s11071_s3 + $0x430] sm:$0xff]  ;;  %v2361_v8 = vld [vmem:[%s11071_s3 + $0x440] sm:$0xff]  ;;  %v6150_v41 = vpack.c.bf16 %v2409_v50, %v2408_v31 }
 0x3b3   :  { %v5496_v56 = vpop.f32.mrb[71].mxu0  ;;  %v5426_v35 = vadd.f32 %v5425_v25, %v5424_v12  ;;  %v6116_v42 = vpack.c.bf16 %v2359_v34, %v2358_v55  ;;  %v2393_v25 = vld [vmem:[%s11071_s3 + $0x540] sm:$0xff] }
 0x3b4   :  { %7105 = vpow2.f32 %v2276_v17  ;;  %v2260_v29 = vmin.f32 %v9098_v4, 0.0  ;;  %v5497_v49 = vadd.f32 %v5496_v56, %v5495_v58  ;;  %v11207_v58 = vld [vmem:[#allocation2_spill] sm:$0xff]  ;;  %6151 = vmatprep.subr.bf16.mxu0 %v6150_v41  ;;  %vm2244_vm11 = vcmp.gt.f32.partialorder %v9098_v4, 0.0 }
 0x3b5   :  { %v9129_v20 = vadd.f32 %v5426_v35, %v9010_v47  ;;  %v5427_v27 = vpop.f32.mrb[46].mxu1  ;;  %6117 = vmatpush3.bf16.msra.mxu1 %v6116_v42 }
 0x3b6   :  { %v2278_v30 = vmul.f32 1.442695, %v2260_v29  ;;  %v9120_v52 = vadd.f32 %v5497_v49, %v2034_v14  ;;  %v5498_v0 = vpop.f32.mrb[72].mxu0  ;;  %v5428_v48 = vpop.f32.mrb[47].mxu1  ;;  %v6120_v29 = vpack.c.bf16 %v2361_v8, %v2360_v5  ;;  %v2392_v49 = vld [vmem:[%s11071_s3 + $0x538] sm:$0xff]  ;;  %v11211_v8 = vld [vmem:[#allocation8_spill] sm:$0xff] }
 0x3b7   :  { %v5499_v54 = vpop.f32.mrb[73].mxu0  ;;  %v5429_v7 = vadd.f32 %v5428_v48, %v5427_v27  ;;  %v6152_v34 = vpack.c.bf16 %v2393_v25, %v2392_v49 }
 0x3b8   :  { %7107 = vpow2.f32 %v2278_v30  ;;  %v2261_v14 = vmin.f32 %v9120_v52, 0.0  ;;  %v5500_v59 = vadd.f32 %v5499_v54, %v5498_v0  ;;  %vm2245_vm13 = vcmp.gt.f32.partialorder %v9120_v52, 0.0 }
 0x3b9   :  { %v2054_v44 = vadd.f32 %v5429_v7, %v9013_v53  ;;  %v5430_v62 = vpop.f32.mrb[48].mxu1  ;;  %6153 = vmatpush3.bf16.msra.mxu0 %v6152_v34 }
 0x3ba   :  { %v7104_v18 = vpop.eup %7103  ;;  %v9132_v6 = vadd.f32 %v5500_v59, %v2039_v10  ;;  %v5501_v24 = vpop.f32.mrb[74].mxu0  ;;  %v2280_v26 = vmul.f32 1.442695, %v2261_v14  ;;  %v2377_v10 = vld [vmem:[%s11071_s3 + $0x4c0] sm:$0xff] }
 0x3bb   :  { %v5091_v47 = vadd.f32 -1.0, %v7104_v18  ;;  %v5502_v57 = vpop.f32.mrb[75].mxu0  ;;  %v5431_v11 = vpop.f32.mrb[49].mxu1  ;;  %v6118_v39 = vpack.c.bf16 %v2377_v10, %v2376_v60 }
 0x3bc   :  { %v5503_v21 = vadd.f32 %v5502_v57, %v5501_v24  ;;  %v2262_v53 = vmin.f32 %v9132_v6, 0.0  ;;  %v5432_v61 = vadd.f32 %v5431_v11, %v5430_v62  ;;  %7109 = vpow2.f32 %v2280_v26 }
 0x3bd   :  { %v2322_v1 = vsel %vm2242_vm4, %v9066_v51, %v5091_v47  ;;  %v5433_v35 = vpop.f32.mrb[50].mxu1  ;;  %6119 = vmatprep.subr.bf16.mxu1 %v6118_v39  ;;  %vm2246_vm15 = vcmp.gt.f32.partialorder %v9132_v6, 0.0 }
 0x3be   :  { %v7106_v17 = vpop.eup %7105  ;;  %v9157_v56 = vadd.f32 %v2322_v1, %v11207_v58  ;;  %v9159_v51 = vadd.f32 %v5503_v21, %v2044_v19  ;;  %v5504_v12 = vpop.f32.mrb[76].mxu0  ;;  %v2059_v40 = vadd.f32 %v5432_v61, %v9016_v38  ;;  %6121 = vmatpush3.bf16.msra.mxu1 %v6120_v29  ;;  %v2282_v43 = vmul.f32 1.442695, %v2262_v53  ;;  %v11209_v38 = vld [vmem:[#allocation7_spill] sm:$0xff] }
 0x3bf   :  { %v5092_v33 = vadd.f32 -1.0, %v7106_v17  ;;  %v5505_v55 = vpop.f32.mrb[77].mxu0  ;;  %v5434_v19 = vpop.f32.mrb[51].mxu1 }
 0x3c0   :  { %11208 = vst [vmem:[#allocation2_spill] sm:$0xff] %v9157_v56  ;;  %v5506_v30 = vadd.f32 %v5505_v55, %v5504_v12  ;;  %v5435_v0 = vadd.f32 %v5434_v19, %v5433_v35  ;;  %v2434_v28 = vrot.slane %v9157_v56, 1  ;;  %7111 = vpow2.f32 %v2282_v43  ;;  %v11239_v56 = vld [vmem:[#allocation21_spill] sm:$0xff] }
 0x3c1   :  { %v2323_v22 = vsel %vm2243_vm10, %v9088_v45, %v5092_v33  ;;  %v5436_v45 = vpop.f32.mrb[52].mxu1  ;;  %vm2247_vm1 = vcmp.gt.f32.partialorder %v9159_v51, 0.0 }
 0x3c2   :  { %v7108_v42 = vpop.eup %7107  ;;  %v9172_v37 = vadd.f32 %v2323_v22, %v11209_v38  ;;  %v5507_v23 = vpop.f32.mrb[78].mxu0  ;;  %v9175_v27 = vadd.f32 %v5506_v30, %v9129_v20  ;;  %v2064_v32 = vadd.f32 %v5435_v0, %v9019_v2  ;;  %v9181_v24 = vsel %vm787_vm7, 0.0, %v2434_v28 }
 0x3c3   :  { %v5093_v54 = vadd.f32 -1.0, %v7108_v42  ;;  %v5508_v14 = vpop.f32.mrb[79].mxu0  ;;  %v5437_v7 = vpop.f32.mrb[53].mxu1  ;;  %v2263_v20 = vmin.f32 %v9159_v51, 0.0  ;;  %v2572_v61 = vrot.slane %v9181_v24, 2 }
 0x3c4   :  { %11210 = vst [vmem:[#allocation7_spill] sm:$0xff] %v9172_v37  ;;  %v2435_v59 = vrot.slane %v9172_v37, 1  ;;  %v5509_v48 = vadd.f32 %v5508_v14, %v5507_v23  ;;  %v5438_v18 = vadd.f32 %v5437_v7, %v5436_v45  ;;  %v2264_v1 = vmin.f32 %v9175_v27, 0.0 }
 0x3c5   :  { %v2324_v62 = vsel %vm2244_vm11, %v9098_v4, %v5093_v54  ;;  %v5439_v11 = vpop.f32.mrb[54].mxu1  ;;  %v2284_v31 = vmul.f32 1.442695, %v2263_v20  ;;  %vm2248_vm4 = vcmp.gt.f32.partialorder %v9175_v27, 0.0 }
 0x3c6   :  { %v9184_v47 = vsel %vm787_vm7, %v2434_v28, %v2435_v59  ;;  %v9187_v57 = vadd.f32 %v5509_v48, %v2054_v44  ;;  %v5510_v2 = vpop.f32.mrb[80].mxu0  ;;  %v2069_v26 = vadd.f32 %v5438_v18, %v9022_v13  ;;  %v5440_v5 = vpop.f32.mrb[55].mxu1  ;;  %v9195_v44 = vadd.f32 %v2324_v62, %v11211_v8 }
 0x3c7   :  { %v5511_v21 = vpop.f32.mrb[81].mxu0  ;;  %v2573_v60 = vrot.slane %v9184_v47, 2  ;;  %v5441_v53 = vadd.f32 %v5440_v5, %v5439_v11  ;;  %v7110_v39 = vpop.eup %7109  ;;  %v2868_v13 = vrot.slane %v9181_v24, 6  ;;  %v2869_v49 = vrot.slane %v9184_v47, 6 }
 0x3c8   :  { %v5512_v10 = vadd.f32 %v5511_v21, %v5510_v2  ;;  %11212 = vst [vmem:[#allocation8_spill] sm:$0xff] %v9195_v44  ;;  %v2491_v25 = vrot.slane %v9184_v47, 1  ;;  %v2286_v35 = vmul.f32 1.442695, %v2264_v1  ;;  %v2437_v34 = vrot.slane %v9195_v44, 1 }
 0x3c9   :  { %v9201_v17 = vadd.f32 %v5441_v53, %v9025_v16  ;;  %v2574_v29 = vsel %vm924_vm12, %v2572_v61, %v2573_v60  ;;  %v5442_v33 = vpop.f32.mrb[56].mxu1  ;;  %v2870_v41 = vsel %vm1219_vm14, %v2868_v13, %v2869_v49  ;;  %v2490_v16 = vrot.slane %v9181_v24, 1 }
 0x3ca   :  { %v9197_v50 = vadd.f32 %v5512_v10, %v2059_v40  ;;  %v5513_v4 = vpop.f32.mrb[82].mxu0  ;;  %v5443_v55 = vpop.f32.mrb[57].mxu1  ;;  %v5094_v19 = vadd.f32 -1.0, %v7110_v39  ;;  %7113 = vpow2.f32 %v2284_v31  ;;  %v6602_v22 = vpack.i.bf16 %v2574_v29, %v2870_v41 }
 0x3cb   :  { %v5514_v12 = vpop.f32.mrb[83].mxu0  ;;  %v7112_v30 = vpop.eup %7111  ;;  %v2492_v42 = vsel %vm787_vm7, %v2490_v16, %v2491_v25  ;;  %v2786_v28 = vrot.slane %v9181_v24, 5  ;;  %v2787_v23 = vrot.slane %v9184_v47, 5  ;;  %v5444_v45 = vadd.f32 %v5443_v55, %v5442_v33 }
 0x3cc   :  { %v5515_v40 = vadd.f32 %v5514_v12, %v5513_v4  ;;  %6603 = vrot.lane.b32.xlu0 %v6602_v22, %s7212_s24  ;;  %7115 = vpow2.f32 %v2286_v35  ;;  %v2265_v18 = vmin.f32 %v9187_v57, 0.0  ;;  %v9225_v20 = vsel %vm787_vm7, %v2435_v59, %v2437_v34  ;;  %v11213_v4 = vld [vmem:[#allocation11_spill] sm:$0xff] }
 0x3cd   :  { %v5445_v14 = vpop.f32.mrb[58].mxu1  ;;  %v2325_v2 = vsel %vm2245_vm13, %v9120_v52, %v5094_v19  ;;  %v9229_v21 = vadd.f32 %v5444_v45, %v9028_v63  ;;  %v5095_v10 = vadd.f32 -1.0, %v7112_v30  ;;  %v2654_v1 = vrot.slane %v9181_v24, 3  ;;  %v11215_v45 = vld [vmem:[#allocation13_spill] sm:$0xff] }
 0x3ce   :  { %v5516_v43 = vpop.f32.mrb[84].mxu0  ;;  %v9213_v0 = vadd.f32 %v5515_v40, %v2064_v32  ;;  %v5446_v7 = vpop.f32.mrb[59].mxu1  ;;  %v2788_v32 = vsel %vm103_vm0, %v2786_v28, %v2787_v23  ;;  %v2655_v53 = vrot.slane %v9184_v47, 3  ;;  %v2950_v59 = vrot.slane %v9181_v24, 7 }
 0x3cf   :  { %v5517_v54 = vpop.f32.mrb[85].mxu0  ;;  %v6597_v62 = vpack.i.bf16 %v2492_v42, %v2788_v32  ;;  %v2951_v52 = vrot.slane %v9184_v47, 7  ;;  %v9239_v63 = vadd.f32 %v2325_v2, %v11213_v4  ;;  %v2288_v13 = vmul.f32 1.442695, %v2265_v18 }
 0x3d0   :  { %v5518_v48 = vadd.f32 %v5517_v54, %v5516_v43  ;;  %v2493_v29 = vrot.slane %v9225_v20, 1  ;;  %v2326_v55 = vsel %vm2246_vm15, %v9132_v6, %v5095_v10  ;;  %v2266_v35 = vmin.f32 %v9197_v50, 0.0 }
 0x3d1   :  { %v5448_v39 = vpop.f32.mrb[60].mxu1  ;;  %6598 = vrot.lane.b32.xlu1 %v6597_v62, %s7211_s23  ;;  %11214 = vst [vmem:[#allocation11_spill] sm:$0xff] %v9239_v63  ;;  %v2952_v12 = vsel %vm1301_vm9, %v2950_v59, %v2951_v52  ;;  %v2789_v43 = vrot.slane %v9225_v20, 5  ;;  %v5447_v30 = vadd.f32 %v5446_v7, %v5445_v14  ;;  %v2439_v54 = vrot.slane %v9239_v63, 1 }
 0x3d2   :  { %v5519_v11 = vpop.f32.mrb[86].mxu0  ;;  %v9231_v5 = vadd.f32 %v5518_v48, %v2069_v26  ;;  %v5449_v31 = vpop.f32.mrb[61].mxu1  ;;  %v2656_v26 = vsel %vm1006_vm8, %v2654_v1, %v2655_v53  ;;  %v2494_v22 = vsel %vm787_vm7, %v2491_v25, %v2493_v29  ;;  %7117 = vpow2.f32 %v2288_v13 }
 0x3d3   :  { %v5520_v61 = vpop.f32.mrb[87].mxu0  ;;  %v6607_v40 = vpack.i.bf16 %v2656_v26, %v2952_v12  ;;  %v2657_v6 = vrot.slane %v9225_v20, 3  ;;  %v9257_v48 = vadd.f32 %v2326_v55, %v11215_v45  ;;  %v2790_v18 = vsel %vm103_vm0, %v2787_v23, %v2789_v43 }
 0x3d4   :  { %v7114_v19 = vpop.eup %7113  ;;  %v5521_v42 = vadd.f32 %v5520_v61, %v5519_v11  ;;  %v9261_v32 = vadd.f32 %v5447_v30, %v9031_v15  ;;  %v6612_v2 = vpack.i.bf16 %v2494_v22, %v2790_v18  ;;  %v2290_v10 = vmul.f32 1.442695, %v2266_v35 }
 0x3d5   :  { %v9247_v16 = vpop.f32.mrb[62].mxu1  ;;  %6608 = vrot.lane.b32.xlu0 %v6607_v40, %s7210_s22  ;;  %11216 = vst [vmem:[#allocation13_spill] sm:$0xff] %v9257_v48  ;;  %v5096_v11 = vadd.f32 -1.0, %v7114_v19  ;;  %v2953_v1 = vrot.slane %v9225_v20, 7  ;;  %v2658_v15 = vsel %vm1006_vm8, %v2655_v53, %v2657_v6  ;;  %v2575_v23 = vrot.slane %v9225_v20, 2 }
 0x3d6   :  { %v5522_v33 = vpop.f32.mrb[88].mxu0  ;;  %v5452_v28 = vpop.f32.mrb[63].mxu1  ;;  %v9264_v25 = vadd.f32 %v5521_v42, %v9201_v17  ;;  %6613 = vrot.lane.b32.xlu1 %v6612_v2, %s7211_s23  ;;  %v2871_v17 = vrot.slane %v9225_v20, 6  ;;  %v5450_v61 = vadd.f32 %v5449_v31, %v5448_v39  ;;  %v9277_v59 = vsel %vm787_vm7, %v2437_v34, %v2439_v54 }
 0x3d7   :  { %v5523_v41 = vpop.f32.mrb[89].mxu0  ;;  %v7116_v7 = vpop.eup %7115  ;;  %v2441_v13 = vrot.slane %v9257_v48, 1  ;;  %v2954_v53 = vsel %vm1301_vm9, %v2951_v52, %v2953_v1  ;;  %v2576_v55 = vsel %vm924_vm12, %v2573_v60, %v2575_v23  ;;  %v2327_v35 = vsel %vm2247_vm1, %v9159_v51, %v5096_v11 }
 0x3d8   :  { %v5097_v26 = vadd.f32 -1.0, %v7116_v7  ;;  %v2872_v39 = vsel %vm1219_vm14, %v2869_v49, %v2871_v17  ;;  %v2089_v34 = vadd.f32 %v5450_v61, %v9035_v36  ;;  %7119 = vpow2.f32 %v2290_v10  ;;  %v11217_v61 = vld [vmem:[#allocation12_spill] sm:$0xff] }
 0x3d9   :  { %v2267_v40 = vmin.f32 %v9213_v0, 0.0  ;;  %v6622_v19 = vpack.i.bf16 %v2658_v15, %v2954_v53  ;;  %v6617_v52 = vpack.i.bf16 %v2576_v55, %v2872_v39  ;;  %v5524_v22 = vadd.f32 %v5523_v41, %v5522_v33 }
 0x3da   :  { %v5525_v14 = vpop.f32.mrb[90].mxu0  ;;  %v2577_v30 = vrot.slane %v9277_v59, 2  ;;  %v2873_v60 = vrot.slane %v9277_v59, 6  ;;  %v2328_v49 = vsel %vm2248_vm4, %v9175_v27, %v5097_v26  ;;  %v2268_v36 = vmin.f32 %v9231_v5, 0.0 }
 0x3db   :  { %v5526_v62 = vpop.f32.mrb[91].mxu0  ;;  %6623 = vrot.lane.b32.xlu0 %v6622_v19, %s7210_s22  ;;  %v2495_v51 = vrot.slane %v9277_v59, 1  ;;  %v2791_v42 = vrot.slane %v9277_v59, 5  ;;  %v9307_v33 = vsel %vm787_vm7, %v2439_v54, %v2441_v13  ;;  %6618 = vrot.lane.b32.xlu1 %v6617_v52, %s7212_s24  ;;  %v9311_v41 = vadd.f32 %v5524_v22, %v9229_v21  ;;  %v11219_v21 = vld [vmem:[#allocation14_spill] sm:$0xff] }
 0x3dc   :  { %v7118_v7 = vpop.eup %7117  ;;  %v2578_v27 = vsel %vm924_vm12, %v2575_v23, %v2577_v30  ;;  %v2874_v2 = vsel %vm1219_vm14, %v2871_v17, %v2873_v60  ;;  %v9324_v26 = vadd.f32 %v2327_v35, %v11217_v61  ;;  %v9327_v53 = vadd.f32 %v2328_v49, %v11219_v21 }
 0x3dd   :  { %v6632_v10 = vpack.i.bf16 %v2578_v27, %v2874_v2  ;;  %v2496_v54 = vsel %vm787_vm7, %v2493_v29, %v2495_v51  ;;  %v2792_v15 = vsel %vm103_vm0, %v2789_v43, %v2791_v42  ;;  %v2292_v55 = vmul.f32 1.442695, %v2267_v40 }
 0x3de   :  { %v5528_v12 = vpop.f32.mrb[92].mxu0  ;;  %11218 = vst [vmem:[#allocation12_spill] sm:$0xff] %v9324_v26  ;;  %11220 = vst [vmem:[#allocation24_spill] sm:$0xff] %v9327_v53  ;;  %v6627_v23 = vpack.i.bf16 %v2496_v54, %v2792_v15  ;;  %v2294_v39 = vmul.f32 1.442695, %v2268_v36  ;;  %v5453_v17 = vadd.f32 %v5452_v28, %v9247_v16  ;;  %v5527_v19 = vadd.f32 %v5526_v62, %v5525_v14 }
 0x3df   :  { %v5529_v31 = vpop.f32.mrb[93].mxu0  ;;  %6633 = vrot.lane.b32.xlu0 %v6632_v10, %s7212_s24  ;;  %v2497_v52 = vrot.slane %v9307_v33, 1  ;;  %vm2249_vm10 = vcmp.gt.f32.partialorder %v9187_v57, 0.0  ;;  %v5098_v29 = vadd.f32 -1.0, %v7118_v7  ;;  %v2793_v43 = vrot.slane %v9307_v33, 5 }
 0x3e0   :  { %6628 = vrot.lane.b32.xlu1 %v6627_v23, %s7211_s23  ;;  %v2094_v35 = vadd.f32 %v5453_v17, %v9057_v46  ;;  %v9337_v40 = vadd.f32 %v5527_v19, %v9261_v32  ;;  %v2659_v49 = vrot.slane %v9277_v59, 3  ;;  %v2443_v16 = vrot.slane %v9324_v26, 1 }
 0x3e1   :  { %v2498_v22 = vsel %vm787_vm7, %v2495_v51, %v2497_v52  ;;  %7121 = vpow2.f32 %v2292_v55  ;;  %v2794_v28 = vsel %vm103_vm0, %v2791_v42, %v2793_v43  ;;  %v2955_v14 = vrot.slane %v9277_v59, 7 }
 0x3e2   :  { %v5531_v18 = vpop.f32.mrb[94].mxu0  ;;  %v7120_v62 = vpop.eup %7119  ;;  %v2445_v36 = vrot.slane %v9327_v53, 1  ;;  %7123 = vpow2.f32 %v2294_v39  ;;  %v6642_v7 = vpack.i.bf16 %v2498_v22, %v2794_v28  ;;  %v2660_v46 = vsel %vm1006_vm8, %v2657_v6, %v2659_v49 }
 0x3e3   :  { %v5532_v11 = vpop.f32.mrb[95].mxu0  ;;  %v2329_v32 = vsel %vm2249_vm10, %v9187_v57, %v5098_v29  ;;  %v2269_v51 = vmin.f32 %v9264_v25, 0.0  ;;  %v2956_v42 = vsel %vm1301_vm9, %v2953_v1, %v2955_v14  ;;  %v5530_v27 = vadd.f32 %v5529_v31, %v5528_v12  ;;  %v11221_v12 = vld [vmem:[#allocation15_spill] sm:$0xff] }
 0x3e4   :  { %6643 = vrot.lane.b32.xlu0 %v6642_v7, %s7211_s23  ;;  %v6637_v2 = vpack.i.bf16 %v2660_v46, %v2956_v42  ;;  %v2661_v10 = vrot.slane %v9307_v33, 3  ;;  %v2957_v54 = vrot.slane %v9307_v33, 7  ;;  %v9361_v6 = vsel %vm787_vm7, %v2441_v13, %v2443_v16 }
 0x3e5   :  { %v9363_v57 = vadd.f32 %v5530_v27, %v2089_v34  ;;  %v2579_v15 = vrot.slane %v9307_v33, 2  ;;  %v2875_v55 = vrot.slane %v9307_v33, 6  ;;  %v9368_v1 = vsel %vm787_vm7, %v2443_v16, %v2445_v36 }
 0x3e6   :  { %v9371_v31 = vadd.f32 %v2329_v32, %v11221_v12  ;;  %6638 = vrot.lane.b32.xlu1 %v6637_v2, %s7210_s22  ;;  %v2662_v23 = vsel %vm1006_vm8, %v2659_v49, %v2661_v10  ;;  %v2958_v39 = vsel %vm1301_vm9, %v2955_v14, %v2957_v54  ;;  %v5099_v13 = vadd.f32 -1.0, %v7120_v62 }
 0x3e7   :  { %v2296_v17 = vmul.f32 1.442695, %v2269_v51  ;;  %v6652_v34 = vpack.i.bf16 %v2662_v23, %v2958_v39  ;;  %v2580_v19 = vsel %vm924_vm12, %v2577_v30, %v2579_v15  ;;  %v2270_v29 = vmin.f32 %v9311_v41, 0.0 }
 0x3e8   :  { %11222 = vst [vmem:[#allocation25_spill] sm:$0xff] %v9371_v31  ;;  %v2876_v22 = vsel %vm1219_vm14, %v2873_v60, %v2875_v55  ;;  %v5533_v16 = vadd.f32 %v5532_v11, %v5531_v18  ;;  %v2581_v28 = vrot.slane %v9361_v6, 2  ;;  %vm2250_vm11 = vcmp.gt.f32.partialorder %v9197_v50, 0.0 }
 0x3e9   :  { %6653 = vrot.lane.b32.xlu0 %v6652_v34, %s7210_s22  ;;  %v6647_v49 = vpack.i.bf16 %v2580_v19, %v2876_v22  ;;  %v2877_v14 = vrot.slane %v9361_v6, 6  ;;  %v2499_v62 = vrot.slane %v9361_v6, 1  ;;  %v2447_v30 = vrot.slane %v9371_v31, 1 }
 0x3ea   :  { %vm2251_vm13 = vcmp.gt.f32.partialorder %v9213_v0, 0.0  ;;  %v9390_v7 = vadd.f32 %v5533_v16, %v2094_v35  ;;  %v2582_v60 = vsel %vm924_vm12, %v2579_v15, %v2581_v28  ;;  %v2795_v18 = vrot.slane %v9361_v6, 5 }
 0x3eb   :  { %v7122_v11 = vpop.eup %7121  ;;  %7125 = vpow2.f32 %v2296_v17  ;;  %6648 = vrot.lane.b32.xlu1 %v6647_v49, %s7212_s24  ;;  %v2878_v46 = vsel %vm1219_vm14, %v2875_v55, %v2877_v14  ;;  %v2500_v32 = vsel %vm787_vm7, %v2497_v52, %v2499_v62  ;;  %v2501_v51 = vrot.slane %v9368_v1, 1 }
 0x3ec   :  { %v7124_v42 = vpop.eup %7123  ;;  %v2330_v35 = vsel %vm2250_vm11, %v9197_v50, %v5099_v13  ;;  %vm2252_vm15 = vcmp.gt.f32.partialorder %v9231_v5, 0.0  ;;  %v2298_v27 = vmul.f32 1.442695, %v2270_v29  ;;  %v6662_v2 = vpack.i.bf16 %v2582_v60, %v2878_v46 }
 0x3ed   :  { %v2796_v15 = vsel %vm103_vm0, %v2793_v43, %v2795_v18  ;;  %v2502_v23 = vsel %vm787_vm7, %v2499_v62, %v2501_v51  ;;  %v2797_v39 = vrot.slane %v9368_v1, 5  ;;  %v2663_v55 = vrot.slane %v9361_v6, 3 }
 0x3ee   :  { %v9407_v52 = vsel %vm787_vm7, %v2445_v36, %v2447_v30  ;;  %v5100_v17 = vadd.f32 -1.0, %v7122_v11  ;;  %6663 = vrot.lane.b32.xlu0 %v6662_v2, %s7212_s24  ;;  %v6657_v34 = vpack.i.bf16 %v2500_v32, %v2796_v15  ;;  %v2959_v50 = vrot.slane %v9361_v6, 7 }
 0x3ef   :  { %v5101_v13 = vadd.f32 -1.0, %v7124_v42  ;;  %v2798_v19 = vsel %vm103_vm0, %v2795_v18, %v2797_v39  ;;  %v2664_v43 = vsel %vm1006_vm8, %v2661_v10, %v2663_v55  ;;  %v2665_v29 = vrot.slane %v9368_v1, 3 }
 0x3f0   :  { %v2271_v22 = vmin.f32 %v9337_v40, 0.0  ;;  %6658 = vrot.lane.b32.xlu1 %v6657_v34, %s7211_s23  ;;  %v6672_v16 = vpack.i.bf16 %v2502_v23, %v2798_v19  ;;  %v2960_v36 = vsel %vm1301_vm9, %v2957_v54, %v2959_v50  ;;  %v2961_v49 = vrot.slane %v9368_v1, 7  ;;  %v11223_v54 = vld [vmem:[#allocation16_spill] sm:$0xff] }
 0x3f1   :  { %v9419_v62 = vsel %vm787_vm7, %v2447_v30, 0.0  ;;  %7127 = vpow2.f32 %v2298_v27  ;;  %v6667_v60 = vpack.i.bf16 %v2664_v43, %v2960_v36  ;;  %v2666_v18 = vsel %vm1006_vm8, %v2663_v55, %v2665_v29 }
 0x3f2   :  { %6673 = vrot.lane.b32.xlu0 %v6672_v16, %s7211_s23  ;;  %v2962_v10 = vsel %vm1301_vm9, %v2959_v50, %v2961_v49  ;;  %v2583_v11 = vrot.slane %v9368_v1, 2  ;;  %v2879_v46 = vrot.slane %v9368_v1, 6  ;;  %v2585_v32 = vrot.slane %v9407_v52, 2 }
 0x3f3   :  { %v9428_v42 = vadd.f32 %v2330_v35, %v11223_v54  ;;  %v2331_v30 = vsel %vm2251_vm13, %v9213_v0, %v5100_v17  ;;  %v2332_v27 = vsel %vm2252_vm15, %v9231_v5, %v5101_v13  ;;  %v2881_v2 = vrot.slane %v9407_v52, 6  ;;  %v11225_v5 = vld [vmem:[#allocation17_spill] sm:$0xff] }
 0x3f4   :  { %v2300_v15 = vmul.f32 1.442695, %v2271_v22  ;;  %6668 = vrot.lane.b32.xlu1 %v6667_v60, %s7210_s22  ;;  %v6682_v23 = vpack.i.bf16 %v2666_v18, %v2962_v10  ;;  %v2584_v55 = vsel %vm924_vm12, %v2581_v28, %v2583_v11  ;;  %v2880_v34 = vsel %vm1219_vm14, %v2877_v14, %v2879_v46  ;;  %v11227_v18 = vld [vmem:[#allocation18_spill] sm:$0xff] }
 0x3f5   :  { %11224 = vst [vmem:[#allocation26_spill] sm:$0xff] %v9428_v42  ;;  %v7126_v35 = vpop.eup %7125  ;;  %v2586_v50 = vsel %vm924_vm12, %v2583_v11, %v2585_v32  ;;  %v2882_v19 = vsel %vm1219_vm14, %v2879_v46, %v2881_v2  ;;  %v2503_v0 = vrot.slane %v9407_v52, 1  ;;  %v2799_v17 = vrot.slane %v9407_v52, 5 }
 0x3f6   :  { %v9445_v13 = vadd.f32 %v2331_v30, %v11225_v5  ;;  %v2272_v43 = vmin.f32 %v9363_v57, 0.0  ;;  %6683 = vrot.lane.b32.xlu0 %v6682_v23, %s7210_s22  ;;  %v6677_v22 = vpack.i.bf16 %v2584_v55, %v2880_v34  ;;  %v2505_v28 = vrot.slane %v9419_v62, 1  ;;  %v2367_v5 = vld [vmem:[%s11071_s3 + $0x470] sm:$0xff] }
 0x3f7   :  { %v2504_v14 = vsel %vm787_vm7, %v2501_v51, %v2503_v0  ;;  %v2800_v16 = vsel %vm103_vm0, %v2797_v39, %v2799_v17  ;;  %v2801_v36 = vrot.slane %v9419_v62, 5  ;;  %v2667_v60 = vrot.slane %v9407_v52, 3 }
 0x3f8   :  { %11226 = vst [vmem:[#allocation27_spill] sm:$0xff] %v9445_v13  ;;  %v9455_v10 = vadd.f32 %v2332_v27, %v11227_v18  ;;  %v5102_v11 = vadd.f32 -1.0, %v7126_v35  ;;  %7129 = vpow2.f32 %v2300_v15  ;;  %6678 = vrot.lane.b32.xlu1 %v6677_v22, %s7212_s24  ;;  %v6692_v46 = vpack.i.bf16 %v2586_v50, %v2882_v19 }
 0x3f9   :  { %v2273_v30 = vmin.f32 %v9390_v7, 0.0  ;;  %v2506_v23 = vsel %vm787_vm7, %v2503_v0, %v2505_v28  ;;  %v2802_v51 = vsel %vm103_vm0, %v2799_v17, %v2801_v36  ;;  %v2963_v39 = vrot.slane %v9407_v52, 7 }
 0x3fa   :  { %11228 = vst [vmem:[#allocation28_spill] sm:$0xff] %v9455_v10  ;;  %v2302_v55 = vmul.f32 1.442695, %v2272_v43  ;;  %6693 = vrot.lane.b32.xlu0 %v6692_v46, %s7212_s24  ;;  %v6687_v34 = vpack.i.bf16 %v2504_v14, %v2800_v16  ;;  %v2669_v27 = vrot.slane %v9419_v62, 3  ;;  %v2965_v35 = vrot.slane %v9419_v62, 7 }
 0x3fb   :  { %v7128_v15 = vpop.eup %7127  ;;  %v2668_v22 = vsel %vm1006_vm8, %v2665_v29, %v2667_v60  ;;  %v2964_v50 = vsel %vm1301_vm9, %v2961_v49, %v2963_v39  ;;  %v2587_v19 = vrot.slane %v9419_v62, 2  ;;  %v2883_v0 = vrot.slane %v9419_v62, 6 }
 0x3fc   :  { %v2450_v17 = vrot.slane %v9445_v13, 1  ;;  %v2452_v43 = vrot.slane %v9455_v10, 1  ;;  %vm2253_vm1 = vcmp.gt.f32.partialorder %v9264_v25, 0.0  ;;  %6688 = vrot.lane.b32.xlu1 %v6687_v34, %s7211_s23  ;;  %v6702_v14 = vpack.i.bf16 %v2506_v23, %v2802_v51  ;;  %v11231_v51 = vld [vmem:[#allocation9_spill] sm:$0xff] }
 0x3fd   :  { %v2333_v16 = vsel %vm2253_vm1, %v9264_v25, %v5102_v11  ;;  %v2304_v46 = vmul.f32 1.442695, %v2273_v30  ;;  %v2670_v29 = vsel %vm1006_vm8, %v2667_v60, %v2669_v27  ;;  %v2966_v49 = vsel %vm1301_vm9, %v2963_v39, %v2965_v35  ;;  %v11229_v25 = vld [vmem:[#allocation19_spill] sm:$0xff]  ;;  %v11232_v39 = vld [vmem:[#allocation10_spill] sm:$0xff] }
 0x3fe   :  { %v2449_v53 = vrot.slane %v9428_v42, 1  ;;  %v5103_v31 = vadd.f32 -1.0, %v7128_v15  ;;  %6703 = vrot.lane.b32.xlu0 %v6702_v14, %s7211_s23  ;;  %v6697_v13 = vpack.i.bf16 %v2668_v22, %v2964_v50  ;;  %7131 = vpow2.f32 %v2302_v55  ;;  %v11233_v22 = vld [vmem:[#allocation5_spill] sm:$0xff] }
 0x3ff   :  { %v2588_v10 = vsel %vm924_vm12, %v2585_v32, %v2587_v19  ;;  %v2884_v48 = vsel %vm1219_vm14, %v2881_v2, %v2883_v0  ;;  %v9484_v11 = vadd.f32 %v2333_v16, %v11229_v25  ;;  %vm2254_vm4 = vcmp.gt.f32.partialorder %v9311_v41, 0.0 }
 0x400   :  { %v9481_v23 = vsel %vm787_vm7, %v2449_v53, %v2450_v17  ;;  %6698 = vrot.lane.b32.xlu1 %v6697_v13, %s7210_s22  ;;  %v6712_v60 = vpack.i.bf16 %v2670_v29, %v2966_v49  ;;  %v9489_v30 = vsel %vm787_vm7, %v2450_v17, %v2452_v43  ;;  %7133 = vpow2.f32 %v2304_v46  ;;  %v11234_v17 = vld [vmem:[#allocation6_spill] sm:$0xff]  ;;  %v11235_v46 = vld [vmem:[#allocation3_spill] sm:$0xff]  ;;  %v11237_v49 = vld [vmem:[#allocation20_spill] sm:$0xff] }
 0x401   :  { %11230 = vst [vmem:[#allocation29_spill] sm:$0xff] %v9484_v11  ;;  %v3040_v32 = vsel %vm924_vm12, %v2587_v19, %v11231_v51  ;;  %v3068_v2 = vsel %vm1219_vm14, %v2883_v0, %v11232_v39  ;;  %v9496_v34 = vsel %vm787_vm7, 0.0, %v2449_v53  ;;  %v2334_v15 = vsel %vm2254_vm4, %v9311_v41, %v5103_v31  ;;  %v11236_v31 = vld [vmem:[#allocation4_spill] sm:$0xff] }
 0x402   :  { %v7130_v55 = vpop.eup %7129  ;;  %6713 = vrot.lane.b32.xlu0 %v6712_v60, %s7210_s22  ;;  %v6707_v13 = vpack.i.bf16 %v2588_v10, %v2884_v48  ;;  %v3032_v50 = vsel %vm787_vm7, %v2505_v28, %v11233_v22  ;;  %v3060_v14 = vsel %vm103_vm0, %v2801_v36, %v11234_v17  ;;  %v2508_v19 = vrot.slane %v9481_v23, 1 }
 0x403   :  { %v2804_v16 = vrot.slane %v9481_v23, 5  ;;  %v2454_v0 = vrot.slane %v9484_v11, 1  ;;  %v6722_v53 = vpack.i.bf16 %v3040_v32, %v3068_v2  ;;  %v3048_v41 = vsel %vm1006_vm8, %v2669_v27, %v11235_v46 }
 0x404   :  { %6708 = vrot.lane.b32.xlu1 %v6707_v13, %s7212_s24  ;;  %v2510_v48 = vrot.slane %v9489_v30, 1  ;;  %v3076_v28 = vsel %vm1301_vm9, %v2965_v35, %v11236_v31  ;;  %v2507_v10 = vrot.slane %v9496_v34, 1  ;;  %v2803_v36 = vrot.slane %v9496_v34, 5 }
 0x405   :  { %v2806_v29 = vrot.slane %v9489_v30, 5  ;;  %v9517_v60 = vadd.f32 %v2334_v15, %v11237_v49  ;;  %vm2255_vm10 = vcmp.gt.f32.partialorder %v9337_v40, 0.0  ;;  %v5104_v32 = vadd.f32 -1.0, %v7130_v55 }
 0x406   :  { %6723 = vrot.lane.b32.xlu0 %v6722_v53, %s7212_s24  ;;  %v6717_v27 = vpack.i.bf16 %v3032_v50, %v3060_v14  ;;  %v2509_v2 = vsel %vm787_vm7, %v2507_v10, %v2508_v19  ;;  %v2805_v13 = vsel %vm103_vm0, %v2803_v36, %v2804_v16  ;;  %v2590_v35 = vrot.slane %v9481_v23, 2 }
 0x407   :  { %11238 = vst [vmem:[#allocation9_spill] sm:$0xff] %v9517_v60  ;;  %v2886_v11 = vrot.slane %v9481_v23, 6  ;;  %v9526_v42 = vsel %vm787_vm7, %v2452_v43, %v2454_v0  ;;  %v6727_v15 = vpack.i.bf16 %v3048_v41, %v3076_v28  ;;  %v2511_v26 = vsel %vm787_vm7, %v2508_v19, %v2510_v48 }
 0x408   :  { %6718 = vrot.lane.b32.xlu1 %v6717_v27, %s7211_s23  ;;  %v2589_v55 = vrot.slane %v9496_v34, 2  ;;  %v7132_v53 = vpop.eup %7131  ;;  %v2807_v50 = vsel %vm103_vm0, %v2804_v16, %v2806_v29  ;;  %v2885_v14 = vrot.slane %v9496_v34, 6  ;;  %v2592_v10 = vrot.slane %v9489_v30, 2 }
 0x409   :  { %v2888_v36 = vrot.slane %v9489_v30, 6  ;;  %v2456_v44 = vrot.slane %v9517_v60, 1  ;;  %v2335_v43 = vsel %vm2255_vm10, %v9337_v40, %v5104_v32  ;;  %vm2256_vm11 = vcmp.gt.f32.partialorder %v9363_v57, 0.0 }
 0x40a   :  { %6728 = vrot.lane.b32.xlu0 %v6727_v15, %s7210_s22  ;;  %v6732_v19 = vpack.i.bf16 %v2509_v2, %v2805_v13  ;;  %v7134_v41 = vpop.eup %7133  ;;  %v2591_v16 = vsel %vm924_vm12, %v2589_v55, %v2590_v35  ;;  %v2887_v28 = vsel %vm1219_vm14, %v2885_v14, %v2886_v11  ;;  %v2672_v27 = vrot.slane %v9481_v23, 3 }
 0x40b   :  { %v2968_v63 = vrot.slane %v9481_v23, 7  ;;  %v5105_v37 = vadd.f32 -1.0, %v7132_v53  ;;  %v6747_v60 = vpack.i.bf16 %v2511_v26, %v2807_v50  ;;  %v2671_v40 = vrot.slane %v9496_v34, 3 }
 0x40c   :  { %6733 = vrot.lane.b32.xlu1 %v6732_v19, %s7211_s23  ;;  %v2512_v32 = vrot.slane %v9526_v42, 1  ;;  %v2593_v15 = vsel %vm924_vm12, %v2590_v35, %v2592_v10  ;;  %v2889_v2 = vsel %vm1219_vm14, %v2886_v11, %v2888_v36  ;;  %v2967_v13 = vrot.slane %v9496_v34, 7 }
 0x40d   :  { %v2808_v55 = vrot.slane %v9526_v42, 5  ;;  %v9553_v14 = vsel %vm787_vm7, %v2454_v0, %v2456_v44  ;;  %v9556_v53 = vadd.f32 %v2335_v43, %v11239_v56  ;;  %v5106_v19 = vadd.f32 -1.0, %v7134_v41 }
 0x40e   :  { %6748 = vrot.lane.b32.xlu0 %v6747_v60, %s7211_s23  ;;  %v6737_v26 = vpack.i.bf16 %v2591_v16, %v2887_v28  ;;  %v2673_v50 = vsel %vm1006_vm8, %v2671_v40, %v2672_v27  ;;  %v2969_v35 = vsel %vm1301_vm9, %v2967_v13, %v2968_v63  ;;  %v2674_v11 = vrot.slane %v9489_v30, 3 }
 0x40f   :  { %11240 = vst [vmem:[#allocation10_spill] sm:$0xff] %v9556_v53  ;;  %v2970_v49 = vrot.slane %v9489_v30, 7  ;;  %v2336_v0 = vsel %vm2256_vm11, %v9363_v57, %v5105_v37  ;;  %v6752_v43 = vpack.i.bf16 %v2593_v15, %v2889_v2  ;;  %v2513_v41 = vsel %vm787_vm7, %v2510_v48, %v2512_v32  ;;  %v11241_v57 = vld [vmem:[#allocation22_spill] sm:$0xff] }
 0x410   :  { %6738 = vrot.lane.b32.xlu1 %v6737_v26, %s7212_s24  ;;  %v2676_v60 = vrot.slane %v9526_v42, 3  ;;  %v2809_v16 = vsel %vm103_vm0, %v2806_v29, %v2808_v55  ;;  %v2972_v28 = vrot.slane %v9526_v42, 7  ;;  %v2594_v40 = vrot.slane %v9526_v42, 2 }
 0x411   :  { %v2890_v13 = vrot.slane %v9526_v42, 6  ;;  %v2458_v56 = vrot.slane %v9556_v53, 1  ;;  %vm2257_vm13 = vcmp.gt.f32.partialorder %v9390_v7, 0.0  ;;  %v6742_v37 = vpack.i.bf16 %v2673_v50, %v2969_v35 }
 0x412   :  { %6753 = vrot.lane.b32.xlu0 %v6752_v43, %s7212_s24  ;;  %v9577_v15 = vadd.f32 %v2336_v0, %v11241_v57  ;;  %v2337_v48 = vsel %vm2257_vm13, %v9390_v7, %v5106_v19  ;;  %v2675_v29 = vsel %vm1006_vm8, %v2672_v27, %v2674_v11  ;;  %v2971_v2 = vsel %vm1301_vm9, %v2968_v63, %v2970_v49  ;;  %v11243_v43 = vld [vmem:[#allocation23_spill] sm:$0xff] }
 0x413   :  { %v6762_v26 = vpack.i.bf16 %v2513_v41, %v2809_v16  ;;  %v2677_v25 = vsel %vm1006_vm8, %v2674_v11, %v2676_v60  ;;  %v11154_v53 = vrot.slane %v9553_v14, 2  ;;  %v11153_v18 = vrot.slane %v9553_v14, 6  ;;  %v2366_v57 = vld [vmem:[%s11071_s3 + $0x468] sm:$0xff] }
 0x414   :  { %11242 = vst [vmem:[#allocation5_spill] sm:$0xff] %v9577_v15  ;;  %6743 = vrot.lane.b32.xlu1 %v6742_v37, %s7210_s22  ;;  %v2973_v50 = vsel %vm1301_vm9, %v2970_v49, %v2972_v28  ;;  %v2595_v35 = vsel %vm924_vm12, %v2592_v10, %v2594_v40  ;;  %v2891_v0 = vsel %vm1219_vm14, %v2888_v36, %v2890_v13  ;;  %v2514_v7 = vrot.slane %v9553_v14, 1 }
 0x415   :  { %v9591_v27 = vsel %vm787_vm7, %v2456_v44, %v2458_v56  ;;  %v6757_v63 = vpack.i.bf16 %v2675_v29, %v2971_v2  ;;  %v2810_v19 = vrot.slane %v9553_v14, 5  ;;  %v2460_v11 = vrot.slane %v9577_v15, 1  ;;  %v2396_v15 = vld [vmem:[%s11071_s3 + $0x558] sm:$0xff] }
 0x416   :  { %6763 = vrot.lane.b32.xlu0 %v6762_v26, %s7211_s23  ;;  %v9597_v41 = vadd.f32 %v2337_v48, %v11243_v43  ;;  %v6772_v49 = vpack.i.bf16 %v2677_v25, %v2973_v50  ;;  %v6767_v10 = vpack.i.bf16 %v2595_v35, %v2891_v0  ;;  %v2597_v36 = vsel %vm924_vm12, %v2594_v40, %v11154_v53  ;;  %v2365_v53 = vld [vmem:[%s11071_s3 + $0x460] sm:$0xff] }
 0x417   :  { %v2893_v44 = vsel %vm1219_vm14, %v2890_v13, %v11153_v18  ;;  %v2515_v16 = vsel %vm787_vm7, %v2512_v32, %v2514_v7  ;;  %v11152_v37 = vrot.slane %v9591_v27, 1  ;;  %v11151_v29 = vrot.slane %v9591_v27, 5  ;;  %v2364_v18 = vld [vmem:[%s11071_s3 + $0x458] sm:$0xff] }
 0x418   :  { %6758 = vrot.lane.b32.xlu1 %v6757_v63, %s7210_s22  ;;  %v2678_v48 = vrot.slane %v9553_v14, 3  ;;  %v2811_v25 = vsel %vm103_vm0, %v2808_v55, %v2810_v19  ;;  %v2974_v2 = vrot.slane %v9553_v14, 7  ;;  %v11150_v40 = vrot.slane %v9591_v27, 3 }
 0x419   :  { %v11149_v26 = vrot.slane %v9591_v27, 7  ;;  %v9616_v13 = vsel %vm787_vm7, %v2458_v56, %v2460_v11  ;;  %v11156_v32 = vrot.slane %v9597_v41, 1  ;;  %v6782_v50 = vpack.i.bf16 %v2597_v36, %v2893_v44  ;;  %v2378_v56 = vld [vmem:[%s11071_s3 + $0x4c8] sm:$0xff]  ;;  %v2363_v44 = vld [vmem:[%s11071_s3 + $0x450] sm:$0xff] }
 0x41a   :  { %6773 = vrot.lane.b32.xlu0 %v6772_v49, %s7210_s22  ;;  %v6777_v35 = vpack.i.bf16 %v2515_v16, %v2811_v25  ;;  %v2517_v0 = vsel %vm787_vm7, %v2514_v7, %v11152_v37  ;;  %v2813_v55 = vsel %vm103_vm0, %v2810_v19, %v11151_v29  ;;  %v2679_v63 = vsel %vm1006_vm8, %v2676_v60, %v2678_v48  ;;  %v2379_v49 = vld [vmem:[%s11071_s3 + $0x4d0] sm:$0xff]  ;;  %v2410_v16 = vld [vmem:[%s11071_s3 + $0x5c8] sm:$0xff]  ;;  %v2381_v25 = vld [vmem:[%s11071_s3 + $0x4e0] sm:$0xff] }
 0x41b   :  { %v2975_v7 = vsel %vm1301_vm9, %v2972_v28, %v2974_v2  ;;  %v2681_v60 = vsel %vm1006_vm8, %v2678_v48, %v11150_v40  ;;  %v2977_v19 = vsel %vm1301_vm9, %v2974_v2, %v11149_v26  ;;  %v2598_v36 = vrot.slane %v9591_v27, 2  ;;  %v2411_v28 = vld [vmem:[%s11071_s3 + $0x5d0] sm:$0xff]  ;;  %v2394_v2 = vld [vmem:[%s11071_s3 + $0x548] sm:$0xff]  ;;  %v2380_v26 = vld [vmem:[%s11071_s3 + $0x4d8] sm:$0xff] }
 0x41c   :  { %6768 = vrot.lane.b32.xlu1 %v6767_v10, %s7212_s24  ;;  %v2362_v10 = vld [vmem:[%s11071_s3 + $0x448] sm:$0xff]  ;;  %v2894_v48 = vrot.slane %v9591_v27, 6  ;;  %v6792_v40 = vpack.i.bf16 %v2517_v0, %v2813_v55  ;;  %v6122_v37 = vpack.c.bf16 %v2379_v49, %v2378_v56  ;;  %v6787_v0 = vpack.i.bf16 %v2679_v63, %v2975_v7  ;;  %v2412_v49 = vld [vmem:[%s11071_s3 + $0x5d8] sm:$0xff]  ;;  %v2413_v29 = vld [vmem:[%s11071_s3 + $0x5e0] sm:$0xff] }
 0x41d   :  { %v6802_v55 = vpack.i.bf16 %v2681_v60, %v2977_v19  ;;  %v6124_v56 = vpack.c.bf16 %v2363_v44, %v2362_v10  ;;  %v6154_v10 = vpack.c.bf16 %v2411_v28, %v2410_v16  ;;  %v2397_v60 = vld [vmem:[%s11071_s3 + $0x560] sm:$0xff]  ;;  %v2382_v19 = vld [vmem:[%s11071_s3 + $0x4e8] sm:$0xff]  ;;  %v2383_v44 = vld [vmem:[%s11071_s3 + $0x4f0] sm:$0xff]  ;;  %v2518_v28 = vrot.slane %v9616_v13, 1 }
 0x41e   :  { %6783 = vrot.lane.b32.xlu0 %v6782_v50, %s7212_s24  ;;  %v2395_v50 = vld [vmem:[%s11071_s3 + $0x550] sm:$0xff]  ;;  %6123 = vmatprep.subr.bf16.mxu1 %v6122_v37  ;;  %v11246_v37 = vrot.slane %v9616_v13, 2  ;;  %v6158_v54 = vpack.c.bf16 %v2413_v29, %v2412_v49  ;;  %v6160_v12 = vpack.c.bf16 %v2397_v60, %v2396_v15  ;;  %v6130_v21 = vpack.c.bf16 %v2383_v44, %v2382_v19  ;;  %v2417_v60 = vld [vmem:[%s11071_s3 + $0x600] sm:$0xff] }
 0x41f   :  { %v6156_v7 = vpack.c.bf16 %v2395_v50, %v2394_v2  ;;  %v2814_v2 = vrot.slane %v9616_v13, 5  ;;  %6125 = vmatpush3.bf16.msra.mxu1 %v6124_v56  ;;  %v2414_v50 = vld [vmem:[%s11071_s3 + $0x5e8] sm:$0xff]  ;;  %6155 = vmatprep.subr.bf16.mxu0 %v6154_v10  ;;  %v6126_v56 = vpack.c.bf16 %v2381_v25, %v2380_v26  ;;  %v2385_v26 = vld [vmem:[%s11071_s3 + $0x500] sm:$0xff]  ;;  %v2682_v10 = vrot.slane %v9616_v13, 3 }
 0x420   :  { %6778 = vrot.lane.b32.xlu1 %v6777_v35, %s7211_s23  ;;  %v9679_v35 = vsel %vm787_vm7, %v2460_v11, %v11156_v32  ;;  %v11244_v11 = vrot.slane %v9553_v14, 2  ;;  %v2601_v16 = vsel %vm924_vm12, %v2598_v36, %v11246_v37  ;;  %v11248_v15 = vrot.slane %v9591_v27, 1 }
 0x421   :  { %v2816_v37 = vrot.slane %v9679_v35, 5  ;;  %6157 = vmatpush3.bf16.msra.mxu0 %v6156_v7  ;;  %6127 = vmatprep.subr.bf16.mxu1 %v6126_v56  ;;  %v11249_v49 = vrot.slane %v9591_v27, 5  ;;  %v2416_v7 = vld [vmem:[%s11071_s3 + $0x5f8] sm:$0xff]  ;;  %v2684_v44 = vrot.slane %v9679_v35, 3 }
 0x422   :  { %6793 = vrot.lane.b32.xlu0 %v6792_v40, %s7211_s23  ;;  %v2599_v63 = vsel %vm924_vm12, %v11244_v11, %v2598_v36  ;;  %v11245_v40 = vrot.slane %v9553_v14, 6  ;;  %v2415_v11 = vld [vmem:[%s11071_s3 + $0x5f0] sm:$0xff]  ;;  %v2520_v36 = vrot.slane %v9679_v35, 1  ;;  %v2519_v29 = vsel %vm787_vm7, %v11248_v15, %v2518_v28  ;;  %6159 = vmatprep.subr.bf16.mxu0 %v6158_v54  ;;  %v2368_v54 = vld [vmem:[%s11071_s3 + $0x478] sm:$0xff] }
 0x423   :  { %v2898_v15 = vrot.slane %v9679_v35, 6 }
 0x424   :  { %v2895_v32 = vsel %vm1219_vm14, %v11245_v40, %v2894_v48  ;;  %6788 = vrot.lane.b32.xlu1 %v6787_v0, %s7210_s22  ;;  %v11247_v40 = vrot.slane %v9616_v13, 6  ;;  %v6128_v0 = vpack.c.bf16 %v2365_v53, %v2364_v18  ;;  %v2398_v18 = vld [vmem:[%s11071_s3 + $0x568] sm:$0xff]  ;;  %v2399_v53 = vld [vmem:[%s11071_s3 + $0x570] sm:$0xff] }
 0x425   :  { %v6797_v25 = vpack.i.bf16 %v2599_v63, %v2895_v32  ;;  %v2815_v32 = vsel %vm103_vm0, %v11249_v49, %v2814_v2  ;;  %v6132_v63 = vpack.c.bf16 %v2367_v5, %v2366_v57  ;;  %v2369_v5 = vld [vmem:[%s11071_s3 + $0x480] sm:$0xff]  ;;  %v2521_v57 = vsel %vm787_vm7, %v2518_v28, %v2520_v36  ;;  %6161 = vmatpush3.bf16.msra.mxu0 %v6160_v12 }
 0x426   :  { %v2897_v43 = vsel %vm1219_vm14, %v2894_v48, %v11247_v40  ;;  %v2384_v48 = vld [vmem:[%s11071_s3 + $0x4f8] sm:$0xff]  ;;  %6803 = vrot.lane.b32.xlu0 %v6802_v55, %s7210_s22  ;;  %v6162_v40 = vpack.c.bf16 %v2415_v11, %v2414_v50  ;;  %v2978_v55 = vrot.slane %v9616_v13, 7  ;;  %6129 = vmatpush3.bf16.msra.mxu1 %v6128_v0  ;;  %v11250_v11 = vrot.slane %v9597_v41, 1  ;;  %v2401_v12 = vld [vmem:[%s11071_s3 + $0x580] sm:$0xff] }
 0x427   :  { %v6812_v19 = vpack.i.bf16 %v2601_v16, %v2897_v43  ;;  %6131 = vmatprep.subr.bf16.mxu1 %v6130_v21  ;;  %v6134_v50 = vpack.c.bf16 %v2385_v26, %v2384_v48  ;;  %v2817_v43 = vsel %vm103_vm0, %v2814_v2, %v2816_v37  ;;  %v2980_v16 = vrot.slane %v9679_v35, 7  ;;  %v2400_v2 = vld [vmem:[%s11071_s3 + $0x578] sm:$0xff] }
 0x428   :  { %6798 = vrot.lane.b32.xlu1 %v6797_v25, %s7212_s24  ;;  %v6164_v21 = vpack.c.bf16 %v2399_v53, %v2398_v18  ;;  %v9774_v56 = vsel %vm787_vm7, %v11250_v11, 0.0  ;;  %v6807_v0 = vpack.i.bf16 %v2519_v29, %v2815_v32  ;;  %v11251_v48 = vrot.slane %v9591_v27, 3  ;;  %6163 = vmatprep.subr.bf16.mxu0 %v6162_v40 }
 0x429   :  { %v6166_v26 = vpack.c.bf16 %v2417_v60, %v2416_v7  ;;  %v11252_v25 = vrot.slane %v9591_v27, 7  ;;  %v2602_v53 = vrot.slane %v9679_v35, 2  ;;  %v6136_v29 = vpack.c.bf16 %v2369_v5, %v2368_v54 }
 0x42a   :  { %6813 = vrot.lane.b32.xlu0 %v6812_v19, %s7212_s24  ;;  %v2683_v28 = vsel %vm1006_vm8, %v11251_v48, %v2682_v10  ;;  %6133 = vmatpush3.bf16.msra.mxu1 %v6132_v63  ;;  %v6822_v40 = vpack.i.bf16 %v2521_v57, %v2817_v43  ;;  %v2685_v49 = vsel %vm1006_vm8, %v2682_v10, %v2684_v44  ;;  %v2604_v7 = vrot.slane %v9774_v56, 2 }
 0x42b   :  { %v2979_v18 = vsel %vm1301_vm9, %v11252_v25, %v2978_v55  ;;  %6135 = vmatprep.subr.bf16.mxu1 %v6134_v50  ;;  %v2981_v32 = vsel %vm1301_vm9, %v2978_v55, %v2980_v16  ;;  %v2900_v60 = vrot.slane %v9774_v56, 6  ;;  %6165 = vmatpush3.bf16.msra.mxu0 %v6164_v21  ;;  %v6168_v19 = vpack.c.bf16 %v2401_v12, %v2400_v2 }
 0x42c   :  { %6808 = vrot.lane.b32.xlu1 %v6807_v0, %s7211_s23  ;;  %v6817_v11 = vpack.i.bf16 %v2683_v28, %v2979_v18  ;;  %6167 = vmatprep.subr.bf16.mxu0 %v6166_v26  ;;  %v11253_v63 = vrot.slane %v9616_v13, 2  ;;  %v11254_v5 = vrot.slane %v9616_v13, 6  ;;  %v2522_v55 = vrot.slane %v9774_v56, 1 }
 0x42d   :  { %v2818_v50 = vrot.slane %v9774_v56, 5  ;;  %v6832_v57 = vpack.i.bf16 %v2685_v49, %v2981_v32  ;;  %v2605_v43 = vsel %vm924_vm12, %v2602_v53, %v2604_v7  ;;  %v2901_v21 = vsel %vm1219_vm14, %v2898_v15, %v2900_v60 }
 0x42e   :  { %6823 = vrot.lane.b32.xlu0 %v6822_v40, %s7211_s23  ;;  %v2603_v54 = vsel %vm924_vm12, %v11253_v63, %v2602_v53  ;;  %v2899_v10 = vsel %vm1219_vm14, %v11254_v5, %v2898_v15  ;;  %6137 = vmatpush3.bf16.msra.mxu1 %v6136_v29  ;;  %v2523_v48 = vsel %vm787_vm7, %v2520_v36, %v2522_v55  ;;  %v2686_v26 = vrot.slane %v9774_v56, 3 }
 0x42f   :  { %6169 = vmatpush3.bf16.msra.mxu0 %v6168_v19  ;;  %v6827_v0 = vpack.i.bf16 %v2603_v54, %v2899_v10  ;;  %v2819_v28 = vsel %vm103_vm0, %v2816_v37, %v2818_v50  ;;  %v2982_v2 = vrot.slane %v9774_v56, 7  ;;  %v6842_v12 = vpack.i.bf16 %v2605_v43, %v2901_v21 }
 0x430   :  { %6818 = vrot.lane.b32.xlu1 %v6817_v11, %s7210_s22  ;;  %v3033_v25 = vsel %vm787_vm7, %v2522_v55, %v11233_v22  ;;  %v3061_v18 = vsel %vm103_vm0, %v2818_v50, %v11234_v17  ;;  %v6837_v36 = vpack.i.bf16 %v2523_v48, %v2819_v28  ;;  %v2687_v53 = vsel %vm1006_vm8, %v2684_v44, %v2686_v26 }
 0x431   :  { %v2983_v37 = vsel %vm1301_vm9, %v2980_v16, %v2982_v2  ;;  %v6852_v15 = vpack.i.bf16 %v3033_v25, %v3061_v18  ;;  %v3049_v29 = vsel %vm1006_vm8, %v2686_v26, %v11235_v46  ;;  %v3077_v40 = vsel %vm1301_vm9, %v2982_v2, %v11236_v31 }
 0x432   :  { %6833 = vrot.lane.b32.xlu0 %v6832_v57, %s7210_s22  ;;  %v6847_v49 = vpack.i.bf16 %v2687_v53, %v2983_v37  ;;  %v3041_v17 = vsel %vm924_vm12, %v2604_v7, %v11231_v51  ;;  %v3069_v44 = vsel %vm1219_vm14, %v2900_v60, %v11232_v39  ;;  %v6862_v16 = vpack.i.bf16 %v3049_v29, %v3077_v40 }
 0x433   :  { %v2737_v19 = vrot.slane %v9184_v47, 4  ;;  %v6857_v46 = vpack.i.bf16 %v3041_v17, %v3069_v44  ;;  %v2736_v54 = vrot.slane %v9181_v24, 4  ;;  %v2739_v26 = vrot.slane %v9225_v20, 4 }
 0x434   :  { %6828 = vrot.lane.b32.xlu1 %v6827_v0, %s7212_s24 }
 0x435   :  { %v2738_v39 = vsel %vm1088_vm2, %v2736_v54, %v2737_v19 }
 0x436   :  { %6843 = vrot.lane.b32.xlu0 %v6842_v12, %s7212_s24 }
 0x438   :  { %6838 = vrot.lane.b32.xlu1 %v6837_v36, %s7211_s23 }
 0x43a   :  { %6853 = vrot.lane.b32.xlu0 %v6852_v15, %s7211_s23  ;;  %v2740_v15 = vsel %vm1088_vm2, %v2737_v19, %v2739_v26 }
 0x43c   :  { %6848 = vrot.lane.b32.xlu1 %v6847_v49, %s7210_s22 }
 0x43e   :  { %v6604_v32 = vpop.permute.xlu0 %6603  ;;  %6863 = vrot.lane.b32.xlu0 %v6862_v16, %s7210_s22 }
 0x43f   :  { %v6606_v7 = vunpack.i.h.bf16 %v6604_v32  ;;  %v6605_v5 = vunpack.i.l.bf16 %v6604_v32 }
 0x440   :  { %6858 = vrot.lane.b32.xlu1 %v6857_v46, %s7212_s24 }
 0x443   :  { %v6599_v11 = vpop.permute.xlu1 %6598 }
 0x444   :  { %v6601_v31 = vunpack.i.h.bf16 %v6599_v11  ;;  %v6600_v63 = vunpack.i.l.bf16 %v6599_v11  ;;  %v2741_v11 = vrot.slane %v9277_v59, 4 }
 0x446   :  { %v3084_v60 = vsel %vm1451_vm3, %v9181_v24, %v6601_v31  ;;  %v3132_v10 = vsel %vm1451_vm3, %v2738_v39, %v6600_v63 }
 0x447   :  { %v6609_v55 = vpop.permute.xlu0 %6608  ;;  %v3148_v43 = vsel %vm1468_vm5, %v3132_v10, %v6605_v5  ;;  %v3100_v21 = vsel %vm1468_vm5, %v3084_v60, %v6606_v7  ;;  %v2742_v7 = vsel %vm1088_vm2, %v2739_v26, %v2741_v11 }
 0x448   :  { %v6611_v50 = vunpack.i.h.bf16 %v6609_v55  ;;  %v6610_v57 = vunpack.i.l.bf16 %v6609_v55  ;;  %v6614_v28 = vpop.permute.xlu1 %6613 }
 0x449   :  { %v6616_v2 = vunpack.i.h.bf16 %v6614_v28  ;;  %v6615_v24 = vunpack.i.l.bf16 %v6614_v28 }
 0x44a   :  { %v3164_v0 = vsel %vm1485_vm6, %v3148_v43, %v6610_v57  ;;  %v3116_v48 = vsel %vm1485_vm6, %v3100_v21, %v6611_v50  ;;  %v2743_v43 = vrot.slane %v9307_v33, 4 }
 0x44b   :  { %3260 = vmatprep.mubr.f32.mxu1 %v3164_v0  ;;  %v3133_v29 = vsel %vm1451_vm3, %v2740_v15, %v6615_v24  ;;  %v3085_v40 = vsel %vm1451_vm3, %v9184_v47, %v6616_v2 }
 0x44c   :  { %3261 = vmatmul.mubr.f32.vlgmr.msra.gmra.mrb[64].mxu1 %v3116_v48 }
 0x44d   :  { %v6624_v12 = vpop.permute.xlu0 %6623  ;;  %v6619_v36 = vpop.permute.xlu1 %6618 }
 0x44e   :  { %v6626_v25 = vunpack.i.h.bf16 %v6624_v12  ;;  %v6625_v18 = vunpack.i.l.bf16 %v6624_v12  ;;  %v6621_v53 = vunpack.i.h.bf16 %v6619_v36  ;;  %v6620_v37 = vunpack.i.l.bf16 %v6619_v36 }
 0x450   :  { %v3149_v17 = vsel %vm1468_vm5, %v3133_v29, %v6620_v37  ;;  %v3101_v44 = vsel %vm1468_vm5, %v3085_v40, %v6621_v53  ;;  %v2745_v40 = vrot.slane %v9361_v6, 4 }
 0x451   :  { %v6634_v49 = vpop.permute.xlu0 %6633  ;;  %v3165_v32 = vsel %vm1485_vm6, %v3149_v17, %v6625_v18  ;;  %v3117_v46 = vsel %vm1485_vm6, %v3101_v44, %v6626_v25  ;;  %v2744_v18 = vsel %vm1088_vm2, %v2741_v11, %v2743_v43 }
 0x452   :  { %v6629_v16 = vpop.permute.xlu1 %6628  ;;  %3265 = vmatprep.mubr.f32.mxu1 %v3165_v32  ;;  %3405 = vmatprep.mubr.f32.mxu0 %v3165_v32  ;;  %v6636_v63 = vunpack.i.h.bf16 %v6634_v49  ;;  %v6635_v47 = vunpack.i.l.bf16 %v6634_v49 }
 0x453   :  { %v6631_v19 = vunpack.i.h.bf16 %v6629_v16  ;;  %v6630_v31 = vunpack.i.l.bf16 %v6629_v16  ;;  %3266 = vmatmul.mubr.f32.gmra.mrb[66].mxu1 %v3117_v46  ;;  %3406 = vmatmul.mubr.f32.vlgmr.msra.gmra.mrb[96].mxu0 %v3117_v46 }
 0x455   :  { %v3134_v5 = vsel %vm1451_vm3, %v2742_v7, %v6630_v31  ;;  %v3086_v39 = vsel %vm1451_vm3, %v9225_v20, %v6631_v19  ;;  %v2746_v19 = vsel %vm1088_vm2, %v2743_v43, %v2745_v40 }
 0x456   :  { %v6644_v54 = vpop.permute.xlu0 %6643  ;;  %v3150_v50 = vsel %vm1468_vm5, %v3134_v5, %v6635_v47  ;;  %v3102_v57 = vsel %vm1468_vm5, %v3086_v39, %v6636_v63  ;;  %v2747_v5 = vrot.slane %v9368_v1, 4 }
 0x457   :  { %v6646_v21 = vunpack.i.h.bf16 %v6644_v54  ;;  %v6645_v0 = vunpack.i.l.bf16 %v6644_v54 }
 0x458   :  { %v6639_v60 = vpop.permute.xlu1 %6638 }
 0x459   :  { %v6641_v10 = vunpack.i.h.bf16 %v6639_v60  ;;  %v6640_v55 = vunpack.i.l.bf16 %v6639_v60  ;;  %v3135_v36 = vsel %vm1451_vm3, %v2744_v18, %v6645_v0  ;;  %v3087_v53 = vsel %vm1451_vm3, %v9277_v59, %v6646_v21 }
 0x45b   :  { %v6654_v48 = vpop.permute.xlu0 %6653  ;;  %v3166_v28 = vsel %vm1485_vm6, %v3150_v50, %v6640_v55  ;;  %v3118_v26 = vsel %vm1485_vm6, %v3102_v57, %v6641_v10 }
 0x45c   :  { %3270 = vmatprep.mubr.f32.mxu1 %v3166_v28  ;;  %3410 = vmatprep.mubr.f32.mxu0 %v3166_v28  ;;  %v6656_v2 = vunpack.i.h.bf16 %v6654_v48  ;;  %v6655_v20 = vunpack.i.l.bf16 %v6654_v48 }
 0x45d   :  { %v6649_v24 = vpop.permute.xlu1 %6648  ;;  %3271 = vmatmul.mubr.f32.gmra.mrb[68].mxu1 %v3118_v26  ;;  %3411 = vmatmul.mubr.f32.gmra.mrb[98].mxu0 %v3118_v26  ;;  %v2748_v26 = vsel %vm1088_vm2, %v2745_v40, %v2747_v5 }
 0x45e   :  { %v6651_v12 = vunpack.i.h.bf16 %v6649_v24  ;;  %v6650_v25 = vunpack.i.l.bf16 %v6649_v24 }
 0x460   :  { %v6664_v37 = vpop.permute.xlu0 %6663  ;;  %v3151_v15 = vsel %vm1468_vm5, %v3135_v36, %v6650_v25  ;;  %v3103_v29 = vsel %vm1468_vm5, %v3087_v53, %v6651_v12  ;;  %v2749_v12 = vrot.slane %v9407_v52, 4 }
 0x461   :  { %v3167_v49 = vsel %vm1485_vm6, %v3151_v15, %v6655_v20  ;;  %v3119_v17 = vsel %vm1485_vm6, %v3103_v29, %v6656_v2  ;;  %v6666_v46 = vunpack.i.h.bf16 %v6664_v37  ;;  %v6665_v59 = vunpack.i.l.bf16 %v6664_v37 }
 0x462   :  { %v6659_v44 = vpop.permute.xlu1 %6658  ;;  %3275 = vmatprep.mubr.f32.mxu1 %v3167_v49  ;;  %3415 = vmatprep.mubr.f32.mxu0 %v3167_v49 }
 0x463   :  { %v6661_v16 = vunpack.i.h.bf16 %v6659_v44  ;;  %v6660_v32 = vunpack.i.l.bf16 %v6659_v44  ;;  %3276 = vmatmul.mubr.f32.gmra.mrb[70].mxu1 %v3119_v17  ;;  %3416 = vmatmul.mubr.f32.gmra.mrb[100].mxu0 %v3119_v17  ;;  %v2750_v17 = vsel %vm1088_vm2, %v2747_v5, %v2749_v12 }
 0x464   :  { %v6674_v11 = vpop.permute.xlu0 %6673 }
 0x465   :  { %v3136_v31 = vsel %vm1451_vm3, %v2746_v19, %v6660_v32  ;;  %v3088_v63 = vsel %vm1451_vm3, %v9307_v33, %v6661_v16  ;;  %v6676_v39 = vunpack.i.h.bf16 %v6674_v11  ;;  %v6675_v60 = vunpack.i.l.bf16 %v6674_v11 }
 0x466   :  { %v6669_v47 = vpop.permute.xlu1 %6668  ;;  %v3152_v55 = vsel %vm1468_vm5, %v3136_v31, %v6665_v59  ;;  %v3104_v50 = vsel %vm1468_vm5, %v3088_v63, %v6666_v46  ;;  %v2751_v11 = vrot.slane %v9419_v62, 4 }
 0x467   :  { %v6671_v54 = vunpack.i.h.bf16 %v6669_v47  ;;  %v6670_v7 = vunpack.i.l.bf16 %v6669_v47  ;;  %v3137_v20 = vsel %vm1451_vm3, %v2748_v26, %v6675_v60  ;;  %v3089_v24 = vsel %vm1451_vm3, %v9361_v6, %v6676_v39 }
 0x468   :  { %v6684_v10 = vpop.permute.xlu0 %6683 }
 0x469   :  { %v3168_v57 = vsel %vm1485_vm6, %v3152_v55, %v6670_v7  ;;  %v3120_v43 = vsel %vm1485_vm6, %v3104_v50, %v6671_v54  ;;  %v6686_v21 = vunpack.i.h.bf16 %v6684_v10  ;;  %v6685_v0 = vunpack.i.l.bf16 %v6684_v10 }
 0x46a   :  { %v6679_v48 = vpop.permute.xlu1 %6678  ;;  %3280 = vmatprep.mubr.f32.mxu1 %v3168_v57  ;;  %3420 = vmatprep.mubr.f32.mxu0 %v3168_v57  ;;  %v2752_v50 = vsel %vm1088_vm2, %v2749_v12, %v2751_v11 }
 0x46b   :  { %v6681_v33 = vunpack.i.h.bf16 %v6679_v48  ;;  %v6680_v28 = vunpack.i.l.bf16 %v6679_v48  ;;  %3281 = vmatmul.mubr.f32.gmra.mrb[72].mxu1 %v3120_v43  ;;  %3421 = vmatmul.mubr.f32.gmra.mrb[102].mxu0 %v3120_v43 }
 0x46c   :  { %v6694_v2 = vpop.permute.xlu0 %6693 }
 0x46d   :  { %v3153_v25 = vsel %vm1468_vm5, %v3137_v20, %v6680_v28  ;;  %v3105_v18 = vsel %vm1468_vm5, %v3089_v24, %v6681_v33  ;;  %v6696_v40 = vunpack.i.h.bf16 %v6694_v2  ;;  %v6695_v49 = vunpack.i.l.bf16 %v6694_v2 }
 0x46e   :  { %v6689_v36 = vpop.permute.xlu1 %6688  ;;  %v3169_v53 = vsel %vm1485_vm6, %v3153_v25, %v6685_v0  ;;  %v3121_v37 = vsel %vm1485_vm6, %v3105_v18, %v6686_v21 }
 0x46f   :  { %v6691_v15 = vunpack.i.h.bf16 %v6689_v36  ;;  %v6690_v29 = vunpack.i.l.bf16 %v6689_v36  ;;  %3285 = vmatprep.mubr.f32.mxu1 %v3169_v53  ;;  %3425 = vmatprep.mubr.f32.mxu0 %v3169_v53 }
 0x470   :  { %3286 = vmatmul.mubr.f32.gmra.mrb[74].mxu1 %v3121_v37  ;;  %3426 = vmatmul.mubr.f32.gmra.mrb[104].mxu0 %v3121_v37  ;;  %v6704_v6 = vpop.permute.xlu0 %6703 }
 0x471   :  { %v3138_v44 = vsel %vm1451_vm3, %v2750_v17, %v6690_v29  ;;  %v3090_v16 = vsel %vm1451_vm3, %v9368_v1, %v6691_v15  ;;  %v6706_v19 = vunpack.i.h.bf16 %v6704_v6  ;;  %v6705_v31 = vunpack.i.l.bf16 %v6704_v6 }
 0x472   :  { %v6699_v32 = vpop.permute.xlu1 %6698  ;;  %v3154_v47 = vsel %vm1468_vm5, %v3138_v44, %v6695_v49  ;;  %v3106_v54 = vsel %vm1468_vm5, %v3090_v16, %v6696_v40  ;;  %v2754_v16 = vrot.slane %v9481_v23, 4 }
 0x473   :  { %v6701_v46 = vunpack.i.h.bf16 %v6699_v32  ;;  %v6700_v59 = vunpack.i.l.bf16 %v6699_v32  ;;  %v3139_v43 = vsel %vm1451_vm3, %v2752_v50, %v6705_v31  ;;  %v3091_v21 = vsel %vm1451_vm3, %v9407_v52, %v6706_v19 }
 0x474   :  { %v6714_v63 = vpop.permute.xlu0 %6713  ;;  %v3056_v52 = vsel %vm1088_vm2, %v2751_v11, %v8175_v3  ;;  %v2753_v19 = vrot.slane %v9496_v34, 4 }
 0x475   :  { %v3170_v7 = vsel %vm1485_vm6, %v3154_v47, %v6700_v59  ;;  %v3122_v5 = vsel %vm1485_vm6, %v3106_v54, %v6701_v46  ;;  %v6716_v39 = vunpack.i.h.bf16 %v6714_v63  ;;  %v6715_v60 = vunpack.i.l.bf16 %v6714_v63 }
 0x476   :  { %v6709_v10 = vpop.permute.xlu1 %6708  ;;  %3290 = vmatprep.mubr.f32.mxu1 %v3170_v7  ;;  %3430 = vmatprep.mubr.f32.mxu0 %v3170_v7  ;;  %v2755_v54 = vsel %vm1088_vm2, %v2753_v19, %v2754_v16  ;;  %v2756_v7 = vrot.slane %v9489_v30, 4 }
 0x477   :  { %v6711_v1 = vunpack.i.h.bf16 %v6709_v10  ;;  %v6710_v55 = vunpack.i.l.bf16 %v6709_v10  ;;  %3291 = vmatmul.mubr.f32.gmra.mrb[76].mxu1 %v3122_v5  ;;  %3431 = vmatmul.mubr.f32.gmra.mrb[106].mxu0 %v3122_v5 }
 0x478   :  { %v6724_v57 = vpop.permute.xlu0 %6723 }
 0x479   :  { %v3155_v0 = vsel %vm1468_vm5, %v3139_v43, %v6710_v55  ;;  %v3107_v48 = vsel %vm1468_vm5, %v3091_v21, %v6711_v1  ;;  %v6726_v33 = vunpack.i.h.bf16 %v6724_v57  ;;  %v6725_v28 = vunpack.i.l.bf16 %v6724_v57 }
 0x47a   :  { %v6719_v26 = vpop.permute.xlu1 %6718  ;;  %v3171_v2 = vsel %vm1485_vm6, %v3155_v0, %v6715_v60  ;;  %v3123_v20 = vsel %vm1485_vm6, %v3107_v48, %v6716_v39 }
 0x47b   :  { %v6721_v24 = vunpack.i.h.bf16 %v6719_v26  ;;  %v6720_v25 = vunpack.i.l.bf16 %v6719_v26  ;;  %3295 = vmatprep.mubr.f32.mxu1 %v3171_v2  ;;  %3435 = vmatprep.mubr.f32.mxu0 %v3171_v2 }
 0x47c   :  { %3296 = vmatmul.mubr.f32.gmra.mrb[78].mxu1 %v3123_v20  ;;  %3436 = vmatmul.mubr.f32.gmra.mrb[108].mxu0 %v3123_v20  ;;  %v6729_v12 = vpop.permute.xlu0 %6728 }
 0x47d   :  { %v6731_v18 = vunpack.i.h.bf16 %v6729_v12  ;;  %v6730_v36 = vunpack.i.l.bf16 %v6729_v12  ;;  %v3186_v53 = vsel %vm1451_vm3, %v3056_v52, %v6720_v25  ;;  %v3180_v37 = vsel %vm1451_vm3, %v9419_v62, %v6721_v24 }
 0x47e   :  { %v6734_v15 = vpop.permute.xlu1 %6733  ;;  %v3188_v29 = vsel %vm1468_vm5, %v3186_v53, %v6725_v28  ;;  %v3182_v40 = vsel %vm1468_vm5, %v3180_v37, %v6726_v33  ;;  %v2757_v33 = vsel %vm1088_vm2, %v2754_v16, %v2756_v7  ;;  %v2758_v28 = vrot.slane %v9526_v42, 4 }
 0x47f   :  { %v3190_v49 = vsel %vm1485_vm6, %v3188_v29, %v6730_v36  ;;  %v3184_v6 = vsel %vm1485_vm6, %v3182_v40, %v6731_v18  ;;  %v6736_v32 = vunpack.i.h.bf16 %v6734_v15  ;;  %v6735_v46 = vunpack.i.l.bf16 %v6734_v15 }
 0x480   :  { %v6749_v17 = vpop.permute.xlu0 %6748  ;;  %3440 = vmatprep.mubr.f32.mxu0 %v3190_v49  ;;  %v2760_v16 = vrot.slane %v9553_v14, 4 }
 0x481   :  { %3441 = vmatmul.mubr.f32.gmra.mrb[110].mxu0 %v3184_v6  ;;  %v6751_v31 = vunpack.i.h.bf16 %v6749_v17  ;;  %v6750_v63 = vunpack.i.l.bf16 %v6749_v17  ;;  %v3140_v60 = vsel %vm1451_vm3, %v2755_v54, %v6735_v46  ;;  %v3092_v10 = vsel %vm1451_vm3, %v9496_v34, %v6736_v32 }
 0x482   :  { %v6739_v44 = vpop.permute.xlu1 %6738  ;;  %v2761_v54 = vsel %vm1088_vm2, %v2758_v28, %v2760_v16 }
 0x483   :  { %v6741_v59 = vunpack.i.h.bf16 %v6739_v44  ;;  %v6740_v11 = vunpack.i.l.bf16 %v6739_v44  ;;  %v3141_v34 = vsel %vm1451_vm3, %v2757_v33, %v6750_v63  ;;  %v3093_v20 = vsel %vm1451_vm3, %v9481_v23, %v6751_v31 }
 0x484   :  { %v6754_v62 = vpop.permute.xlu0 %6753  ;;  %v2759_v23 = vsel %vm1088_vm2, %v2756_v7, %v2758_v28 }
 0x485   :  { %v6756_v1 = vunpack.i.h.bf16 %v6754_v62  ;;  %v6755_v55 = vunpack.i.l.bf16 %v6754_v62  ;;  %v3156_v57 = vsel %vm1468_vm5, %v3140_v60, %v6740_v11  ;;  %v3108_v43 = vsel %vm1468_vm5, %v3092_v10, %v6741_v59 }
 0x486   :  { %v6744_v47 = vpop.permute.xlu1 %6743 }
 0x487   :  { %v6746_v5 = vunpack.i.h.bf16 %v6744_v47  ;;  %v6745_v39 = vunpack.i.l.bf16 %v6744_v47  ;;  %v3157_v52 = vsel %vm1468_vm5, %v3141_v34, %v6755_v55  ;;  %v3109_v18 = vsel %vm1468_vm5, %v3093_v20, %v6756_v1 }
 0x488   :  { %v6764_v50 = vpop.permute.xlu0 %6763  ;;  %v2762_v1 = vrot.slane %v9591_v27, 4 }
 0x489   :  { %v3172_v21 = vsel %vm1485_vm6, %v3156_v57, %v6745_v39  ;;  %v3124_v0 = vsel %vm1485_vm6, %v3108_v43, %v6746_v5  ;;  %v6766_v24 = vunpack.i.h.bf16 %v6764_v50  ;;  %v6765_v25 = vunpack.i.l.bf16 %v6764_v50 }
 0x48a   :  { %v6759_v48 = vpop.permute.xlu1 %6758  ;;  %3300 = vmatprep.mubr.f32.mxu1 %v3172_v21  ;;  %v2763_v34 = vsel %vm1088_vm2, %v2760_v16, %v2762_v1 }
 0x48b   :  { %v6761_v26 = vunpack.i.h.bf16 %v6759_v48  ;;  %v6760_v2 = vunpack.i.l.bf16 %v6759_v48  ;;  %3301 = vmatmul.mubr.f32.gmra.mrb[80].mxu1 %v3124_v0  ;;  %v3142_v17 = vsel %vm1451_vm3, %v2759_v23, %v6765_v25  ;;  %v3094_v44 = vsel %vm1451_vm3, %v9489_v30, %v6766_v24 }
 0x48c   :  { %v6774_v12 = vpop.permute.xlu0 %6773 }
 0x48d   :  { %v3173_v36 = vsel %vm1485_vm6, %v3157_v52, %v6760_v2  ;;  %v3125_v53 = vsel %vm1485_vm6, %v3109_v18, %v6761_v26  ;;  %v6776_v37 = vunpack.i.h.bf16 %v6774_v12  ;;  %v6775_v15 = vunpack.i.l.bf16 %v6774_v12 }
 0x48e   :  { %v6769_v29 = vpop.permute.xlu1 %6768  ;;  %3305 = vmatprep.mubr.f32.mxu1 %v3173_v36  ;;  %3445 = vmatprep.mubr.f32.mxu0 %v3173_v36  ;;  %v2764_v12 = vrot.slane %v9616_v13, 4 }
 0x48f   :  { %v6771_v40 = vunpack.i.h.bf16 %v6769_v29  ;;  %v6770_v49 = vunpack.i.l.bf16 %v6769_v29  ;;  %3306 = vmatmul.mubr.f32.gmra.mrb[82].mxu1 %v3125_v53  ;;  %3446 = vmatmul.mubr.f32.gmra.mrb[112].mxu0 %v3125_v53 }
 0x490   :  { %v6784_v6 = vpop.permute.xlu0 %6783  ;;  %v2765_v23 = vsel %vm1088_vm2, %v2762_v1, %v2764_v12 }
 0x491   :  { %v3158_v32 = vsel %vm1468_vm5, %v3142_v17, %v6770_v49  ;;  %v3110_v46 = vsel %vm1468_vm5, %v3094_v44, %v6771_v40  ;;  %v6786_v63 = vunpack.i.h.bf16 %v6784_v6  ;;  %v6785_v47 = vunpack.i.l.bf16 %v6784_v6 }
 0x492   :  { %v6779_v59 = vpop.permute.xlu1 %6778  ;;  %v3174_v11 = vsel %vm1485_vm6, %v3158_v32, %v6775_v15  ;;  %v3126_v62 = vsel %vm1485_vm6, %v3110_v46, %v6776_v37  ;;  %v2766_v46 = vrot.slane %v9679_v35, 4 }
 0x493   :  { %v6781_v19 = vunpack.i.h.bf16 %v6779_v59  ;;  %v6780_v31 = vunpack.i.l.bf16 %v6779_v59  ;;  %3310 = vmatprep.mubr.f32.mxu1 %v3174_v11  ;;  %3450 = vmatprep.mubr.f32.mxu0 %v3174_v11 }
 0x494   :  { %3311 = vmatmul.mubr.f32.gmra.mrb[84].mxu1 %v3126_v62  ;;  %3451 = vmatmul.mubr.f32.gmra.mrb[114].mxu0 %v3126_v62  ;;  %v6794_v30 = vpop.permute.xlu0 %6793 }
 0x495   :  { %v3143_v7 = vsel %vm1451_vm3, %v2761_v54, %v6780_v31  ;;  %v3095_v5 = vsel %vm1451_vm3, %v9526_v42, %v6781_v19  ;;  %v6796_v55 = vunpack.i.h.bf16 %v6794_v30  ;;  %v6795_v50 = vunpack.i.l.bf16 %v6794_v30 }
 0x496   :  { %v6789_v39 = vpop.permute.xlu1 %6788  ;;  %v3159_v43 = vsel %vm1468_vm5, %v3143_v7, %v6785_v47  ;;  %v3111_v21 = vsel %vm1468_vm5, %v3095_v5, %v6786_v63 }
 0x497   :  { %v6791_v60 = vunpack.i.h.bf16 %v6789_v39  ;;  %v6790_v10 = vunpack.i.l.bf16 %v6789_v39  ;;  %v3144_v24 = vsel %vm1451_vm3, %v2763_v34, %v6795_v50  ;;  %v3096_v25 = vsel %vm1451_vm3, %v9553_v14, %v6796_v55 }
 0x498   :  { %v6804_v57 = vpop.permute.xlu0 %6803  ;;  %v2767_v39 = vsel %vm1088_vm2, %v2764_v12, %v2766_v46  ;;  %v2768_v55 = vrot.slane %v9774_v56, 4 }
 0x499   :  { %v3175_v0 = vsel %vm1485_vm6, %v3159_v43, %v6790_v10  ;;  %v3127_v48 = vsel %vm1485_vm6, %v3111_v21, %v6791_v60  ;;  %v6806_v33 = vunpack.i.h.bf16 %v6804_v57  ;;  %v6805_v28 = vunpack.i.l.bf16 %v6804_v57 }
 0x49a   :  { %v6799_v26 = vpop.permute.xlu1 %6798  ;;  %3315 = vmatprep.mubr.f32.mxu1 %v3175_v0  ;;  %3455 = vmatprep.mubr.f32.mxu0 %v3175_v0 }
 0x49b   :  { %v6801_v42 = vunpack.i.h.bf16 %v6799_v26  ;;  %v6800_v2 = vunpack.i.l.bf16 %v6799_v26  ;;  %3316 = vmatmul.mubr.f32.gmra.mrb[86].mxu1 %v3127_v48  ;;  %3456 = vmatmul.mubr.f32.gmra.mrb[116].mxu0 %v3127_v48 }
 0x49c   :  { %v6814_v20 = vpop.permute.xlu0 %6813 }
 0x49d   :  { %v3160_v52 = vsel %vm1468_vm5, %v3144_v24, %v6800_v2  ;;  %v3112_v18 = vsel %vm1468_vm5, %v3096_v25, %v6801_v42  ;;  %v6816_v40 = vunpack.i.h.bf16 %v6814_v20  ;;  %v6815_v49 = vunpack.i.l.bf16 %v6814_v20 }
 0x49e   :  { %v6809_v36 = vpop.permute.xlu1 %6808  ;;  %v3176_v53 = vsel %vm1485_vm6, %v3160_v52, %v6805_v28  ;;  %v3128_v37 = vsel %vm1485_vm6, %v3112_v18, %v6806_v33  ;;  %v2769_v42 = vsel %vm1088_vm2, %v2766_v46, %v2768_v55 }
 0x49f   :  { %v6811_v15 = vunpack.i.h.bf16 %v6809_v36  ;;  %v6810_v29 = vunpack.i.l.bf16 %v6809_v36  ;;  %3320 = vmatprep.mubr.f32.mxu1 %v3176_v53  ;;  %3460 = vmatprep.mubr.f32.mxu0 %v3176_v53 }
 0x4a0   :  { %3321 = vmatmul.mubr.f32.gmra.mrb[88].mxu1 %v3128_v37  ;;  %3461 = vmatmul.mubr.f32.gmra.mrb[118].mxu0 %v3128_v37  ;;  %v6824_v14 = vpop.permute.xlu0 %6823 }
 0x4a1   :  { %v3145_v6 = vsel %vm1451_vm3, %v2765_v23, %v6810_v29  ;;  %v3097_v17 = vsel %vm1451_vm3, %v9591_v27, %v6811_v15  ;;  %v6826_v59 = vunpack.i.h.bf16 %v6824_v14  ;;  %v6825_v11 = vunpack.i.l.bf16 %v6824_v14 }
 0x4a2   :  { %v6819_v44 = vpop.permute.xlu1 %6818  ;;  %v3161_v19 = vsel %vm1468_vm5, %v3145_v6, %v6815_v49  ;;  %v3113_v31 = vsel %vm1468_vm5, %v3097_v17, %v6816_v40  ;;  %v3057_v23 = vsel %vm1088_vm2, %v2768_v55, %v8175_v3  ;;  %v3194_v3 = vsub.s32 2, %v7446_v9 }
 0x4a3   :  { %v6821_v16 = vunpack.i.h.bf16 %v6819_v44  ;;  %v6820_v32 = vunpack.i.l.bf16 %v6819_v44  ;;  %v3146_v10 = vsel %vm1451_vm3, %v2767_v39, %v6825_v11  ;;  %v3098_v1 = vsel %vm1451_vm3, %v9616_v13, %v6826_v59 }
 0x4a4   :  { %v6834_v62 = vpop.permute.xlu0 %6833 }
 0x4a5   :  { %v3177_v63 = vsel %vm1485_vm6, %v3161_v19, %v6820_v32  ;;  %v3129_v47 = vsel %vm1485_vm6, %v3113_v31, %v6821_v16  ;;  %v6836_v30 = vunpack.i.h.bf16 %v6834_v62  ;;  %v6835_v54 = vunpack.i.l.bf16 %v6834_v62  ;;  %v7206_v19 = vld [vmem:[%s11073_s4] sm:$0xf] }
 0x4a6   :  { %v6829_v7 = vpop.permute.xlu1 %6828  ;;  %3325 = vmatprep.mubr.f32.mxu1 %v3177_v63  ;;  %3465 = vmatprep.mubr.f32.mxu0 %v3177_v63 }
 0x4a7   :  { %v6831_v27 = vunpack.i.h.bf16 %v6829_v7  ;;  %v6830_v5 = vunpack.i.l.bf16 %v6829_v7  ;;  %3326 = vmatmul.mubr.f32.gmra.mrb[90].mxu1 %v3129_v47  ;;  %3466 = vmatmul.mubr.f32.gmra.mrb[120].mxu0 %v3129_v47 }
 0x4a8   :  { %v6844_v60 = vpop.permute.xlu0 %6843 }
 0x4a9   :  { %v3162_v50 = vsel %vm1468_vm5, %v3146_v10, %v6830_v5  ;;  %v3114_v57 = vsel %vm1468_vm5, %v3098_v1, %v6831_v27  ;;  %v6846_v28 = vunpack.i.h.bf16 %v6844_v60  ;;  %v6845_v26 = vunpack.i.l.bf16 %v6844_v60  ;;  %v3614_v60 = vld [vmem:[%s11071_s3 + $0x688] sm:$0xff]  ;;  %v3615_v10 = vld [vmem:[%s11071_s3 + $0x690] sm:$0xff] }
 0x4aa   :  { %v6839_v43 = vpop.permute.xlu1 %6838  ;;  %v3178_v21 = vsel %vm1485_vm6, %v3162_v50, %v6835_v54  ;;  %v3130_v0 = vsel %vm1485_vm6, %v3114_v57, %v6836_v30  ;;  %v3598_v1 = vld [vmem:[%s11071_s3 + $0x608] sm:$0xff]  ;;  %v6170_v55 = vpack.c.bf16 %v3615_v10, %v3614_v60  ;;  %v3599_v50 = vld [vmem:[%s11071_s3 + $0x610] sm:$0xff] }
 0x4ab   :  { %v6841_v48 = vunpack.i.h.bf16 %v6839_v43  ;;  %v6840_v33 = vunpack.i.l.bf16 %v6839_v43  ;;  %3330 = vmatprep.mubr.f32.mxu1 %v3178_v21  ;;  %3470 = vmatprep.mubr.f32.mxu0 %v3178_v21  ;;  %v6172_v43 = vpack.c.bf16 %v3599_v50, %v3598_v1 }
 0x4ac   :  { %3331 = vmatmul.mubr.f32.gmra.mrb[92].mxu1 %v3130_v0  ;;  %3471 = vmatmul.mubr.f32.gmra.mrb[122].mxu0 %v3130_v0  ;;  %v6854_v13 = vpop.permute.xlu0 %6853 }
 0x4ad   :  { %v3147_v2 = vsel %vm1451_vm3, %v2769_v42, %v6840_v33  ;;  %v3099_v34 = vsel %vm1451_vm3, %v9679_v35, %v6841_v48  ;;  %v6856_v12 = vunpack.i.h.bf16 %v6854_v13  ;;  %v6855_v52 = vunpack.i.l.bf16 %v6854_v13  ;;  %6171 = vmatprep.subr.bf16.mxu1 %v6170_v55  ;;  %v3616_v48 = vld [vmem:[%s11071_s3 + $0x698] sm:$0xff]  ;;  %v3617_v33 = vld [vmem:[%s11071_s3 + $0x6a0] sm:$0xff] }
 0x4ae   :  { %v6849_v20 = vpop.permute.xlu1 %6848  ;;  %v3163_v36 = vsel %vm1468_vm5, %v3147_v2, %v6845_v26  ;;  %v3115_v53 = vsel %vm1468_vm5, %v3099_v34, %v6846_v28  ;;  %6173 = vmatpush3.bf16.msra.mxu1 %v6172_v43  ;;  %v3600_v28 = vld [vmem:[%s11071_s3 + $0x618] sm:$0xff]  ;;  %v6174_v42 = vpack.c.bf16 %v3617_v33, %v3616_v48  ;;  %v3601_v2 = vld [vmem:[%s11071_s3 + $0x620] sm:$0xff] }
 0x4af   :  { %v6851_v24 = vunpack.i.h.bf16 %v6849_v20  ;;  %v6850_v25 = vunpack.i.l.bf16 %v6849_v20  ;;  %v3187_v6 = vsel %vm1451_vm3, %v3057_v23, %v6855_v52  ;;  %v3181_v17 = vsel %vm1451_vm3, %v9774_v56, %v6856_v12  ;;  %v3618_v52 = vld [vmem:[%s11071_s3 + $0x6a8] sm:$0xff]  ;;  %v3625_v33 = vld [vmem:[%s11071_s3 + $0x6e0] sm:$0xff] }
 0x4b0   :  { %v6864_v18 = vpop.permute.xlu0 %6863  ;;  %v10006_v56 = vrot.slane %v7206_v19, %v3194_v3  ;;  %6175 = vmatprep.subr.bf16.mxu1 %v6174_v42 }
 0x4b1   :  { %v3179_v37 = vsel %vm1485_vm6, %v3163_v36, %v6850_v25  ;;  %v3131_v15 = vsel %vm1485_vm6, %v3115_v53, %v6851_v24  ;;  %v6866_v29 = vunpack.i.h.bf16 %v6864_v18  ;;  %v6865_v40 = vunpack.i.l.bf16 %v6864_v18  ;;  %v3619_v18 = vld [vmem:[%s11071_s3 + $0x6b0] sm:$0xff]  ;;  %v3602_v36 = vld [vmem:[%s11071_s3 + $0x628] sm:$0xff] }
 0x4b2   :  { %v6859_v49 = vpop.permute.xlu1 %6858  ;;  %3335 = vmatprep.mubr.f32.mxu1 %v3179_v37  ;;  %3475 = vmatprep.mubr.f32.mxu0 %v3179_v37  ;;  %v6176_v25 = vpack.c.bf16 %v3601_v2, %v3600_v28  ;;  %v6178_v53 = vpack.c.bf16 %v3619_v18, %v3618_v52  ;;  %v3603_v37 = vld [vmem:[%s11071_s3 + $0x630] sm:$0xff]  ;;  %v3608_v28 = vld [vmem:[%s11071_s3 + $0x658] sm:$0xff] }
 0x4b3   :  { %v6861_v35 = vunpack.i.h.bf16 %v6859_v49  ;;  %v6860_v14 = vunpack.i.l.bf16 %v6859_v49  ;;  %3336 = vmatmul.mubr.f32.gmra.mrb[94].mxu1 %v3131_v15  ;;  %3476 = vmatmul.mubr.f32.gmra.mrb[124].mxu0 %v3131_v15  ;;  %v6180_v49 = vpack.c.bf16 %v3603_v37, %v3602_v36 }
 0x4b4   :  { %6177 = vmatpush3.bf16.msra.mxu1 %v6176_v25 }
 0x4b5   :  { %v3189_v44 = vsel %vm1468_vm5, %v3187_v6, %v6860_v14  ;;  %v3183_v16 = vsel %vm1468_vm5, %v3181_v17, %v6861_v35  ;;  %6179 = vmatprep.subr.bf16.mxu1 %v6178_v53 }
 0x4b6   :  { %v3191_v32 = vsel %vm1485_vm6, %v3189_v44, %v6865_v40  ;;  %v3185_v46 = vsel %vm1485_vm6, %v3183_v16, %v6866_v29  ;;  %v3620_v16 = vld [vmem:[%s11071_s3 + $0x6b8] sm:$0xff] }
 0x4b7   :  { %3480 = vmatprep.mubr.f32.mxu0 %v3191_v32  ;;  %v3621_v32 = vld [vmem:[%s11071_s3 + $0x6c0] sm:$0xff] }
 0x4b8   :  { %3481 = vmatmul.mubr.f32.gmra.mrb[126].mxu0 %v3185_v46  ;;  %6181 = vmatpush3.bf16.msra.mxu1 %v6180_v49  ;;  %v3604_v46 = vld [vmem:[%s11071_s3 + $0x638] sm:$0xff] }
 0x51f   :  { %v5566_v59 = vpop.f32.mrb[64].mxu1 }
 0x520   :  { %v5567_v11 = vpop.f32.mrb[65].mxu1 }
 0x521   :  { %v5568_v62 = vadd.f32 %v5567_v11, %v5566_v59  ;;  %v6182_v59 = vpack.c.bf16 %v3621_v32, %v3620_v16  ;;  %v3605_v11 = vld [vmem:[%s11071_s3 + $0x640] sm:$0xff] }
 0x522   :  { %v6184_v19 = vpack.c.bf16 %v3605_v11, %v3604_v46  ;;  %v3610_v11 = vld [vmem:[%s11071_s3 + $0x668] sm:$0xff] }
 0x523   :  { %v3263_v54 = vadd.f32 %v5568_v62, %v10006_v56  ;;  %6183 = vmatprep.subr.bf16.mxu1 %v6182_v59  ;;  %v3626_v59 = vld [vmem:[%s11071_s3 + $0x6e8] sm:$0xff] }
 0x524   :  { %6185 = vmatpush3.bf16.msra.mxu1 %v6184_v19 }
 0x526   :  { %v5569_v31 = vpop.f32.mrb[66].mxu1  ;;  %v5646_v63 = vpop.f32.mrb[96].mxu0 }
 0x527   :  { %v5570_v47 = vpop.f32.mrb[67].mxu1  ;;  %v5647_v30 = vpop.f32.mrb[97].mxu0 }
 0x528   :  { %v5571_v7 = vadd.f32 %v5570_v47, %v5569_v31  ;;  %v5648_v27 = vadd.f32 %v5647_v30, %v5646_v63  ;;  %v3622_v47 = vld [vmem:[%s11071_s3 + $0x6c8] sm:$0xff]  ;;  %v3623_v30 = vld [vmem:[%s11071_s3 + $0x6d0] sm:$0xff] }
 0x52a   :  { %v10009_v5 = vadd.f32 %v5648_v27, %v3263_v54  ;;  %v3268_v34 = vadd.f32 %v5571_v7, %v10006_v56  ;;  %v3606_v54 = vld [vmem:[%s11071_s3 + $0x648] sm:$0xff]  ;;  %v6186_v27 = vpack.c.bf16 %v3623_v30, %v3622_v47  ;;  %v3611_v30 = vld [vmem:[%s11071_s3 + $0x670] sm:$0xff] }
 0x52c   :  { %v3502_v39 = vmin.f32 %v10009_v5, 0.0  ;;  %vm3486_vm15 = vcmp.gt.f32.partialorder %v10009_v5, 0.0  ;;  %6187 = vmatprep.subr.bf16.mxu1 %v6186_v27  ;;  %v3633_v27 = vld [vmem:[%s11071_s3 + $0x720] sm:$0xff] }
 0x52e   :  { %v3518_v57 = vmul.f32 1.442695, %v3502_v39  ;;  %v3607_v39 = vld [vmem:[%s11071_s3 + $0x650] sm:$0xff] }
 0x52f   :  { %v6188_v50 = vpack.c.bf16 %v3607_v39, %v3606_v54  ;;  %v3632_v54 = vld [vmem:[%s11071_s3 + $0x718] sm:$0xff] }
 0x530   :  { %7135 = vpow2.f32 %v3518_v57  ;;  %v5572_v21 = vpop.f32.mrb[68].mxu1  ;;  %v5649_v0 = vpop.f32.mrb[98].mxu0 }
 0x531   :  { %v5573_v26 = vpop.f32.mrb[69].mxu1  ;;  %v5650_v13 = vpop.f32.mrb[99].mxu0  ;;  %6189 = vmatpush3.bf16.msra.mxu1 %v6188_v50  ;;  %v6206_v50 = vpack.c.bf16 %v3633_v27, %v3632_v54 }
 0x532   :  { %v5574_v20 = vadd.f32 %v5573_v26, %v5572_v21  ;;  %v5651_v24 = vadd.f32 %v5650_v13, %v5649_v0  ;;  %v3609_v13 = vld [vmem:[%s11071_s3 + $0x660] sm:$0xff] }
 0x533   :  { %v6192_v2 = vpack.c.bf16 %v3609_v13, %v3608_v28 }
 0x534   :  { %v10037_v12 = vadd.f32 %v5651_v24, %v3268_v34  ;;  %v3273_v23 = vadd.f32 %v5574_v20, %v10006_v56  ;;  %v3630_v34 = vld [vmem:[%s11071_s3 + $0x708] sm:$0xff]  ;;  %v3631_v20 = vld [vmem:[%s11071_s3 + $0x710] sm:$0xff] }
 0x536   :  { %v3503_v15 = vmin.f32 %v10037_v12, 0.0  ;;  %v5575_v29 = vpop.f32.mrb[70].mxu1  ;;  %v5652_v40 = vpop.f32.mrb[100].mxu0  ;;  %vm3487_vm1 = vcmp.gt.f32.partialorder %v10037_v12, 0.0 }
 0x537   :  { %v5576_v35 = vpop.f32.mrb[71].mxu1  ;;  %v5653_v14 = vpop.f32.mrb[101].mxu0 }
 0x538   :  { %v3520_v6 = vmul.f32 1.442695, %v3503_v15  ;;  %v5577_v17 = vadd.f32 %v5576_v35, %v5575_v29  ;;  %v5654_v44 = vadd.f32 %v5653_v14, %v5652_v40  ;;  %v6202_v35 = vpack.c.bf16 %v3631_v20, %v3630_v34 }
 0x53a   :  { %v7136_v62 = vpop.eup %7135  ;;  %7137 = vpow2.f32 %v3520_v6  ;;  %v10065_v3 = vadd.f32 %v5654_v44, %v3273_v23  ;;  %v3278_v57 = vadd.f32 %v5577_v17, %v10006_v56  ;;  %6203 = vmatprep.subr.bf16.mxu0 %v6202_v35 }
 0x53b   :  { %v5107_v31 = vadd.f32 -1.0, %v7136_v62  ;;  %6205 = vmatpush3.bf16.msra.mxu0 %v6202_v35 }
 0x53c   :  { %v3504_v63 = vmin.f32 %v10065_v3, 0.0  ;;  %vm3488_vm4 = vcmp.gt.f32.partialorder %v10065_v3, 0.0  ;;  %6207 = vmatprep.subr.bf16.mxu0 %v6206_v50 }
 0x53d   :  { %v10079_v7 = vsel %vm3486_vm15, %v10009_v5, %v5107_v31 }
 0x53e   :  { %v10086_v60 = vadd.f32 %v10079_v7, %v11207_v58  ;;  %v3522_v10 = vmul.f32 1.442695, %v3504_v63  ;;  %v5578_v1 = vpop.f32.mrb[72].mxu1  ;;  %v5655_v55 = vpop.f32.mrb[102].mxu0  ;;  %v3624_v58 = vld [vmem:[%s11071_s3 + $0x6d8] sm:$0xff] }
 0x53f   :  { %v5579_v43 = vpop.f32.mrb[73].mxu1  ;;  %v5656_v21 = vpop.f32.mrb[103].mxu0  ;;  %v6190_v26 = vpack.c.bf16 %v3625_v33, %v3624_v58  ;;  %6209 = vmatpush3.bf16.msra.mxu0 %v6206_v50 }
 0x540   :  { %v3658_v5 = vrot.slane %v10086_v60, 3  ;;  %7139 = vpow2.f32 %v3522_v10  ;;  %v5580_v0 = vadd.f32 %v5579_v43, %v5578_v1  ;;  %v5657_v48 = vadd.f32 %v5656_v21, %v5655_v55 }
 0x541   :  { %6191 = vmatprep.subr.bf16.mxu1 %v6190_v26  ;;  %v6196_v55 = vpack.c.bf16 %v3611_v30, %v3610_v11 }
 0x542   :  { %v10102_v42 = vadd.f32 %v5657_v48, %v3278_v57  ;;  %v10111_v18 = vsel %vm1006_vm8, 0.0, %v3658_v5  ;;  %v3283_v36 = vadd.f32 %v5580_v0, %v10006_v56  ;;  %6193 = vmatpush3.bf16.msra.mxu1 %v6192_v2 }
 0x543   :  { %v5581_v24 = vpop.f32.mrb[74].mxu1  ;;  %v5658_v25 = vpop.f32.mrb[104].mxu0  ;;  %v3796_v44 = vrot.slane %v10111_v18, 2  ;;  %v4092_v16 = vrot.slane %v10111_v18, 6  ;;  %v3714_v46 = vrot.slane %v10111_v18, 1  ;;  %v3878_v13 = vrot.slane %v10111_v18, 3 }
 0x544   :  { %v7138_v52 = vpop.eup %7137  ;;  %v3505_v53 = vmin.f32 %v10102_v42, 0.0  ;;  %v5582_v37 = vpop.f32.mrb[75].mxu1  ;;  %vm3489_vm10 = vcmp.gt.f32.partialorder %v10102_v42, 0.0 }
 0x545   :  { %v5659_v15 = vpop.f32.mrb[105].mxu0  ;;  %v5108_v29 = vadd.f32 -1.0, %v7138_v52  ;;  %v5583_v40 = vadd.f32 %v5582_v37, %v5581_v24 }
 0x546   :  { %v5660_v49 = vadd.f32 %v5659_v15, %v5658_v25  ;;  %v3524_v14 = vmul.f32 1.442695, %v3505_v53 }
 0x547   :  { %v10117_v23 = vsel %vm3487_vm1, %v10037_v12, %v5108_v29  ;;  %v4010_v12 = vrot.slane %v10111_v18, 5  ;;  %v3288_v43 = vadd.f32 %v5583_v40, %v10006_v56 }
 0x548   :  { %v10120_v6 = vadd.f32 %v5660_v49, %v3283_v36  ;;  %v3583_v17 = vadd.f32 %v10117_v23, %v11209_v38  ;;  %7141 = vpow2.f32 %v3524_v14  ;;  %v3627_v38 = vld [vmem:[%s11071_s3 + $0x6f0] sm:$0xff] }
 0x549   :  { %v6194_v47 = vpack.c.bf16 %v3627_v38, %v3626_v59 }
 0x54a   :  { %v3506_v32 = vmin.f32 %v10120_v6, 0.0  ;;  %v7140_v62 = vpop.eup %7139  ;;  %v3659_v19 = vrot.slane %v3583_v17, 3  ;;  %v5584_v31 = vpop.f32.mrb[76].mxu1  ;;  %vm3490_vm11 = vcmp.gt.f32.partialorder %v10120_v6, 0.0 }
 0x54b   :  { %v5661_v63 = vpop.f32.mrb[106].mxu0  ;;  %v5109_v39 = vadd.f32 -1.0, %v7140_v62  ;;  %v5585_v10 = vpop.f32.mrb[77].mxu1  ;;  %6195 = vmatprep.subr.bf16.mxu1 %v6194_v47 }
 0x54c   :  { %v3526_v60 = vmul.f32 1.442695, %v3506_v32  ;;  %v5662_v1 = vpop.f32.mrb[107].mxu0  ;;  %v10148_v57 = vsel %vm1006_vm8, %v3658_v5, %v3659_v19  ;;  %v5586_v21 = vadd.f32 %v5585_v10, %v5584_v31  ;;  %6197 = vmatpush3.bf16.msra.mxu1 %v6196_v55  ;;  %v4174_v32 = vrot.slane %v10111_v18, 7 }
 0x54d   :  { %v5663_v0 = vadd.f32 %v5662_v1, %v5661_v63  ;;  %v10154_v48 = vsel %vm3488_vm4, %v10065_v3, %v5109_v39  ;;  %v3797_v58 = vrot.slane %v10148_v57, 2  ;;  %v4093_v33 = vrot.slane %v10148_v57, 6 }
 0x54e   :  { %7143 = vpow2.f32 %v3526_v60  ;;  %v3584_v5 = vadd.f32 %v10154_v48, %v11211_v8  ;;  %v3715_v26 = vrot.slane %v10148_v57, 1  ;;  %v4011_v24 = vrot.slane %v10148_v57, 5 }
 0x54f   :  { %v10160_v28 = vadd.f32 %v5663_v0, %v3288_v43  ;;  %v5587_v2 = vpop.f32.mrb[78].mxu1  ;;  %v5664_v3 = vpop.f32.mrb[108].mxu0  ;;  %v3798_v34 = vsel %vm924_vm12, %v3796_v44, %v3797_v58  ;;  %v4094_v20 = vsel %vm1219_vm14, %v4092_v16, %v4093_v33  ;;  %v3879_v8 = vrot.slane %v10148_v57, 3 }
 0x550   :  { %v3661_v25 = vrot.slane %v3584_v5, 3  ;;  %v3293_v52 = vadd.f32 %v5586_v21, %v10006_v56  ;;  %v5588_v53 = vpop.f32.mrb[79].mxu1  ;;  %v5665_v37 = vpop.f32.mrb[109].mxu0  ;;  %v6872_v15 = vpack.i.bf16 %v3798_v34, %v4094_v20  ;;  %v3716_v49 = vsel %vm787_vm7, %v3714_v46, %v3715_v26 }
 0x551   :  { %v3507_v36 = vmin.f32 %v10160_v28, 0.0  ;;  %v5589_v29 = vadd.f32 %v5588_v53, %v5587_v2  ;;  %v5666_v40 = vadd.f32 %v5665_v37, %v5664_v3  ;;  %v4012_v35 = vsel %vm103_vm0, %v4010_v12, %v4011_v24 }
 0x552   :  { %v7142_v14 = vpop.eup %7141  ;;  %v10177_v17 = vsel %vm1006_vm8, %v3659_v19, %v3661_v25  ;;  %6873 = vrot.lane.b32.xlu0 %v6872_v15, %s7212_s24  ;;  %v6867_v16 = vpack.i.bf16 %v3716_v49, %v4012_v35  ;;  %v3880_v11 = vsel %vm1006_vm8, %v3878_v13, %v3879_v8  ;;  %v4175_v62 = vrot.slane %v10148_v57, 7 }
 0x553   :  { %v3528_v44 = vmul.f32 1.442695, %v3507_v36  ;;  %v5110_v59 = vadd.f32 -1.0, %v7142_v14  ;;  %v10181_v38 = vadd.f32 %v5666_v40, %v3293_v52  ;;  %v3881_v12 = vrot.slane %v10177_v17, 3 }
 0x554   :  { %6868 = vrot.lane.b32.xlu1 %v6867_v16, %s7211_s23  ;;  %v5667_v46 = vpop.f32.mrb[110].mxu0  ;;  %v4177_v19 = vrot.slane %v10177_v17, 7  ;;  %v4176_v30 = vsel %vm1301_vm9, %v4174_v32, %v4175_v62  ;;  %v3298_v27 = vadd.f32 %v5589_v29, %v10006_v56  ;;  %v3717_v50 = vrot.slane %v10177_v17, 1 }
 0x555   :  { %7145 = vpow2.f32 %v3528_v44  ;;  %v10190_v31 = vsel %vm3489_vm10, %v10102_v42, %v5110_v59  ;;  %v3508_v63 = vmin.f32 %v10181_v38, 0.0  ;;  %v5668_v47 = vpop.f32.mrb[111].mxu0  ;;  %v6877_v60 = vpack.i.bf16 %v3880_v11, %v4176_v30 }
 0x556   :  { %v3585_v54 = vadd.f32 %v10190_v31, %v11213_v4  ;;  %v5669_v39 = vadd.f32 %v5668_v47, %v5667_v46  ;;  %v3882_v55 = vsel %vm1006_vm8, %v3879_v8, %v3881_v12  ;;  %v4178_v42 = vsel %vm1301_vm9, %v4175_v62, %v4177_v19 }
 0x557   :  { %v3530_v1 = vmul.f32 1.442695, %v3508_v63  ;;  %v6882_v4 = vpack.i.bf16 %v3882_v55, %v4178_v42  ;;  %v4013_v5 = vrot.slane %v10177_v17, 5  ;;  %v3718_v20 = vsel %vm787_vm7, %v3715_v26, %v3717_v50 }
 0x558   :  { %v7144_v10 = vpop.eup %7143  ;;  %v3663_v43 = vrot.slane %v3585_v54, 3  ;;  %v10204_v0 = vadd.f32 %v5669_v39, %v3298_v27  ;;  %6878 = vrot.lane.b32.xlu1 %v6877_v60, %s7210_s22  ;;  %v3799_v52 = vrot.slane %v10177_v17, 2  ;;  %vm3491_vm13 = vcmp.gt.f32.partialorder %v10160_v28, 0.0 }
 0x559   :  { %v5111_v21 = vadd.f32 -1.0, %v7144_v10  ;;  %7147 = vpow2.f32 %v3530_v1  ;;  %6883 = vrot.lane.b32.xlu0 %v6882_v4, %s7210_s22  ;;  %v4014_v53 = vsel %vm103_vm0, %v4011_v24, %v4013_v5  ;;  %vm3492_vm15 = vcmp.gt.f32.partialorder %v10181_v38, 0.0 }
 0x55a   :  { %v10210_v13 = vsel %vm1006_vm8, %v3661_v25, %v3663_v43  ;;  %v3509_v3 = vmin.f32 %v10204_v0, 0.0  ;;  %v3800_v24 = vsel %vm924_vm12, %v3797_v58, %v3799_v52  ;;  %vm3493_vm1 = vcmp.gt.f32.partialorder %v10204_v0, 0.0 }
 0x55b   :  { %v10213_v2 = vsel %vm3490_vm11, %v10120_v6, %v5111_v21  ;;  %v4015_v8 = vrot.slane %v10210_v13, 5  ;;  %v4097_v25 = vrot.slane %v10210_v13, 6  ;;  %v3719_v40 = vrot.slane %v10210_v13, 1 }
 0x55c   :  { %v3586_v34 = vadd.f32 %v10213_v2, %v11215_v45  ;;  %v3532_v36 = vmul.f32 1.442695, %v3509_v3  ;;  %3750 = vrot.lane.b32.xlu1 %v3718_v20, %s7211_s23  ;;  %v4095_v45 = vrot.slane %v10177_v17, 6  ;;  %v3883_v49 = vrot.slane %v10210_v13, 3 }
 0x55d   :  { %v4016_v37 = vsel %vm103_vm0, %v4013_v5, %v4015_v8  ;;  %v4179_v59 = vrot.slane %v10210_v13, 7  ;;  %v3801_v62 = vrot.slane %v10210_v13, 2  ;;  %v3720_v54 = vsel %vm787_vm7, %v3717_v50, %v3719_v40 }
 0x55e   :  { %v3665_v6 = vrot.slane %v3586_v34, 3  ;;  %7149 = vpow2.f32 %v3532_v36  ;;  %v5590_v26 = vpop.f32.mrb[80].mxu1  ;;  %v6887_v29 = vpack.i.bf16 %v4016_v37, %v4014_v53  ;;  %v4098_v44 = vsel %vm1219_vm14, %v4095_v45, %v4097_v25  ;;  %v11255_v34 = vld [vmem:[#allocation14_spill] sm:$0xff] }
 0x55f   :  { %v7146_v15 = vpop.eup %7145  ;;  %v5591_v14 = vpop.f32.mrb[81].mxu1  ;;  %v4096_v58 = vsel %vm1219_vm14, %v4093_v33, %v4095_v45 }
 0x560   :  { %v5112_v35 = vadd.f32 -1.0, %v7146_v15  ;;  %v10238_v16 = vsel %vm1006_vm8, %v3663_v43, %v3665_v6  ;;  %v5592_v32 = vadd.f32 %v5591_v14, %v5590_v26  ;;  %6888 = vrot.lane.b32.xlu0 %v6887_v29, %s7211_s23  ;;  %3832 = vrot.lane.b32.xlu1 %v3800_v24, %s7212_s24  ;;  %v6892_v30 = vpack.i.bf16 %v4098_v44, %v4096_v58 }
 0x561   :  { %v3885_v10 = vrot.slane %v10238_v16, 3  ;;  %v4181_v1 = vrot.slane %v10238_v16, 7  ;;  %v3721_v21 = vrot.slane %v10238_v16, 1  ;;  %v4017_v29 = vrot.slane %v10238_v16, 5 }
 0x562   :  { %v10245_v11 = vsel %vm3491_vm13, %v10160_v28, %v5112_v35  ;;  %v5593_v63 = vpop.f32.mrb[82].mxu1  ;;  %v5670_v47 = vpop.f32.mrb[112].mxu0  ;;  %v3884_v28 = vsel %vm1006_vm8, %v3881_v12, %v3883_v49  ;;  %v3303_v33 = vadd.f32 %v5592_v32, %v10006_v56  ;;  %v3802_v12 = vsel %vm924_vm12, %v3799_v52, %v3801_v62 }
 0x563   :  { %v10253_v46 = vadd.f32 %v10245_v11, %v11217_v61  ;;  %v7148_v27 = vpop.eup %7147  ;;  %v5594_v39 = vpop.f32.mrb[83].mxu1  ;;  %v4180_v61 = vsel %vm1301_vm9, %v4177_v19, %v4179_v59  ;;  %v3886_v52 = vsel %vm1006_vm8, %v3883_v49, %v3885_v10  ;;  %v3803_v49 = vrot.slane %v10238_v16, 2 }
 0x564   :  { %v5671_v60 = vpop.f32.mrb[113].mxu0  ;;  %v5113_v42 = vadd.f32 -1.0, %v7148_v27  ;;  %v5595_v50 = vadd.f32 %v5594_v39, %v5593_v63  ;;  %6893 = vrot.lane.b32.xlu0 %v6892_v30, %s7212_s24  ;;  %3752 = vrot.lane.b32.xlu1 %v3720_v54, %s7211_s23  ;;  %v6897_v3 = vpack.i.bf16 %v3884_v28, %v4180_v61  ;;  %v3722_v58 = vsel %vm787_vm7, %v3719_v40, %v3721_v21  ;;  %v11256_v28 = vld [vmem:[#allocation15_spill] sm:$0xff] }
 0x565   :  { %v3667_v55 = vrot.slane %v10253_v46, 3  ;;  %v5672_v43 = vadd.f32 %v5671_v60, %v5670_v47  ;;  %v4099_v40 = vrot.slane %v10238_v16, 6  ;;  %v3804_v39 = vsel %vm924_vm12, %v3801_v62, %v3803_v49 }
 0x566   :  { %v10277_v4 = vsel %vm3492_vm15, %v10181_v38, %v5113_v42  ;;  %v3308_v14 = vadd.f32 %v5595_v50, %v10006_v56 }
 0x567   :  { %v10274_v19 = vsel %vm1006_vm8, %v3665_v6, %v3667_v55  ;;  %v10279_v5 = vadd.f32 %v5672_v43, %v3303_v33  ;;  %v3588_v20 = vadd.f32 %v10277_v4, %v11255_v34  ;;  %v5596_v36 = vpop.f32.mrb[84].mxu1  ;;  %v5673_v53 = vpop.f32.mrb[114].mxu0  ;;  %v4182_v6 = vsel %vm1301_vm9, %v4179_v59, %v4181_v1 }
 0x568   :  { %v4019_v37 = vrot.slane %v10274_v19, 5  ;;  %v7150_v38 = vpop.eup %7149  ;;  %v5597_v15 = vpop.f32.mrb[85].mxu1  ;;  %3834 = vrot.lane.b32.xlu0 %v3802_v12, %s7212_s24  ;;  %6898 = vrot.lane.b32.xlu1 %v6897_v3, %s7210_s22  ;;  %v6902_v59 = vpack.i.bf16 %v3886_v52, %v4182_v6  ;;  %v4101_v46 = vrot.slane %v10274_v19, 6  ;;  %v4018_v33 = vsel %vm103_vm0, %v4015_v8, %v4017_v29 }
 0x569   :  { %v3510_v45 = vmin.f32 %v10279_v5, 0.0  ;;  %v5674_v26 = vpop.f32.mrb[115].mxu0  ;;  %v5114_v35 = vadd.f32 -1.0, %v7150_v38  ;;  %v5598_v24 = vadd.f32 %v5597_v15, %v5596_v36  ;;  %v3669_v63 = vrot.slane %v3588_v20, 3 }
 0x56a   :  { %v5675_v44 = vadd.f32 %v5674_v26, %v5673_v53  ;;  %v4020_v54 = vsel %vm103_vm0, %v4017_v29, %v4019_v37  ;;  %v4102_v43 = vsel %vm1219_vm14, %v4099_v40, %v4101_v46  ;;  %v3723_v12 = vrot.slane %v10274_v19, 1 }
 0x56b   :  { %v3534_v32 = vmul.f32 1.442695, %v3510_v45  ;;  %v10306_v47 = vsel %vm3493_vm1, %v10204_v0, %v5114_v35  ;;  %v6907_v50 = vpack.i.bf16 %v4020_v54, %v4018_v33  ;;  %v10331_v3 = vsel %vm1006_vm8, %v3667_v55, %v3669_v63 }
 0x56c   :  { %v10308_v30 = vadd.f32 %v5675_v44, %v3308_v14  ;;  %v10315_v27 = vadd.f32 %v10306_v47, %v11256_v28  ;;  %6903 = vrot.lane.b32.xlu0 %v6902_v59, %s7210_s22  ;;  %3754 = vrot.lane.b32.xlu1 %v3722_v58, %s7211_s23  ;;  %v3887_v8 = vrot.slane %v10274_v19, 3  ;;  %v4183_v62 = vrot.slane %v10274_v19, 7 }
 0x56d   :  { %7151 = vpow2.f32 %v3534_v32  ;;  %v3313_v53 = vadd.f32 %v5598_v24, %v10006_v56  ;;  %v3805_v38 = vrot.slane %v10274_v19, 2  ;;  %v4100_v55 = vsel %vm1219_vm14, %v4097_v25, %v4099_v40 }
 0x56e   :  { %v3511_v0 = vmin.f32 %v10308_v30, 0.0  ;;  %v3671_v60 = vrot.slane %v10315_v27, 3  ;;  %v5599_v61 = vpop.f32.mrb[86].mxu1  ;;  %v5676_v42 = vpop.f32.mrb[116].mxu0  ;;  %v6912_v15 = vpack.i.bf16 %v4102_v43, %v4100_v55  ;;  %v3724_v26 = vsel %vm787_vm7, %v3721_v21, %v3723_v12 }
 0x56f   :  { %v5600_v20 = vpop.f32.mrb[87].mxu1  ;;  %v5677_v36 = vpop.f32.mrb[117].mxu0  ;;  %v3889_v29 = vrot.slane %v10331_v3, 3  ;;  %v3888_v44 = vsel %vm1006_vm8, %v3885_v10, %v3887_v8  ;;  %v4184_v25 = vsel %vm1301_vm9, %v4181_v1, %v4183_v62  ;;  %v4185_v32 = vrot.slane %v10331_v3, 7 }
 0x570   :  { %v3536_v34 = vmul.f32 1.442695, %v3511_v0  ;;  %v5601_v52 = vadd.f32 %v5600_v20, %v5599_v61  ;;  %v5678_v6 = vadd.f32 %v5677_v36, %v5676_v42  ;;  %6908 = vrot.lane.b32.xlu0 %v6907_v50, %s7211_s23  ;;  %3836 = vrot.lane.b32.xlu1 %v3804_v39, %s7212_s24  ;;  %v10349_v35 = vsel %vm1006_vm8, %v3669_v63, %v3671_v60 }
 0x571   :  { %v3806_v63 = vsel %vm924_vm12, %v3803_v49, %v3805_v38  ;;  %v3725_v1 = vrot.slane %v10331_v3, 1  ;;  %v6917_v0 = vpack.i.bf16 %v3888_v44, %v4184_v25  ;;  %v3890_v33 = vsel %vm1006_vm8, %v3887_v8, %v3889_v29  ;;  %v11257_v25 = vld [vmem:[#allocation16_spill] sm:$0xff] }
 0x572   :  { %7153 = vpow2.f32 %v3536_v34  ;;  %v10342_v45 = vadd.f32 %v5678_v6, %v3313_v53  ;;  %v3318_v10 = vadd.f32 %v5601_v52, %v10006_v56  ;;  %v4023_v39 = vrot.slane %v10349_v35, 5 }
 0x573   :  { %v5602_v14 = vpop.f32.mrb[88].mxu1  ;;  %v5679_v24 = vpop.f32.mrb[118].mxu0  ;;  %v4186_v49 = vsel %vm1301_vm9, %v4183_v62, %v4185_v32  ;;  %v4021_v50 = vrot.slane %v10331_v3, 5  ;;  %vm3494_vm4 = vcmp.gt.f32.partialorder %v10279_v5, 0.0  ;;  %vm3495_vm10 = vcmp.gt.f32.partialorder %v10308_v30, 0.0 }
 0x574   :  { %v3512_v59 = vmin.f32 %v10342_v45, 0.0  ;;  %v5603_v21 = vpop.f32.mrb[89].mxu1  ;;  %v5680_v58 = vpop.f32.mrb[119].mxu0  ;;  %6913 = vrot.lane.b32.xlu0 %v6912_v15, %s7212_s24  ;;  %3756 = vrot.lane.b32.xlu1 %v3724_v26, %s7211_s23  ;;  %v3807_v20 = vrot.slane %v10331_v3, 2  ;;  %v4105_v36 = vrot.slane %v10349_v35, 6  ;;  %v10387_v8 = vsel %vm1006_vm8, %v3671_v60, 0.0 }
 0x575   :  { %v5604_v54 = vadd.f32 %v5603_v21, %v5602_v14  ;;  %v5681_v28 = vadd.f32 %v5680_v58, %v5679_v24  ;;  %v6922_v52 = vpack.i.bf16 %v3890_v33, %v4186_v49  ;;  %v3726_v6 = vsel %vm787_vm7, %v3723_v12, %v3725_v1 }
 0x576   :  { %v3538_v40 = vmul.f32 1.442695, %v3512_v59  ;;  %v4022_v60 = vsel %vm103_vm0, %v4019_v37, %v4021_v50  ;;  %v4103_v44 = vrot.slane %v10331_v3, 6  ;;  %v3808_v37 = vsel %vm924_vm12, %v3805_v38, %v3807_v20 }
 0x577   :  { %v7152_v27 = vpop.eup %7151  ;;  %v10370_v42 = vadd.f32 %v5681_v28, %v3318_v10  ;;  %v3323_v15 = vadd.f32 %v5604_v54, %v10006_v56  ;;  %vm3496_vm11 = vcmp.gt.f32.partialorder %v10342_v45, 0.0 }
 0x578   :  { %v5115_v61 = vadd.f32 -1.0, %v7152_v27  ;;  %7155 = vpow2.f32 %v3538_v40  ;;  %3838 = vrot.lane.b32.xlu0 %v3806_v63, %s7212_s24  ;;  %6918 = vrot.lane.b32.xlu1 %v6917_v0, %s7210_s22  ;;  %v4106_v10 = vsel %vm1219_vm14, %v4103_v44, %v4105_v36  ;;  %v3727_v27 = vrot.slane %v10349_v35, 1  ;;  %v11258_v0 = vld [vmem:[#allocation17_spill] sm:$0xff] }
 0x579   :  { %v3513_v34 = vmin.f32 %v10370_v42, 0.0  ;;  %v3891_v40 = vrot.slane %v10349_v35, 3  ;;  %v4104_v49 = vsel %vm1219_vm14, %v4101_v46, %v4103_v44  ;;  %vm3497_vm13 = vcmp.gt.f32.partialorder %v10370_v42, 0.0 }
 0x57a   :  { %v10381_v43 = vsel %vm3494_vm4, %v10279_v5, %v5115_v61  ;;  %v5605_v62 = vpop.f32.mrb[90].mxu1  ;;  %v5682_v53 = vpop.f32.mrb[120].mxu0  ;;  %v4024_v5 = vsel %vm103_vm0, %v4021_v50, %v4023_v39  ;;  %v3809_v50 = vrot.slane %v10349_v35, 2 }
 0x57b   :  { %v3540_v26 = vmul.f32 1.442695, %v3513_v34  ;;  %v5606_v14 = vpop.f32.mrb[91].mxu1  ;;  %v5683_v24 = vpop.f32.mrb[121].mxu0  ;;  %v10402_v59 = vadd.f32 %v10381_v43, %v11257_v25  ;;  %v6927_v63 = vpack.i.bf16 %v4024_v5, %v4022_v60  ;;  %v3893_v5 = vrot.slane %v10387_v8, 3 }
 0x57c   :  { %v7154_v55 = vpop.eup %7153  ;;  %v5607_v21 = vadd.f32 %v5606_v14, %v5605_v62  ;;  %v5684_v58 = vadd.f32 %v5683_v24, %v5682_v53  ;;  %6923 = vrot.lane.b32.xlu0 %v6922_v52, %s7210_s22  ;;  %3758 = vrot.lane.b32.xlu1 %v3726_v6, %s7211_s23  ;;  %v6932_v6 = vpack.i.bf16 %v4106_v10, %v4104_v49  ;;  %v4189_v25 = vrot.slane %v10387_v8, 7 }
 0x57d   :  { %v5116_v12 = vadd.f32 -1.0, %v7154_v55  ;;  %7157 = vpow2.f32 %v3540_v26  ;;  %v3673_v34 = vrot.slane %v10402_v59, 3  ;;  %v3728_v60 = vsel %vm787_vm7, %v3725_v1, %v3727_v27 }
 0x57e   :  { %v10419_v28 = vadd.f32 %v5684_v58, %v3323_v15  ;;  %v3328_v46 = vadd.f32 %v5607_v21, %v10006_v56  ;;  %v3892_v44 = vsel %vm1006_vm8, %v3889_v29, %v3891_v40 }
 0x57f   :  { %v10417_v54 = vsel %vm3495_vm10, %v10308_v30, %v5116_v12  ;;  %v5608_v61 = vpop.f32.mrb[92].mxu1  ;;  %v5685_v38 = vpop.f32.mrb[122].mxu0  ;;  %v4187_v30 = vrot.slane %v10349_v35, 7 }
 0x580   :  { %v3591_v33 = vadd.f32 %v10417_v54, %v11258_v0  ;;  %v3514_v62 = vmin.f32 %v10419_v28, 0.0  ;;  %v5609_v53 = vpop.f32.mrb[93].mxu1  ;;  %v5686_v52 = vpop.f32.mrb[123].mxu0  ;;  %6928 = vrot.lane.b32.xlu0 %v6927_v63, %s7211_s23  ;;  %3840 = vrot.lane.b32.xlu1 %v3808_v37, %s7212_s24  ;;  %v3810_v63 = vsel %vm924_vm12, %v3807_v20, %v3809_v50  ;;  %v11259_v37 = vld [vmem:[#allocation18_spill] sm:$0xff]  ;;  %v3811_v20 = vrot.slane %v10387_v8, 2 }
 0x581   :  { %v5610_v15 = vadd.f32 %v5609_v53, %v5608_v61  ;;  %v5687_v26 = vadd.f32 %v5686_v52, %v5685_v38  ;;  %v4188_v58 = vsel %vm1301_vm9, %v4185_v32, %v4187_v30  ;;  %v3894_v32 = vsel %vm1006_vm8, %v3891_v40, %v3893_v5 }
 0x582   :  { %v3674_v55 = vrot.slane %v3591_v33, 3  ;;  %v7156_v14 = vpop.eup %7155  ;;  %v3542_v24 = vmul.f32 1.442695, %v3514_v62  ;;  %v6937_v61 = vpack.i.bf16 %v3892_v44, %v4188_v58  ;;  %v4190_v38 = vsel %vm1301_vm9, %v4187_v30, %v4189_v25 }
 0x583   :  { %v5117_v12 = vadd.f32 -1.0, %v7156_v14  ;;  %v10448_v21 = vadd.f32 %v5687_v26, %v3328_v46  ;;  %v3333_v62 = vadd.f32 %v5610_v15, %v10006_v56  ;;  %v4025_v40 = vrot.slane %v10387_v8, 5 }
 0x584   :  { %v10446_v59 = vsel %vm1006_vm8, %v3673_v34, %v3674_v55  ;;  %7159 = vpow2.f32 %v3542_v24  ;;  %6933 = vrot.lane.b32.xlu0 %v6932_v6, %s7212_s24  ;;  %3760 = vrot.lane.b32.xlu1 %v3728_v60, %s7211_s23  ;;  %v10476_v30 = vsel %vm1006_vm8, 0.0, %v3673_v34  ;;  %v6942_v15 = vpack.i.bf16 %v3894_v32, %v4190_v38 }
 0x585   :  { %v10457_v29 = vsel %vm3496_vm11, %v10342_v45, %v5117_v12  ;;  %v3515_v1 = vmin.f32 %v10448_v21, 0.0  ;;  %v3729_v45 = vrot.slane %v10387_v8, 1  ;;  %v4028_v25 = vrot.slane %v10446_v59, 5  ;;  %v11260_v12 = vld [vmem:[#allocation19_spill] sm:$0xff] }
 0x586   :  { %v3592_v10 = vadd.f32 %v10457_v29, %v11259_v37  ;;  %v5611_v0 = vpop.f32.mrb[94].mxu1  ;;  %v5688_v33 = vpop.f32.mrb[124].mxu0  ;;  %vm3498_vm15 = vcmp.gt.f32.partialorder %v10419_v28, 0.0  ;;  %v3812_v32 = vsel %vm924_vm12, %v3809_v50, %v3811_v20  ;;  %v4026_v37 = vsel %vm103_vm0, %v4023_v39, %v4025_v40 }
 0x587   :  { %v7158_v49 = vpop.eup %7157  ;;  %v3544_v53 = vmul.f32 1.442695, %v3515_v1  ;;  %v5612_v52 = vpop.f32.mrb[95].mxu1  ;;  %v3730_v1 = vsel %vm787_vm7, %v3727_v27, %v3729_v45  ;;  %v4027_v27 = vrot.slane %v10476_v30, 5  ;;  %vm3499_vm1 = vcmp.gt.f32.partialorder %v10448_v21, 0.0 }
 0x588   :  { %v5689_v6 = vpop.f32.mrb[125].mxu0  ;;  %v3676_v5 = vrot.slane %v3592_v10, 3  ;;  %v5118_v46 = vadd.f32 -1.0, %v7158_v49  ;;  %v5613_v26 = vadd.f32 %v5612_v52, %v5611_v0  ;;  %3842 = vrot.lane.b32.xlu0 %v3810_v63, %s7212_s24  ;;  %6938 = vrot.lane.b32.xlu1 %v6937_v61, %s7210_s22  ;;  %v4110_v49 = vrot.slane %v10446_v59, 6 }
 0x589   :  { %v5690_v14 = vadd.f32 %v5689_v6, %v5688_v33  ;;  %7161 = vpow2.f32 %v3544_v53  ;;  %v3896_v50 = vrot.slane %v10446_v59, 3  ;;  %v4192_v52 = vrot.slane %v10446_v59, 7 }
 0x58a   :  { %v10480_v24 = vsel %vm1006_vm8, %v3674_v55, %v3676_v5  ;;  %v10483_v60 = vsel %vm3497_vm13, %v10370_v42, %v5118_v46  ;;  %v4256_v55 = vsel %vm787_vm7, %v3729_v45, %v11233_v22  ;;  %v3338_v0 = vadd.f32 %v5613_v26, %v10006_v56 }
 0x58b   :  { %v10485_v44 = vadd.f32 %v5690_v14, %v3333_v62  ;;  %v3593_v58 = vadd.f32 %v10483_v60, %v11260_v12  ;;  %v5691_v34 = vpop.f32.mrb[126].mxu0  ;;  %v4029_v45 = vsel %vm103_vm0, %v4027_v27, %v4028_v25  ;;  %v4264_v56 = vsel %vm924_vm12, %v3811_v20, %v11231_v51 }
 0x58c   :  { %v5692_v63 = vpop.f32.mrb[127].mxu0  ;;  %6943 = vrot.lane.b32.xlu0 %v6942_v15, %s7210_s22  ;;  %3762 = vrot.lane.b32.xlu1 %v3730_v1, %s7211_s23  ;;  %v4107_v6 = vrot.slane %v10387_v8, 6  ;;  %v4109_v40 = vrot.slane %v10476_v30, 6  ;;  %v3895_v26 = vrot.slane %v10476_v30, 3  ;;  %v4191_v14 = vrot.slane %v10476_v30, 7  ;;  %v11261_v15 = vld [vmem:[#allocation20_spill] sm:$0xff] }
 0x58d   :  { %v3516_v42 = vmin.f32 %v10485_v44, 0.0  ;;  %v3678_v10 = vrot.slane %v3593_v58, 3  ;;  %v5693_v33 = vadd.f32 %v5692_v63, %v5691_v34  ;;  %v6947_v58 = vpack.i.bf16 %v4029_v45, %v4026_v37 }
 0x58e   :  { %v7160_v61 = vpop.eup %7159  ;;  %v4111_v20 = vsel %vm1219_vm14, %v4109_v40, %v4110_v49  ;;  %v4112_v34 = vrot.slane %v10480_v24, 6  ;;  %v4030_v63 = vrot.slane %v10480_v24, 5  ;;  %v4108_v37 = vsel %vm1219_vm14, %v4105_v36, %v4107_v6  ;;  %v11262_v6 = vld [vmem:[#allocation21_spill] sm:$0xff] }
 0x58f   :  { %v3546_v38 = vmul.f32 1.442695, %v3516_v42  ;;  %v10512_v62 = vsel %vm1006_vm8, %v3676_v5, %v3678_v10  ;;  %v5119_v39 = vadd.f32 -1.0, %v7160_v61  ;;  %v10514_v53 = vadd.f32 %v5693_v33, %v3338_v0 }
 0x590   :  { %4258 = vrot.lane.b32.xlu0 %v4256_v55, %s7211_s23  ;;  %3844 = vrot.lane.b32.xlu1 %v3812_v32, %s7212_s24  ;;  %v4193_v42 = vsel %vm1301_vm9, %v4191_v14, %v4192_v52  ;;  %v3814_v0 = vrot.slane %v10446_v59, 2  ;;  %v6952_v33 = vpack.i.bf16 %v4111_v20, %v4108_v37  ;;  %v3813_v61 = vrot.slane %v10476_v30, 2 }
 0x591   :  { %7163 = vpow2.f32 %v3546_v38  ;;  %v10526_v5 = vsel %vm3498_vm15, %v10419_v28, %v5119_v39  ;;  %v3517_v46 = vmin.f32 %v10514_v53, 0.0  ;;  %v3897_v28 = vsel %vm1006_vm8, %v3895_v26, %v3896_v50 }
 0x592   :  { %v3594_v12 = vadd.f32 %v10526_v5, %v11261_v15  ;;  %v3732_v38 = vrot.slane %v10446_v59, 1  ;;  %v4113_v36 = vsel %vm1219_vm14, %v4110_v49, %v4112_v34  ;;  %v3734_v49 = vrot.slane %v10480_v24, 1 }
 0x593   :  { %v7162_v1 = vpop.eup %7161  ;;  %v3548_v55 = vmul.f32 1.442695, %v3517_v46  ;;  %v3731_v46 = vrot.slane %v10476_v30, 1  ;;  %v3816_v20 = vrot.slane %v10480_v24, 2  ;;  %vm3500_vm4 = vcmp.gt.f32.partialorder %v10485_v44, 0.0 }
 0x594   :  { %v3680_v32 = vrot.slane %v3594_v12, 3  ;;  %v5120_v27 = vadd.f32 -1.0, %v7162_v1  ;;  %6948 = vrot.lane.b32.xlu0 %v6947_v58, %s7211_s23  ;;  %4266 = vrot.lane.b32.xlu1 %v4264_v56, %s7212_s24  ;;  %v6957_v56 = vpack.i.bf16 %v3897_v28, %v4193_v42  ;;  %v3898_v1 = vrot.slane %v10480_v24, 3 }
 0x595   :  { %7165 = vpow2.f32 %v3548_v55  ;;  %v3733_v15 = vsel %vm787_vm7, %v3731_v46, %v3732_v38  ;;  %v3900_v42 = vrot.slane %v10512_v62, 3  ;;  %vm3501_vm10 = vcmp.gt.f32.partialorder %v10514_v53, 0.0 }
 0x596   :  { %v10551_v45 = vsel %vm1006_vm8, %v3678_v10, %v3680_v32  ;;  %v10556_v39 = vsel %vm3499_vm1, %v10448_v21, %v5120_v27  ;;  %v4031_v10 = vsel %vm103_vm0, %v4028_v25, %v4030_v63  ;;  %v3815_v21 = vsel %vm924_vm12, %v3813_v61, %v3814_v0 }
 0x597   :  { %v3595_v40 = vadd.f32 %v10556_v39, %v11262_v6  ;;  %v6967_v14 = vpack.i.bf16 %v4113_v36, %v3815_v21  ;;  %v6962_v58 = vpack.i.bf16 %v4031_v10, %v3733_v15  ;;  %v4194_v25 = vrot.slane %v10480_v24, 7 }
 0x598   :  { %6953 = vrot.lane.b32.xlu0 %v6952_v33, %s7212_s24  ;;  %6958 = vrot.lane.b32.xlu1 %v6957_v56, %s7210_s22  ;;  %v4196_v27 = vrot.slane %v10512_v62, 7  ;;  %v11263_v33 = vld [vmem:[#allocation22_spill] sm:$0xff]  ;;  %v3817_v56 = vsel %vm924_vm12, %v3814_v0, %v3816_v20  ;;  %v3899_v36 = vsel %vm1006_vm8, %v3896_v50, %v3898_v1  ;;  %v4034_v46 = vrot.slane %v10551_v45, 5 }
 0x599   :  { %v3682_v26 = vrot.slane %v3595_v40, 3  ;;  %v4195_v40 = vsel %vm1301_vm9, %v4192_v52, %v4194_v25  ;;  %v4032_v50 = vrot.slane %v10512_v62, 5 }
 0x59b   :  { %v7164_v12 = vpop.eup %7163  ;;  %v10576_v55 = vsel %vm1006_vm8, %v3680_v32, %v3682_v26  ;;  %v3735_v32 = vsel %vm787_vm7, %v3732_v38, %v3734_v49  ;;  %v4197_v38 = vsel %vm1301_vm9, %v4194_v25, %v4196_v27 }
 0x59c   :  { %v5121_v28 = vadd.f32 -1.0, %v7164_v12  ;;  %6968 = vrot.lane.b32.xlu0 %v6967_v14, %s7212_s24  ;;  %6963 = vrot.lane.b32.xlu1 %v6962_v58, %s7211_s23  ;;  %v6972_v14 = vpack.i.bf16 %v3899_v36, %v4195_v40  ;;  %v3628_v12 = vld [vmem:[%s11071_s3 + $0x6f8] sm:$0xff]  ;;  %v3629_v58 = vld [vmem:[%s11071_s3 + $0x700] sm:$0xff] }
 0x59d   :  { %v3613_v40 = vld [vmem:[%s11071_s3 + $0x680] sm:$0xff] }
 0x59e   :  { %v10584_v37 = vsel %vm3500_vm4, %v10485_v44, %v5121_v28  ;;  %v3901_v44 = vsel %vm1006_vm8, %v3898_v1, %v3900_v42  ;;  %v11264_v1 = vld [vmem:[#allocation23_spill] sm:$0xff]  ;;  %v4116_v28 = vrot.slane %v10551_v45, 6 }
 0x59f   :  { %v3596_v61 = vadd.f32 %v10584_v37, %v11263_v33  ;;  %v7166_v6 = vpop.eup %7165  ;;  %v6977_v15 = vpack.i.bf16 %v3901_v44, %v4197_v38 }
 0x5a0   :  { %v5122_v10 = vadd.f32 -1.0, %v7166_v6  ;;  %3766 = vrot.lane.b32.xlu0 %v3735_v32, %s7211_s23  ;;  %3848 = vrot.lane.b32.xlu1 %v3817_v56, %s7212_s24  ;;  %v4114_v32 = vrot.slane %v10512_v62, 6  ;;  %v6198_v56 = vpack.c.bf16 %v3629_v58, %v3628_v12  ;;  %v3612_v6 = vld [vmem:[%s11071_s3 + $0x678] sm:$0xff] }
 0x5a1   :  { %v3684_v0 = vrot.slane %v3596_v61, 3  ;;  %v4033_v61 = vsel %vm103_vm0, %v4030_v63, %v4032_v50  ;;  %v3818_v63 = vrot.slane %v10512_v62, 2  ;;  %v6200_v12 = vpack.c.bf16 %v3613_v40, %v3612_v6  ;;  %v3638_v40 = vld [vmem:[%s11071_s3 + $0x748] sm:$0xff] }
 0x5a2   :  { %v10613_v21 = vsel %vm3501_vm10, %v10514_v53, %v5122_v10  ;;  %v4035_v53 = vsel %vm103_vm0, %v4032_v50, %v4034_v46  ;;  %v4117_v10 = vsel %vm1219_vm14, %v4114_v32, %v4116_v28  ;;  %6199 = vmatprep.subr.bf16.mxu1 %v6198_v56  ;;  %v3634_v50 = vld [vmem:[%s11071_s3 + $0x728] sm:$0xff]  ;;  %v3636_v56 = vld [vmem:[%s11071_s3 + $0x738] sm:$0xff]  ;;  %v4200_v6 = vrot.slane %v10576_v55, 7 }
 0x5a3   :  { %v10610_v52 = vsel %vm1006_vm8, %v3682_v26, %v3684_v0  ;;  %v10623_v25 = vadd.f32 %v10613_v21, %v11264_v1  ;;  %v3736_v26 = vrot.slane %v10512_v62, 1  ;;  %v6982_v36 = vpack.i.bf16 %v4035_v53, %v4033_v61  ;;  %6201 = vmatpush3.bf16.msra.mxu1 %v6200_v12 }
 0x5a4   :  { %6973 = vrot.lane.b32.xlu0 %v6972_v14, %s7210_s22  ;;  %6978 = vrot.lane.b32.xlu1 %v6977_v15, %s7210_s22  ;;  %v3635_v14 = vld [vmem:[%s11071_s3 + $0x730] sm:$0xff]  ;;  %v3820_v15 = vrot.slane %v10551_v45, 2  ;;  %v3902_v1 = vrot.slane %v10551_v45, 3  ;;  %v4198_v53 = vrot.slane %v10551_v45, 7 }
 0x5a5   :  { %v3686_v33 = vrot.slane %v10623_v25, 3  ;;  %v3737_v38 = vsel %vm787_vm7, %v3734_v49, %v3736_v26  ;;  %v4115_v49 = vsel %vm1219_vm14, %v4112_v34, %v4114_v32  ;;  %v6210_v61 = vpack.c.bf16 %v3635_v14, %v3634_v50 }
 0x5a6   :  { %v6987_v58 = vpack.i.bf16 %v4117_v10, %v4115_v49  ;;  %v3819_v34 = vsel %vm924_vm12, %v3816_v20, %v3818_v63  ;;  %v3904_v32 = vrot.slane %v10576_v55, 3  ;;  %v3821_v50 = vsel %vm924_vm12, %v3818_v63, %v3820_v15 }
 0x5a7   :  { %v10646_v44 = vsel %vm1006_vm8, %v3684_v0, %v3686_v33  ;;  %v3738_v0 = vrot.slane %v10551_v45, 1  ;;  %6211 = vmatprep.subr.bf16.mxu0 %v6210_v61  ;;  %v3903_v14 = vsel %vm1006_vm8, %v3900_v42, %v3902_v1  ;;  %v4199_v49 = vsel %vm1301_vm9, %v4196_v27, %v4198_v53  ;;  %v3640_v42 = vld [vmem:[%s11071_s3 + $0x758] sm:$0xff]  ;;  %v3641_v27 = vld [vmem:[%s11071_s3 + $0x760] sm:$0xff] }
 0x5a8   :  { %3768 = vrot.lane.b32.xlu0 %v3737_v38, %s7211_s23  ;;  %6983 = vrot.lane.b32.xlu1 %v6982_v36, %s7211_s23  ;;  %v3637_v36 = vld [vmem:[%s11071_s3 + $0x740] sm:$0xff]  ;;  %v3639_v38 = vld [vmem:[%s11071_s3 + $0x750] sm:$0xff]  ;;  %v3905_v12 = vsel %vm1006_vm8, %v3902_v1, %v3904_v32  ;;  %v6992_v63 = vpack.i.bf16 %v3903_v14, %v4199_v49  ;;  %v3822_v14 = vrot.slane %v10576_v55, 2  ;;  %v4202_v25 = vrot.slane %v10610_v52, 7 }
 0x5a9   :  { %v6214_v10 = vpack.c.bf16 %v3637_v36, %v3636_v56  ;;  %v3739_v20 = vsel %vm787_vm7, %v3736_v26, %v3738_v0  ;;  %6213 = vmatpush3.bf16.msra.mxu0 %v6210_v61  ;;  %v6218_v56 = vpack.c.bf16 %v3639_v38, %v3638_v40  ;;  %v4036_v26 = vrot.slane %v10576_v55, 5 }
 0x5aa   :  { %v4120_v36 = vrot.slane %v10610_v52, 6  ;;  %v6222_v40 = vpack.c.bf16 %v3641_v27, %v3640_v42  ;;  %v3906_v42 = vrot.slane %v10610_v52, 3  ;;  %v4040_v27 = vrot.slane %v10646_v44, 5 }
 0x5ab   :  { %6215 = vmatprep.subr.bf16.mxu0 %v6214_v10  ;;  %v4037_v38 = vsel %vm103_vm0, %v4034_v46, %v4036_v26 }
 0x5ac   :  { %3850 = vrot.lane.b32.xlu0 %v3819_v34, %s7212_s24  ;;  %6988 = vrot.lane.b32.xlu1 %v6987_v58, %s7212_s24  ;;  %v4201_v58 = vsel %vm1301_vm9, %v4198_v53, %v4200_v6  ;;  %v4038_v34 = vrot.slane %v10610_v52, 5  ;;  %v3740_v53 = vrot.slane %v10576_v55, 1 }
 0x5ad   :  { %v6997_v1 = vpack.i.bf16 %v3905_v12, %v4201_v58  ;;  %6217 = vmatpush3.bf16.msra.mxu0 %v6214_v10  ;;  %v10722_v12 = vsel %vm1006_vm8, %v3686_v33, 0.0  ;;  %v3823_v33 = vsel %vm924_vm12, %v3820_v15, %v3822_v14 }
 0x5ae   :  { %v4039_v61 = vsel %vm103_vm0, %v4036_v26, %v4038_v34  ;;  %6219 = vmatprep.subr.bf16.mxu0 %v6218_v56  ;;  %v3741_v10 = vsel %vm787_vm7, %v3738_v0, %v3740_v53  ;;  %v3742_v0 = vrot.slane %v10610_v52, 1  ;;  %v4042_v26 = vrot.slane %v10722_v12, 5 }
 0x5b0   :  { %3770 = vrot.lane.b32.xlu0 %v3739_v20, %s7211_s23  ;;  %3852 = vrot.lane.b32.xlu1 %v3821_v50, %s7212_s24  ;;  %v4118_v20 = vrot.slane %v10576_v55, 6  ;;  %v7002_v50 = vpack.i.bf16 %v4039_v61, %v4037_v38  ;;  %v4203_v61 = vsel %vm1301_vm9, %v4200_v6, %v4202_v25  ;;  %v4043_v15 = vsel %vm103_vm0, %v4040_v27, %v4042_v26 }
 0x5b1   :  { %6221 = vmatpush3.bf16.msra.mxu0 %v6218_v56  ;;  %v3824_v56 = vrot.slane %v10610_v52, 2  ;;  %v4122_v38 = vrot.slane %v10646_v44, 6  ;;  %v3826_v26 = vrot.slane %v10646_v44, 2 }
 0x5b2   :  { %v4121_v49 = vsel %vm1219_vm14, %v4118_v20, %v4120_v36  ;;  %6223 = vmatprep.subr.bf16.mxu0 %v6222_v40  ;;  %v4119_v46 = vsel %vm1219_vm14, %v4116_v28, %v4118_v20  ;;  %v3743_v28 = vsel %vm787_vm7, %v3740_v53, %v3742_v0  ;;  %v4124_v20 = vrot.slane %v10722_v12, 6 }
 0x5b3   :  { %v7007_v58 = vpack.i.bf16 %v4121_v49, %v4119_v46  ;;  %v3961_v49 = vrot.slane %v10148_v57, 4 }
 0x5b4   :  { %6993 = vrot.lane.b32.xlu0 %v6992_v63, %s7210_s22  ;;  %6998 = vrot.lane.b32.xlu1 %v6997_v1, %s7210_s22  ;;  %v3825_v63 = vsel %vm924_vm12, %v3822_v14, %v3824_v56  ;;  %v3907_v1 = vsel %vm1006_vm8, %v3904_v32, %v3906_v42  ;;  %v4123_v32 = vsel %vm1219_vm14, %v4120_v36, %v4122_v38  ;;  %v4204_v14 = vrot.slane %v10646_v44, 7 }
 0x5b5   :  { %6225 = vmatpush3.bf16.msra.mxu0 %v6222_v40  ;;  %v4041_v40 = vsel %vm103_vm0, %v4038_v34, %v4040_v27  ;;  %v4125_v6 = vsel %vm1219_vm14, %v4122_v38, %v4124_v20  ;;  %v3908_v34 = vrot.slane %v10646_v44, 3  ;;  %v3960_v36 = vrot.slane %v10111_v18, 4 }
 0x5b6   :  { %v7017_v53 = vpack.i.bf16 %v4043_v15, %v4041_v40  ;;  %v7022_v27 = vpack.i.bf16 %v4125_v6, %v4123_v32  ;;  %vm7214_vm0 = vmmov 0  }
 0x5b7   :  { %v3962_v38 = vsel %vm1088_vm2, %v3960_v36, %v3961_v49 }
 0x5b8   :  { %3772 = vrot.lane.b32.xlu0 %v3741_v10, %s7211_s23  ;;  %7003 = vrot.lane.b32.xlu1 %v7002_v50, %s7211_s23  ;;  %v7012_v50 = vpack.i.bf16 %v3907_v1, %v4203_v61  ;;  %v3744_v10 = vrot.slane %v10646_v44, 1  ;;  %v3909_v1 = vsel %vm1006_vm8, %v3906_v42, %v3908_v34  ;;  %v4205_v61 = vsel %vm1301_vm9, %v4202_v25, %v4204_v14 }
 0x5b9   :  { %v7027_v32 = vpack.i.bf16 %v3909_v1, %v4205_v61  ;;  %v3746_v42 = vrot.slane %v10722_v12, 1  ;;  %v3828_v25 = vrot.slane %v10722_v12, 2 }
 0x5bb   :  { %v3747_v1 = vsel %vm787_vm7, %v3744_v10, %v3746_v42  ;;  %v3829_v61 = vsel %vm924_vm12, %v3826_v26, %v3828_v25 }
 0x5bc   :  { %3854 = vrot.lane.b32.xlu0 %v3823_v33, %s7212_s24  ;;  %7008 = vrot.lane.b32.xlu1 %v7007_v58, %s7212_s24  ;;  %v3745_v33 = vsel %vm787_vm7, %v3742_v0, %v3744_v10  ;;  %v4257_v10 = vsel %vm787_vm7, %v3746_v42, %v11233_v22 }
 0x5c0   :  { %3774 = vrot.lane.b32.xlu0 %v3743_v28, %s7211_s23  ;;  %3856 = vrot.lane.b32.xlu1 %v3825_v63, %s7212_s24 }
 0x5c4   :  { %7013 = vrot.lane.b32.xlu0 %v7012_v50, %s7210_s22  ;;  %7018 = vrot.lane.b32.xlu1 %v7017_v53, %s7211_s23  ;;  %v6874_v46 = vpop.permute.xlu0 %6873  ;;  %v3827_v53 = vsel %vm924_vm12, %v3824_v56, %v3826_v26  ;;  %v3963_v26 = vrot.slane %v10177_v17, 4 }
 0x5c5   :  { %v6876_v40 = vunpack.i.h.bf16 %v6874_v46  ;;  %v6875_v15 = vunpack.i.l.bf16 %v6874_v46 }
 0x5c6   :  { %v6869_v58 = vpop.permute.xlu1 %6868  ;;  %v3964_v22 = vsel %vm1088_vm2, %v3961_v49, %v3963_v26 }
 0x5c7   :  { %v6871_v28 = vunpack.i.h.bf16 %v6869_v58  ;;  %v6870_v63 = vunpack.i.l.bf16 %v6869_v58  ;;  %v3910_v58 = vrot.slane %v10722_v12, 3 }
 0x5c8   :  { %3776 = vrot.lane.b32.xlu0 %v3745_v33, %s7211_s23  ;;  %7023 = vrot.lane.b32.xlu1 %v7022_v27, %s7212_s24  ;;  %v4206_v33 = vrot.slane %v10722_v12, 7 }
 0x5c9   :  { %v4272_v0 = vsel %vm1451_vm3, %v10111_v18, %v6871_v28  ;;  %v4320_v20 = vsel %vm1451_vm3, %v3962_v38, %v6870_v63  ;;  %v3911_v38 = vsel %vm1006_vm8, %v3908_v34, %v3910_v58  ;;  %v4265_v58 = vsel %vm924_vm12, %v3828_v25, %v11231_v51 }
 0x5ca   :  { %v6879_v50 = vpop.permute.xlu1 %6878  ;;  %v4336_v18 = vsel %vm1468_vm5, %v4320_v20, %v6875_v15  ;;  %v4288_v27 = vsel %vm1468_vm5, %v4272_v0, %v6876_v40 }
 0x5cb   :  { %v6881_v6 = vunpack.i.h.bf16 %v6879_v50  ;;  %v6880_v46 = vunpack.i.l.bf16 %v6879_v50  ;;  %v6884_v28 = vpop.permute.xlu0 %6883  ;;  %v4207_v50 = vsel %vm1301_vm9, %v4204_v14, %v4206_v33  ;;  %vm10968_vm9 = vmpackc.low %vm1451_vm3, %vm1451_vm3 }
 0x5cc   :  { %3858 = vrot.lane.b32.xlu0 %v3827_v53, %s7212_s24  ;;  %7028 = vrot.lane.b32.xlu1 %v7027_v32, %s7210_s22  ;;  %v7032_v20 = vpack.i.bf16 %v3911_v38, %v4207_v50  ;;  %v6886_v42 = vunpack.i.h.bf16 %v6884_v28  ;;  %v6885_v33 = vunpack.i.l.bf16 %v6884_v28 }
 0x5cd   :  { %v4352_v56 = vsel %vm1485_vm6, %v4336_v18, %v6880_v46  ;;  %v4304_v36 = vsel %vm1485_vm6, %v4288_v27, %v6881_v6 }
 0x5ce   :  { %v3751_v63 = vpop.permute.xlu1 %3750  ;;  %4488 = vmatprep.mubr.f32.mxu1 %v4352_v56 }
 0x5cf   :  { %4489 = vmatmul.mubr.f32.vlgmr.msra.gmra.mrb[96].mxu1 %v4304_v36  ;;  %v4273_v40 = vsel %vm1451_vm3, %v10148_v57, %v3751_v63  ;;  %v3965_v57 = vrot.slane %v10210_v13, 4 }
 0x5d0   :  { %3778 = vrot.lane.b32.xlu0 %v3747_v1, %s7211_s23  ;;  %3860 = vrot.lane.b32.xlu1 %v3829_v61, %s7212_s24 }
 0x5d1   :  { %v3966_v49 = vsel %vm1088_vm2, %v3963_v26, %v3965_v57 }
 0x5d2   :  { %v6889_v15 = vpop.permute.xlu0 %6888  ;;  %v3833_v0 = vpop.permute.xlu1 %3832 }
 0x5d3   :  { %v4289_v53 = vsel %vm1468_vm5, %v4273_v40, %v3833_v0  ;;  %v6890_v34 = vunpack.i.l.bf16 %v6889_v15  ;;  %v6891_v6 = vunpack.i.h.bf16 %v6889_v15 }
 0x5d4   :  { %7033 = vrot.lane.b32.xlu0 %v7032_v20, %s7210_s22  ;;  %4260 = vrot.lane.b32.xlu1 %v4257_v10, %s7211_s23  ;;  %v4305_v51 = vsel %vm1485_vm6, %v4289_v53, %v6886_v42 }
 0x5d5   :  { %5903 = vmatprep.mubr.msk.f32.mxu0 %vm1485_vm6, %v4289_v53  ;;  %v4321_v27 = vsel %vm1451_vm3, %v3964_v22, %v6890_v34  ;;  %v4322_v50 = vsel %vm1451_vm3, %v3966_v49, %v6891_v6 }
 0x5d6   :  { %v6894_v14 = vpop.permute.xlu0 %6893  ;;  %v3753_v32 = vpop.permute.xlu1 %3752 }
 0x5d7   :  { %v6895_v46 = vunpack.i.l.bf16 %v6894_v14  ;;  %v6896_v18 = vunpack.i.h.bf16 %v6894_v14  ;;  %v4274_v36 = vsel %vm1451_vm3, %v10177_v17, %v3753_v32  ;;  %v3967_v14 = vrot.slane %v10238_v16, 4 }
 0x5d8   :  { %4268 = vrot.lane.b32.xlu0 %v4265_v58, %s7212_s24  ;;  %v3969_v58 = vrot.slane %v10274_v19, 4 }
 0x5d9   :  { %v4337_v56 = vsel %vm1468_vm5, %v4321_v27, %v6895_v46  ;;  %v4338_v17 = vsel %vm1468_vm5, %v4322_v50, %v6896_v18 }
 0x5da   :  { %v3835_v63 = vpop.permute.xlu0 %3834  ;;  %v6899_v1 = vpop.permute.xlu1 %6898  ;;  %v4353_v61 = vsel %vm1485_vm6, %v4337_v56, %v6885_v33  ;;  %v3968_v33 = vsel %vm1088_vm2, %v3965_v57, %v3967_v14 }
 0x5db   :  { %v4290_v25 = vsel %vm1468_vm5, %v4274_v36, %v3835_v63  ;;  %v6901_v28 = vunpack.i.h.bf16 %v6899_v1  ;;  %v6900_v38 = vunpack.i.l.bf16 %v6899_v1  ;;  %4493 = vmatprep.mubr.f32.mxu1 %v4353_v61 }
 0x5dc   :  { %4494 = vmatmul.mubr.f32.gmra.mrb[98].mxu1 %v4305_v51  ;;  %5904 = vmatmul.mubr.msk.f32.vlgmr.msra.gmra.mrb[128].mxu0 %vm1485_vm6, %v4290_v25 }
 0x5dd   :  { %v4354_v40 = vsel %vm1485_vm6, %v4338_v17, %v6900_v38  ;;  %v4306_v20 = vsel %vm1485_vm6, %v4290_v25, %v6901_v28  ;;  %v3970_v25 = vsel %vm1088_vm2, %v3967_v14, %v3969_v58 }
 0x5de   :  { %v6904_v15 = vpop.permute.xlu0 %6903  ;;  %v3755_v0 = vpop.permute.xlu1 %3754  ;;  %4498 = vmatprep.mubr.f32.mxu1 %v4354_v40 }
 0x5df   :  { %v4275_v53 = vsel %vm1451_vm3, %v10210_v13, %v3755_v0  ;;  %v6906_v18 = vunpack.i.h.bf16 %v6904_v15  ;;  %v6905_v27 = vunpack.i.l.bf16 %v6904_v15 }
 0x5e0   :  { %4499 = vmatmul.mubr.f32.gmra.mrb[100].mxu1 %v4306_v20 }
 0x5e2   :  { %v6909_v10 = vpop.permute.xlu0 %6908  ;;  %v3837_v26 = vpop.permute.xlu1 %3836 }
 0x5e3   :  { %v4291_v34 = vsel %vm1468_vm5, %v4275_v53, %v3837_v26  ;;  %v6910_v32 = vunpack.i.l.bf16 %v6909_v10  ;;  %v6911_v22 = vunpack.i.h.bf16 %v6909_v10 }
 0x5e4   :  { %5906 = vmatprep.mubr.msk.f32.mxu0 %vm1485_vm6, %v4291_v34  ;;  %v4307_v49 = vsel %vm1485_vm6, %v4291_v34, %v6906_v18  ;;  %v3971_v34 = vrot.slane %v10331_v3, 4 }
 0x5e5   :  { %v4323_v56 = vsel %vm1451_vm3, %v3968_v33, %v6910_v32  ;;  %v4324_v50 = vsel %vm1451_vm3, %v3970_v25, %v6911_v22 }
 0x5e6   :  { %v6914_v6 = vpop.permute.xlu0 %6913  ;;  %v3757_v46 = vpop.permute.xlu1 %3756  ;;  %v3972_v33 = vsel %vm1088_vm2, %v3969_v58, %v3971_v34 }
 0x5e7   :  { %v6915_v42 = vunpack.i.l.bf16 %v6914_v6  ;;  %v6916_v13 = vunpack.i.h.bf16 %v6914_v6  ;;  %v4276_v63 = vsel %vm1451_vm3, %v10238_v16, %v3757_v46  ;;  %v3973_v46 = vrot.slane %v10349_v35, 4 }
 0x5e9   :  { %v4339_v36 = vsel %vm1468_vm5, %v4323_v56, %v6915_v42  ;;  %v4340_v16 = vsel %vm1468_vm5, %v4324_v50, %v6916_v13 }
 0x5ea   :  { %v3839_v1 = vpop.permute.xlu0 %3838  ;;  %v6919_v61 = vpop.permute.xlu1 %6918  ;;  %v4355_v51 = vsel %vm1485_vm6, %v4339_v36, %v6905_v27 }
 0x5eb   :  { %v4292_v57 = vsel %vm1468_vm5, %v4276_v63, %v3839_v1  ;;  %v6921_v28 = vunpack.i.h.bf16 %v6919_v61  ;;  %v6920_v38 = vunpack.i.l.bf16 %v6919_v61  ;;  %4503 = vmatprep.mubr.f32.mxu1 %v4355_v51 }
 0x5ec   :  { %4504 = vmatmul.mubr.f32.gmra.mrb[102].mxu1 %v4307_v49  ;;  %5907 = vmatmul.mubr.msk.f32.gmra.mrb[130].mxu0 %vm1485_vm6, %v4292_v57  ;;  %v3974_v49 = vsel %vm1088_vm2, %v3971_v34, %v3973_v46 }
 0x5ed   :  { %v4356_v17 = vsel %vm1485_vm6, %v4340_v16, %v6920_v38  ;;  %v4308_v0 = vsel %vm1485_vm6, %v4292_v57, %v6921_v28 }
 0x5ee   :  { %v6924_v40 = vpop.permute.xlu0 %6923  ;;  %v3759_v15 = vpop.permute.xlu1 %3758  ;;  %4508 = vmatprep.mubr.f32.mxu1 %v4356_v17 }
 0x5ef   :  { %v4277_v20 = vsel %vm1451_vm3, %v10274_v19, %v3759_v15  ;;  %v6926_v18 = vunpack.i.h.bf16 %v6924_v40  ;;  %v6925_v27 = vunpack.i.l.bf16 %v6924_v40 }
 0x5f0   :  { %4509 = vmatmul.mubr.f32.gmra.mrb[104].mxu1 %v4308_v0 }
 0x5f2   :  { %v6929_v53 = vpop.permute.xlu0 %6928  ;;  %v3841_v10 = vpop.permute.xlu1 %3840 }
 0x5f3   :  { %v4293_v26 = vsel %vm1468_vm5, %v4277_v20, %v3841_v10  ;;  %v6930_v14 = vunpack.i.l.bf16 %v6929_v53  ;;  %v6931_v22 = vunpack.i.h.bf16 %v6929_v53 }
 0x5f4   :  { %5909 = vmatprep.mubr.msk.f32.mxu0 %vm1485_vm6, %v4293_v26  ;;  %v4309_v51 = vsel %vm1485_vm6, %v4293_v26, %v6926_v18 }
 0x5f5   :  { %v4325_v13 = vsel %vm1451_vm3, %v3972_v33, %v6930_v14  ;;  %v4326_v28 = vsel %vm1451_vm3, %v3974_v49, %v6931_v22  ;;  %v3975_v14 = vrot.slane %v10387_v8, 4 }
 0x5f6   :  { %v6934_v32 = vpop.permute.xlu0 %6933  ;;  %v3761_v6 = vpop.permute.xlu1 %3760 }
 0x5f7   :  { %v6935_v42 = vunpack.i.l.bf16 %v6934_v32  ;;  %v6936_v19 = vunpack.i.h.bf16 %v6934_v32  ;;  %v4278_v36 = vsel %vm1451_vm3, %v10331_v3, %v3761_v6  ;;  %v3978_v32 = vrot.slane %v10446_v59, 4 }
 0x5f9   :  { %v4341_v56 = vsel %vm1468_vm5, %v4325_v13, %v6935_v42  ;;  %v4342_v3 = vsel %vm1468_vm5, %v4326_v28, %v6936_v19  ;;  %v3976_v19 = vsel %vm1088_vm2, %v3973_v46, %v3975_v14 }
 0x5fa   :  { %v3843_v63 = vpop.permute.xlu0 %3842  ;;  %v6939_v1 = vpop.permute.xlu1 %6938  ;;  %v4357_v61 = vsel %vm1485_vm6, %v4341_v56, %v6925_v27 }
 0x5fb   :  { %v4294_v58 = vsel %vm1468_vm5, %v4278_v36, %v3843_v63  ;;  %v6941_v25 = vunpack.i.h.bf16 %v6939_v1  ;;  %v6940_v57 = vunpack.i.l.bf16 %v6939_v1  ;;  %4513 = vmatprep.mubr.f32.mxu1 %v4357_v61 }
 0x5fc   :  { %4514 = vmatmul.mubr.f32.gmra.mrb[106].mxu1 %v4309_v51  ;;  %5910 = vmatmul.mubr.msk.f32.gmra.mrb[132].mxu0 %vm1485_vm6, %v4294_v58 }
 0x5fd   :  { %v4358_v38 = vsel %vm1485_vm6, %v4342_v3, %v6940_v57  ;;  %v4310_v17 = vsel %vm1485_vm6, %v4294_v58, %v6941_v25 }
 0x5fe   :  { %v6944_v50 = vpop.permute.xlu0 %6943  ;;  %v3763_v16 = vpop.permute.xlu1 %3762  ;;  %4518 = vmatprep.mubr.f32.mxu1 %v4358_v38  ;;  %v3980_v38 = vrot.slane %v10480_v24, 4 }
 0x5ff   :  { %v4279_v40 = vsel %vm1451_vm3, %v10349_v35, %v3763_v16  ;;  %v3977_v35 = vrot.slane %v10476_v30, 4  ;;  %v6945_v56 = vunpack.i.l.bf16 %v6944_v50  ;;  %v6946_v1 = vunpack.i.h.bf16 %v6944_v50 }
 0x600   :  { %4519 = vmatmul.mubr.f32.gmra.mrb[108].mxu1 %v4310_v17 }
 0x601   :  { %v3979_v13 = vsel %vm1088_vm2, %v3977_v35, %v3978_v32 }
 0x602   :  { %v4259_v15 = vpop.permute.xlu0 %4258  ;;  %v3845_v0 = vpop.permute.xlu1 %3844 }
 0x603   :  { %v4295_v20 = vsel %vm1468_vm5, %v4279_v40, %v3845_v0  ;;  %v4368_v53 = vsel %vm1451_vm3, %v10387_v8, %v4259_v15 }
 0x604   :  { %5912 = vmatprep.mubr.msk.f32.mxu0 %vm1485_vm6, %v4295_v20  ;;  %v4311_v46 = vsel %vm1485_vm6, %v4295_v20, %v6946_v1 }
 0x606   :  { %v6949_v10 = vpop.permute.xlu0 %6948  ;;  %v4267_v26 = vpop.permute.xlu1 %4266 }
 0x607   :  { %v4370_v34 = vsel %vm1468_vm5, %v4368_v53, %v4267_v26  ;;  %v6951_v6 = vunpack.i.h.bf16 %v6949_v10  ;;  %v6950_v22 = vunpack.i.l.bf16 %v6949_v10 }
 0x608   :  { %5913 = vmatmul.mubr.msk.f32.gmra.mrb[134].mxu0 %vm1485_vm6, %v4370_v34  ;;  %v3981_v34 = vsel %vm1088_vm2, %v3978_v32, %v3980_v38  ;;  %v3982_v32 = vrot.slane %v10512_v62, 4 }
 0x609   :  { %v4327_v8 = vsel %vm1451_vm3, %v3976_v19, %v6950_v22  ;;  %v4328_v63 = vsel %vm1451_vm3, %v3979_v13, %v6951_v6 }
 0x60a   :  { %v6954_v42 = vpop.permute.xlu0 %6953  ;;  %v6959_v33 = vpop.permute.xlu1 %6958  ;;  %v3983_v1 = vsel %vm1088_vm2, %v3980_v38, %v3982_v32 }
 0x60b   :  { %v6956_v18 = vunpack.i.h.bf16 %v6954_v42  ;;  %v6955_v27 = vunpack.i.l.bf16 %v6954_v42  ;;  %v6960_v36 = vunpack.i.l.bf16 %v6959_v33  ;;  %v6961_v16 = vunpack.i.h.bf16 %v6959_v33 }
 0x60d   :  { %v4343_v61 = vsel %vm1468_vm5, %v4327_v8, %v6955_v27  ;;  %v4344_v51 = vsel %vm1468_vm5, %v4328_v63, %v6956_v18 }
 0x60e   :  { %v6969_v49 = vpop.permute.xlu0 %6968  ;;  %v6964_v58 = vpop.permute.xlu1 %6963  ;;  %v4359_v25 = vsel %vm1485_vm6, %v4343_v61, %v6945_v56  ;;  %v4360_v3 = vsel %vm1485_vm6, %v4344_v51, %v6960_v36 }
 0x60f   :  { %v6970_v57 = vunpack.i.l.bf16 %v6969_v49  ;;  %v6965_v28 = vunpack.i.l.bf16 %v6964_v58  ;;  %4523 = vmatprep.mubr.f32.mxu1 %v4359_v25  ;;  %v6966_v50 = vunpack.i.h.bf16 %v6964_v58  ;;  %v6971_v10 = vunpack.i.h.bf16 %v6969_v49 }
 0x610   :  { %4524 = vmatmul.mubr.f32.gmra.mrb[110].mxu1 %v4311_v46 }
 0x611   :  { %4528 = vmatprep.mubr.f32.mxu1 %v4360_v3  ;;  %v4280_v17 = vsel %vm1451_vm3, %v10476_v30, %v6965_v28  ;;  %v4329_v14 = vsel %vm1451_vm3, %v3981_v34, %v6966_v50 }
 0x612   :  { %v3767_v40 = vpop.permute.xlu0 %3766  ;;  %v3849_v15 = vpop.permute.xlu1 %3848  ;;  %v4296_v0 = vsel %vm1468_vm5, %v4280_v17, %v6970_v57  ;;  %v4345_v42 = vsel %vm1468_vm5, %v4329_v14, %v6971_v10 }
 0x613   :  { %v4281_v53 = vsel %vm1451_vm3, %v10446_v59, %v3767_v40  ;;  %v4312_v20 = vsel %vm1485_vm6, %v4296_v0, %v6961_v16 }
 0x614   :  { %v4297_v26 = vsel %vm1468_vm5, %v4281_v53, %v3849_v15  ;;  %4529 = vmatmul.mubr.f32.gmra.mrb[112].mxu1 %v4312_v20 }
 0x615   :  { %5915 = vmatprep.mubr.msk.f32.mxu0 %vm1485_vm6, %v4297_v26 }
 0x616   :  { %v6974_v30 = vpop.permute.xlu0 %6973  ;;  %v6979_v6 = vpop.permute.xlu1 %6978 }
 0x617   :  { %v6976_v22 = vunpack.i.h.bf16 %v6974_v30  ;;  %v6975_v35 = vunpack.i.l.bf16 %v6974_v30  ;;  %v6980_v61 = vunpack.i.l.bf16 %v6979_v6  ;;  %v6981_v49 = vunpack.i.h.bf16 %v6979_v6 }
 0x618   :  { %v3986_v30 = vrot.slane %v10576_v55, 4 }
 0x619   :  { %v4361_v59 = vsel %vm1485_vm6, %v4345_v42, %v6975_v35  ;;  %v4313_v33 = vsel %vm1485_vm6, %v4297_v26, %v6976_v22 }
 0x61a   :  { %v3769_v18 = vpop.permute.xlu0 %3768  ;;  %v6984_v27 = vpop.permute.xlu1 %6983  ;;  %4533 = vmatprep.mubr.f32.mxu1 %v4361_v59 }
 0x61b   :  { %4534 = vmatmul.mubr.f32.gmra.mrb[114].mxu1 %v4313_v33  ;;  %v6985_v19 = vunpack.i.l.bf16 %v6984_v27  ;;  %v4282_v13 = vsel %vm1451_vm3, %v10480_v24, %v3769_v18  ;;  %v3984_v24 = vrot.slane %v10551_v45, 4  ;;  %v6986_v46 = vunpack.i.h.bf16 %v6984_v27 }
 0x61d   :  { %v4330_v51 = vsel %vm1451_vm3, %v3983_v1, %v6985_v19  ;;  %v3985_v15 = vsel %vm1088_vm2, %v3982_v32, %v3984_v24  ;;  %v3987_v18 = vsel %vm1088_vm2, %v3984_v24, %v3986_v30 }
 0x61e   :  { %v3851_v56 = vpop.permute.xlu0 %3850  ;;  %v6989_v36 = vpop.permute.xlu1 %6988  ;;  %v4331_v20 = vsel %vm1451_vm3, %v3985_v15, %v6986_v46 }
 0x61f   :  { %v4298_v8 = vsel %vm1468_vm5, %v4282_v13, %v3851_v56  ;;  %v6990_v63 = vunpack.i.l.bf16 %v6989_v36  ;;  %v6991_v16 = vunpack.i.h.bf16 %v6989_v36 }
 0x620   :  { %5916 = vmatmul.mubr.msk.f32.gmra.mrb[136].mxu0 %vm1485_vm6, %v4298_v8  ;;  %v4314_v38 = vsel %vm1485_vm6, %v4298_v8, %v6981_v49 }
 0x621   :  { %v4346_v58 = vsel %vm1468_vm5, %v4330_v51, %v6990_v63  ;;  %v4347_v10 = vsel %vm1468_vm5, %v4331_v20, %v6991_v16 }
 0x622   :  { %v3771_v25 = vpop.permute.xlu0 %3770  ;;  %v3853_v57 = vpop.permute.xlu1 %3852  ;;  %v4362_v28 = vsel %vm1485_vm6, %v4346_v58, %v6980_v61 }
 0x623   :  { %v4283_v3 = vsel %vm1451_vm3, %v10512_v62, %v3771_v25  ;;  %4538 = vmatprep.mubr.f32.mxu1 %v4362_v28 }
 0x624   :  { %v4299_v50 = vsel %vm1468_vm5, %v4283_v3, %v3853_v57  ;;  %4539 = vmatmul.mubr.f32.gmra.mrb[116].mxu1 %v4314_v38 }
 0x625   :  { %5918 = vmatprep.mubr.msk.f32.mxu0 %vm1485_vm6, %v4299_v50 }
 0x626   :  { %v6994_v17 = vpop.permute.xlu0 %6993  ;;  %v6999_v40 = vpop.permute.xlu1 %6998 }
 0x627   :  { %v6996_v0 = vunpack.i.h.bf16 %v6994_v17  ;;  %v6995_v53 = vunpack.i.l.bf16 %v6994_v17  ;;  %v7000_v27 = vunpack.i.l.bf16 %v6999_v40  ;;  %v7001_v19 = vunpack.i.h.bf16 %v6999_v40 }
 0x628   :  { %v3990_v17 = vrot.slane %v10646_v44, 4 }
 0x629   :  { %v4363_v62 = vsel %vm1485_vm6, %v4347_v10, %v6995_v53  ;;  %v4315_v26 = vsel %vm1485_vm6, %v4299_v50, %v6996_v0 }
 0x62a   :  { %v3773_v34 = vpop.permute.xlu0 %3772  ;;  %v7004_v14 = vpop.permute.xlu1 %7003  ;;  %4543 = vmatprep.mubr.f32.mxu1 %v4363_v62 }
 0x62b   :  { %4544 = vmatmul.mubr.f32.gmra.mrb[118].mxu1 %v4315_v26  ;;  %v7005_v6 = vunpack.i.l.bf16 %v7004_v14  ;;  %v4284_v22 = vsel %vm1451_vm3, %v10551_v45, %v3773_v34  ;;  %v3988_v45 = vrot.slane %v10610_v52, 4  ;;  %v7006_v63 = vunpack.i.h.bf16 %v7004_v14 }
 0x62d   :  { %v4332_v32 = vsel %vm1451_vm3, %v3987_v18, %v7005_v6  ;;  %v3989_v57 = vsel %vm1088_vm2, %v3986_v30, %v3988_v45  ;;  %v3991_v10 = vsel %vm1088_vm2, %v3988_v45, %v3990_v17 }
 0x62e   :  { %v3855_v35 = vpop.permute.xlu0 %3854  ;;  %v7009_v42 = vpop.permute.xlu1 %7008  ;;  %v4333_v46 = vsel %vm1451_vm3, %v3989_v57, %v7006_v63 }
 0x62f   :  { %v4300_v59 = vsel %vm1468_vm5, %v4284_v22, %v3855_v35  ;;  %v7010_v33 = vunpack.i.l.bf16 %v7009_v42  ;;  %v7011_v51 = vunpack.i.h.bf16 %v7009_v42  ;;  %v3992_v42 = vrot.slane %v10722_v12, 4 }
 0x630   :  { %5919 = vmatmul.mubr.msk.f32.gmra.mrb[138].mxu0 %vm1485_vm6, %v4300_v59  ;;  %v4316_v61 = vsel %vm1485_vm6, %v4300_v59, %v7001_v19 }
 0x631   :  { %v4348_v13 = vsel %vm1468_vm5, %v4332_v32, %v7010_v33  ;;  %v4349_v3 = vsel %vm1468_vm5, %v4333_v46, %v7011_v51  ;;  %v3993_v19 = vsel %vm1088_vm2, %v3990_v17, %v3992_v42 }
 0x632   :  { %v3775_v56 = vpop.permute.xlu0 %3774  ;;  %v3857_v36 = vpop.permute.xlu1 %3856  ;;  %v4364_v8 = vsel %vm1485_vm6, %v4348_v13, %v7000_v27 }
 0x633   :  { %v4285_v1 = vsel %vm1451_vm3, %v10576_v55, %v3775_v56  ;;  %4548 = vmatprep.mubr.f32.mxu1 %v4364_v8 }
 0x634   :  { %v4301_v49 = vsel %vm1468_vm5, %v4285_v1, %v3857_v36  ;;  %4549 = vmatmul.mubr.f32.gmra.mrb[120].mxu1 %v4316_v61 }
 0x635   :  { %5921 = vmatprep.mubr.msk.f32.mxu0 %vm1485_vm6, %v4301_v49 }
 0x636   :  { %v7014_v58 = vpop.permute.xlu0 %7013  ;;  %v7019_v25 = vpop.permute.xlu1 %7018 }
 0x637   :  { %v7016_v28 = vunpack.i.h.bf16 %v7014_v58  ;;  %v7015_v24 = vunpack.i.l.bf16 %v7014_v58  ;;  %v7020_v40 = vunpack.i.l.bf16 %v7019_v25  ;;  %v7021_v59 = vunpack.i.h.bf16 %v7019_v25 }
 0x639   :  { %v4365_v55 = vsel %vm1485_vm6, %v4349_v3, %v7015_v24  ;;  %v4317_v38 = vsel %vm1485_vm6, %v4301_v49, %v7016_v28  ;;  %v4334_v14 = vsel %vm1451_vm3, %v3991_v10, %v7020_v40  ;;  %v4335_v8 = vsel %vm1451_vm3, %v3993_v19, %v7021_v59  ;;  %v7207_v24 = vld [vmem:[%s11073_s4] sm:$0xf] }
 0x63a   :  { %v3777_v16 = vpop.permute.xlu0 %3776  ;;  %v7024_v50 = vpop.permute.xlu1 %7023  ;;  %4553 = vmatprep.mubr.f32.mxu1 %v4365_v55  ;;  %v7213_v49 = vmov 0.0|0.0   ;;  %v4374_v28 = vsub.s32 3, %v7446_v9 }
 0x63b   :  { %4554 = vmatmul.mubr.f32.gmra.mrb[122].mxu1 %v4317_v38  ;;  %v7025_v15 = vunpack.i.l.bf16 %v7024_v50  ;;  %v4286_v0 = vsel %vm1451_vm3, %v10610_v52, %v3777_v16  ;;  %v7026_v18 = vunpack.i.h.bf16 %v7024_v50  ;;  %6226 = vmatprep.subr.bf16.mxu1 %v7213_v49 }
 0x63d   :  { %v4350_v30 = vsel %vm1468_vm5, %v4334_v14, %v7025_v15  ;;  %v4351_v45 = vsel %vm1468_vm5, %v4335_v8, %v7026_v18  ;;  %v11266_v18 = vld [vmem:[#allocation2_spill] sm:$0xff] }
 0x63e   :  { %v3859_v53 = vpop.permute.xlu0 %3858  ;;  %v7029_v20 = vpop.permute.xlu1 %7028 }
 0x63f   :  { %v4302_v62 = vsel %vm1468_vm5, %v4286_v0, %v3859_v53  ;;  %v7031_v26 = vunpack.i.h.bf16 %v7029_v20  ;;  %v7030_v34 = vunpack.i.l.bf16 %v7029_v20 }
 0x640   :  { %5922 = vmatmul.mubr.msk.f32.gmra.mrb[140].mxu0 %vm1485_vm6, %v4302_v62 }
 0x641   :  { %v4366_v6 = vsel %vm1485_vm6, %v4350_v30, %v7030_v34  ;;  %v4318_v22 = vsel %vm1485_vm6, %v4302_v62, %v7031_v26  ;;  %v11265_v34 = vmov 0.0  }
 0x642   :  { %v3779_v35 = vpop.permute.xlu0 %3778  ;;  %v3861_v52 = vpop.permute.xlu1 %3860  ;;  %4558 = vmatprep.mubr.f32.mxu1 %v4366_v6 }
 0x643   :  { %v4287_v33 = vsel %vm1451_vm3, %v10646_v44, %v3779_v35  ;;  %4559 = vmatmul.mubr.f32.gmra.mrb[124].mxu1 %v4318_v22 }
 0x644   :  { %v4303_v27 = vsel %vm1468_vm5, %v4287_v33, %v3861_v52 }
 0x645   :  { %5924 = vmatprep.mubr.msk.f32.mxu0 %vm1485_vm6, %v4303_v27 }
 0x646   :  { %v7034_v32 = vpop.permute.xlu0 %7033  ;;  %v4261_v36 = vpop.permute.xlu1 %4260 }
 0x647   :  { %v7036_v13 = vunpack.i.h.bf16 %v7034_v32  ;;  %v7035_v56 = vunpack.i.l.bf16 %v7034_v32  ;;  %v4369_v1 = vsel %vm1451_vm3, %v10722_v12, %v4261_v36  ;;  %v10954_v12 = vrot.slane %v7207_v24, %v4374_v28 }
 0x649   :  { %v4367_v63 = vsel %vm1485_vm6, %v4351_v45, %v7035_v56  ;;  %v4319_v44 = vsel %vm1485_vm6, %v4303_v27, %v7036_v13  ;;  %v4810_v27 = vadd.f32 %v10079_v7, %v11266_v18 }
 0x64a   :  { %v4269_v61 = vpop.permute.xlu0 %4268  ;;  %4563 = vmatprep.mubr.f32.mxu1 %v4367_v63 }
 0x64b   :  { %v4371_v51 = vsel %vm1468_vm5, %v4369_v1, %v4269_v61  ;;  %4564 = vmatmul.mubr.f32.gmra.mrb[126].mxu1 %v4319_v44 }
 0x64c   :  { %5925 = vmatmul.mubr.msk.f32.gmra.mrb[142].mxu0 %vm1485_vm6, %v4371_v51  ;;  %5959 = vmatprep.mubr.msk.f32.mxu1 %vm7214_vm0, %v11265_v34  ;;  %v11267_v51 = vld [vmem:[#allocation7_spill] sm:$0xff] }
 0x6a2   :  { %v5726_v58 = vpop.f32.mrb[96].mxu1 }
 0x6a3   :  { %v5727_v25 = vpop.f32.mrb[97].mxu1 }
 0x6a4   :  { %v5728_v57 = vadd.f32 %v5727_v25, %v5726_v58  ;;  %v4811_v58 = vadd.f32 %v10117_v23, %v11267_v51  ;;  %v4845_v23 = vld [vmem:[%s11074_s6] sm:$0xff] }
 0x6a6   :  { %v4491_v55 = vadd.f32 %v5728_v57, %v10954_v12 }
 0x6af   :  { %v5729_v46 = vpop.f32.mrb[98].mxu1  ;;  %v5905_v3 = vpop.f32.mrb[128].mxu0 }
 0x6b0   :  { %v5730_v38 = vpop.f32.mrb[99].mxu1  ;;  %v4635_v16 = vpop.f32.mrb[129].mxu0 }
 0x6b1   :  { %v5731_v50 = vadd.f32 %v5730_v38, %v5729_v46  ;;  %v4636_v17 = vadd.f32 %v4635_v16, %v4491_v55  ;;  %v4846_v55 = vld [vmem:[%s11074_s6 + $0x8] sm:$0xff]  ;;  %v4847_v38 = vld [vmem:[%s11074_s6 + $0x10] sm:$0x3] }
 0x6b3   :  { %v4496_v40 = vadd.f32 %v5731_v50, %v10954_v12  ;;  %v4730_v15 = vmin.f32 %v4636_v17, 0.0  ;;  %v5732_v0 = vpop.f32.mrb[100].mxu1  ;;  %vm4714_vm7 = vcmp.gt.f32.partialorder %v4636_v17, 0.0 }
 0x6b4   :  { %v5733_v53 = vpop.f32.mrb[101].mxu1 }
 0x6b5   :  { %v4641_v9 = vadd.f32 %v5905_v3, %v4496_v40  ;;  %v4746_v20 = vmul.f32 1.442695, %v4730_v15  ;;  %v5734_v10 = vadd.f32 %v5733_v53, %v5732_v0  ;;  %v7215_v3 = vmov 0  }
 0x6b6   :  { %7037 = vset.pattern.permute.xlu1 %v7215_v3  ;;  %7038 = vset.pattern.permute.xlu0 %v7215_v3  ;;  %v11272_v3 = vld [vmem:[#allocation12_spill] sm:$0xff] }
 0x6b7   :  { %v4731_v62 = vmin.f32 %v4641_v9, 0.0  ;;  %7167 = vpow2.f32 %v4746_v20  ;;  %v4501_v6 = vadd.f32 %v5734_v10, %v10954_v12  ;;  %vm4715_vm8 = vcmp.gt.f32.partialorder %v4641_v9, 0.0  ;;  %4850 = vperm.xlu1 %7037, %v4845_v23   ;;  %4855 = vperm.xlu0 %7038, %v4846_v55   ;;  %v11273_v55 = vld [vmem:[#allocation13_spill] sm:$0xff] }
 0x6b8   :  { %v4815_v23 = vadd.f32 %v10245_v11, %v11272_v3 }
 0x6b9   :  { %v4748_v26 = vmul.f32 1.442695, %v4731_v62 }
 0x6bb   :  { %7169 = vpow2.f32 %v4748_v26  ;;  %4860 = vperm.xlu1 %7037, %v4847_v38   ;;  %v4814_v38 = vadd.f32 %v10213_v2, %v11273_v55 }
 0x6bf   :  { %v5735_v14 = vpop.f32.mrb[102].mxu1  ;;  %v5908_v30 = vpop.f32.mrb[130].mxu0 }
 0x6c0   :  { %v5736_v22 = vpop.f32.mrb[103].mxu1  ;;  %v4645_v35 = vpop.f32.mrb[131].mxu0 }
 0x6c1   :  { %v7168_v52 = vpop.eup %7167  ;;  %v5737_v42 = vadd.f32 %v5736_v22, %v5735_v14  ;;  %v4646_v59 = vadd.f32 %v4645_v35, %v4501_v6 }
 0x6c2   :  { %v5139_v33 = vadd.f32 -1.0, %v7168_v52  ;;  %v11270_v52 = vld [vmem:[#allocation11_spill] sm:$0xff] }
 0x6c3   :  { %v4506_v32 = vadd.f32 %v5737_v42, %v10954_v12  ;;  %v4732_v19 = vmin.f32 %v4646_v59, 0.0  ;;  %v5738_v13 = vpop.f32.mrb[104].mxu1  ;;  %vm4716_vm12 = vcmp.gt.f32.partialorder %v4646_v59, 0.0  ;;  %v4813_v42 = vadd.f32 %v10190_v31, %v11270_v52 }
 0x6c4   :  { %v4794_v56 = vsel %vm4714_vm7, %v4636_v17, %v5139_v33  ;;  %v5739_v36 = vpop.f32.mrb[105].mxu1 }
 0x6c5   :  { %v7170_v8 = vpop.eup %7169  ;;  %v4826_v45 = vadd.f32 %v4810_v27, %v4794_v56  ;;  %v4651_v63 = vadd.f32 %v5908_v30, %v4506_v32  ;;  %v4750_v44 = vmul.f32 1.442695, %v4732_v19  ;;  %v5740_v1 = vadd.f32 %v5739_v36, %v5738_v13  ;;  %v11271_v27 = vld [vmem:[#allocation8_spill] sm:$0xff] }
 0x6c6   :  { %v5140_v61 = vadd.f32 -1.0, %v7170_v8  ;;  %v4812_v32 = vadd.f32 %v10154_v48, %v11271_v27 }
 0x6c7   :  { %v4733_v25 = vmin.f32 %v4651_v63, 0.0  ;;  %7171 = vpow2.f32 %v4750_v44  ;;  %v4511_v17 = vadd.f32 %v5740_v1, %v10954_v12  ;;  %vm4717_vm14 = vcmp.gt.f32.partialorder %v4651_v63, 0.0 }
 0x6c8   :  { %v4795_v57 = vsel %vm4715_vm8, %v4641_v9, %v5140_v61 }
 0x6c9   :  { %v4827_v7 = vadd.f32 %v4811_v58, %v4795_v57  ;;  %v4752_v28 = vmul.f32 1.442695, %v4733_v25 }
 0x6cb   :  { %v6227_v46 = vpack.c.bf16 %v4827_v7, %v4826_v45  ;;  %7173 = vpow2.f32 %v4752_v28 }
 0x6cd   :  { %6229 = vmatpush3.bf16.xpose.msk.msra.mxu1 %vm10968_vm9, %v6227_v46 }
 0x6ce   :  { %6230 = vmatprep.subr.bf16.mxu1 %v7213_v49 }
 0x6cf   :  { %v5741_v16 = vpop.f32.mrb[106].mxu1  ;;  %v5911_v50 = vpop.f32.mrb[132].mxu0 }
 0x6d0   :  { %v5742_v40 = vpop.f32.mrb[107].mxu1  ;;  %v4655_v15 = vpop.f32.mrb[133].mxu0 }
 0x6d1   :  { %v7172_v0 = vpop.eup %7171  ;;  %v5743_v53 = vadd.f32 %v5742_v40, %v5741_v16  ;;  %v4656_v9 = vadd.f32 %v4655_v15, %v4511_v17 }
 0x6d2   :  { %v5141_v20 = vadd.f32 -1.0, %v7172_v0 }
 0x6d3   :  { %v4516_v10 = vadd.f32 %v5743_v53, %v10954_v12  ;;  %v4734_v62 = vmin.f32 %v4656_v9, 0.0  ;;  %v5744_v26 = vpop.f32.mrb[108].mxu1  ;;  %vm4718_vm2 = vcmp.gt.f32.partialorder %v4656_v9, 0.0 }
 0x6d4   :  { %v5745_v14 = vpop.f32.mrb[109].mxu1  ;;  %v4796_v18 = vsel %vm4716_vm12, %v4646_v59, %v5141_v20 }
 0x6d5   :  { %v7174_v30 = vpop.eup %7173  ;;  %v4661_v6 = vadd.f32 %v5911_v50, %v4516_v10  ;;  %v4754_v22 = vmul.f32 1.442695, %v4734_v62  ;;  %v5746_v35 = vadd.f32 %v5745_v14, %v5744_v26  ;;  %v4828_v56 = vadd.f32 %v4812_v32, %v4796_v18 }
 0x6d6   :  { %v5142_v33 = vadd.f32 -1.0, %v7174_v30 }
 0x6d7   :  { %v4735_v19 = vmin.f32 %v4661_v6, 0.0  ;;  %7175 = vpow2.f32 %v4754_v22  ;;  %v4521_v1 = vadd.f32 %v5746_v35, %v10954_v12  ;;  %vm4719_vm5 = vcmp.gt.f32.partialorder %v4661_v6, 0.0 }
 0x6d8   :  { %v4797_v13 = vsel %vm4717_vm14, %v4651_v63, %v5142_v33 }
 0x6d9   :  { %v4829_v36 = vadd.f32 %v4813_v42, %v4797_v13  ;;  %v4756_v8 = vmul.f32 1.442695, %v4735_v19 }
 0x6db   :  { %v6231_v45 = vpack.c.bf16 %v4829_v36, %v4828_v56  ;;  %7177 = vpow2.f32 %v4756_v8  ;;  %v5914_v44 = vpop.f32.mrb[134].mxu0 }
 0x6dc   :  { %v4665_v61 = vpop.f32.mrb[135].mxu0 }
 0x6dd   :  { %v4666_v51 = vadd.f32 %v4665_v61, %v4521_v1  ;;  %6233 = vmatpush3.bf16.xpose.msk.msra.mxu1 %vm10968_vm9, %v6231_v45  ;;  %v11274_v1 = vld [vmem:[#allocation25_spill] sm:$0xff] }
 0x6de   :  { %6234 = vmatprep.subr.bf16.mxu1 %v7213_v49  ;;  %v4817_v61 = vadd.f32 %v10306_v47, %v11274_v1 }
 0x6df   :  { %v4736_v31 = vmin.f32 %v4666_v51, 0.0  ;;  %vm4720_vm6 = vcmp.gt.f32.partialorder %v4666_v51, 0.0 }
 0x6e1   :  { %v7176_v48 = vpop.eup %7175  ;;  %v4758_v63 = vmul.f32 1.442695, %v4736_v31  ;;  %v11275_v31 = vld [vmem:[#allocation24_spill] sm:$0xff] }
 0x6e2   :  { %v5143_v59 = vadd.f32 -1.0, %v7176_v48  ;;  %v4816_v48 = vadd.f32 %v10277_v4, %v11275_v31  ;;  %v11279_v31 = vld [vmem:[#allocation28_spill] sm:$0xff] }
 0x6e3   :  { %v5747_v58 = vpop.f32.mrb[110].mxu1  ;;  %7179 = vpow2.f32 %v4758_v63 }
 0x6e4   :  { %v5748_v25 = vpop.f32.mrb[111].mxu1  ;;  %v4798_v46 = vsel %vm4718_vm2, %v4656_v9, %v5143_v59 }
 0x6e5   :  { %v7178_v57 = vpop.eup %7177  ;;  %v5749_v7 = vadd.f32 %v5748_v25, %v5747_v58  ;;  %v4830_v15 = vadd.f32 %v4814_v38, %v4798_v46 }
 0x6e6   :  { %v5144_v28 = vadd.f32 -1.0, %v7178_v57 }
 0x6e7   :  { %v4526_v16 = vadd.f32 %v5749_v7, %v10954_v12  ;;  %v5750_v50 = vpop.f32.mrb[112].mxu1 }
 0x6e8   :  { %v4799_v17 = vsel %vm4719_vm5, %v4661_v6, %v5144_v28  ;;  %v5751_v40 = vpop.f32.mrb[113].mxu1 }
 0x6e9   :  { %v4831_v0 = vadd.f32 %v4815_v23, %v4799_v17  ;;  %v4671_v53 = vadd.f32 %v5914_v44, %v4526_v16  ;;  %v5752_v20 = vadd.f32 %v5751_v40, %v5750_v50  ;;  %v11276_v50 = vld [vmem:[#allocation27_spill] sm:$0xff] }
 0x6ea   :  { %v4819_v17 = vadd.f32 %v10417_v54, %v11276_v50 }
 0x6eb   :  { %v6235_v10 = vpack.c.bf16 %v4831_v0, %v4830_v15  ;;  %v4737_v62 = vmin.f32 %v4671_v53, 0.0  ;;  %v4531_v22 = vadd.f32 %v5752_v20, %v10954_v12  ;;  %vm4721_vm11 = vcmp.gt.f32.partialorder %v4671_v53, 0.0 }
 0x6ed   :  { %v4760_v9 = vmul.f32 1.442695, %v4737_v62  ;;  %6237 = vmatpush3.bf16.xpose.msk.msra.mxu1 %vm10968_vm9, %v6235_v10  ;;  %v7180_v14 = vpop.eup %7179 }
 0x6ee   :  { %v5753_v11 = vpop.f32.mrb[114].mxu1  ;;  %6238 = vmatprep.subr.bf16.mxu1 %v7213_v49  ;;  %v5145_v33 = vadd.f32 -1.0, %v7180_v14 }
 0x6ef   :  { %7181 = vpow2.f32 %v4760_v9  ;;  %v5754_v2 = vpop.f32.mrb[115].mxu1 }
 0x6f0   :  { %v5755_v26 = vadd.f32 %v5754_v2, %v5753_v11  ;;  %v4800_v45 = vsel %vm4720_vm6, %v4666_v51, %v5145_v33 }
 0x6f1   :  { %v4832_v58 = vadd.f32 %v4816_v48, %v4800_v45  ;;  %v4820_v48 = vadd.f32 %v10457_v29, %v11279_v31 }
 0x6f2   :  { %v4536_v30 = vadd.f32 %v5755_v26, %v10954_v12 }
 0x6f3   :  { %v5917_v6 = vpop.f32.mrb[136].mxu0 }
 0x6f4   :  { %v4681_v35 = vadd.f32 %v5917_v6, %v4536_v30  ;;  %v4675_v52 = vpop.f32.mrb[137].mxu0 }
 0x6f5   :  { %v4676_v42 = vadd.f32 %v4675_v52, %v4531_v22 }
 0x6f6   :  { %v4739_v18 = vmin.f32 %v4681_v35, 0.0  ;;  %vm4723_vm13 = vcmp.gt.f32.partialorder %v4681_v35, 0.0 }
 0x6f7   :  { %v4738_v27 = vmin.f32 %v4676_v42, 0.0  ;;  %v5756_v32 = vpop.f32.mrb[116].mxu1  ;;  %vm4722_vm15 = vcmp.gt.f32.partialorder %v4676_v42, 0.0 }
 0x6f8   :  { %v4764_v19 = vmul.f32 1.442695, %v4739_v18  ;;  %v5757_v13 = vpop.f32.mrb[117].mxu1 }
 0x6f9   :  { %v7182_v56 = vpop.eup %7181  ;;  %v4762_v36 = vmul.f32 1.442695, %v4738_v27  ;;  %v5758_v8 = vadd.f32 %v5757_v13, %v5756_v32 }
 0x6fa   :  { %v5146_v44 = vadd.f32 -1.0, %v7182_v56  ;;  %7183 = vpow2.f32 %v4764_v19 }
 0x6fb   :  { %7185 = vpow2.f32 %v4762_v36  ;;  %v4541_v46 = vadd.f32 %v5758_v8, %v10954_v12  ;;  %v11278_v36 = vld [vmem:[#allocation29_spill] sm:$0xff] }
 0x6fc   :  { %v4801_v59 = vsel %vm4721_vm11, %v4671_v53, %v5146_v44  ;;  %v11277_v53 = vld [vmem:[#allocation26_spill] sm:$0xff]  ;;  %v4821_v8 = vadd.f32 %v10483_v60, %v11278_v36 }
 0x6fd   :  { %v4833_v63 = vadd.f32 %v4817_v61, %v4801_v59  ;;  %v4818_v20 = vadd.f32 %v10381_v43, %v11277_v53  ;;  %v11280_v53 = vld [vmem:[#allocation10_spill] sm:$0xff] }
 0x6fe   :  { %v5759_v25 = vpop.f32.mrb[118].mxu1 }
 0x6ff   :  { %v5760_v57 = vpop.f32.mrb[119].mxu1  ;;  %v6239_v7 = vpack.c.bf16 %v4833_v63, %v4832_v58 }
 0x700   :  { %v5761_v28 = vadd.f32 %v5760_v57, %v5759_v25 }
 0x701   :  { %6241 = vmatpush3.bf16.xpose.msk.msra.mxu1 %vm10968_vm9, %v6239_v7 }
 0x702   :  { %v4546_v51 = vadd.f32 %v5761_v28, %v10954_v12  ;;  %6242 = vmatprep.subr.bf16.mxu1 %v7213_v49 }
 0x703   :  { %v5920_v47 = vpop.f32.mrb[138].mxu0 }
 0x704   :  { %v7184_v4 = vpop.eup %7183  ;;  %v4691_v3 = vadd.f32 %v5920_v47, %v4546_v51  ;;  %v4685_v23 = vpop.f32.mrb[139].mxu0 }
 0x705   :  { %v7186_v55 = vpop.eup %7185  ;;  %v5148_v38 = vadd.f32 -1.0, %v7184_v4  ;;  %v4686_v16 = vadd.f32 %v4685_v23, %v4541_v46 }
 0x706   :  { %v5147_v40 = vadd.f32 -1.0, %v7186_v55  ;;  %v4741_v15 = vmin.f32 %v4691_v3, 0.0  ;;  %vm4725_vm1 = vcmp.gt.f32.partialorder %v4691_v3, 0.0 }
 0x707   :  { %v4803_v0 = vsel %vm4723_vm13, %v4681_v35, %v5148_v38  ;;  %v4740_v10 = vmin.f32 %v4686_v16, 0.0  ;;  %v5762_v62 = vpop.f32.mrb[120].mxu1  ;;  %vm4724_vm4 = vcmp.gt.f32.partialorder %v4686_v16, 0.0 }
 0x708   :  { %v4835_v9 = vadd.f32 %v4819_v17, %v4803_v0  ;;  %v4802_v11 = vsel %vm4722_vm15, %v4676_v42, %v5147_v40  ;;  %v4768_v2 = vmul.f32 1.442695, %v4741_v15  ;;  %v5763_v26 = vpop.f32.mrb[121].mxu1 }
 0x709   :  { %v4834_v14 = vadd.f32 %v4818_v20, %v4802_v11  ;;  %v4766_v30 = vmul.f32 1.442695, %v4740_v10  ;;  %v5764_v6 = vadd.f32 %v5763_v26, %v5762_v62  ;;  %v4823_v20 = vadd.f32 %v10556_v39, %v11280_v53  ;;  %v11281_v11 = vld [vmem:[#allocation9_spill] sm:$0xff] }
 0x70a   :  { %7187 = vpow2.f32 %v4768_v2  ;;  %v4822_v2 = vadd.f32 %v10526_v5, %v11281_v11 }
 0x70b   :  { %v6243_v22 = vpack.c.bf16 %v4835_v9, %v4834_v14  ;;  %7189 = vpow2.f32 %v4766_v30  ;;  %v4551_v42 = vadd.f32 %v5764_v6, %v10954_v12 }
 0x70d   :  { %6245 = vmatpush3.bf16.xpose.msk.msra.mxu1 %vm10968_vm9, %v6243_v22 }
 0x70e   :  { %v5765_v54 = vpop.f32.mrb[122].mxu1  ;;  %6246 = vmatprep.subr.bf16.mxu1 %v7213_v49 }
 0x70f   :  { %v5766_v35 = vpop.f32.mrb[123].mxu1 }
 0x710   :  { %v5767_v43 = vadd.f32 %v5766_v35, %v5765_v54  ;;  %v11282_v54 = vld [vmem:[#allocation5_spill] sm:$0xff] }
 0x711   :  { %v4824_v35 = vadd.f32 %v10584_v37, %v11282_v54  ;;  %v4843_v37 = vld [vmem:[%s11075_s5 + $0x8] sm:$0xff] }
 0x712   :  { %v4556_v52 = vadd.f32 %v5767_v43, %v10954_v12 }
 0x713   :  { %v5923_v33 = vpop.f32.mrb[140].mxu0 }
 0x714   :  { %v7188_v18 = vpop.eup %7187  ;;  %v4701_v27 = vadd.f32 %v5923_v33, %v4556_v52  ;;  %v4695_v32 = vpop.f32.mrb[141].mxu0 }
 0x715   :  { %v7190_v19 = vpop.eup %7189  ;;  %v5150_v13 = vadd.f32 -1.0, %v7188_v18  ;;  %v4696_v56 = vadd.f32 %v4695_v32, %v4551_v42  ;;  %v4825_v42 = vadd.f32 %v10613_v21, %v9597_v41  ;;  %v4844_v41 = vld [vmem:[%s11075_s5 + $0x10] sm:$0x3] }
 0x716   :  { %v5149_v45 = vadd.f32 -1.0, %v7190_v19  ;;  %v4743_v44 = vmin.f32 %v4701_v27, 0.0  ;;  %v5768_v1 = vpop.f32.mrb[124].mxu1  ;;  %vm4727_vm10 = vcmp.gt.f32.partialorder %v4701_v27, 0.0 }
 0x717   :  { %v4805_v61 = vsel %vm4725_vm1, %v4691_v3, %v5150_v13  ;;  %v4742_v59 = vmin.f32 %v4696_v56, 0.0  ;;  %v5769_v58 = vpop.f32.mrb[125].mxu1  ;;  %vm4726_vm7 = vcmp.gt.f32.partialorder %v4696_v56, 0.0 }
 0x718   :  { %v4837_v63 = vadd.f32 %v4821_v8, %v4805_v61  ;;  %v4804_v25 = vsel %vm4724_vm4, %v4686_v16, %v5149_v45  ;;  %v4772_v57 = vmul.f32 1.442695, %v4743_v44  ;;  %v5770_v7 = vadd.f32 %v5769_v58, %v5768_v1 }
 0x719   :  { %v4836_v28 = vadd.f32 %v4820_v48, %v4804_v25  ;;  %v4770_v51 = vmul.f32 1.442695, %v4742_v59 }
 0x71a   :  { %7191 = vpow2.f32 %v4772_v57  ;;  %v4561_v29 = vadd.f32 %v5770_v7, %v10954_v12 }
 0x71b   :  { %v6247_v47 = vpack.c.bf16 %v4837_v63, %v4836_v28  ;;  %7193 = vpow2.f32 %v4770_v51 }
 0x71d   :  { %6249 = vmatpush3.bf16.xpose.msk.msra.mxu1 %vm10968_vm9, %v6247_v47 }
 0x71e   :  { %v5771_v60 = vpop.f32.mrb[126].mxu1  ;;  %6250 = vmatprep.subr.bf16.mxu1 %v7213_v49 }
 0x71f   :  { %v5772_v46 = vpop.f32.mrb[127].mxu1  ;;  %v5926_v4 = vpop.f32.mrb[142].mxu0 }
 0x720   :  { %v5773_v3 = vadd.f32 %v5772_v46, %v5771_v60  ;;  %v4705_v23 = vpop.f32.mrb[143].mxu0 }
 0x721   :  { %v4706_v55 = vadd.f32 %v4705_v23, %v4561_v29 }
 0x722   :  { %v4566_v38 = vadd.f32 %v5773_v3, %v10954_v12 }
 0x723   :  { %v4744_v16 = vmin.f32 %v4706_v55, 0.0  ;;  %vm4728_vm8 = vcmp.gt.f32.partialorder %v4706_v55, 0.0 }
 0x724   :  { %v7192_v50 = vpop.eup %7191  ;;  %v4711_v17 = vadd.f32 %v5926_v4, %v4566_v38 }
 0x725   :  { %v7194_v40 = vpop.eup %7193  ;;  %v5152_v15 = vadd.f32 -1.0, %v7192_v50  ;;  %v4774_v0 = vmul.f32 1.442695, %v4744_v16 }
 0x726   :  { %v5151_v10 = vadd.f32 -1.0, %v7194_v40  ;;  %v4745_v62 = vmin.f32 %v4711_v17, 0.0  ;;  %vm4729_vm12 = vcmp.gt.f32.partialorder %v4711_v17, 0.0 }
 0x727   :  { %v4807_v9 = vsel %vm4727_vm10, %v4701_v27, %v5152_v15  ;;  %7195 = vpow2.f32 %v4774_v0 }
 0x728   :  { %v4839_v26 = vadd.f32 %v4823_v20, %v4807_v9  ;;  %v4806_v12 = vsel %vm4726_vm7, %v4696_v56, %v5151_v10  ;;  %v4776_v14 = vmul.f32 1.442695, %v4745_v62 }
 0x729   :  { %v4838_v30 = vadd.f32 %v4822_v2, %v4806_v12 }
 0x72a   :  { %7197 = vpow2.f32 %v4776_v14 }
 0x72b   :  { %v6251_v6 = vpack.c.bf16 %v4839_v26, %v4838_v30 }
 0x72d   :  { %6253 = vmatpush3.bf16.xpose.msk.msra.mxu1 %vm10968_vm9, %v6251_v6 }
 0x72e   :  { %6254 = vmatprep.subr.bf16.mxu1 %v7213_v49  ;;  %v4842_v49 = vld [vmem:[%s11075_s5] sm:$0xff] }
 0x731   :  { %v7196_v39 = vpop.eup %7195 }
 0x732   :  { %v5153_v22 = vadd.f32 -1.0, %v7196_v39 }
 0x734   :  { %v7198_v43 = vpop.eup %7197  ;;  %v4808_v5 = vsel %vm4728_vm8, %v4706_v55, %v5153_v22 }
 0x735   :  { %v5154_v52 = vadd.f32 -1.0, %v7198_v43  ;;  %v4840_v33 = vadd.f32 %v4824_v35, %v4808_v5 }
 0x736   :  { %v4851_v21 = vpop.permute.xlu1 %4850  ;;  %v4856_v56 = vpop.permute.xlu0 %4855 }
 0x737   :  { %v4809_v18 = vsel %vm4729_vm12, %v4711_v17, %v5154_v52 }
 0x738   :  { %v4841_v27 = vadd.f32 %v4825_v42, %v4809_v18 }
 0x73a   :  { %v6255_v32 = vpack.c.bf16 %v4841_v27, %v4840_v33  ;;  %v4861_v31 = vpop.permute.xlu1 %4860 }
 0x73c   :  { %6257 = vmatpush3.bf16.xpose.msk.msra.mxu1 %vm10968_vm9, %v6255_v32 }
 0x743   :  { %5960 = vmatmul.mubr.msk.f32.vlgmr.msra.gmra.mrb[128].mxu1 %vm1451_vm3, %v4842_v49 }
 0x744   :  { %5962 = vmatprep.mubr.msk.f32.mxu1 %vm7214_vm0, %v11265_v34 }
 0x747   :  { %5963 = vmatmul.mubr.msk.f32.gmra.mrb[130].mxu1 %vm1451_vm3, %v4843_v37 }
 0x748   :  { %5965 = vmatprep.mubr.msk.f32.mxu1 %vm7214_vm0, %v11265_v34 }
 0x74b   :  { %5966 = vmatmul.mubr.msk.f32.gmra.mrb[132].mxu1 %vm1451_vm3, %v4844_v41 }
 0x816   :  { %v4986_v24 = vpop.f32.mrb[128].mxu1 }
 0x817   :  { %v4987_v19 = vadd.f32 %v4986_v24, %v4851_v21  ;;  %v5961_v13 = vpop.f32.mrb[129].mxu1 }
 0x819   :  { %v5003_v36 = vmin.f32 %v4987_v19, 0.0  ;;  %vm5000_vm3 = vcmp.gt.f32.partialorder %v4987_v19, 0.0 }
 0x81a   :  { %v4991_v8 = vpop.f32.mrb[130].mxu1 }
 0x81b   :  { %v5006_v45 = vmul.f32 1.442695, %v5003_v36  ;;  %v4992_v44 = vadd.f32 %v4991_v8, %v4856_v56  ;;  %v5964_v1 = vpop.f32.mrb[131].mxu1 }
 0x81d   :  { %7199 = vpow2.f32 %v5006_v45  ;;  %v5004_v61 = vmin.f32 %v4992_v44, 0.0  ;;  %vm5001_vm0 = vcmp.gt.f32.partialorder %v4992_v44, 0.0 }
 0x81e   :  { %v4996_v34 = vpop.f32.mrb[132].mxu1 }
 0x81f   :  { %v5008_v48 = vmul.f32 1.442695, %v5004_v61  ;;  %v4997_v59 = vadd.f32 %v4996_v34, %v4861_v31  ;;  %v5967_v58 = vpop.f32.mrb[133].mxu1 }
 0x821   :  { %7201 = vpow2.f32 %v5008_v48  ;;  %v5005_v63 = vmin.f32 %v4997_v59, 0.0  ;;  %vm5002_vm9 = vcmp.gt.f32.partialorder %v4997_v59, 0.0 }
 0x823   :  { %v5010_v25 = vmul.f32 1.442695, %v5005_v63 }
 0x825   :  { %7203 = vpow2.f32 %v5010_v25 }
 0x827   :  { %v7200_v57 = vpop.eup %7199 }
 0x828   :  { %v5174_v7 = vadd.f32 -1.0, %v7200_v57 }
 0x82a   :  { %v5015_v28 = vsel %vm5000_vm3, %v4987_v19, %v5174_v7 }
 0x82b   :  { %v7202_v51 = vpop.eup %7201  ;;  %5018 = vst [vmem:[%s11076_s7] sm:$0xff] %v5015_v28 }
 0x82c   :  { %v5175_v47 = vadd.f32 -1.0, %v7202_v51 }
 0x82e   :  { %v5016_v60 = vsel %vm5001_vm0, %v4992_v44, %v5175_v47 }
 0x82f   :  { %v7204_v46 = vpop.eup %7203  ;;  %5019 = vst [vmem:[%s11076_s7 + $0x8] sm:$0xff] %v5016_v60 }
 0x830   :  { %v5176_v4 = vadd.f32 -1.0, %v7204_v46 }
 0x832   :  { %v5017_v29 = vsel %vm5002_vm9, %v4997_v59, %v5176_v4 }
 0x833   :  { %5020 = vst [vmem:[%s11076_s7 + $0x10] sm:$0x3] %v5017_v29 }

</bundles_post_ra>
